<compile_context>
chip_gen: v7x
topology: tpu7x:2x2x1
jax: 0.10.0
libtpu: 0.0.40
codegen_flags: <defaults>
</compile_context>

<pallas_src>
import jax
import jax.numpy as jnp
from jax.experimental import pallas as pl
from jax.experimental.pallas import tpu as pltpu

# config['Model']['Dimension'] -> image channels; small demo sizes for the rest.
DIM = 4        # input/output channels
BASE = 8       # base_channels (64 in the reference module)
N_PS = 2       # n_ps_blocks
N_RES = 2      # n_res_blocks (16 in the reference module)
BN_EPS = 1e-5


# ------------------------- weight preprocessing ----------------------------- #
def _conv_to_row_toeplitz(w, w_out):
    """(KH, KW, Cin, Cout) HWIO conv weights -> per-dy block-Toeplitz matrices.

    Returns B of shape (KH, w_out*Cin, w_out*Cout) such that, with the image
    laid out lane-dense as rows of length w_out*Cin and vertically zero-padded
    by vpad=(KH-1)//2:
        conv2d(x, w, stride=1, padding='same')[h]  ==  sum_dy x_vpad[h+dy] @ B[dy]
    The horizontal 'same' padding is folded into B (zero-pad taps dropped).
    """
    kh, kw, cin, cout = w.shape
    pad = (kw - 1) // 2
    wp = w_out + kw - 1
    L = kw * cin                    # one kernel row, flattened (dx, ci)
    M = wp * cin                    # one (horizontally padded) image row
    a = jnp.broadcast_to(w.reshape(kh, 1, L, cout), (kh, w_out, L, cout))
    a = jnp.pad(a, ((0, 0), (0, 0), (0, M + cin - L), (0, 0)))
    t = a.reshape(kh, w_out * (M + cin), cout)[:, : w_out * M, :]
    t = t.reshape(kh, w_out, M, cout)                      # t[dy, wo, p*cin+ci, co]
    b_full = jnp.transpose(t, (0, 2, 1, 3)).reshape(kh, M, w_out * cout)
    # drop rows that would multiply the horizontal zero padding
    return b_full[:, pad * cin:(pad + w_out) * cin, :]


def _permute_ps_columns(b_toep, bias_row, wd, c_out):
    """Permute output columns so a PixelShuffle(2) becomes a free reshape.

    Old column order: (wo, c, i, j) with channel co = c*4 + i*2 + j (PyTorch
    PixelShuffle convention).  New order: (i, wo, j, c), i.e. the first half of
    each output row is the even output image row (in flat-NHWC order) and the
    second half the odd row.
    """
    kh, K, N = b_toep.shape
    b = b_toep.reshape(kh, K, wd, c_out, 2, 2)
    b = jnp.transpose(b, (0, 1, 4, 2, 5, 3)).reshape(kh, K, N)
    bias = bias_row.reshape(1, wd, c_out, 2, 2)
    bias = jnp.transpose(bias, (0, 3, 1, 4, 2)).reshape(1, N)
    return b, bias


# ----------------------------- Pallas kernels ------------------------------- #
def _make_conv_kernel(kh, pad, apply_prelu):
    """conv (bf16 MXU) + bias (+ PReLU) on one batch element, f32 epilogue."""

    def kernel(*refs):
        it = iter(refs)
        x_ref = next(it)                               # (1, H, W*Cin) f32
        b_ref = next(it)                               # (KH, W*Cin, W*Cout) bf16
        bias_ref = next(it)                            # (1, W*Cout) f32
        slope_ref = next(it) if apply_prelu else None  # SMEM (1,)
        out_ref = next(it)                             # (1, H, W*Cout) f32
        xpad_ref = next(it)                            # VMEM (H+2*pad, W*Cin) f32

        h = x_ref.shape[1]
        wcin = x_ref.shape[2]
        # Zero only the vertical pad rows; the middle is fully overwritten.
        zrows = jnp.zeros((pad, wcin), xpad_ref.dtype)
        xpad_ref[0:pad, :] = zrows
        xpad_ref[pad + h:pad + h + pad, :] = zrows
        xpad_ref[pad:pad + h, :] = x_ref[0]

        nout = out_ref.shape[2]
        acc = jnp.zeros((h, nout), jnp.float32)
        for dy in range(kh):                           # dy = sublane-only shift
            acc = acc + jnp.dot(xpad_ref[dy:dy + h, :].astype(jnp.bfloat16),
                                b_ref[dy],
                                preferred_element_type=jnp.float32)
        y = acc + bias_ref[...]
        if apply_prelu:
            s = slope_ref[0]
            y = jnp.where(y >= 0.0, y, s * y)
        out_ref[0] = y.astype(out_ref.dtype)

    return kernel


def _res_chain_kernel(x_res_ref, b1_ref, bias1_ref, b2_ref, bias2_ref, slope_ref,
                      out_ref, h_ref, xpad_ref):
    """Fused SRResNet residual chain on one batch element.

    grid = (N, N_RES+1).  For block index j < N_RES:
        h <- h + bn2(conv2(prelu(bn1(conv1(h)))))      (h resident in VMEM)
    For j == N_RES (trailing conv+BN of res_blocks + outer skip):
        out <- x_res + bn(conv(h))
    BN is folded into the weights/biases; matmuls run in bf16, epilogue in f32.
    """
    j = pl.program_id(1)
    last = pl.num_programs(1) - 1
    h = x_res_ref.shape[1]
    wc = x_res_ref.shape[2]

    @pl.when(j == 0)
    def _():
        zrow = jnp.zeros((1, wc), xpad_ref.dtype)
        xpad_ref[0:1, :] = zrow            # vertical pad rows (pad = 1)
        xpad_ref[h + 1:h + 2, :] = zrow
        h_ref[...] = x_res_ref[0]          # chain input = in_layer output

    def conv(inp, b_ref_, bias_row):
        xpad_ref[1:1 + h, :] = inp
        acc = jnp.zeros((h, wc), jnp.float32)
        for dy in range(3):
            acc = acc + jnp.dot(xpad_ref[dy:dy + h, :].astype(jnp.bfloat16),
                                b_ref_[0, dy],
                                preferred_element_type=jnp.float32)
        return acc + bias_row

    @pl.when(j < last)
    def _():
        x = h_ref[...]
        t = conv(x, b1_ref, bias1_ref[0])
        s = slope_ref[j]
        t = jnp.where(t >= 0.0, t, s * t)
        h_ref[...] = conv(t, b2_ref, bias2_ref[0]) + x

    @pl.when(j == last)
    def _():
        y = conv(h_ref[...], b1_ref, bias1_ref[0]) + x_res_ref[0]
        out_ref[0] = y.astype(out_ref.dtype)


# --------------------------- pallas_call wrappers --------------------------- #
def conv2d_lane_dense(x, w, bias, *, slope=None, ps_shuffle=False):
    """x: (N, H, W*Cin) flat-NHWC f32.  w: (KH, KW, Cin, Cout) HWIO.

    conv2d (stride 1, 'same' padding) + bias; optional PReLU(scalar slope);
    optional PixelShuffle(2) fused via output-column permutation (the caller
    then only needs a free row-major reshape).
    """
    n, h, wcin = x.shape
    kh, kw, cin, cout = w.shape
    assert wcin % cin == 0
    wd = wcin // cin
    pad = (kh - 1) // 2

    b_toep = _conv_to_row_toeplitz(w.astype(jnp.float32), wd)
    bias_t = jnp.tile(jnp.asarray(bias, jnp.float32), wd).reshape(1, wd * cout)
    if ps_shuffle:
        assert cout % 4 == 0
        b_toep, bias_t = _permute_ps_columns(b_toep, bias_t, wd, cout // 4)
    b_toep = b_toep.astype(jnp.bfloat16)     # bf16 MXU weights

    apply_prelu = slope is not None
    nout = wd * cout

    in_specs = [
        pl.BlockSpec((1, h, wcin), lambda i: (i, 0, 0)),
        # TODO(synk): at production sizes use pipeline_mode=pl.Buffered(1) for
        # this constant-index weight block and W-tile the Toeplitz.
        pl.BlockSpec((kh, wcin, nout), lambda i: (0, 0, 0)),
        pl.BlockSpec((1, nout), lambda i: (0, 0)),
    ]
    args = [x, b_toep, bias_t]
    if apply_prelu:
        in_specs.append(pl.BlockSpec(memory_space=pltpu.MemorySpace.SMEM))
        args.append(jnp.asarray(slope, jnp.float32).reshape(1))

    return pl.pallas_call(
        _make_conv_kernel(kh, pad, apply_prelu),
        out_shape=jax.ShapeDtypeStruct((n, h, nout), jnp.float32),
        grid=(n,),
        in_specs=in_specs,
        out_specs=pl.BlockSpec((1, h, nout), lambda i: (i, 0, 0)),
        scratch_shapes=[pltpu.VMEM((h + 2 * pad, wcin), jnp.float32)],
        compiler_params=pltpu.CompilerParams(
            dimension_semantics=("parallel",)),
    )(*args)


def res_chain(x_res, res_blocks, tail):
    """ONE pallas_call for the whole residual chain + trailing conv/BN + skip."""
    n, h, wc = x_res.shape
    c = res_blocks[0]['w1'].shape[3]
    wd = wc // c
    n_res = len(res_blocks)

    b1_l, bias1_l, b2_l, bias2_l, slope_l = [], [], [], [], []
    for blk in res_blocks:
        w1 = blk['w1'] * blk['s1'].reshape(1, 1, 1, c)
        w2 = blk['w2'] * blk['s2'].reshape(1, 1, 1, c)
        b1_l.append(_conv_to_row_toeplitz(w1.astype(jnp.float32), wd))
        b2_l.append(_conv_to_row_toeplitz(w2.astype(jnp.float32), wd))
        bias1_l.append(jnp.tile(jnp.asarray(blk['b1'], jnp.float32), wd).reshape(1, wc))
        bias2_l.append(jnp.tile(jnp.asarray(blk['b2'], jnp.float32), wd).reshape(1, wc))
        slope_l.append(jnp.asarray(blk['prelu'], jnp.float32).reshape(()))
    # trailing Conv3x3 + BN occupies block slot n_res (its conv2 slot is unused)
    wt = tail['w'] * tail['s'].reshape(1, 1, 1, c)
    b1_l.append(_conv_to_row_toeplitz(wt.astype(jnp.float32), wd))
    bias1_l.append(jnp.tile(jnp.asarray(tail['b'], jnp.float32), wd).reshape(1, wc))
    b2_l.append(jnp.zeros((3, wc, wc), jnp.float32))
    bias2_l.append(jnp.zeros((1, wc), jnp.float32))
    slope_l.append(jnp.zeros((), jnp.float32))

    b1s = jnp.stack(b1_l).astype(jnp.bfloat16)     # (n_res+1, 3, wc, wc)
    b2s = jnp.stack(b2_l).astype(jnp.bfloat16)
    bias1s = jnp.stack(bias1_l)                     # (n_res+1, 1, wc) f32
    bias2s = jnp.stack(bias2_l)
    slopes = jnp.stack(slope_l)                     # (n_res+1,) f32

    return pl.pallas_call(
        _res_chain_kernel,
        out_shape=jax.ShapeDtypeStruct((n, h, wc), jnp.float32),
        grid=(n, n_res + 1),
        in_specs=[
            pl.BlockSpec((1, h, wc), lambda i, j: (i, 0, 0)),        # x_res (resident over j)
            pl.BlockSpec((1, 3, wc, wc), lambda i, j: (j, 0, 0, 0)),  # conv1 / tail weights
            pl.BlockSpec((1, 1, wc), lambda i, j: (j, 0, 0)),
            pl.BlockSpec((1, 3, wc, wc), lambda i, j: (j, 0, 0, 0)),  # conv2 weights
            pl.BlockSpec((1, 1, wc), lambda i, j: (j, 0, 0)),
            pl.BlockSpec(memory_space=pltpu.MemorySpace.SMEM),        # PReLU slopes
        ],
        out_specs=pl.BlockSpec((1, h, wc), lambda i, j: (i, 0, 0)),
        scratch_shapes=[pltpu.VMEM((h, wc), jnp.float32),          # resident activation
                        pltpu.VMEM((h + 2, wc), jnp.float32)],     # vertical-pad buffer
        compiler_params=pltpu.CompilerParams(
            dimension_semantics=("parallel", "arbitrary")),
    )(x_res, b1s, bias1s, b2s, bias2s, slopes)


# ------------------------------ parameters ---------------------------------- #
def _init_conv(key, kh, kw, cin, cout):
    k1, k2 = jax.random.split(key)
    w = jax.random.normal(k1, (kh, kw, cin, cout), jnp.float32) / jnp.sqrt(kh * kw * cin)
    b = 0.01 * jax.random.normal(k2, (cout,), jnp.float32)
    return w, b


def _init_bn(key, c):
    kg, kb, km, kv = jax.random.split(key, 4)
    gamma = 1.0 + 0.1 * jax.random.normal(kg, (c,), jnp.float32)
    beta = 0.1 * jax.random.normal(kb, (c,), jnp.float32)
    mean = 0.1 * jax.random.normal(km, (c,), jnp.float32)
    var = 1.0 + 0.1 * jax.random.uniform(kv, (c,), jnp.float32)
    return gamma, beta, mean, var


def _fold_bn(conv_bias, bn):
    # TODO(synk): BatchNorm folded with running statistics (eval-mode); training-mode
    # batch statistics are not reproduced.
    gamma, beta, mean, var = bn
    s = gamma / jnp.sqrt(var + BN_EPS)
    b = (conv_bias - mean) * s + beta
    return s, b


def init_generator_params(key):
    keys = iter(jax.random.split(key, 64))
    P = {}
    # in_layer: Conv2d(DIM, BASE, 9, pad=4) + PReLU
    P['in_w'], P['in_b'] = _init_conv(next(keys), 9, 9, DIM, BASE)
    P['in_prelu'] = 0.25
    # residual blocks (standard SRResNet block: conv-bn-prelu-conv-bn + skip)
    res = []
    for _ in range(N_RES):
        w1, b1 = _init_conv(next(keys), 3, 3, BASE, BASE)
        s1, fb1 = _fold_bn(b1, _init_bn(next(keys), BASE))
        w2, b2 = _init_conv(next(keys), 3, 3, BASE, BASE)
        s2, fb2 = _fold_bn(b2, _init_bn(next(keys), BASE))
        res.append(dict(w1=w1, s1=s1, b1=fb1, prelu=0.25, w2=w2, s2=s2, b2=fb2))
    P['res'] = res
    # trailing Conv2d(BASE, BASE, 3, pad=1) + BatchNorm2d in res_blocks
    wt, bt = _init_conv(next(keys), 3, 3, BASE, BASE)
    st, fbt = _fold_bn(bt, _init_bn(next(keys), BASE))
    P['res_tail'] = dict(w=wt, s=st, b=fbt)
    # ps_blocks: Conv2d(BASE, 4*BASE, 3, pad=1) + PixelShuffle(2) + PReLU
    ps = []
    for _ in range(N_PS):
        w, b = _init_conv(next(keys), 3, 3, BASE, 4 * BASE)
        ps.append(dict(w=w, b=b, prelu=0.25))
    P['ps'] = ps
    # out_layer: Conv2d(BASE, DIM, 9, pad=4)
    P['out_w'], P['out_b'] = _init_conv(next(keys), 9, 9, BASE, DIM)
    return P


# ------------------------------- forward ------------------------------------ #
def generator_forward(x_nchw, P):
    n, c, h0, w0 = x_nchw.shape
    x = jnp.transpose(x_nchw, (0, 2, 3, 1)).astype(jnp.float32)   # NCHW -> NHWC
    x = x.reshape(n, h0, w0 * c)                                  # lane-dense flat NHWC

    # in_layer: conv9x9 + PReLU
    x_res = conv2d_lane_dense(x, P['in_w'], P['in_b'], slope=P['in_prelu'])

    # res_blocks + trailing conv/BN + outer skip: one fused pallas_call
    x = res_chain(x_res, P['res'], P['res_tail'])

    # ps_blocks: conv3x3 + PixelShuffle(2) + PReLU.  The scalar-slope PReLU and
    # the PixelShuffle column permutation are fused into the conv kernel; the
    # shuffle itself is now a free row-major reshape.
    wd, hh = w0, h0
    for blk in P['ps']:
        x = conv2d_lane_dense(x, blk['w'], blk['b'], slope=blk['prelu'],
                              ps_shuffle=True)
        hh, wd = hh * 2, wd * 2
        x = x.reshape(n, hh, wd * BASE)          # (N,H,2*Wout*C) -> (N,2H,Wout*C)

    # out_layer: conv9x9, no activation
    x = conv2d_lane_dense(x, P['out_w'], P['out_b'])

    x = x.reshape(n, hh, wd, DIM)
    return jnp.transpose(x, (0, 3, 1, 2))   # NHWC -> NCHW


# ----------------------- pure-JAX reference (for check) --------------------- #
def _conv_ref(x, w, b, pad):
    y = jax.lax.conv_general_dilated(
        x, w, window_strides=(1, 1), padding=((pad, pad), (pad, pad)),
        dimension_numbers=('NHWC', 'HWIO', 'NHWC'),
        precision=jax.lax.Precision.HIGHEST)
    return y + b.reshape(1, 1, 1, -1)


def _prelu_ref(x, slope):
    return jnp.where(x >= 0.0, x, slope * x)


def _pixel_shuffle_ref(x, r):
    n, h, w, c4 = x.shape
    c = c4 // (r * r)
    x = x.reshape(n, h, w, c, r, r)
    x = jnp.transpose(x, (0, 1, 4, 2, 5, 3))
    return x.reshape(n, h * r, w * r, c)


def generator_reference(x_nchw, P):
    x = jnp.transpose(x_nchw, (0, 2, 3, 1)).astype(jnp.float32)
    x_res = _prelu_ref(_conv_ref(x, P['in_w'], P['in_b'], 4), P['in_prelu'])
    h = x_res
    for blk in P['res']:
        t = _prelu_ref(_conv_ref(h, blk['w1'] * blk['s1'], blk['b1'], 1), blk['prelu'])
        t = _conv_ref(t, blk['w2'] * blk['s2'], blk['b2'], 1)
        h = h + t
    tail = P['res_tail']
    x = x_res + _conv_ref(h, tail['w'] * tail['s'], tail['b'], 1)
    for blk in P['ps']:
        x = _prelu_ref(_conv_ref(x, blk['w'], blk['b'], 1), blk['prelu'])
        x = _pixel_shuffle_ref(x, 2)
    x = _conv_ref(x, P['out_w'], P['out_b'], 4)
    return jnp.transpose(x, (0, 3, 1, 2))


if __name__ == "__main__":
    key = jax.random.PRNGKey(0)
    kp, kx = jax.random.split(key)
    params = init_generator_params(kp)
    x = jax.random.normal(kx, (2, DIM, 16, 16), jnp.float32)  # NCHW, like PyTorch

    fwd = jax.jit(generator_forward)
    y = jax.block_until_ready(fwd(x, params))

    up = 2 ** N_PS
    assert y.shape == (2, DIM, 16 * up, 16 * up), y.shape
    assert bool(jnp.isfinite(y).all())

    # numerical check against a pure-JAX/XLA f32 (HIGHEST) reference; the Pallas
    # path runs its matmuls in bf16, so use a relative-error criterion.
    y_ref = jax.block_until_ready(jax.jit(generator_reference)(x, params))
    denom = float(jnp.max(jnp.abs(y_ref))) + 1e-6
    rel = float(jnp.max(jnp.abs(y - y_ref))) / denom
    assert rel < 8e-2, f"max |pallas - reference| / max|reference| = {rel}"

    print("KERNEL_OK")
</pallas_src>

<mosaic_0001>
module attributes {stable_mosaic.version = 11 : i64} {
  func.func @kernel(%arg0: i32, %arg1: memref<1x16x64xf32, #tpu.memory_space<vmem>>, %arg2: memref<9x64x128xbf16, #tpu.memory_space<vmem>>, %arg3: memref<1x128xf32, #tpu.memory_space<vmem>>, %arg4: memref<1xf32, #tpu.memory_space<smem>>, %arg5: memref<1x16x128xf32, #tpu.memory_space<vmem>>, %arg6: memref<24x64xf32, #tpu.memory_space<vmem>>) attributes {dimension_semantics = [#tpu.dimension_semantics<parallel>], iteration_bounds = array<i64: 2>, scalar_prefetch = 0 : i64, scratch_operands = 1 : i64, tpu.core_type = #tpu.core_type<tc>, window_params = [{transform_indices = @transform_0, window_bounds = array<i64: 1, 16, 64>}, {pipeline_mode = #tpu.pipeline_mode<synchronous>, transform_indices = @transform_1, window_bounds = array<i64: 9, 64, 128>}, {pipeline_mode = #tpu.pipeline_mode<synchronous>, transform_indices = @transform_2, window_bounds = array<i64: 1, 128>}, {transform_indices = @transform_3, window_bounds = array<i64: 1>}, {transform_indices = @transform_4, window_bounds = array<i64: 1, 16, 128>}]} {
    %cst = arith.constant 0.000000e+00 : f32
    %0 = vector.broadcast %cst : f32 to vector<4x64xf32>
    %c0 = arith.constant 0 : index
    %c0_0 = arith.constant 0 : index
    %1 = vector.load %arg6[%c0, %c0_0] : memref<24x64xf32, #tpu.memory_space<vmem>>, vector<4x64xf32>
    tpu.vector_store %arg6[%c0, %c0_0], %0 {strides = array<i32>} : memref<24x64xf32, #tpu.memory_space<vmem>>, vector<4x64xf32>,
    %c20 = arith.constant 20 : index
    %c0_1 = arith.constant 0 : index
    %2 = vector.load %arg6[%c20, %c0_1] : memref<24x64xf32, #tpu.memory_space<vmem>>, vector<4x64xf32>
    tpu.vector_store %arg6[%c20, %c0_1], %0 {strides = array<i32>} : memref<24x64xf32, #tpu.memory_space<vmem>>, vector<4x64xf32>,
    %c0_2 = arith.constant 0 : index
    %c0_3 = arith.constant 0 : index
    %c0_4 = arith.constant 0 : index
    %3 = vector.load %arg1[%c0_2, %c0_3, %c0_4] : memref<1x16x64xf32, #tpu.memory_space<vmem>>, vector<1x16x64xf32>
    %4 = vector.shape_cast %3 : vector<1x16x64xf32> to vector<16x64xf32>
    %c4 = arith.constant 4 : index
    %c0_5 = arith.constant 0 : index
    %5 = vector.load %arg6[%c4, %c0_5] : memref<24x64xf32, #tpu.memory_space<vmem>>, vector<16x64xf32>
    tpu.vector_store %arg6[%c4, %c0_5], %4 {strides = array<i32>} : memref<24x64xf32, #tpu.memory_space<vmem>>, vector<16x64xf32>,
    %cst_6 = arith.constant 0.000000e+00 : f32
    %6 = vector.broadcast %cst_6 : f32 to vector<16x128xf32>
    %c0_7 = arith.constant 0 : index
    %c0_8 = arith.constant 0 : index
    %7 = vector.load %arg6[%c0_7, %c0_8] : memref<24x64xf32, #tpu.memory_space<vmem>>, vector<16x64xf32>
    %8 = arith.truncf %7 : vector<16x64xf32> to vector<16x64xbf16>
    %c0_9 = arith.constant 0 : index
    %c0_10 = arith.constant 0 : index
    %c0_11 = arith.constant 0 : index
    %9 = vector.load %arg2[%c0_9, %c0_10, %c0_11] : memref<9x64x128xbf16, #tpu.memory_space<vmem>>, vector<1x64x128xbf16>
    %10 = vector.shape_cast %9 : vector<1x64x128xbf16> to vector<64x128xbf16>
    %cst_12 = arith.constant dense<0.000000e+00> : vector<16x128xf32>
    %11 = tpu.matmul %8, %10, %cst_12 {dimension_numbers = #tpu.dot_dimension_numbers<[1], [0], [0], [1], [0, 0, 1, 1], [], []>} : vector<16x64xbf16>, vector<64x128xbf16>, vector<16x128xf32> -> vector<16x128xf32>
    %12 = arith.addf %6, %11 : vector<16x128xf32>
    %c1 = arith.constant 1 : index
    %c0_13 = arith.constant 0 : index
    %13 = vector.load %arg6[%c1, %c0_13] : memref<24x64xf32, #tpu.memory_space<vmem>>, vector<16x64xf32>
    %14 = arith.truncf %13 : vector<16x64xf32> to vector<16x64xbf16>
    %c1_14 = arith.constant 1 : index
    %c0_15 = arith.constant 0 : index
    %c0_16 = arith.constant 0 : index
    %15 = vector.load %arg2[%c1_14, %c0_15, %c0_16] : memref<9x64x128xbf16, #tpu.memory_space<vmem>>, vector<1x64x128xbf16>
    %16 = vector.shape_cast %15 : vector<1x64x128xbf16> to vector<64x128xbf16>
    %cst_17 = arith.constant dense<0.000000e+00> : vector<16x128xf32>
    %17 = tpu.matmul %14, %16, %cst_17 {dimension_numbers = #tpu.dot_dimension_numbers<[1], [0], [0], [1], [0, 0, 1, 1], [], []>} : vector<16x64xbf16>, vector<64x128xbf16>, vector<16x128xf32> -> vector<16x128xf32>
    %18 = arith.addf %12, %17 : vector<16x128xf32>
    %c2 = arith.constant 2 : index
    %c0_18 = arith.constant 0 : index
    %19 = vector.load %arg6[%c2, %c0_18] : memref<24x64xf32, #tpu.memory_space<vmem>>, vector<16x64xf32>
    %20 = arith.truncf %19 : vector<16x64xf32> to vector<16x64xbf16>
    %c2_19 = arith.constant 2 : index
    %c0_20 = arith.constant 0 : index
    %c0_21 = arith.constant 0 : index
    %21 = vector.load %arg2[%c2_19, %c0_20, %c0_21] : memref<9x64x128xbf16, #tpu.memory_space<vmem>>, vector<1x64x128xbf16>
    %22 = vector.shape_cast %21 : vector<1x64x128xbf16> to vector<64x128xbf16>
    %cst_22 = arith.constant dense<0.000000e+00> : vector<16x128xf32>
    %23 = tpu.matmul %20, %22, %cst_22 {dimension_numbers = #tpu.dot_dimension_numbers<[1], [0], [0], [1], [0, 0, 1, 1], [], []>} : vector<16x64xbf16>, vector<64x128xbf16>, vector<16x128xf32> -> vector<16x128xf32>
    %24 = arith.addf %18, %23 : vector<16x128xf32>
    %c3 = arith.constant 3 : index
    %c0_23 = arith.constant 0 : index
    %25 = vector.load %arg6[%c3, %c0_23] : memref<24x64xf32, #tpu.memory_space<vmem>>, vector<16x64xf32>
    %26 = arith.truncf %25 : vector<16x64xf32> to vector<16x64xbf16>
    %c3_24 = arith.constant 3 : index
    %c0_25 = arith.constant 0 : index
    %c0_26 = arith.constant 0 : index
    %27 = vector.load %arg2[%c3_24, %c0_25, %c0_26] : memref<9x64x128xbf16, #tpu.memory_space<vmem>>, vector<1x64x128xbf16>
    %28 = vector.shape_cast %27 : vector<1x64x128xbf16> to vector<64x128xbf16>
    %cst_27 = arith.constant dense<0.000000e+00> : vector<16x128xf32>
    %29 = tpu.matmul %26, %28, %cst_27 {dimension_numbers = #tpu.dot_dimension_numbers<[1], [0], [0], [1], [0, 0, 1, 1], [], []>} : vector<16x64xbf16>, vector<64x128xbf16>, vector<16x128xf32> -> vector<16x128xf32>
    %30 = arith.addf %24, %29 : vector<16x128xf32>
    %c4_28 = arith.constant 4 : index
    %c0_29 = arith.constant 0 : index
    %31 = vector.load %arg6[%c4_28, %c0_29] : memref<24x64xf32, #tpu.memory_space<vmem>>, vector<16x64xf32>
    %32 = arith.truncf %31 : vector<16x64xf32> to vector<16x64xbf16>
    %c4_30 = arith.constant 4 : index
    %c0_31 = arith.constant 0 : index
    %c0_32 = arith.constant 0 : index
    %33 = vector.load %arg2[%c4_30, %c0_31, %c0_32] : memref<9x64x128xbf16, #tpu.memory_space<vmem>>, vector<1x64x128xbf16>
    %34 = vector.shape_cast %33 : vector<1x64x128xbf16> to vector<64x128xbf16>
    %cst_33 = arith.constant dense<0.000000e+00> : vector<16x128xf32>
    %35 = tpu.matmul %32, %34, %cst_33 {dimension_numbers = #tpu.dot_dimension_numbers<[1], [0], [0], [1], [0, 0, 1, 1], [], []>} : vector<16x64xbf16>, vector<64x128xbf16>, vector<16x128xf32> -> vector<16x128xf32>
    %36 = arith.addf %30, %35 : vector<16x128xf32>
    %c5 = arith.constant 5 : index
    %c0_34 = arith.constant 0 : index
    %37 = vector.load %arg6[%c5, %c0_34] : memref<24x64xf32, #tpu.memory_space<vmem>>, vector<16x64xf32>
    %38 = arith.truncf %37 : vector<16x64xf32> to vector<16x64xbf16>
    %c5_35 = arith.constant 5 : index
    %c0_36 = arith.constant 0 : index
    %c0_37 = arith.constant 0 : index
    %39 = vector.load %arg2[%c5_35, %c0_36, %c0_37] : memref<9x64x128xbf16, #tpu.memory_space<vmem>>, vector<1x64x128xbf16>
    %40 = vector.shape_cast %39 : vector<1x64x128xbf16> to vector<64x128xbf16>
    %cst_38 = arith.constant dense<0.000000e+00> : vector<16x128xf32>
    %41 = tpu.matmul %38, %40, %cst_38 {dimension_numbers = #tpu.dot_dimension_numbers<[1], [0], [0], [1], [0, 0, 1, 1], [], []>} : vector<16x64xbf16>, vector<64x128xbf16>, vector<16x128xf32> -> vector<16x128xf32>
    %42 = arith.addf %36, %41 : vector<16x128xf32>
    %c6 = arith.constant 6 : index
    %c0_39 = arith.constant 0 : index
    %43 = vector.load %arg6[%c6, %c0_39] : memref<24x64xf32, #tpu.memory_space<vmem>>, vector<16x64xf32>
    %44 = arith.truncf %43 : vector<16x64xf32> to vector<16x64xbf16>
    %c6_40 = arith.constant 6 : index
    %c0_41 = arith.constant 0 : index
    %c0_42 = arith.constant 0 : index
    %45 = vector.load %arg2[%c6_40, %c0_41, %c0_42] : memref<9x64x128xbf16, #tpu.memory_space<vmem>>, vector<1x64x128xbf16>
    %46 = vector.shape_cast %45 : vector<1x64x128xbf16> to vector<64x128xbf16>
    %cst_43 = arith.constant dense<0.000000e+00> : vector<16x128xf32>
    %47 = tpu.matmul %44, %46, %cst_43 {dimension_numbers = #tpu.dot_dimension_numbers<[1], [0], [0], [1], [0, 0, 1, 1], [], []>} : vector<16x64xbf16>, vector<64x128xbf16>, vector<16x128xf32> -> vector<16x128xf32>
    %48 = arith.addf %42, %47 : vector<16x128xf32>
    %c7 = arith.constant 7 : index
    %c0_44 = arith.constant 0 : index
    %49 = vector.load %arg6[%c7, %c0_44] : memref<24x64xf32, #tpu.memory_space<vmem>>, vector<16x64xf32>
    %50 = arith.truncf %49 : vector<16x64xf32> to vector<16x64xbf16>
    %c7_45 = arith.constant 7 : index
    %c0_46 = arith.constant 0 : index
    %c0_47 = arith.constant 0 : index
    %51 = vector.load %arg2[%c7_45, %c0_46, %c0_47] : memref<9x64x128xbf16, #tpu.memory_space<vmem>>, vector<1x64x128xbf16>
    %52 = vector.shape_cast %51 : vector<1x64x128xbf16> to vector<64x128xbf16>
    %cst_48 = arith.constant dense<0.000000e+00> : vector<16x128xf32>
    %53 = tpu.matmul %50, %52, %cst_48 {dimension_numbers = #tpu.dot_dimension_numbers<[1], [0], [0], [1], [0, 0, 1, 1], [], []>} : vector<16x64xbf16>, vector<64x128xbf16>, vector<16x128xf32> -> vector<16x128xf32>
    %54 = arith.addf %48, %53 : vector<16x128xf32>
    %c8 = arith.constant 8 : index
    %c0_49 = arith.constant 0 : index
    %55 = vector.load %arg6[%c8, %c0_49] : memref<24x64xf32, #tpu.memory_space<vmem>>, vector<16x64xf32>
    %56 = arith.truncf %55 : vector<16x64xf32> to vector<16x64xbf16>
    %c8_50 = arith.constant 8 : index
    %c0_51 = arith.constant 0 : index
    %c0_52 = arith.constant 0 : index
    %57 = vector.load %arg2[%c8_50, %c0_51, %c0_52] : memref<9x64x128xbf16, #tpu.memory_space<vmem>>, vector<1x64x128xbf16>
    %58 = vector.shape_cast %57 : vector<1x64x128xbf16> to vector<64x128xbf16>
    %cst_53 = arith.constant dense<0.000000e+00> : vector<16x128xf32>
    %59 = tpu.matmul %56, %58, %cst_53 {dimension_numbers = #tpu.dot_dimension_numbers<[1], [0], [0], [1], [0, 0, 1, 1], [], []>} : vector<16x64xbf16>, vector<64x128xbf16>, vector<16x128xf32> -> vector<16x128xf32>
    %60 = arith.addf %54, %59 : vector<16x128xf32>
    %c0_54 = arith.constant 0 : index
    %c0_55 = arith.constant 0 : index
    %61 = vector.load %arg3[%c0_54, %c0_55] : memref<1x128xf32, #tpu.memory_space<vmem>>, vector<1x128xf32>
    %62 = vector.broadcast %61 : vector<1x128xf32> to vector<16x128xf32>
    %63 = arith.addf %60, %62 : vector<16x128xf32>
    %c0_56 = arith.constant 0 : index
    %64 = memref.load %arg4[%c0_56] : memref<1xf32, #tpu.memory_space<smem>>
    %cst_57 = arith.constant 0.000000e+00 : f32
    %65 = vector.broadcast %cst_57 : f32 to vector<16x128xf32>
    %66 = arith.cmpf oge, %63, %65 : vector<16x128xf32>
    %67 = vector.broadcast %64 : f32 to vector<16x128xf32>
    %68 = arith.mulf %67, %63 : vector<16x128xf32>
    %69 = arith.select %66, %63, %68 : vector<16x128xi1>, vector<16x128xf32>
    %c0_58 = arith.constant 0 : index
    %c0_59 = arith.constant 0 : index
    %c0_60 = arith.constant 0 : index
    %70 = vector.load %arg5[%c0_58, %c0_59, %c0_60] : memref<1x16x128xf32, #tpu.memory_space<vmem>>, vector<1x16x128xf32>
    %71 = vector.shape_cast %70 : vector<1x16x128xf32> to vector<16x128xf32>
    %72 = vector.shape_cast %69 : vector<16x128xf32> to vector<1x16x128xf32>
    tpu.vector_store %arg5[%c0_58, %c0_59, %c0_60], %72 {strides = array<i32>} : memref<1x16x128xf32, #tpu.memory_space<vmem>>, vector<1x16x128xf32>,
    return
  }
  func.func @transform_0(%arg0: i32) -> (i32, i32, i32) {
    %c0_i32 = arith.constant 0 : i32
    %c0_i32_0 = arith.constant 0 : i32
    %c0_i32_1 = arith.constant 0 : i32
    return %arg0, %c0_i32, %c0_i32_0 : i32, i32, i32
  }
  func.func @transform_1(%arg0: i32) -> (i32, i32, i32) {
    %c0_i32 = arith.constant 0 : i32
    %c0_i32_0 = arith.constant 0 : i32
    %c0_i32_1 = arith.constant 0 : i32
    %c0_i32_2 = arith.constant 0 : i32
    return %c0_i32, %c0_i32_0, %c0_i32_1 : i32, i32, i32
  }
  func.func @transform_2(%arg0: i32) -> (i32, i32) {
    %c0_i32 = arith.constant 0 : i32
    %c0_i32_0 = arith.constant 0 : i32
    %c0_i32_1 = arith.constant 0 : i32
    return %c0_i32, %c0_i32_0 : i32, i32
  }
  func.func @transform_3(%arg0: i32) -> i32 {
    %c0_i32 = arith.constant 0 : i32
    %c0_i32_0 = arith.constant 0 : i32
    return %c0_i32 : i32
  }
  func.func @transform_4(%arg0: i32) -> (i32, i32, i32) {
    %c0_i32 = arith.constant 0 : i32
    %c0_i32_0 = arith.constant 0 : i32
    %c0_i32_1 = arith.constant 0 : i32
    return %arg0, %c0_i32, %c0_i32_0 : i32, i32, i32
  }
}

module attributes {stable_mosaic.version = 11 : i64} {
  func.func @_res_chain_kernel(%arg0: i32, %arg1: i32, %arg2: memref<1x16x128xf32, #tpu.memory_space<vmem>>, %arg3: memref<1x3x128x128xbf16, #tpu.memory_space<vmem>>, %arg4: memref<1x1x128xf32, #tpu.memory_space<vmem>>, %arg5: memref<1x3x128x128xbf16, #tpu.memory_space<vmem>>, %arg6: memref<1x1x128xf32, #tpu.memory_space<vmem>>, %arg7: memref<3xf32, #tpu.memory_space<smem>>, %arg8: memref<1x16x128xf32, #tpu.memory_space<vmem>>, %arg9: memref<16x128xf32, #tpu.memory_space<vmem>>, %arg10: memref<18x128xf32, #tpu.memory_space<vmem>>) attributes {dimension_semantics = [#tpu.dimension_semantics<parallel>, #tpu.dimension_semantics<arbitrary>], iteration_bounds = array<i64: 2, 3>, scalar_prefetch = 0 : i64, scratch_operands = 2 : i64, tpu.core_type = #tpu.core_type<tc>, window_params = [{transform_indices = @transform_0, window_bounds = array<i64: 1, 16, 128>}, {transform_indices = @transform_1, window_bounds = array<i64: 1, 3, 128, 128>}, {transform_indices = @transform_2, window_bounds = array<i64: 1, 1, 128>}, {transform_indices = @transform_3, window_bounds = array<i64: 1, 3, 128, 128>}, {transform_indices = @transform_4, window_bounds = array<i64: 1, 1, 128>}, {transform_indices = @transform_5, window_bounds = array<i64: 3>}, {transform_indices = @transform_6, window_bounds = array<i64: 1, 16, 128>}]} {
    %c0_i32 = arith.constant 0 : i32
    %0 = arith.cmpi eq, %arg1, %c0_i32 : i32
    %1 = arith.extui %0 : i1 to i32
    %c0_i32_0 = arith.constant 0 : i32
    %2 = arith.cmpi ne, %1, %c0_i32_0 : i32
    scf.if %2 {
      %cst = arith.constant 0.000000e+00 : f32
      %9 = vector.broadcast %cst : f32 to vector<1x128xf32>
      %c0 = arith.constant 0 : index
      %c0_4 = arith.constant 0 : index
      %10 = vector.load %arg10[%c0, %c0_4] : memref<18x128xf32, #tpu.memory_space<vmem>>, vector<1x128xf32>
      tpu.vector_store %arg10[%c0, %c0_4], %9 {strides = array<i32>} : memref<18x128xf32, #tpu.memory_space<vmem>>, vector<1x128xf32>,
      %c17 = arith.constant 17 : index
      %c0_5 = arith.constant 0 : index
      %11 = vector.load %arg10[%c17, %c0_5] : memref<18x128xf32, #tpu.memory_space<vmem>>, vector<1x128xf32>
      tpu.vector_store %arg10[%c17, %c0_5], %9 {strides = array<i32>} : memref<18x128xf32, #tpu.memory_space<vmem>>, vector<1x128xf32>,
      %c0_6 = arith.constant 0 : index
      %c0_7 = arith.constant 0 : index
      %c0_8 = arith.constant 0 : index
      %12 = vector.load %arg2[%c0_6, %c0_7, %c0_8] : memref<1x16x128xf32, #tpu.memory_space<vmem>>, vector<1x16x128xf32>
      %13 = vector.shape_cast %12 : vector<1x16x128xf32> to vector<16x128xf32>
      %c0_9 = arith.constant 0 : index
      %c0_10 = arith.constant 0 : index
      %14 = vector.load %arg9[%c0_9, %c0_10] : memref<16x128xf32, #tpu.memory_space<vmem>>, vector<16x128xf32>
      tpu.vector_store %arg9[%c0_9, %c0_10], %13 {strides = array<i32>} : memref<16x128xf32, #tpu.memory_space<vmem>>, vector<16x128xf32>,
    } else {
    }
    %c2_i32 = arith.constant 2 : i32
    %3 = arith.cmpi slt, %arg1, %c2_i32 : i32
    %4 = arith.extui %3 : i1 to i32
    %c0_i32_1 = arith.constant 0 : i32
    %5 = arith.cmpi ne, %4, %c0_i32_1 : i32
    scf.if %5 {
      %c0 = arith.constant 0 : index
      %c0_4 = arith.constant 0 : index
      %9 = vector.load %arg9[%c0, %c0_4] : memref<16x128xf32, #tpu.memory_space<vmem>>, vector<16x128xf32>
      %c0_5 = arith.constant 0 : index
      %c0_6 = arith.constant 0 : index
      %c0_7 = arith.constant 0 : index
      %10 = vector.load %arg4[%c0_5, %c0_6, %c0_7] : memref<1x1x128xf32, #tpu.memory_space<vmem>>, vector<1x1x128xf32>
      %11 = vector.shape_cast %10 : vector<1x1x128xf32> to vector<1x128xf32>
      %c1 = arith.constant 1 : index
      %c0_8 = arith.constant 0 : index
      %12 = vector.load %arg10[%c1, %c0_8] : memref<18x128xf32, #tpu.memory_space<vmem>>, vector<16x128xf32>
      tpu.vector_store %arg10[%c1, %c0_8], %9 {strides = array<i32>} : memref<18x128xf32, #tpu.memory_space<vmem>>, vector<16x128xf32>,
      %cst = arith.constant 0.000000e+00 : f32
      %13 = vector.broadcast %cst : f32 to vector<16x128xf32>
      %c0_9 = arith.constant 0 : index
      %c0_10 = arith.constant 0 : index
      %14 = vector.load %arg10[%c0_9, %c0_10] : memref<18x128xf32, #tpu.memory_space<vmem>>, vector<16x128xf32>
      %15 = arith.truncf %14 : vector<16x128xf32> to vector<16x128xbf16>
      %c0_11 = arith.constant 0 : index
      %c0_12 = arith.constant 0 : index
      %c0_13 = arith.constant 0 : index
      %c0_14 = arith.constant 0 : index
      %16 = vector.load %arg3[%c0_11, %c0_12, %c0_13, %c0_14] : memref<1x3x128x128xbf16, #tpu.memory_space<vmem>>, vector<1x1x128x128xbf16>
      %17 = vector.shape_cast %16 : vector<1x1x128x128xbf16> to vector<128x128xbf16>
      %cst_15 = arith.constant dense<0.000000e+00> : vector<16x128xf32>
      %18 = tpu.matmul %15, %17, %cst_15 {dimension_numbers = #tpu.dot_dimension_numbers<[1], [0], [0], [1], [0, 0, 1, 1], [], []>} : vector<16x128xbf16>, vector<128x128xbf16>, vector<16x128xf32> -> vector<16x128xf32>
      %19 = arith.addf %13, %18 : vector<16x128xf32>
      %c1_16 = arith.constant 1 : index
      %c0_17 = arith.constant 0 : index
      %20 = vector.load %arg10[%c1_16, %c0_17] : memref<18x128xf32, #tpu.memory_space<vmem>>, vector<16x128xf32>
      %21 = arith.truncf %20 : vector<16x128xf32> to vector<16x128xbf16>
      %c0_18 = arith.constant 0 : index
      %c1_19 = arith.constant 1 : index
      %c0_20 = arith.constant 0 : index
      %c0_21 = arith.constant 0 : index
      %22 = vector.load %arg3[%c0_18, %c1_19, %c0_20, %c0_21] : memref<1x3x128x128xbf16, #tpu.memory_space<vmem>>, vector<1x1x128x128xbf16>
      %23 = vector.shape_cast %22 : vector<1x1x128x128xbf16> to vector<128x128xbf16>
      %cst_22 = arith.constant dense<0.000000e+00> : vector<16x128xf32>
      %24 = tpu.matmul %21, %23, %cst_22 {dimension_numbers = #tpu.dot_dimension_numbers<[1], [0], [0], [1], [0, 0, 1, 1], [], []>} : vector<16x128xbf16>, vector<128x128xbf16>, vector<16x128xf32> -> vector<16x128xf32>
      %25 = arith.addf %19, %24 : vector<16x128xf32>
      %c2 = arith.constant 2 : index
      %c0_23 = arith.constant 0 : index
      %26 = vector.load %arg10[%c2, %c0_23] : memref<18x128xf32, #tpu.memory_space<vmem>>, vector<16x128xf32>
      %27 = arith.truncf %26 : vector<16x128xf32> to vector<16x128xbf16>
      %c0_24 = arith.constant 0 : index
      %c2_25 = arith.constant 2 : index
      %c0_26 = arith.constant 0 : index
      %c0_27 = arith.constant 0 : index
      %28 = vector.load %arg3[%c0_24, %c2_25, %c0_26, %c0_27] : memref<1x3x128x128xbf16, #tpu.memory_space<vmem>>, vector<1x1x128x128xbf16>
      %29 = vector.shape_cast %28 : vector<1x1x128x128xbf16> to vector<128x128xbf16>
      %cst_28 = arith.constant dense<0.000000e+00> : vector<16x128xf32>
      %30 = tpu.matmul %27, %29, %cst_28 {dimension_numbers = #tpu.dot_dimension_numbers<[1], [0], [0], [1], [0, 0, 1, 1], [], []>} : vector<16x128xbf16>, vector<128x128xbf16>, vector<16x128xf32> -> vector<16x128xf32>
      %31 = arith.addf %25, %30 : vector<16x128xf32>
      %32 = vector.broadcast %11 : vector<1x128xf32> to vector<16x128xf32>
      %33 = arith.addf %31, %32 : vector<16x128xf32>
      %34 = arith.index_cast %arg1 : i32 to index
      %35 = memref.load %arg7[%34] : memref<3xf32, #tpu.memory_space<smem>>
      %cst_29 = arith.constant 0.000000e+00 : f32
      %36 = vector.broadcast %cst_29 : f32 to vector<16x128xf32>
      %37 = arith.cmpf oge, %33, %36 : vector<16x128xf32>
      %38 = vector.broadcast %35 : f32 to vector<16x128xf32>
      %39 = arith.mulf %38, %33 : vector<16x128xf32>
      %40 = arith.select %37, %33, %39 : vector<16x128xi1>, vector<16x128xf32>
      %c0_30 = arith.constant 0 : index
      %c0_31 = arith.constant 0 : index
      %c0_32 = arith.constant 0 : index
      %41 = vector.load %arg6[%c0_30, %c0_31, %c0_32] : memref<1x1x128xf32, #tpu.memory_space<vmem>>, vector<1x1x128xf32>
      %42 = vector.shape_cast %41 : vector<1x1x128xf32> to vector<1x128xf32>
      %c1_33 = arith.constant 1 : index
      %c0_34 = arith.constant 0 : index
      %43 = vector.load %arg10[%c1_33, %c0_34] : memref<18x128xf32, #tpu.memory_space<vmem>>, vector<16x128xf32>
      tpu.vector_store %arg10[%c1_33, %c0_34], %40 {strides = array<i32>} : memref<18x128xf32, #tpu.memory_space<vmem>>, vector<16x128xf32>,
      %cst_35 = arith.constant 0.000000e+00 : f32
      %44 = vector.broadcast %cst_35 : f32 to vector<16x128xf32>
      %c0_36 = arith.constant 0 : index
      %c0_37 = arith.constant 0 : index
      %45 = vector.load %arg10[%c0_36, %c0_37] : memref<18x128xf32, #tpu.memory_space<vmem>>, vector<16x128xf32>
      %46 = arith.truncf %45 : vector<16x128xf32> to vector<16x128xbf16>
      %c0_38 = arith.constant 0 : index
      %c0_39 = arith.constant 0 : index
      %c0_40 = arith.constant 0 : index
      %c0_41 = arith.constant 0 : index
      %47 = vector.load %arg5[%c0_38, %c0_39, %c0_40, %c0_41] : memref<1x3x128x128xbf16, #tpu.memory_space<vmem>>, vector<1x1x128x128xbf16>
      %48 = vector.shape_cast %47 : vector<1x1x128x128xbf16> to vector<128x128xbf16>
      %cst_42 = arith.constant dense<0.000000e+00> : vector<16x128xf32>
      %49 = tpu.matmul %46, %48, %cst_42 {dimension_numbers = #tpu.dot_dimension_numbers<[1], [0], [0], [1], [0, 0, 1, 1], [], []>} : vector<16x128xbf16>, vector<128x128xbf16>, vector<16x128xf32> -> vector<16x128xf32>
      %50 = arith.addf %44, %49 : vector<16x128xf32>
      %c1_43 = arith.constant 1 : index
      %c0_44 = arith.constant 0 : index
      %51 = vector.load %arg10[%c1_43, %c0_44] : memref<18x128xf32, #tpu.memory_space<vmem>>, vector<16x128xf32>
      %52 = arith.truncf %51 : vector<16x128xf32> to vector<16x128xbf16>
      %c0_45 = arith.constant 0 : index
      %c1_46 = arith.constant 1 : index
      %c0_47 = arith.constant 0 : index
      %c0_48 = arith.constant 0 : index
      %53 = vector.load %arg5[%c0_45, %c1_46, %c0_47, %c0_48] : memref<1x3x128x128xbf16, #tpu.memory_space<vmem>>, vector<1x1x128x128xbf16>
      %54 = vector.shape_cast %53 : vector<1x1x128x128xbf16> to vector<128x128xbf16>
      %cst_49 = arith.constant dense<0.000000e+00> : vector<16x128xf32>
      %55 = tpu.matmul %52, %54, %cst_49 {dimension_numbers = #tpu.dot_dimension_numbers<[1], [0], [0], [1], [0, 0, 1, 1], [], []>} : vector<16x128xbf16>, vector<128x128xbf16>, vector<16x128xf32> -> vector<16x128xf32>
      %56 = arith.addf %50, %55 : vector<16x128xf32>
      %c2_50 = arith.constant 2 : index
      %c0_51 = arith.constant 0 : index
      %57 = vector.load %arg10[%c2_50, %c0_51] : memref<18x128xf32, #tpu.memory_space<vmem>>, vector<16x128xf32>
      %58 = arith.truncf %57 : vector<16x128xf32> to vector<16x128xbf16>
      %c0_52 = arith.constant 0 : index
      %c2_53 = arith.constant 2 : index
      %c0_54 = arith.constant 0 : index
      %c0_55 = arith.constant 0 : index
      %59 = vector.load %arg5[%c0_52, %c2_53, %c0_54, %c0_55] : memref<1x3x128x128xbf16, #tpu.memory_space<vmem>>, vector<1x1x128x128xbf16>
      %60 = vector.shape_cast %59 : vector<1x1x128x128xbf16> to vector<128x128xbf16>
      %cst_56 = arith.constant dense<0.000000e+00> : vector<16x128xf32>
      %61 = tpu.matmul %58, %60, %cst_56 {dimension_numbers = #tpu.dot_dimension_numbers<[1], [0], [0], [1], [0, 0, 1, 1], [], []>} : vector<16x128xbf16>, vector<128x128xbf16>, vector<16x128xf32> -> vector<16x128xf32>
      %62 = arith.addf %56, %61 : vector<16x128xf32>
      %63 = vector.broadcast %42 : vector<1x128xf32> to vector<16x128xf32>
      %64 = arith.addf %62, %63 : vector<16x128xf32>
      %65 = arith.addf %64, %9 : vector<16x128xf32>
      %c0_57 = arith.constant 0 : index
      %c0_58 = arith.constant 0 : index
      %66 = vector.load %arg9[%c0_57, %c0_58] : memref<16x128xf32, #tpu.memory_space<vmem>>, vector<16x128xf32>
      tpu.vector_store %arg9[%c0_57, %c0_58], %65 {strides = array<i32>} : memref<16x128xf32, #tpu.memory_space<vmem>>, vector<16x128xf32>,
    } else {
    }
    %c2_i32_2 = arith.constant 2 : i32
    %6 = arith.cmpi eq, %arg1, %c2_i32_2 : i32
    %7 = arith.extui %6 : i1 to i32
    %c0_i32_3 = arith.constant 0 : i32
    %8 = arith.cmpi ne, %7, %c0_i32_3 : i32
    scf.if %8 {
      %c0 = arith.constant 0 : index
      %c0_4 = arith.constant 0 : index
      %9 = vector.load %arg9[%c0, %c0_4] : memref<16x128xf32, #tpu.memory_space<vmem>>, vector<16x128xf32>
      %c0_5 = arith.constant 0 : index
      %c0_6 = arith.constant 0 : index
      %c0_7 = arith.constant 0 : index
      %10 = vector.load %arg4[%c0_5, %c0_6, %c0_7] : memref<1x1x128xf32, #tpu.memory_space<vmem>>, vector<1x1x128xf32>
      %11 = vector.shape_cast %10 : vector<1x1x128xf32> to vector<1x128xf32>
      %c1 = arith.constant 1 : index
      %c0_8 = arith.constant 0 : index
      %12 = vector.load %arg10[%c1, %c0_8] : memref<18x128xf32, #tpu.memory_space<vmem>>, vector<16x128xf32>
      tpu.vector_store %arg10[%c1, %c0_8], %9 {strides = array<i32>} : memref<18x128xf32, #tpu.memory_space<vmem>>, vector<16x128xf32>,
      %cst = arith.constant 0.000000e+00 : f32
      %13 = vector.broadcast %cst : f32 to vector<16x128xf32>
      %c0_9 = arith.constant 0 : index
      %c0_10 = arith.constant 0 : index
      %14 = vector.load %arg10[%c0_9, %c0_10] : memref<18x128xf32, #tpu.memory_space<vmem>>, vector<16x128xf32>
      %15 = arith.truncf %14 : vector<16x128xf32> to vector<16x128xbf16>
      %c0_11 = arith.constant 0 : index
      %c0_12 = arith.constant 0 : index
      %c0_13 = arith.constant 0 : index
      %c0_14 = arith.constant 0 : index
      %16 = vector.load %arg3[%c0_11, %c0_12, %c0_13, %c0_14] : memref<1x3x128x128xbf16, #tpu.memory_space<vmem>>, vector<1x1x128x128xbf16>
      %17 = vector.shape_cast %16 : vector<1x1x128x128xbf16> to vector<128x128xbf16>
      %cst_15 = arith.constant dense<0.000000e+00> : vector<16x128xf32>
      %18 = tpu.matmul %15, %17, %cst_15 {dimension_numbers = #tpu.dot_dimension_numbers<[1], [0], [0], [1], [0, 0, 1, 1], [], []>} : vector<16x128xbf16>, vector<128x128xbf16>, vector<16x128xf32> -> vector<16x128xf32>
      %19 = arith.addf %13, %18 : vector<16x128xf32>
      %c1_16 = arith.constant 1 : index
      %c0_17 = arith.constant 0 : index
      %20 = vector.load %arg10[%c1_16, %c0_17] : memref<18x128xf32, #tpu.memory_space<vmem>>, vector<16x128xf32>
      %21 = arith.truncf %20 : vector<16x128xf32> to vector<16x128xbf16>
      %c0_18 = arith.constant 0 : index
      %c1_19 = arith.constant 1 : index
      %c0_20 = arith.constant 0 : index
      %c0_21 = arith.constant 0 : index
      %22 = vector.load %arg3[%c0_18, %c1_19, %c0_20, %c0_21] : memref<1x3x128x128xbf16, #tpu.memory_space<vmem>>, vector<1x1x128x128xbf16>
      %23 = vector.shape_cast %22 : vector<1x1x128x128xbf16> to vector<128x128xbf16>
      %cst_22 = arith.constant dense<0.000000e+00> : vector<16x128xf32>
      %24 = tpu.matmul %21, %23, %cst_22 {dimension_numbers = #tpu.dot_dimension_numbers<[1], [0], [0], [1], [0, 0, 1, 1], [], []>} : vector<16x128xbf16>, vector<128x128xbf16>, vector<16x128xf32> -> vector<16x128xf32>
      %25 = arith.addf %19, %24 : vector<16x128xf32>
      %c2 = arith.constant 2 : index
      %c0_23 = arith.constant 0 : index
      %26 = vector.load %arg10[%c2, %c0_23] : memref<18x128xf32, #tpu.memory_space<vmem>>, vector<16x128xf32>
      %27 = arith.truncf %26 : vector<16x128xf32> to vector<16x128xbf16>
      %c0_24 = arith.constant 0 : index
      %c2_25 = arith.constant 2 : index
      %c0_26 = arith.constant 0 : index
      %c0_27 = arith.constant 0 : index
      %28 = vector.load %arg3[%c0_24, %c2_25, %c0_26, %c0_27] : memref<1x3x128x128xbf16, #tpu.memory_space<vmem>>, vector<1x1x128x128xbf16>
      %29 = vector.shape_cast %28 : vector<1x1x128x128xbf16> to vector<128x128xbf16>
      %cst_28 = arith.constant dense<0.000000e+00> : vector<16x128xf32>
      %30 = tpu.matmul %27, %29, %cst_28 {dimension_numbers = #tpu.dot_dimension_numbers<[1], [0], [0], [1], [0, 0, 1, 1], [], []>} : vector<16x128xbf16>, vector<128x128xbf16>, vector<16x128xf32> -> vector<16x128xf32>
      %31 = arith.addf %25, %30 : vector<16x128xf32>
      %32 = vector.broadcast %11 : vector<1x128xf32> to vector<16x128xf32>
      %33 = arith.addf %31, %32 : vector<16x128xf32>
      %c0_29 = arith.constant 0 : index
      %c0_30 = arith.constant 0 : index
      %c0_31 = arith.constant 0 : index
      %34 = vector.load %arg2[%c0_29, %c0_30, %c0_31] : memref<1x16x128xf32, #tpu.memory_space<vmem>>, vector<1x16x128xf32>
      %35 = vector.shape_cast %34 : vector<1x16x128xf32> to vector<16x128xf32>
      %36 = arith.addf %33, %35 : vector<16x128xf32>
      %c0_32 = arith.constant 0 : index
      %c0_33 = arith.constant 0 : index
      %c0_34 = arith.constant 0 : index
      %37 = vector.load %arg8[%c0_32, %c0_33, %c0_34] : memref<1x16x128xf32, #tpu.memory_space<vmem>>, vector<1x16x128xf32>
      %38 = vector.shape_cast %37 : vector<1x16x128xf32> to vector<16x128xf32>
      %39 = vector.shape_cast %36 : vector<16x128xf32> to vector<1x16x128xf32>
      tpu.vector_store %arg8[%c0_32, %c0_33, %c0_34], %39 {strides = array<i32>} : memref<1x16x128xf32, #tpu.memory_space<vmem>>, vector<1x16x128xf32>,
    } else {
    }
    return
  }
  func.func @transform_0(%arg0: i32, %arg1: i32) -> (i32, i32, i32) {
    %c0_i32 = arith.constant 0 : i32
    %c0_i32_0 = arith.constant 0 : i32
    %c0_i32_1 = arith.constant 0 : i32
    return %arg0, %c0_i32, %c0_i32_0 : i32, i32, i32
  }
  func.func @transform_1(%arg0: i32, %arg1: i32) -> (i32, i32, i32, i32) {
    %c0_i32 = arith.constant 0 : i32
    %c0_i32_0 = arith.constant 0 : i32
    %c0_i32_1 = arith.constant 0 : i32
    %c0_i32_2 = arith.constant 0 : i32
    return %arg1, %c0_i32, %c0_i32_0, %c0_i32_1 : i32, i32, i32, i32
  }
  func.func @transform_2(%arg0: i32, %arg1: i32) -> (i32, i32, i32) {
    %c0_i32 = arith.constant 0 : i32
    %c0_i32_0 = arith.constant 0 : i32
    %c0_i32_1 = arith.constant 0 : i32
    return %arg1, %c0_i32, %c0_i32_0 : i32, i32, i32
  }
  func.func @transform_3(%arg0: i32, %arg1: i32) -> (i32, i32, i32, i32) {
    %c0_i32 = arith.constant 0 : i32
    %c0_i32_0 = arith.constant 0 : i32
    %c0_i32_1 = arith.constant 0 : i32
    %c0_i32_2 = arith.constant 0 : i32
    return %arg1, %c0_i32, %c0_i32_0, %c0_i32_1 : i32, i32, i32, i32
  }
  func.func @transform_4(%arg0: i32, %arg1: i32) -> (i32, i32, i32) {
    %c0_i32 = arith.constant 0 : i32
    %c0_i32_0 = arith.constant 0 : i32
    %c0_i32_1 = arith.constant 0 : i32
    return %arg1, %c0_i32, %c0_i32_0 : i32, i32, i32
  }
  func.func @transform_5(%arg0: i32, %arg1: i32) -> i32 {
    %c0_i32 = arith.constant 0 : i32
    %c0_i32_0 = arith.constant 0 : i32
    return %c0_i32 : i32
  }
  func.func @transform_6(%arg0: i32, %arg1: i32) -> (i32, i32, i32) {
    %c0_i32 = arith.constant 0 : i32
    %c0_i32_0 = arith.constant 0 : i32
    %c0_i32_1 = arith.constant 0 : i32
    return %arg0, %c0_i32, %c0_i32_0 : i32, i32, i32
  }
}

module attributes {stable_mosaic.version = 11 : i64} {
  func.func @kernel(%arg0: i32, %arg1: memref<1x16x128xf32, #tpu.memory_space<vmem>>, %arg2: memref<3x128x512xbf16, #tpu.memory_space<vmem>>, %arg3: memref<1x512xf32, #tpu.memory_space<vmem>>, %arg4: memref<1xf32, #tpu.memory_space<smem>>, %arg5: memref<1x16x512xf32, #tpu.memory_space<vmem>>, %arg6: memref<18x128xf32, #tpu.memory_space<vmem>>) attributes {dimension_semantics = [#tpu.dimension_semantics<parallel>], iteration_bounds = array<i64: 2>, scalar_prefetch = 0 : i64, scratch_operands = 1 : i64, tpu.core_type = #tpu.core_type<tc>, window_params = [{transform_indices = @transform_0, window_bounds = array<i64: 1, 16, 128>}, {pipeline_mode = #tpu.pipeline_mode<synchronous>, transform_indices = @transform_1, window_bounds = array<i64: 3, 128, 512>}, {pipeline_mode = #tpu.pipeline_mode<synchronous>, transform_indices = @transform_2, window_bounds = array<i64: 1, 512>}, {transform_indices = @transform_3, window_bounds = array<i64: 1>}, {transform_indices = @transform_4, window_bounds = array<i64: 1, 16, 512>}]} {
    %cst = arith.constant 0.000000e+00 : f32
    %0 = vector.broadcast %cst : f32 to vector<1x128xf32>
    %c0 = arith.constant 0 : index
    %c0_0 = arith.constant 0 : index
    %1 = vector.load %arg6[%c0, %c0_0] : memref<18x128xf32, #tpu.memory_space<vmem>>, vector<1x128xf32>
    tpu.vector_store %arg6[%c0, %c0_0], %0 {strides = array<i32>} : memref<18x128xf32, #tpu.memory_space<vmem>>, vector<1x128xf32>,
    %c17 = arith.constant 17 : index
    %c0_1 = arith.constant 0 : index
    %2 = vector.load %arg6[%c17, %c0_1] : memref<18x128xf32, #tpu.memory_space<vmem>>, vector<1x128xf32>
    tpu.vector_store %arg6[%c17, %c0_1], %0 {strides = array<i32>} : memref<18x128xf32, #tpu.memory_space<vmem>>, vector<1x128xf32>,
    %c0_2 = arith.constant 0 : index
    %c0_3 = arith.constant 0 : index
    %c0_4 = arith.constant 0 : index
    %3 = vector.load %arg1[%c0_2, %c0_3, %c0_4] : memref<1x16x128xf32, #tpu.memory_space<vmem>>, vector<1x16x128xf32>
    %4 = vector.shape_cast %3 : vector<1x16x128xf32> to vector<16x128xf32>
    %c1 = arith.constant 1 : index
    %c0_5 = arith.constant 0 : index
    %5 = vector.load %arg6[%c1, %c0_5] : memref<18x128xf32, #tpu.memory_space<vmem>>, vector<16x128xf32>
    tpu.vector_store %arg6[%c1, %c0_5], %4 {strides = array<i32>} : memref<18x128xf32, #tpu.memory_space<vmem>>, vector<16x128xf32>,
    %cst_6 = arith.constant 0.000000e+00 : f32
    %6 = vector.broadcast %cst_6 : f32 to vector<16x512xf32>
    %c0_7 = arith.constant 0 : index
    %c0_8 = arith.constant 0 : index
    %7 = vector.load %arg6[%c0_7, %c0_8] : memref<18x128xf32, #tpu.memory_space<vmem>>, vector<16x128xf32>
    %8 = arith.truncf %7 : vector<16x128xf32> to vector<16x128xbf16>
    %c0_9 = arith.constant 0 : index
    %c0_10 = arith.constant 0 : index
    %c0_11 = arith.constant 0 : index
    %9 = vector.load %arg2[%c0_9, %c0_10, %c0_11] : memref<3x128x512xbf16, #tpu.memory_space<vmem>>, vector<1x128x512xbf16>
    %10 = vector.shape_cast %9 : vector<1x128x512xbf16> to vector<128x512xbf16>
    %cst_12 = arith.constant dense<0.000000e+00> : vector<16x512xf32>
    %11 = tpu.matmul %8, %10, %cst_12 {dimension_numbers = #tpu.dot_dimension_numbers<[1], [0], [0], [1], [0, 0, 1, 1], [], []>} : vector<16x128xbf16>, vector<128x512xbf16>, vector<16x512xf32> -> vector<16x512xf32>
    %12 = arith.addf %6, %11 : vector<16x512xf32>
    %c1_13 = arith.constant 1 : index
    %c0_14 = arith.constant 0 : index
    %13 = vector.load %arg6[%c1_13, %c0_14] : memref<18x128xf32, #tpu.memory_space<vmem>>, vector<16x128xf32>
    %14 = arith.truncf %13 : vector<16x128xf32> to vector<16x128xbf16>
    %c1_15 = arith.constant 1 : index
    %c0_16 = arith.constant 0 : index
    %c0_17 = arith.constant 0 : index
    %15 = vector.load %arg2[%c1_15, %c0_16, %c0_17] : memref<3x128x512xbf16, #tpu.memory_space<vmem>>, vector<1x128x512xbf16>
    %16 = vector.shape_cast %15 : vector<1x128x512xbf16> to vector<128x512xbf16>
    %cst_18 = arith.constant dense<0.000000e+00> : vector<16x512xf32>
    %17 = tpu.matmul %14, %16, %cst_18 {dimension_numbers = #tpu.dot_dimension_numbers<[1], [0], [0], [1], [0, 0, 1, 1], [], []>} : vector<16x128xbf16>, vector<128x512xbf16>, vector<16x512xf32> -> vector<16x512xf32>
    %18 = arith.addf %12, %17 : vector<16x512xf32>
    %c2 = arith.constant 2 : index
    %c0_19 = arith.constant 0 : index
    %19 = vector.load %arg6[%c2, %c0_19] : memref<18x128xf32, #tpu.memory_space<vmem>>, vector<16x128xf32>
    %20 = arith.truncf %19 : vector<16x128xf32> to vector<16x128xbf16>
    %c2_20 = arith.constant 2 : index
    %c0_21 = arith.constant 0 : index
    %c0_22 = arith.constant 0 : index
    %21 = vector.load %arg2[%c2_20, %c0_21, %c0_22] : memref<3x128x512xbf16, #tpu.memory_space<vmem>>, vector<1x128x512xbf16>
    %22 = vector.shape_cast %21 : vector<1x128x512xbf16> to vector<128x512xbf16>
    %cst_23 = arith.constant dense<0.000000e+00> : vector<16x512xf32>
    %23 = tpu.matmul %20, %22, %cst_23 {dimension_numbers = #tpu.dot_dimension_numbers<[1], [0], [0], [1], [0, 0, 1, 1], [], []>} : vector<16x128xbf16>, vector<128x512xbf16>, vector<16x512xf32> -> vector<16x512xf32>
    %24 = arith.addf %18, %23 : vector<16x512xf32>
    %c0_24 = arith.constant 0 : index
    %c0_25 = arith.constant 0 : index
    %25 = vector.load %arg3[%c0_24, %c0_25] : memref<1x512xf32, #tpu.memory_space<vmem>>, vector<1x512xf32>
    %26 = vector.broadcast %25 : vector<1x512xf32> to vector<16x512xf32>
    %27 = arith.addf %24, %26 : vector<16x512xf32>
    %c0_26 = arith.constant 0 : index
    %28 = memref.load %arg4[%c0_26] : memref<1xf32, #tpu.memory_space<smem>>
    %cst_27 = arith.constant 0.000000e+00 : f32
    %29 = vector.broadcast %cst_27 : f32 to vector<16x512xf32>
    %30 = arith.cmpf oge, %27, %29 : vector<16x512xf32>
    %31 = vector.broadcast %28 : f32 to vector<16x512xf32>
    %32 = arith.mulf %31, %27 : vector<16x512xf32>
    %33 = arith.select %30, %27, %32 : vector<16x512xi1>, vector<16x512xf32>
    %c0_28 = arith.constant 0 : index
    %c0_29 = arith.constant 0 : index
    %c0_30 = arith.constant 0 : index
    %34 = vector.load %arg5[%c0_28, %c0_29, %c0_30] : memref<1x16x512xf32, #tpu.memory_space<vmem>>, vector<1x16x512xf32>
    %35 = vector.shape_cast %34 : vector<1x16x512xf32> to vector<16x512xf32>
    %36 = vector.shape_cast %33 : vector<16x512xf32> to vector<1x16x512xf32>
    tpu.vector_store %arg5[%c0_28, %c0_29, %c0_30], %36 {strides = array<i32>} : memref<1x16x512xf32, #tpu.memory_space<vmem>>, vector<1x16x512xf32>,
    return
  }
  func.func @transform_0(%arg0: i32) -> (i32, i32, i32) {
    %c0_i32 = arith.constant 0 : i32
    %c0_i32_0 = arith.constant 0 : i32
    %c0_i32_1 = arith.constant 0 : i32
    return %arg0, %c0_i32, %c0_i32_0 : i32, i32, i32
  }
  func.func @transform_1(%arg0: i32) -> (i32, i32, i32) {
    %c0_i32 = arith.constant 0 : i32
    %c0_i32_0 = arith.constant 0 : i32
    %c0_i32_1 = arith.constant 0 : i32
    %c0_i32_2 = arith.constant 0 : i32
    return %c0_i32, %c0_i32_0, %c0_i32_1 : i32, i32, i32
  }
  func.func @transform_2(%arg0: i32) -> (i32, i32) {
    %c0_i32 = arith.constant 0 : i32
    %c0_i32_0 = arith.constant 0 : i32
    %c0_i32_1 = arith.constant 0 : i32
    return %c0_i32, %c0_i32_0 : i32, i32
  }
  func.func @transform_3(%arg0: i32) -> i32 {
    %c0_i32 = arith.constant 0 : i32
    %c0_i32_0 = arith.constant 0 : i32
    return %c0_i32 : i32
  }
  func.func @transform_4(%arg0: i32) -> (i32, i32, i32) {
    %c0_i32 = arith.constant 0 : i32
    %c0_i32_0 = arith.constant 0 : i32
    %c0_i32_1 = arith.constant 0 : i32
    return %arg0, %c0_i32, %c0_i32_0 : i32, i32, i32
  }
}

module attributes {stable_mosaic.version = 11 : i64} {
  func.func @kernel(%arg0: i32, %arg1: memref<1x32x256xf32, #tpu.memory_space<vmem>>, %arg2: memref<3x256x1024xbf16, #tpu.memory_space<vmem>>, %arg3: memref<1x1024xf32, #tpu.memory_space<vmem>>, %arg4: memref<1xf32, #tpu.memory_space<smem>>, %arg5: memref<1x32x1024xf32, #tpu.memory_space<vmem>>, %arg6: memref<34x256xf32, #tpu.memory_space<vmem>>) attributes {dimension_semantics = [#tpu.dimension_semantics<parallel>], iteration_bounds = array<i64: 2>, scalar_prefetch = 0 : i64, scratch_operands = 1 : i64, tpu.core_type = #tpu.core_type<tc>, window_params = [{transform_indices = @transform_0, window_bounds = array<i64: 1, 32, 256>}, {pipeline_mode = #tpu.pipeline_mode<synchronous>, transform_indices = @transform_1, window_bounds = array<i64: 3, 256, 1024>}, {pipeline_mode = #tpu.pipeline_mode<synchronous>, transform_indices = @transform_2, window_bounds = array<i64: 1, 1024>}, {transform_indices = @transform_3, window_bounds = array<i64: 1>}, {transform_indices = @transform_4, window_bounds = array<i64: 1, 32, 1024>}]} {
    %cst = arith.constant 0.000000e+00 : f32
    %0 = vector.broadcast %cst : f32 to vector<1x256xf32>
    %c0 = arith.constant 0 : index
    %c0_0 = arith.constant 0 : index
    %1 = vector.load %arg6[%c0, %c0_0] : memref<34x256xf32, #tpu.memory_space<vmem>>, vector<1x256xf32>
    tpu.vector_store %arg6[%c0, %c0_0], %0 {strides = array<i32>} : memref<34x256xf32, #tpu.memory_space<vmem>>, vector<1x256xf32>,
    %c33 = arith.constant 33 : index
    %c0_1 = arith.constant 0 : index
    %2 = vector.load %arg6[%c33, %c0_1] : memref<34x256xf32, #tpu.memory_space<vmem>>, vector<1x256xf32>
    tpu.vector_store %arg6[%c33, %c0_1], %0 {strides = array<i32>} : memref<34x256xf32, #tpu.memory_space<vmem>>, vector<1x256xf32>,
    %c0_2 = arith.constant 0 : index
    %c0_3 = arith.constant 0 : index
    %c0_4 = arith.constant 0 : index
    %3 = vector.load %arg1[%c0_2, %c0_3, %c0_4] : memref<1x32x256xf32, #tpu.memory_space<vmem>>, vector<1x32x256xf32>
    %4 = vector.shape_cast %3 : vector<1x32x256xf32> to vector<32x256xf32>
    %c1 = arith.constant 1 : index
    %c0_5 = arith.constant 0 : index
    %5 = vector.load %arg6[%c1, %c0_5] : memref<34x256xf32, #tpu.memory_space<vmem>>, vector<32x256xf32>
    tpu.vector_store %arg6[%c1, %c0_5], %4 {strides = array<i32>} : memref<34x256xf32, #tpu.memory_space<vmem>>, vector<32x256xf32>,
    %cst_6 = arith.constant 0.000000e+00 : f32
    %6 = vector.broadcast %cst_6 : f32 to vector<32x1024xf32>
    %c0_7 = arith.constant 0 : index
    %c0_8 = arith.constant 0 : index
    %7 = vector.load %arg6[%c0_7, %c0_8] : memref<34x256xf32, #tpu.memory_space<vmem>>, vector<32x256xf32>
    %8 = arith.truncf %7 : vector<32x256xf32> to vector<32x256xbf16>
    %c0_9 = arith.constant 0 : index
    %c0_10 = arith.constant 0 : index
    %c0_11 = arith.constant 0 : index
    %9 = vector.load %arg2[%c0_9, %c0_10, %c0_11] : memref<3x256x1024xbf16, #tpu.memory_space<vmem>>, vector<1x256x1024xbf16>
    %10 = vector.shape_cast %9 : vector<1x256x1024xbf16> to vector<256x1024xbf16>
    %cst_12 = arith.constant dense<0.000000e+00> : vector<32x1024xf32>
    %11 = tpu.matmul %8, %10, %cst_12 {dimension_numbers = #tpu.dot_dimension_numbers<[1], [0], [0], [1], [0, 0, 1, 1], [], []>} : vector<32x256xbf16>, vector<256x1024xbf16>, vector<32x1024xf32> -> vector<32x1024xf32>
    %12 = arith.addf %6, %11 : vector<32x1024xf32>
    %c1_13 = arith.constant 1 : index
    %c0_14 = arith.constant 0 : index
    %13 = vector.load %arg6[%c1_13, %c0_14] : memref<34x256xf32, #tpu.memory_space<vmem>>, vector<32x256xf32>
    %14 = arith.truncf %13 : vector<32x256xf32> to vector<32x256xbf16>
    %c1_15 = arith.constant 1 : index
    %c0_16 = arith.constant 0 : index
    %c0_17 = arith.constant 0 : index
    %15 = vector.load %arg2[%c1_15, %c0_16, %c0_17] : memref<3x256x1024xbf16, #tpu.memory_space<vmem>>, vector<1x256x1024xbf16>
    %16 = vector.shape_cast %15 : vector<1x256x1024xbf16> to vector<256x1024xbf16>
    %cst_18 = arith.constant dense<0.000000e+00> : vector<32x1024xf32>
    %17 = tpu.matmul %14, %16, %cst_18 {dimension_numbers = #tpu.dot_dimension_numbers<[1], [0], [0], [1], [0, 0, 1, 1], [], []>} : vector<32x256xbf16>, vector<256x1024xbf16>, vector<32x1024xf32> -> vector<32x1024xf32>
    %18 = arith.addf %12, %17 : vector<32x1024xf32>
    %c2 = arith.constant 2 : index
    %c0_19 = arith.constant 0 : index
    %19 = vector.load %arg6[%c2, %c0_19] : memref<34x256xf32, #tpu.memory_space<vmem>>, vector<32x256xf32>
    %20 = arith.truncf %19 : vector<32x256xf32> to vector<32x256xbf16>
    %c2_20 = arith.constant 2 : index
    %c0_21 = arith.constant 0 : index
    %c0_22 = arith.constant 0 : index
    %21 = vector.load %arg2[%c2_20, %c0_21, %c0_22] : memref<3x256x1024xbf16, #tpu.memory_space<vmem>>, vector<1x256x1024xbf16>
    %22 = vector.shape_cast %21 : vector<1x256x1024xbf16> to vector<256x1024xbf16>
    %cst_23 = arith.constant dense<0.000000e+00> : vector<32x1024xf32>
    %23 = tpu.matmul %20, %22, %cst_23 {dimension_numbers = #tpu.dot_dimension_numbers<[1], [0], [0], [1], [0, 0, 1, 1], [], []>} : vector<32x256xbf16>, vector<256x1024xbf16>, vector<32x1024xf32> -> vector<32x1024xf32>
    %24 = arith.addf %18, %23 : vector<32x1024xf32>
    %c0_24 = arith.constant 0 : index
    %c0_25 = arith.constant 0 : index
    %25 = vector.load %arg3[%c0_24, %c0_25] : memref<1x1024xf32, #tpu.memory_space<vmem>>, vector<1x1024xf32>
    %26 = vector.broadcast %25 : vector<1x1024xf32> to vector<32x1024xf32>
    %27 = arith.addf %24, %26 : vector<32x1024xf32>
    %c0_26 = arith.constant 0 : index
    %28 = memref.load %arg4[%c0_26] : memref<1xf32, #tpu.memory_space<smem>>
    %cst_27 = arith.constant 0.000000e+00 : f32
    %29 = vector.broadcast %cst_27 : f32 to vector<32x1024xf32>
    %30 = arith.cmpf oge, %27, %29 : vector<32x1024xf32>
    %31 = vector.broadcast %28 : f32 to vector<32x1024xf32>
    %32 = arith.mulf %31, %27 : vector<32x1024xf32>
    %33 = arith.select %30, %27, %32 : vector<32x1024xi1>, vector<32x1024xf32>
    %c0_28 = arith.constant 0 : index
    %c0_29 = arith.constant 0 : index
    %c0_30 = arith.constant 0 : index
    %34 = vector.load %arg5[%c0_28, %c0_29, %c0_30] : memref<1x32x1024xf32, #tpu.memory_space<vmem>>, vector<1x32x1024xf32>
    %35 = vector.shape_cast %34 : vector<1x32x1024xf32> to vector<32x1024xf32>
    %36 = vector.shape_cast %33 : vector<32x1024xf32> to vector<1x32x1024xf32>
    tpu.vector_store %arg5[%c0_28, %c0_29, %c0_30], %36 {strides = array<i32>} : memref<1x32x1024xf32, #tpu.memory_space<vmem>>, vector<1x32x1024xf32>,
    return
  }
  func.func @transform_0(%arg0: i32) -> (i32, i32, i32) {
    %c0_i32 = arith.constant 0 : i32
    %c0_i32_0 = arith.constant 0 : i32
    %c0_i32_1 = arith.constant 0 : i32
    return %arg0, %c0_i32, %c0_i32_0 : i32, i32, i32
  }
  func.func @transform_1(%arg0: i32) -> (i32, i32, i32) {
    %c0_i32 = arith.constant 0 : i32
    %c0_i32_0 = arith.constant 0 : i32
    %c0_i32_1 = arith.constant 0 : i32
    %c0_i32_2 = arith.constant 0 : i32
    return %c0_i32, %c0_i32_0, %c0_i32_1 : i32, i32, i32
  }
  func.func @transform_2(%arg0: i32) -> (i32, i32) {
    %c0_i32 = arith.constant 0 : i32
    %c0_i32_0 = arith.constant 0 : i32
    %c0_i32_1 = arith.constant 0 : i32
    return %c0_i32, %c0_i32_0 : i32, i32
  }
  func.func @transform_3(%arg0: i32) -> i32 {
    %c0_i32 = arith.constant 0 : i32
    %c0_i32_0 = arith.constant 0 : i32
    return %c0_i32 : i32
  }
  func.func @transform_4(%arg0: i32) -> (i32, i32, i32) {
    %c0_i32 = arith.constant 0 : i32
    %c0_i32_0 = arith.constant 0 : i32
    %c0_i32_1 = arith.constant 0 : i32
    return %arg0, %c0_i32, %c0_i32_0 : i32, i32, i32
  }
}

module attributes {stable_mosaic.version = 11 : i64} {
  func.func @kernel(%arg0: i32, %arg1: memref<1x64x512xf32, #tpu.memory_space<vmem>>, %arg2: memref<9x512x256xbf16, #tpu.memory_space<vmem>>, %arg3: memref<1x256xf32, #tpu.memory_space<vmem>>, %arg4: memref<1x64x256xf32, #tpu.memory_space<vmem>>, %arg5: memref<72x512xf32, #tpu.memory_space<vmem>>) attributes {dimension_semantics = [#tpu.dimension_semantics<parallel>], iteration_bounds = array<i64: 2>, scalar_prefetch = 0 : i64, scratch_operands = 1 : i64, tpu.core_type = #tpu.core_type<tc>, window_params = [{transform_indices = @transform_0, window_bounds = array<i64: 1, 64, 512>}, {pipeline_mode = #tpu.pipeline_mode<synchronous>, transform_indices = @transform_1, window_bounds = array<i64: 9, 512, 256>}, {pipeline_mode = #tpu.pipeline_mode<synchronous>, transform_indices = @transform_2, window_bounds = array<i64: 1, 256>}, {transform_indices = @transform_3, window_bounds = array<i64: 1, 64, 256>}]} {
    %cst = arith.constant 0.000000e+00 : f32
    %0 = vector.broadcast %cst : f32 to vector<4x512xf32>
    %c0 = arith.constant 0 : index
    %c0_0 = arith.constant 0 : index
    %1 = vector.load %arg5[%c0, %c0_0] : memref<72x512xf32, #tpu.memory_space<vmem>>, vector<4x512xf32>
    tpu.vector_store %arg5[%c0, %c0_0], %0 {strides = array<i32>} : memref<72x512xf32, #tpu.memory_space<vmem>>, vector<4x512xf32>,
    %c68 = arith.constant 68 : index
    %c0_1 = arith.constant 0 : index
    %2 = vector.load %arg5[%c68, %c0_1] : memref<72x512xf32, #tpu.memory_space<vmem>>, vector<4x512xf32>
    tpu.vector_store %arg5[%c68, %c0_1], %0 {strides = array<i32>} : memref<72x512xf32, #tpu.memory_space<vmem>>, vector<4x512xf32>,
    %c0_2 = arith.constant 0 : index
    %c0_3 = arith.constant 0 : index
    %c0_4 = arith.constant 0 : index
    %3 = vector.load %arg1[%c0_2, %c0_3, %c0_4] : memref<1x64x512xf32, #tpu.memory_space<vmem>>, vector<1x64x512xf32>
    %4 = vector.shape_cast %3 : vector<1x64x512xf32> to vector<64x512xf32>
    %c4 = arith.constant 4 : index
    %c0_5 = arith.constant 0 : index
    %5 = vector.load %arg5[%c4, %c0_5] : memref<72x512xf32, #tpu.memory_space<vmem>>, vector<64x512xf32>
    tpu.vector_store %arg5[%c4, %c0_5], %4 {strides = array<i32>} : memref<72x512xf32, #tpu.memory_space<vmem>>, vector<64x512xf32>,
    %cst_6 = arith.constant 0.000000e+00 : f32
    %6 = vector.broadcast %cst_6 : f32 to vector<64x256xf32>
    %c0_7 = arith.constant 0 : index
    %c0_8 = arith.constant 0 : index
    %7 = vector.load %arg5[%c0_7, %c0_8] : memref<72x512xf32, #tpu.memory_space<vmem>>, vector<64x512xf32>
    %8 = arith.truncf %7 : vector<64x512xf32> to vector<64x512xbf16>
    %c0_9 = arith.constant 0 : index
    %c0_10 = arith.constant 0 : index
    %c0_11 = arith.constant 0 : index
    %9 = vector.load %arg2[%c0_9, %c0_10, %c0_11] : memref<9x512x256xbf16, #tpu.memory_space<vmem>>, vector<1x512x256xbf16>
    %10 = vector.shape_cast %9 : vector<1x512x256xbf16> to vector<512x256xbf16>
    %cst_12 = arith.constant dense<0.000000e+00> : vector<64x256xf32>
    %11 = tpu.matmul %8, %10, %cst_12 {dimension_numbers = #tpu.dot_dimension_numbers<[1], [0], [0], [1], [0, 0, 1, 1], [], []>} : vector<64x512xbf16>, vector<512x256xbf16>, vector<64x256xf32> -> vector<64x256xf32>
    %12 = arith.addf %6, %11 : vector<64x256xf32>
    %c1 = arith.constant 1 : index
    %c0_13 = arith.constant 0 : index
    %13 = vector.load %arg5[%c1, %c0_13] : memref<72x512xf32, #tpu.memory_space<vmem>>, vector<64x512xf32>
    %14 = arith.truncf %13 : vector<64x512xf32> to vector<64x512xbf16>
    %c1_14 = arith.constant 1 : index
    %c0_15 = arith.constant 0 : index
    %c0_16 = arith.constant 0 : index
    %15 = vector.load %arg2[%c1_14, %c0_15, %c0_16] : memref<9x512x256xbf16, #tpu.memory_space<vmem>>, vector<1x512x256xbf16>
    %16 = vector.shape_cast %15 : vector<1x512x256xbf16> to vector<512x256xbf16>
    %cst_17 = arith.constant dense<0.000000e+00> : vector<64x256xf32>
    %17 = tpu.matmul %14, %16, %cst_17 {dimension_numbers = #tpu.dot_dimension_numbers<[1], [0], [0], [1], [0, 0, 1, 1], [], []>} : vector<64x512xbf16>, vector<512x256xbf16>, vector<64x256xf32> -> vector<64x256xf32>
    %18 = arith.addf %12, %17 : vector<64x256xf32>
    %c2 = arith.constant 2 : index
    %c0_18 = arith.constant 0 : index
    %19 = vector.load %arg5[%c2, %c0_18] : memref<72x512xf32, #tpu.memory_space<vmem>>, vector<64x512xf32>
    %20 = arith.truncf %19 : vector<64x512xf32> to vector<64x512xbf16>
    %c2_19 = arith.constant 2 : index
    %c0_20 = arith.constant 0 : index
    %c0_21 = arith.constant 0 : index
    %21 = vector.load %arg2[%c2_19, %c0_20, %c0_21] : memref<9x512x256xbf16, #tpu.memory_space<vmem>>, vector<1x512x256xbf16>
    %22 = vector.shape_cast %21 : vector<1x512x256xbf16> to vector<512x256xbf16>
    %cst_22 = arith.constant dense<0.000000e+00> : vector<64x256xf32>
    %23 = tpu.matmul %20, %22, %cst_22 {dimension_numbers = #tpu.dot_dimension_numbers<[1], [0], [0], [1], [0, 0, 1, 1], [], []>} : vector<64x512xbf16>, vector<512x256xbf16>, vector<64x256xf32> -> vector<64x256xf32>
    %24 = arith.addf %18, %23 : vector<64x256xf32>
    %c3 = arith.constant 3 : index
    %c0_23 = arith.constant 0 : index
    %25 = vector.load %arg5[%c3, %c0_23] : memref<72x512xf32, #tpu.memory_space<vmem>>, vector<64x512xf32>
    %26 = arith.truncf %25 : vector<64x512xf32> to vector<64x512xbf16>
    %c3_24 = arith.constant 3 : index
    %c0_25 = arith.constant 0 : index
    %c0_26 = arith.constant 0 : index
    %27 = vector.load %arg2[%c3_24, %c0_25, %c0_26] : memref<9x512x256xbf16, #tpu.memory_space<vmem>>, vector<1x512x256xbf16>
    %28 = vector.shape_cast %27 : vector<1x512x256xbf16> to vector<512x256xbf16>
    %cst_27 = arith.constant dense<0.000000e+00> : vector<64x256xf32>
    %29 = tpu.matmul %26, %28, %cst_27 {dimension_numbers = #tpu.dot_dimension_numbers<[1], [0], [0], [1], [0, 0, 1, 1], [], []>} : vector<64x512xbf16>, vector<512x256xbf16>, vector<64x256xf32> -> vector<64x256xf32>
    %30 = arith.addf %24, %29 : vector<64x256xf32>
    %c4_28 = arith.constant 4 : index
    %c0_29 = arith.constant 0 : index
    %31 = vector.load %arg5[%c4_28, %c0_29] : memref<72x512xf32, #tpu.memory_space<vmem>>, vector<64x512xf32>
    %32 = arith.truncf %31 : vector<64x512xf32> to vector<64x512xbf16>
    %c4_30 = arith.constant 4 : index
    %c0_31 = arith.constant 0 : index
    %c0_32 = arith.constant 0 : index
    %33 = vector.load %arg2[%c4_30, %c0_31, %c0_32] : memref<9x512x256xbf16, #tpu.memory_space<vmem>>, vector<1x512x256xbf16>
    %34 = vector.shape_cast %33 : vector<1x512x256xbf16> to vector<512x256xbf16>
    %cst_33 = arith.constant dense<0.000000e+00> : vector<64x256xf32>
    %35 = tpu.matmul %32, %34, %cst_33 {dimension_numbers = #tpu.dot_dimension_numbers<[1], [0], [0], [1], [0, 0, 1, 1], [], []>} : vector<64x512xbf16>, vector<512x256xbf16>, vector<64x256xf32> -> vector<64x256xf32>
    %36 = arith.addf %30, %35 : vector<64x256xf32>
    %c5 = arith.constant 5 : index
    %c0_34 = arith.constant 0 : index
    %37 = vector.load %arg5[%c5, %c0_34] : memref<72x512xf32, #tpu.memory_space<vmem>>, vector<64x512xf32>
    %38 = arith.truncf %37 : vector<64x512xf32> to vector<64x512xbf16>
    %c5_35 = arith.constant 5 : index
    %c0_36 = arith.constant 0 : index
    %c0_37 = arith.constant 0 : index
    %39 = vector.load %arg2[%c5_35, %c0_36, %c0_37] : memref<9x512x256xbf16, #tpu.memory_space<vmem>>, vector<1x512x256xbf16>
    %40 = vector.shape_cast %39 : vector<1x512x256xbf16> to vector<512x256xbf16>
    %cst_38 = arith.constant dense<0.000000e+00> : vector<64x256xf32>
    %41 = tpu.matmul %38, %40, %cst_38 {dimension_numbers = #tpu.dot_dimension_numbers<[1], [0], [0], [1], [0, 0, 1, 1], [], []>} : vector<64x512xbf16>, vector<512x256xbf16>, vector<64x256xf32> -> vector<64x256xf32>
    %42 = arith.addf %36, %41 : vector<64x256xf32>
    %c6 = arith.constant 6 : index
    %c0_39 = arith.constant 0 : index
    %43 = vector.load %arg5[%c6, %c0_39] : memref<72x512xf32, #tpu.memory_space<vmem>>, vector<64x512xf32>
    %44 = arith.truncf %43 : vector<64x512xf32> to vector<64x512xbf16>
    %c6_40 = arith.constant 6 : index
    %c0_41 = arith.constant 0 : index
    %c0_42 = arith.constant 0 : index
    %45 = vector.load %arg2[%c6_40, %c0_41, %c0_42] : memref<9x512x256xbf16, #tpu.memory_space<vmem>>, vector<1x512x256xbf16>
    %46 = vector.shape_cast %45 : vector<1x512x256xbf16> to vector<512x256xbf16>
    %cst_43 = arith.constant dense<0.000000e+00> : vector<64x256xf32>
    %47 = tpu.matmul %44, %46, %cst_43 {dimension_numbers = #tpu.dot_dimension_numbers<[1], [0], [0], [1], [0, 0, 1, 1], [], []>} : vector<64x512xbf16>, vector<512x256xbf16>, vector<64x256xf32> -> vector<64x256xf32>
    %48 = arith.addf %42, %47 : vector<64x256xf32>
    %c7 = arith.constant 7 : index
    %c0_44 = arith.constant 0 : index
    %49 = vector.load %arg5[%c7, %c0_44] : memref<72x512xf32, #tpu.memory_space<vmem>>, vector<64x512xf32>
    %50 = arith.truncf %49 : vector<64x512xf32> to vector<64x512xbf16>
    %c7_45 = arith.constant 7 : index
    %c0_46 = arith.constant 0 : index
    %c0_47 = arith.constant 0 : index
    %51 = vector.load %arg2[%c7_45, %c0_46, %c0_47] : memref<9x512x256xbf16, #tpu.memory_space<vmem>>, vector<1x512x256xbf16>
    %52 = vector.shape_cast %51 : vector<1x512x256xbf16> to vector<512x256xbf16>
    %cst_48 = arith.constant dense<0.000000e+00> : vector<64x256xf32>
    %53 = tpu.matmul %50, %52, %cst_48 {dimension_numbers = #tpu.dot_dimension_numbers<[1], [0], [0], [1], [0, 0, 1, 1], [], []>} : vector<64x512xbf16>, vector<512x256xbf16>, vector<64x256xf32> -> vector<64x256xf32>
    %54 = arith.addf %48, %53 : vector<64x256xf32>
    %c8 = arith.constant 8 : index
    %c0_49 = arith.constant 0 : index
    %55 = vector.load %arg5[%c8, %c0_49] : memref<72x512xf32, #tpu.memory_space<vmem>>, vector<64x512xf32>
    %56 = arith.truncf %55 : vector<64x512xf32> to vector<64x512xbf16>
    %c8_50 = arith.constant 8 : index
    %c0_51 = arith.constant 0 : index
    %c0_52 = arith.constant 0 : index
    %57 = vector.load %arg2[%c8_50, %c0_51, %c0_52] : memref<9x512x256xbf16, #tpu.memory_space<vmem>>, vector<1x512x256xbf16>
    %58 = vector.shape_cast %57 : vector<1x512x256xbf16> to vector<512x256xbf16>
    %cst_53 = arith.constant dense<0.000000e+00> : vector<64x256xf32>
    %59 = tpu.matmul %56, %58, %cst_53 {dimension_numbers = #tpu.dot_dimension_numbers<[1], [0], [0], [1], [0, 0, 1, 1], [], []>} : vector<64x512xbf16>, vector<512x256xbf16>, vector<64x256xf32> -> vector<64x256xf32>
    %60 = arith.addf %54, %59 : vector<64x256xf32>
    %c0_54 = arith.constant 0 : index
    %c0_55 = arith.constant 0 : index
    %61 = vector.load %arg3[%c0_54, %c0_55] : memref<1x256xf32, #tpu.memory_space<vmem>>, vector<1x256xf32>
    %62 = vector.broadcast %61 : vector<1x256xf32> to vector<64x256xf32>
    %63 = arith.addf %60, %62 : vector<64x256xf32>
    %c0_56 = arith.constant 0 : index
    %c0_57 = arith.constant 0 : index
    %c0_58 = arith.constant 0 : index
    %64 = vector.load %arg4[%c0_56, %c0_57, %c0_58] : memref<1x64x256xf32, #tpu.memory_space<vmem>>, vector<1x64x256xf32>
    %65 = vector.shape_cast %64 : vector<1x64x256xf32> to vector<64x256xf32>
    %66 = vector.shape_cast %63 : vector<64x256xf32> to vector<1x64x256xf32>
    tpu.vector_store %arg4[%c0_56, %c0_57, %c0_58], %66 {strides = array<i32>} : memref<1x64x256xf32, #tpu.memory_space<vmem>>, vector<1x64x256xf32>,
    return
  }
  func.func @transform_0(%arg0: i32) -> (i32, i32, i32) {
    %c0_i32 = arith.constant 0 : i32
    %c0_i32_0 = arith.constant 0 : i32
    %c0_i32_1 = arith.constant 0 : i32
    return %arg0, %c0_i32, %c0_i32_0 : i32, i32, i32
  }
  func.func @transform_1(%arg0: i32) -> (i32, i32, i32) {
    %c0_i32 = arith.constant 0 : i32
    %c0_i32_0 = arith.constant 0 : i32
    %c0_i32_1 = arith.constant 0 : i32
    %c0_i32_2 = arith.constant 0 : i32
    return %c0_i32, %c0_i32_0, %c0_i32_1 : i32, i32, i32
  }
  func.func @transform_2(%arg0: i32) -> (i32, i32) {
    %c0_i32 = arith.constant 0 : i32
    %c0_i32_0 = arith.constant 0 : i32
    %c0_i32_1 = arith.constant 0 : i32
    return %c0_i32, %c0_i32_0 : i32, i32
  }
  func.func @transform_3(%arg0: i32) -> (i32, i32, i32) {
    %c0_i32 = arith.constant 0 : i32
    %c0_i32_0 = arith.constant 0 : i32
    %c0_i32_1 = arith.constant 0 : i32
    return %arg0, %c0_i32, %c0_i32_0 : i32, i32, i32
  }
}

</mosaic_0001>

<bundles_post_ra>
// kernel: tile.53
= control target key start
LH: loop header
LB: loop body
LE: loop exit
PB: predicated region body
PF: predicated region fallthrough
CT: control target
= control target key end

     0   :  { %s28_s0 = inlined_call_operand.vmem [shape: f32[8], index: 0, kind: input, shape index: {}]   ;;  %s29_s1 = inlined_call_operand.vmem [shape: f32[16,8], index: 1, kind: output, shape index: {}]  }
   0x1   :  { %v4_v0 = vld [vmem:[%s28_s0] ss:$0 sm:$0xff] }
   0x2   :  { %5 = vst [vmem:[%s29_s1] sm:$0xff] %v4_v0  ;;  %8 = vst [vmem:[%s29_s1 + $0x8] sm:$0xff] %v4_v0 }

// kernel: tile.70
= control target key start
LH: loop header
LB: loop body
LE: loop exit
PB: predicated region body
PF: predicated region fallthrough
CT: control target
= control target key end

     0   :  { %s131_s10 = smov 120   ;;  %s132_s11 = smov 104   ;;  %vm3_vm0 = vcmask 64512   ;;  %vm9_vm1 = vcmask 1048512   ;;  %vm15_vm2 = vcmask 982912   ;;  %vm21_vm3 = vcmask 917312   ;;  %s207_s0 = inlined_call_operand.vmem [shape: f32[16,8], index: 0, kind: input, shape index: {}]   ;;  %s208_s1 = inlined_call_operand.vmem [shape: f32[1,1,128], index: 1, kind: output, shape index: {}]  }
   0x1   :  { %v101_v0 = vld [vmem:[%s207_s0 + $0xf] sm:$0x1]   ;;  %v103_v1 = vld [vmem:[%s207_s0 + $0xd] sm:$0x1]   ;;  %v102_v2 = vld [vmem:[%s207_s0 + $0xe] sm:$0x1]  }
   0x2   :  { %7 = vrot.lane.b32.xlu0 %v101_v0, %s131_s10  ;;  %19 = vrot.lane.b32.xlu1 %v103_v1, %s132_s11  ;;  %v104_v3 = vld [vmem:[%s207_s0 + $0xc] sm:$0x1]   ;;  %s133_s16 = smov 112   ;;  %s134_s17 = smov 96   ;;  %v105_v4 = vld [vmem:[%s207_s0 + $0xb] sm:$0x1]  }
   0x3   :  { %v106_v5 = vld [vmem:[%s207_s0 + $0xa] sm:$0x1]   ;;  %v2_v6 = vld [vmem:[%s207_s0] sm:$0x1]   ;;  %s135_s24 = smov 88   ;;  %s136_s25 = smov 80  }
   0x4   :  { %4 = vst.msk [vmem:[#allocation0] sm:$0x1] %vm3_vm0, %v2_v6   ;;  %v107_v7 = vld [vmem:[%s207_s0 + $0x9] sm:$0x1]   ;;  %v108_v8 = vld [vmem:[%s207_s0 + $0x8] sm:$0x1]  }
   0x5   :  { %s137_s30 = smov 72   ;;  %s138_s2 = smov 64   ;;  %v109_v9 = vld [vmem:[%s207_s0 + $0x7] sm:$0x1]   ;;  %v110_v10 = vld [vmem:[%s207_s0 + $0x6] sm:$0x1]  }
   0x6   :  { %13 = vrot.lane.b32.xlu0 %v102_v2, %s133_s16  ;;  %25 = vrot.lane.b32.xlu1 %v104_v3, %s134_s17  ;;  %s139_s7 = smov 56   ;;  %s140_s8 = smov 48   ;;  %v111_v11 = vld [vmem:[%s207_s0 + $0x5] sm:$0x1]   ;;  %v112_v12 = vld [vmem:[%s207_s0 + $0x4] sm:$0x1]  }
   0x7   :  { %s141_s13 = smov 40   ;;  %s142_s14 = smov 32   ;;  %v113_v13 = vld [vmem:[%s207_s0 + $0x3] sm:$0x1]   ;;  %v114_v14 = vld [vmem:[%s207_s0 + $0x2] sm:$0x1]  }
   0x8   :  { %s143_s19 = smov 24   ;;  %s144_s20 = smov 16   ;;  %v115_v15 = vld [vmem:[%s207_s0 + $0x1] sm:$0x1]   ;;  %vm27_vm4 = vcmask 851712   ;;  %vm33_vm5 = vcmask 786112  }
   0x9   :  { %s145_s0 = smov 8   ;;  %vm39_vm6 = vcmask 720512   ;;  %vm45_vm7 = vcmask 654912   ;;  %vm51_vm8 = vcmask 589312   ;;  %vm57_vm9 = vcmask 523712  }
   0xa   :  { %31 = vrot.lane.b32.xlu0 %v105_v4, %s135_s24  ;;  %37 = vrot.lane.b32.xlu1 %v106_v5, %s136_s25  ;;  %vm63_vm10 = vcmask 458112   ;;  %vm69_vm11 = vcmask 392512   ;;  %vm75_vm12 = vcmask 326912   ;;  %vm81_vm13 = vcmask 261312  }
   0xb   :  { %vm87_vm14 = vcmask 195712   ;;  %vm93_vm15 = vcmask 130112  }
   0xe   :  { %43 = vrot.lane.b32.xlu0 %v107_v7, %s137_s30  ;;  %49 = vrot.lane.b32.xlu1 %v108_v8, %s138_s2 }
  0x12   :  { %55 = vrot.lane.b32.xlu0 %v109_v9, %s139_s7  ;;  %61 = vrot.lane.b32.xlu1 %v110_v10, %s140_s8 }
  0x16   :  { %67 = vrot.lane.b32.xlu0 %v111_v11, %s141_s13  ;;  %73 = vrot.lane.b32.xlu1 %v112_v12, %s142_s14 }
  0x1a   :  { %79 = vrot.lane.b32.xlu0 %v113_v13, %s143_s19  ;;  %85 = vrot.lane.b32.xlu1 %v114_v14, %s144_s20 }
  0x1e   :  { %91 = vrot.lane.b32.xlu0 %v115_v15, %s145_s0 }
  0x74   :  { %v8_v16 = vpop.permute.xlu0 %7   ;;  %v20_v17 = vpop.permute.xlu1 %19  }
  0x75   :  { %10 = vst.msk [vmem:[#allocation0] sm:$0x1] %vm9_vm1, %v8_v16  }
  0x78   :  { %v14_v18 = vpop.permute.xlu0 %13   ;;  %v26_v19 = vpop.permute.xlu1 %25  }
  0x79   :  { %16 = vst.msk [vmem:[#allocation0] sm:$0x1] %vm15_vm2, %v14_v18  }
  0x7a   :  { %22 = vst.msk [vmem:[#allocation0] sm:$0x1] %vm21_vm3, %v20_v17  }
  0x7b   :  { %28 = vst.msk [vmem:[#allocation0] sm:$0x1] %vm27_vm4, %v26_v19  }
  0x7c   :  { %v32_v20 = vpop.permute.xlu0 %31   ;;  %v38_v21 = vpop.permute.xlu1 %37  }
  0x7d   :  { %34 = vst.msk [vmem:[#allocation0] sm:$0x1] %vm33_vm5, %v32_v20  }
  0x7e   :  { %40 = vst.msk [vmem:[#allocation0] sm:$0x1] %vm39_vm6, %v38_v21  }
  0x80   :  { %v44_v22 = vpop.permute.xlu0 %43   ;;  %v50_v23 = vpop.permute.xlu1 %49  }
  0x81   :  { %46 = vst.msk [vmem:[#allocation0] sm:$0x1] %vm45_vm7, %v44_v22  }
  0x82   :  { %52 = vst.msk [vmem:[#allocation0] sm:$0x1] %vm51_vm8, %v50_v23  }
  0x84   :  { %v56_v24 = vpop.permute.xlu0 %55   ;;  %v62_v25 = vpop.permute.xlu1 %61  }
  0x85   :  { %58 = vst.msk [vmem:[#allocation0] sm:$0x1] %vm57_vm9, %v56_v24  }
  0x86   :  { %64 = vst.msk [vmem:[#allocation0] sm:$0x1] %vm63_vm10, %v62_v25  }
  0x88   :  { %v68_v26 = vpop.permute.xlu0 %67   ;;  %v74_v27 = vpop.permute.xlu1 %73  }
  0x89   :  { %70 = vst.msk [vmem:[#allocation0] sm:$0x1] %vm69_vm11, %v68_v26  }
  0x8a   :  { %76 = vst.msk [vmem:[#allocation0] sm:$0x1] %vm75_vm12, %v74_v27  }
  0x8c   :  { %v80_v28 = vpop.permute.xlu0 %79   ;;  %v86_v29 = vpop.permute.xlu1 %85  }
  0x8d   :  { %82 = vst.msk [vmem:[#allocation0] sm:$0x1] %vm81_vm13, %v80_v28  }
  0x8e   :  { %88 = vst.msk [vmem:[#allocation0] sm:$0x1] %vm87_vm14, %v86_v29  }
  0x90   :  { %v92_v30 = vpop.permute.xlu0 %91  }
  0x91   :  { %94 = vst.msk [vmem:[#allocation0] sm:$0x1] %vm93_vm15, %v92_v30  }
  0x98   :  { %v98_v31 = vld [vmem:[#allocation0] sm:$0x1] }
  0x99   :  { %100 = vst [vmem:[%s208_s1] sm:$0x1] %v98_v31 }

// kernel: tile.49
= control target key start
LH: loop header
LB: loop body
LE: loop exit
PB: predicated region body
PF: predicated region fallthrough
CT: control target
= control target key end

     0   :  { %s131_s10 = smov 120   ;;  %s132_s11 = smov 104   ;;  %vm3_vm0 = vcmask 64512   ;;  %vm9_vm1 = vcmask 1048512   ;;  %vm15_vm2 = vcmask 982912   ;;  %vm21_vm3 = vcmask 917312   ;;  %s207_s0 = inlined_call_operand.vmem [shape: f32[16,8], index: 0, kind: input, shape index: {}]   ;;  %s208_s1 = inlined_call_operand.vmem [shape: f32[1,128], index: 1, kind: output, shape index: {}]  }
   0x1   :  { %v101_v0 = vld [vmem:[%s207_s0 + $0xf] sm:$0x1]   ;;  %v103_v1 = vld [vmem:[%s207_s0 + $0xd] sm:$0x1]   ;;  %v102_v2 = vld [vmem:[%s207_s0 + $0xe] sm:$0x1]  }
   0x2   :  { %7 = vrot.lane.b32.xlu0 %v101_v0, %s131_s10  ;;  %19 = vrot.lane.b32.xlu1 %v103_v1, %s132_s11  ;;  %v104_v3 = vld [vmem:[%s207_s0 + $0xc] sm:$0x1]   ;;  %s133_s16 = smov 112   ;;  %s134_s17 = smov 96   ;;  %v105_v4 = vld [vmem:[%s207_s0 + $0xb] sm:$0x1]  }
   0x3   :  { %v106_v5 = vld [vmem:[%s207_s0 + $0xa] sm:$0x1]   ;;  %v2_v6 = vld [vmem:[%s207_s0] sm:$0x1]   ;;  %s135_s24 = smov 88   ;;  %s136_s25 = smov 80  }
   0x4   :  { %4 = vst.msk [vmem:[#allocation0] sm:$0x1] %vm3_vm0, %v2_v6   ;;  %v107_v7 = vld [vmem:[%s207_s0 + $0x9] sm:$0x1]   ;;  %v108_v8 = vld [vmem:[%s207_s0 + $0x8] sm:$0x1]  }
   0x5   :  { %s137_s30 = smov 72   ;;  %s138_s2 = smov 64   ;;  %v109_v9 = vld [vmem:[%s207_s0 + $0x7] sm:$0x1]   ;;  %v110_v10 = vld [vmem:[%s207_s0 + $0x6] sm:$0x1]  }
   0x6   :  { %13 = vrot.lane.b32.xlu0 %v102_v2, %s133_s16  ;;  %25 = vrot.lane.b32.xlu1 %v104_v3, %s134_s17  ;;  %s139_s7 = smov 56   ;;  %s140_s8 = smov 48   ;;  %v111_v11 = vld [vmem:[%s207_s0 + $0x5] sm:$0x1]   ;;  %v112_v12 = vld [vmem:[%s207_s0 + $0x4] sm:$0x1]  }
   0x7   :  { %s141_s13 = smov 40   ;;  %s142_s14 = smov 32   ;;  %v113_v13 = vld [vmem:[%s207_s0 + $0x3] sm:$0x1]   ;;  %v114_v14 = vld [vmem:[%s207_s0 + $0x2] sm:$0x1]  }
   0x8   :  { %s143_s19 = smov 24   ;;  %s144_s20 = smov 16   ;;  %v115_v15 = vld [vmem:[%s207_s0 + $0x1] sm:$0x1]   ;;  %vm27_vm4 = vcmask 851712   ;;  %vm33_vm5 = vcmask 786112  }
   0x9   :  { %s145_s0 = smov 8   ;;  %vm39_vm6 = vcmask 720512   ;;  %vm45_vm7 = vcmask 654912   ;;  %vm51_vm8 = vcmask 589312   ;;  %vm57_vm9 = vcmask 523712  }
   0xa   :  { %31 = vrot.lane.b32.xlu0 %v105_v4, %s135_s24  ;;  %37 = vrot.lane.b32.xlu1 %v106_v5, %s136_s25  ;;  %vm63_vm10 = vcmask 458112   ;;  %vm69_vm11 = vcmask 392512   ;;  %vm75_vm12 = vcmask 326912   ;;  %vm81_vm13 = vcmask 261312  }
   0xb   :  { %vm87_vm14 = vcmask 195712   ;;  %vm93_vm15 = vcmask 130112  }
   0xe   :  { %43 = vrot.lane.b32.xlu0 %v107_v7, %s137_s30  ;;  %49 = vrot.lane.b32.xlu1 %v108_v8, %s138_s2 }
  0x12   :  { %55 = vrot.lane.b32.xlu0 %v109_v9, %s139_s7  ;;  %61 = vrot.lane.b32.xlu1 %v110_v10, %s140_s8 }
  0x16   :  { %67 = vrot.lane.b32.xlu0 %v111_v11, %s141_s13  ;;  %73 = vrot.lane.b32.xlu1 %v112_v12, %s142_s14 }
  0x1a   :  { %79 = vrot.lane.b32.xlu0 %v113_v13, %s143_s19  ;;  %85 = vrot.lane.b32.xlu1 %v114_v14, %s144_s20 }
  0x1e   :  { %91 = vrot.lane.b32.xlu0 %v115_v15, %s145_s0 }
  0x74   :  { %v8_v16 = vpop.permute.xlu0 %7   ;;  %v20_v17 = vpop.permute.xlu1 %19  }
  0x75   :  { %10 = vst.msk [vmem:[#allocation0] sm:$0x1] %vm9_vm1, %v8_v16  }
  0x78   :  { %v14_v18 = vpop.permute.xlu0 %13   ;;  %v26_v19 = vpop.permute.xlu1 %25  }
  0x79   :  { %16 = vst.msk [vmem:[#allocation0] sm:$0x1] %vm15_vm2, %v14_v18  }
  0x7a   :  { %22 = vst.msk [vmem:[#allocation0] sm:$0x1] %vm21_vm3, %v20_v17  }
  0x7b   :  { %28 = vst.msk [vmem:[#allocation0] sm:$0x1] %vm27_vm4, %v26_v19  }
  0x7c   :  { %v32_v20 = vpop.permute.xlu0 %31   ;;  %v38_v21 = vpop.permute.xlu1 %37  }
  0x7d   :  { %34 = vst.msk [vmem:[#allocation0] sm:$0x1] %vm33_vm5, %v32_v20  }
  0x7e   :  { %40 = vst.msk [vmem:[#allocation0] sm:$0x1] %vm39_vm6, %v38_v21  }
  0x80   :  { %v44_v22 = vpop.permute.xlu0 %43   ;;  %v50_v23 = vpop.permute.xlu1 %49  }
  0x81   :  { %46 = vst.msk [vmem:[#allocation0] sm:$0x1] %vm45_vm7, %v44_v22  }
  0x82   :  { %52 = vst.msk [vmem:[#allocation0] sm:$0x1] %vm51_vm8, %v50_v23  }
  0x84   :  { %v56_v24 = vpop.permute.xlu0 %55   ;;  %v62_v25 = vpop.permute.xlu1 %61  }
  0x85   :  { %58 = vst.msk [vmem:[#allocation0] sm:$0x1] %vm57_vm9, %v56_v24  }
  0x86   :  { %64 = vst.msk [vmem:[#allocation0] sm:$0x1] %vm63_vm10, %v62_v25  }
  0x88   :  { %v68_v26 = vpop.permute.xlu0 %67   ;;  %v74_v27 = vpop.permute.xlu1 %73  }
  0x89   :  { %70 = vst.msk [vmem:[#allocation0] sm:$0x1] %vm69_vm11, %v68_v26  }
  0x8a   :  { %76 = vst.msk [vmem:[#allocation0] sm:$0x1] %vm75_vm12, %v74_v27  }
  0x8c   :  { %v80_v28 = vpop.permute.xlu0 %79   ;;  %v86_v29 = vpop.permute.xlu1 %85  }
  0x8d   :  { %82 = vst.msk [vmem:[#allocation0] sm:$0x1] %vm81_vm13, %v80_v28  }
  0x8e   :  { %88 = vst.msk [vmem:[#allocation0] sm:$0x1] %vm87_vm14, %v86_v29  }
  0x90   :  { %v92_v30 = vpop.permute.xlu0 %91  }
  0x91   :  { %94 = vst.msk [vmem:[#allocation0] sm:$0x1] %vm93_vm15, %v92_v30  }
  0x98   :  { %v98_v31 = vld [vmem:[#allocation0] sm:$0x1] }
  0x99   :  { %100 = vst [vmem:[%s208_s1] sm:$0x1] %v98_v31 }

// kernel: generator_forward.5
= control target key start
LH: loop header
LB: loop body
LE: loop exit
PB: predicated region body
PF: predicated region fallthrough
CT: control target
= control target key end

     0   :  { %s1375_s17 = smov 0   ;;  %s1581_s0 = inlined_call_operand.vmem [shape: f32[2,16,64], index: 0, kind: input, shape index: {}]   ;;  %s1582_s1 = inlined_call_operand.vmem [shape: bf16[9,64,128], index: 1, kind: input, shape index: {}]   ;;  %s1583_s2 = inlined_call_operand.vmem [shape: f32[1,128], index: 2, kind: input, shape index: {}]   ;;  %s1584_s3 = inlined_call_operand.<no memory space> [shape: f32[1], index: 3, kind: input, shape index: {}]   ;;  %s1585_s4 = inlined_call_operand.vmem [shape: f32[2,16,128], index: 4, kind: output, shape index: {}]  }
   0x1   :  { %9 = sst [smem:[#allocation3]] %s1584_s3 }
   0x2 LB: > { %s1015_s18 = sadd.s32 4294967295, %s1343_s17   ;;  %p1019_p0 = scmp.ge.s32.totalorder %s1343_s17, 1  ;;  %s1343_s17 = sphi %s1375_s17, %s15_s17  }
   0x3   : > { %p163_p1 = scmp.lt.s32.totalorder %s1343_s17, 3 }
   0x5   : > { %p164_p2 = pnand %p1019_p0, %p163_p1 }
   0x6   : > { %v1301_v0 = vld [vmem:[%s1582_s1 + $0x20] sm:$0xff] (!%p164_p2)   ;;  %v1345_v1 = vmov (!%p164_p2), 0.0   ;;  %v1303_v3 = vld [vmem:[%s1582_s1 + $0x28] sm:$0xff] (!%p164_p2)   ;;  %vm1346_vm0 = vmmov (!%p164_p2), 0   ;;  %p189_p3 = scmp.lt.s32.totalorder (!%p164_p2), %s1015_s18, 1  ;;  %vm200_vm1 = vcmask (!%p164_p2), 519168  }
   0x7   : > { %167 = sbr.rel (%p164_p2) target bundleno = 314 (0x13a), region = 36  ;;  %1183 = vmatprep.subr.bf16.mxu0 (!%p164_p2), %v1345_v1  ;;  %1195 = vmatprep.subr.bf16.mxu1 (!%p164_p2), %v1345_v1  ;;  %v1302_v2 = vld [vmem:[%s1582_s1] sm:$0xff] (!%p164_p2)   ;;  %v1304_v4 = vld [vmem:[%s1582_s1 + $0x8] sm:$0xff] (!%p164_p2)   ;;  %201 = vst.msk [vmem:[#allocation2] sm:$0xf] (!%p164_p2), %vm200_vm1, %v1345_v1  ;;  %v1305_v5 = vld [vmem:[%s1582_s1 + $0x30] sm:$0xff] (!%p164_p2)  }
   0x8   : > { %1184 = vmatpush3.bf16.msra.mxu0 (!%p164_p2), %v1301_v0  ;;  %1191 = vmatprep.mubr.msk.bf16.mxu0 (!%p164_p2), %vm1346_vm0, %v1345_v1  ;;  %202 = vst.msk [vmem:[#allocation2 + $0x14] sm:$0xf] (!%p164_p2), %vm200_vm1, %v1345_v1  ;;  %vm205_vm2 = vcmask (!%p164_p2), 523264   ;;  %v1306_v6 = vld [vmem:[%s1582_s1 + $0x10] sm:$0xff] (!%p164_p2)   ;;  %v1307_v9 = vld [vmem:[%s1582_s1 + $0x38] sm:$0xff] (!%p164_p2)   ;;  %v1309_v11 = vld [vmem:[%s1582_s1 + $0x40] sm:$0xff] (!%p164_p2)  }
   0x9   : > { %1196 = vmatpush3.bf16.msra.mxu1 (!%p164_p2), %v1302_v2  ;;  %1185 = vmatprep.subr.bf16.mxu0 (!%p164_p2), %v1345_v1  ;;  %v1308_v10 = vld [vmem:[%s1582_s1 + $0x18] sm:$0xff] (!%p164_p2)   ;;  %v1310_v17 = vld [vmem:[%s1582_s1 + $0x60] sm:$0xff] (!%p164_p2)   ;;  %v1311_v19 = vld [vmem:[%s1582_s1 + $0x48] sm:$0xff] (!%p164_p2)   ;;  %s950_s21 = sld [smem:[#allocation3]] (!%p164_p2) }
   0xa   : > { %1197 = vmatprep.subr.bf16.mxu1 (!%p164_p2), %v1345_v1  ;;  %1203 = vmatprep.mubr.msk.bf16.mxu1 (!%p164_p2), %vm1346_vm0, %v1345_v1  ;;  %v1312_v20 = vld [vmem:[%s1582_s1 + $0x68] sm:$0xff] (!%p164_p2)   ;;  %v1313_v21 = vld [vmem:[%s1582_s1 + $0x50] sm:$0xff] (!%p164_p2)   ;;  %v1315_v23 = vld [vmem:[%s1582_s1 + $0x58] sm:$0xff] (!%p164_p2)  }
   0xb   : > { %v1314_v22 = vld [vmem:[%s1582_s1 + $0x70] sm:$0xff] (!%p164_p2)   ;;  %v1316_v24 = vld [vmem:[%s1582_s1 + $0x78] sm:$0xff] (!%p164_p2)   ;;  %v1317_v30 = vld [vmem:[%s1582_s1 + $0x80] sm:$0xff] (!%p164_p2)  }
   0xc   : > { %1186 = vmatpush3.bf16.msra.mxu0 (!%p164_p2), %v1303_v3  ;;  %v1318_v32 = vld [vmem:[%s1582_s1 + $0xa0] sm:$0xff] (!%p164_p2)   ;;  %v1319_v33 = vld [vmem:[%s1582_s1 + $0x88] sm:$0xff] (!%p164_p2)   ;;  %v1321_v35 = vld [vmem:[%s1582_s1 + $0x90] sm:$0xff] (!%p164_p2)  }
   0xd   : > { %1198 = vmatpush3.bf16.msra.mxu1 (!%p164_p2), %v1304_v4  ;;  %1187 = vmatprep.subr.bf16.mxu0 (!%p164_p2), %v1345_v1  ;;  %v1320_v34 = vld [vmem:[%s1582_s1 + $0xa8] sm:$0xff] (!%p164_p2)   ;;  %v1322_v36 = vld [vmem:[%s1582_s1 + $0xb0] sm:$0xff] (!%p164_p2)   ;;  %v1323_v37 = vld [vmem:[%s1582_s1 + $0x98] sm:$0xff] (!%p164_p2)  }
   0xe   : > { %s1587_s18 = smov (!%p189_p3, %s1015_s18), 1  ;;  %1199 = vmatprep.subr.bf16.mxu1 %v1345_v1  ;;  %v1324_v40 = vld [vmem:[%s1582_s1 + $0xb8] sm:$0xff]   ;;  %v1325_v44 = vld [vmem:[%s1582_s1 + $0xc0] sm:$0xff]   ;;  %v1327_v47 = vld [vmem:[%s1582_s1 + $0xc8] sm:$0xff]  }
   0xf   : > { %s1136_s28 = sshll.u32 %s1587_s18, 4  ;;  %v1326_v46 = vld [vmem:[%s1582_s1 + $0xe0] sm:$0xff]   ;;  %v1328_v48 = vld [vmem:[%s1582_s1 + $0xe8] sm:$0xff]   ;;  %v1329_v49 = vld [vmem:[%s1582_s1 + $0xd0] sm:$0xff]  }
  0x10   : > { %s193_s7 = scalar_lea.vmem %s1581_s0, %s1136_s28  ;;  %1188 = vmatpush3.bf16.msra.mxu0 %v1305_v5  ;;  %v1330_v50 = vld [vmem:[%s1582_s1 + $0xf0] sm:$0xff]   ;;  %v1331_v51 = vld [vmem:[%s1582_s1 + $0xd8] sm:$0xff]   ;;  %v1333_v58 = vld [vmem:[%s1582_s1 + $0x100] sm:$0xff]   ;;  %s198_s26 = scalar_lea.vmem %s1585_s4, %s1136_s28 }
  0x11   : > { %v203_v7 = vld [vmem:[%s193_s7] sm:$0xff]  ;;  %v204_v8 = vld [vmem:[%s193_s7 + $0x8] sm:$0xff]  ;;  %1200 = vmatpush3.bf16.msra.mxu1 %v1306_v6  ;;  %1189 = vmatprep.subr.bf16.mxu0 %v1345_v1  ;;  %v1332_v54 = vld [vmem:[%s1582_s1 + $0xf8] sm:$0xff]  }
  0x12   : > { %206 = vst.msk [vmem:[#allocation2 + $0x4] sm:$0xff] %vm205_vm2, %v203_v7  ;;  %207 = vst.msk [vmem:[#allocation2 + $0xc] sm:$0xff] %vm205_vm2, %v204_v8  ;;  %1201 = vmatprep.subr.bf16.mxu1 %v1345_v1  ;;  %v1334_v60 = vld [vmem:[%s1582_s1 + $0x108] sm:$0xff]   ;;  %v1335_v61 = vld [vmem:[%s1582_s1 + $0x110] sm:$0xff]  }
  0x13   : > { %v1336_v62 = vld [vmem:[%s1582_s1 + $0x118] sm:$0xff]  }
  0x14   : > { %1190 = vmatpush3.bf16.msra.mxu0 %v1307_v9 }
  0x15   : > { %1202 = vmatpush3.bf16.msra.mxu1 %v1308_v10  ;;  %1207 = vmatprep.subr.bf16.mxu0 %v1345_v1 }
  0x16   : > { %1219 = vmatprep.subr.bf16.mxu1 %v1345_v1 }
  0x19   : > { %v219_v12 = vld [vmem:[#allocation2 + $0x1] sm:$0xff]  ;;  %v220_v13 = vld [vmem:[#allocation2 + $0x9] sm:$0xff] }
  0x1a   : > { %v208_v14 = vld [vmem:[#allocation2] sm:$0xff]  ;;  %v221_v15 = vpack.c.bf16 %v220_v13, %v219_v12  ;;  %v1436_v16 = vld [vmem:[#allocation2 + $0x8] sm:$0xff]  ;;  %v860_v63 = vld [vmem:[#allocation2 + $0x10] sm:$0xff] }
  0x1b   : > { %v210_v18 = vpack.c.bf16 %v1436_v16, %v208_v14  ;;  %v367_v25 = vld [vmem:[#allocation2 + $0x2] sm:$0xff]  ;;  %v368_v26 = vld [vmem:[#allocation2 + $0xa] sm:$0xff]  ;;  %v861_v0 = vpack.c.bf16 %v860_v63, %v1436_v16 }
  0x1c   : > { %1192 = vmatmul.mubr.msk.bf16.vlgmr.msra.gmra.mrb[0].mxu0 %vm205_vm2, %v221_v15  ;;  %v449_v27 = vld [vmem:[#allocation2 + $0x3] sm:$0xff]  ;;  %v450_v28 = vld [vmem:[#allocation2 + $0xb] sm:$0xff]  ;;  %v369_v29 = vpack.c.bf16 %v368_v26, %v367_v25 }
  0x1d   : > { %1204 = vmatmul.mubr.msk.bf16.vlgmr.msra.gmra.mrb[0].mxu1 %vm205_vm2, %v210_v18  ;;  %1208 = vmatpush3.bf16.msra.mxu0 %v1309_v11  ;;  %v451_v31 = vpack.c.bf16 %v450_v28, %v449_v27  ;;  %v531_v38 = vld [vmem:[#allocation2 + $0x4] sm:$0xff]  ;;  %v532_v39 = vld [vmem:[#allocation2 + $0xc] sm:$0xff] }
  0x1e   : > { %1220 = vmatpush3.bf16.msra.mxu1 %v1310_v17  ;;  %1209 = vmatprep.subr.bf16.mxu0 %v1345_v1  ;;  %v613_v41 = vld [vmem:[#allocation2 + $0x5] sm:$0xff]  ;;  %v614_v42 = vld [vmem:[#allocation2 + $0xd] sm:$0xff]  ;;  %v533_v43 = vpack.c.bf16 %v532_v39, %v531_v38 }
  0x1f   : > { %1221 = vmatprep.subr.bf16.mxu1 %v1345_v1  ;;  %1215 = vmatprep.mubr.msk.bf16.mxu0 %vm1346_vm0, %v1345_v1  ;;  %v615_v45 = vpack.c.bf16 %v614_v42, %v613_v41  ;;  %v695_v52 = vld [vmem:[#allocation2 + $0x6] sm:$0xff]  ;;  %v696_v53 = vld [vmem:[#allocation2 + $0xe] sm:$0xff] }
  0x20   : > { %1227 = vmatprep.mubr.msk.bf16.mxu1 %vm1346_vm0, %v1345_v1  ;;  %v777_v55 = vld [vmem:[#allocation2 + $0x7] sm:$0xff]  ;;  %v778_v56 = vld [vmem:[#allocation2 + $0xf] sm:$0xff]  ;;  %v697_v57 = vpack.c.bf16 %v696_v53, %v695_v52 }
  0x21   : > { %1210 = vmatpush3.bf16.msra.mxu0 %v1311_v19  ;;  %v779_v59 = vpack.c.bf16 %v778_v56, %v777_v55 }
  0x22   : > { %1222 = vmatpush3.bf16.msra.mxu1 %v1312_v20  ;;  %1211 = vmatprep.subr.bf16.mxu0 %v1345_v1 }
  0x23   : > { %1223 = vmatprep.subr.bf16.mxu1 %v1345_v1 }
  0x25   : > { %1212 = vmatpush3.bf16.msra.mxu0 %v1313_v21 }
  0x26   : > { %1224 = vmatpush3.bf16.msra.mxu1 %v1314_v22  ;;  %1213 = vmatprep.subr.bf16.mxu0 %v1345_v1 }
  0x27   : > { %1225 = vmatprep.subr.bf16.mxu1 %v1345_v1 }
  0x29   : > { %1214 = vmatpush3.bf16.msra.mxu0 %v1315_v23 }
  0x2a   : > { %1226 = vmatpush3.bf16.msra.mxu1 %v1316_v24  ;;  %1231 = vmatprep.subr.bf16.mxu0 %v1345_v1 }
  0x2b   : > { %1243 = vmatprep.subr.bf16.mxu1 %v1345_v1 }
  0x2c   : > { %1216 = vmatmul.mubr.msk.bf16.vlgmr.msra.gmra.mrb[4].mxu0 %vm205_vm2, %v369_v29 }
  0x2d   : > { %1232 = vmatpush3.bf16.msra.mxu0 %v1317_v30  ;;  %1228 = vmatmul.mubr.msk.bf16.vlgmr.msra.gmra.mrb[4].mxu1 %vm205_vm2, %v451_v31 }
  0x2e   : > { %1244 = vmatpush3.bf16.msra.mxu1 %v1318_v32  ;;  %1233 = vmatprep.subr.bf16.mxu0 %v1345_v1 }
  0x2f   : > { %1245 = vmatprep.subr.bf16.mxu1 %v1345_v1  ;;  %1239 = vmatprep.mubr.msk.bf16.mxu0 %vm1346_vm0, %v1345_v1 }
  0x30   : > { %1251 = vmatprep.mubr.msk.bf16.mxu1 %vm1346_vm0, %v1345_v1 }
  0x31   : > { %1234 = vmatpush3.bf16.msra.mxu0 %v1319_v33 }
  0x32   : > { %1246 = vmatpush3.bf16.msra.mxu1 %v1320_v34  ;;  %1235 = vmatprep.subr.bf16.mxu0 %v1345_v1 }
  0x33   : > { %1247 = vmatprep.subr.bf16.mxu1 %v1345_v1 }
  0x35   : > { %1236 = vmatpush3.bf16.msra.mxu0 %v1321_v35 }
  0x36   : > { %1248 = vmatpush3.bf16.msra.mxu1 %v1322_v36  ;;  %1237 = vmatprep.subr.bf16.mxu0 %v1345_v1 }
  0x37   : > { %1249 = vmatprep.subr.bf16.mxu1 %v1345_v1 }
  0x39   : > { %1238 = vmatpush3.bf16.msra.mxu0 %v1323_v37 }
  0x3a   : > { %1250 = vmatpush3.bf16.msra.mxu1 %v1324_v40  ;;  %1255 = vmatprep.subr.bf16.mxu0 %v1345_v1 }
  0x3b   : > { %1267 = vmatprep.subr.bf16.mxu1 %v1345_v1 }
  0x3c   : > { %1240 = vmatmul.mubr.msk.bf16.vlgmr.msra.gmra.mrb[8].mxu0 %vm205_vm2, %v533_v43 }
  0x3d   : > { %1256 = vmatpush3.bf16.msra.mxu0 %v1325_v44  ;;  %1252 = vmatmul.mubr.msk.bf16.vlgmr.msra.gmra.mrb[8].mxu1 %vm205_vm2, %v615_v45 }
  0x3e   : > { %1268 = vmatpush3.bf16.msra.mxu1 %v1326_v46  ;;  %1257 = vmatprep.subr.bf16.mxu0 %v1345_v1 }
  0x3f   : > { %1269 = vmatprep.subr.bf16.mxu1 %v1345_v1  ;;  %1263 = vmatprep.mubr.msk.bf16.mxu0 %vm1346_vm0, %v1345_v1 }
  0x40   : > { %1275 = vmatprep.mubr.msk.bf16.mxu1 %vm1346_vm0, %v1345_v1 }
  0x41   : > { %1258 = vmatpush3.bf16.msra.mxu0 %v1327_v47 }
  0x42   : > { %1270 = vmatpush3.bf16.msra.mxu1 %v1328_v48  ;;  %1259 = vmatprep.subr.bf16.mxu0 %v1345_v1  ;;  %v1133_v48 = vld [vmem:[%s1583_s2] ss:$0 sm:$0xff] }
  0x43   : > { %1271 = vmatprep.subr.bf16.mxu1 %v1345_v1 }
  0x45   : > { %1260 = vmatpush3.bf16.msra.mxu0 %v1329_v49 }
  0x46   : > { %1272 = vmatpush3.bf16.msra.mxu1 %v1330_v50  ;;  %1261 = vmatprep.subr.bf16.mxu0 %v1345_v1 }
  0x47   : > { %1273 = vmatprep.subr.bf16.mxu1 %v1345_v1 }
  0x49   : > { %1262 = vmatpush3.bf16.msra.mxu0 %v1331_v51  ;;  %v953_v51 = vstv %s950_s21 }
  0x4a   : > { %1274 = vmatpush3.bf16.msra.mxu1 %v1332_v54  ;;  %1279 = vmatprep.subr.bf16.mxu0 %v1345_v1 }
  0x4c   : > { %1264 = vmatmul.mubr.msk.bf16.vlgmr.msra.gmra.mrb[12].mxu0 %vm205_vm2, %v697_v57 }
  0x4d   : > { %1280 = vmatpush3.bf16.msra.mxu0 %v1333_v58  ;;  %1276 = vmatmul.mubr.msk.bf16.vlgmr.msra.gmra.mrb[12].mxu1 %vm205_vm2, %v779_v59 }
  0x4e   : > { %1281 = vmatprep.subr.bf16.mxu0 %v1345_v1  ;;  %1287 = vmatprep.mubr.msk.bf16.mxu0 %vm1346_vm0, %v1345_v1 }
  0x51   : > { %1282 = vmatpush3.bf16.msra.mxu0 %v1334_v60 }
  0x52   : > { %1283 = vmatprep.subr.bf16.mxu0 %v1345_v1 }
  0x55   : > { %1284 = vmatpush3.bf16.msra.mxu0 %v1335_v61 }
  0x56   : > { %1285 = vmatprep.subr.bf16.mxu0 %v1345_v1 }
  0x59   : > { %1286 = vmatpush3.bf16.msra.mxu0 %v1336_v62 }
  0x5c   : > { %1288 = vmatmul.mubr.msk.bf16.vlgmr.msra.gmra.mrb[16].mxu0 %vm205_vm2, %v861_v0 }
  0xef   : > { %v292_v2 = vpop.f32.mrb[0].mxu0 }
  0xf0   : > { %v360_v3 = vpop.f32.mrb[0].mxu1  ;;  %v1193_v4 = vpop.f32.mrb[1].mxu0 }
  0xf1   : > { %v361_v5 = vadd.f32 %v360_v3, %v292_v2  ;;  %v1205_v6 = vpop.f32.mrb[1].mxu1  ;;  %v295_v7 = vpop.f32.mrb[2].mxu0 }
  0xf2   : > { %v363_v8 = vpop.f32.mrb[2].mxu1  ;;  %v1194_v9 = vpop.f32.mrb[3].mxu0 }
  0xf3   : > { %v364_v10 = vadd.f32 %v363_v8, %v295_v7  ;;  %v1206_v11 = vpop.f32.mrb[3].mxu1 }
  0xff   : > { %v440_v12 = vpop.f32.mrb[4].mxu0 }
 0x100   : > { %v447_v13 = vadd.f32 %v440_v12, %v361_v5  ;;  %v1217_v14 = vpop.f32.mrb[5].mxu0  ;;  %v522_v15 = vpop.f32.mrb[4].mxu1 }
 0x101   : > { %v443_v1 = vpop.f32.mrb[6].mxu0  ;;  %v1229_v17 = vpop.f32.mrb[5].mxu1 }
 0x102   : > { %v448_v16 = vadd.f32 %v443_v1, %v364_v10  ;;  %v529_v18 = vadd.f32 %v522_v15, %v447_v13  ;;  %v1218_v19 = vpop.f32.mrb[7].mxu0  ;;  %v525_v20 = vpop.f32.mrb[6].mxu1 }
 0x103   : > { %v1230_v21 = vpop.f32.mrb[7].mxu1 }
 0x104   : > { %v530_v22 = vadd.f32 %v525_v20, %v448_v16 }
 0x10f   : > { %v604_v23 = vpop.f32.mrb[8].mxu0 }
 0x110   : > { %v611_v24 = vadd.f32 %v604_v23, %v529_v18  ;;  %v1241_v25 = vpop.f32.mrb[9].mxu0  ;;  %v686_v26 = vpop.f32.mrb[8].mxu1 }
 0x111   : > { %v607_v27 = vpop.f32.mrb[10].mxu0  ;;  %v1253_v28 = vpop.f32.mrb[9].mxu1 }
 0x112   : > { %v612_v29 = vadd.f32 %v607_v27, %v530_v22  ;;  %v693_v30 = vadd.f32 %v686_v26, %v611_v24  ;;  %v1242_v31 = vpop.f32.mrb[11].mxu0  ;;  %v689_v32 = vpop.f32.mrb[10].mxu1 }
 0x113   : > { %v1254_v33 = vpop.f32.mrb[11].mxu1 }
 0x114   : > { %v694_v34 = vadd.f32 %v689_v32, %v612_v29 }
 0x11f   : > { %v768_v35 = vpop.f32.mrb[12].mxu0 }
 0x120   : > { %v775_v36 = vadd.f32 %v768_v35, %v693_v30  ;;  %v1265_v37 = vpop.f32.mrb[13].mxu0  ;;  %v850_v38 = vpop.f32.mrb[12].mxu1 }
 0x121   : > { %v771_v39 = vpop.f32.mrb[14].mxu0  ;;  %v1277_v40 = vpop.f32.mrb[13].mxu1 }
 0x122   : > { %v776_v41 = vadd.f32 %v771_v39, %v694_v34  ;;  %v857_v42 = vadd.f32 %v850_v38, %v775_v36  ;;  %v1266_v43 = vpop.f32.mrb[15].mxu0  ;;  %v853_v44 = vpop.f32.mrb[14].mxu1 }
 0x123   : > { %v1278_v45 = vpop.f32.mrb[15].mxu1 }
 0x124   : > { %v858_v46 = vadd.f32 %v853_v44, %v776_v41 }
 0x12f   : > { %v932_v47 = vpop.f32.mrb[16].mxu0 }
 0x130   : > { %v939_v49 = vadd.f32 %v932_v47, %v857_v42  ;;  %v1289_v50 = vpop.f32.mrb[17].mxu0 }
 0x131   : > { %v935_v52 = vpop.f32.mrb[18].mxu0 }
 0x132   : > { %v948_v53 = vadd.f32 %v1133_v48, %v939_v49  ;;  %v940_v54 = vadd.f32 %v935_v52, %v858_v46  ;;  %v1290_v55 = vpop.f32.mrb[19].mxu0 }
 0x134   : > { %vm951_vm3 = vcmp.ge.f32.partialorder %v948_v53, 0.0  ;;  %v954_v56 = vmul.f32 %v953_v51, %v948_v53  ;;  %v949_v57 = vadd.f32 %v1133_v48, %v940_v54 }
 0x136   : > { %v956_v58 = vsel %vm951_vm3, %v948_v53, %v954_v56  ;;  %vm952_vm4 = vcmp.ge.f32.partialorder %v949_v57, 0.0  ;;  %v955_v59 = vmul.f32 %v953_v51, %v949_v57 }
 0x137   : > { %958 = vst [vmem:[%s198_s26] sm:$0xff] %v956_v58 }
 0x138   : > { %v957_v60 = vsel %vm952_vm4, %v949_v57, %v955_v59 }
 0x139   : > { %959 = vst [vmem:[%s198_s26 + $0x8] sm:$0xff] %v957_v60 }
 0x13a PF: > { %s15_s17 = sadd.s32 1, %s1343_s17  }
 0x13b   : > { %p12_p4 = scmp.ge.s32.totalorder %s15_s17, 4  }
 0x13d   :  { %14 = sbr.rel (!%p12_p4) target bundleno = 2 (0x2), region = 74 }

// kernel: generator_forward.6
= control target key start
LH: loop header
LB: loop body
LE: loop exit
PB: predicated region body
PF: predicated region fallthrough
CT: control target
= control target key end

     0   :  { %11 = vsyncpa [#allocation5], 0  ;;  %s2206_s21 = smov 0   ;;  %s2208_s22 = smov 0   ;;  %s2503_s0 = inlined_call_operand.vmem [shape: f32[2,16,128], index: 0, kind: input, shape index: {}]   ;;  %s2504_s1 = inlined_call_operand.vmem [shape: bf16[3,3,128,128], index: 1, kind: input, shape index: {}]   ;;  %s2505_s2 = inlined_call_operand.vmem [shape: f32[3,1,128], index: 2, kind: input, shape index: {}]   ;;  %s2506_s3 = inlined_call_operand.vmem [shape: bf16[3,3,128,128], index: 3, kind: input, shape index: {}]   ;;  %s2507_s4 = inlined_call_operand.vmem [shape: f32[3,1,128], index: 4, kind: input, shape index: {}]   ;;  %s2508_s5 = inlined_call_operand.vmem [shape: f32[3], index: 5, kind: input, shape index: {}]   ;;  %s2509_s6 = inlined_call_operand.vmem [shape: f32[2,16,128], index: 6, kind: output, shape index: {}]  }
   0x1   :  { %s2210_s23 = smov 0   ;;  %s2212_s24 = smov 0  }
   0x2   :  { %s2214_s25 = smov 0  }
   0x3 LB: > { %s1525_s26 = sadd.s32 4294967295, %s2163_s25   ;;  %s26_s27 = sadd.s32 1, %s2155_s23  ;;  %s2163_s25 = sphi %s2214_s25, %s17_s25   ;;  %s2159_s24 = sphi %s2212_s24, %s2515_s24   ;;  %s2155_s23 = sphi %s2210_s23, %s2514_s23   ;;  %s2151_s22 = sphi %s2208_s22, %s2513_s22   ;;  %s2147_s21 = sphi %s2206_s21, %s2512_s21  }
   0x4   : > { %p27_p0 = scmp.ge.s32.totalorder %s26_s27, 3  ;;  %s29_s28 = sadd.s32 1, %s2159_s24 }
   0x5   : > { %p1527_p1 = scmp.ge.s32.totalorder %s2163_s25, 1  ;;  %p211_p2 = scmp.lt.s32.totalorder %s2163_s25, 7 }
   0x6   : > { %s2517_s27 = smov (%p27_p0, %s26_s27), 0  ;;  %s2519_s28 = smov (!%p27_p0, %s29_s28), %s2159_s24 }
   0x7   : > { %p2239_p3 = pnand %p1527_p1, %p211_p2  ;;  %p31_p4 = scmp.ge.s32.totalorder %s2519_s28, 2 }
   0x8   : > { %p2243_p5 = scmp.eq.s32.totalorder %s1525_s26, 0  ;;  %s224_s9 = sshll.u32 %s2508_s5, 4  ;;  %s225_s9 = int_to_ptr.vmem [resolvable:$true] %s224_s9 }
   0x9   : > { %p1982_p6 = pneg %p2239_p3  ;;  %s2521_s28 = smov (%p31_p4, %s2519_s28), 0 }
   0xa   : > { %s2106_s10 = scalar_lea.vmem %s225_s9, 16  ;;  %p2114_p12 = scmp.lt.s32.totalorder %s225_s9, %s225_s9 }
   0xb   : > { %p1983_p7 = pnand %p2243_p5, %p1982_p6  ;;  %p2107_p8 = scmp.ne.s32.totalorder %s225_s9, %s2106_s10 }
   0xc   : > { %p2115_p13 = scmp.lt.s32.totalorder %s2106_s10, %s2106_s10 }
   0xd   : > { %p2108_p9 = pneg %p1983_p7 }
   0xe   : > { %p2116_p0 = por %p2115_p13, %p2114_p12 }
   0xf   : > { %p2109_p10 = pnand %p2108_p9, %p2107_p8 }
  0x11   : > { %p2110_p11 = pneg %p2109_p10 }
  0x13   : > { %p2117_p1 = pnand %p2116_p0, %p2110_p11 }
  0x15   : > { %2120 = shalt.err (!%p2117_p1)
}
  0x16   : > { %s2165_s11 = smov [#allocation4]   ;;  %273 = sbr.rel (%p2239_p3) target bundleno = 872 (0x368), region = 44 }
  0x17   : > { %1985 = dma.vmem_to_smem (!%p1983_p7), %s225_s9, 16, %s2165_s11, [#allocation5]  }
  0x1d   : > { %2142 = dma.done.wait (%p2243_p5), [#allocation5], 16  }
  0x1e   : > { %2144 = vsyncadd (%p2243_p5), [#allocation5], 4294967280 }
  0x1f   : > { %279 = sfence }
  0x20   : > { %p320_p2 = scmp.lt.s32.totalorder %s2151_s22, 1  ;;  %p325_p4 = scmp.lt.s32.totalorder %s2147_s21, 2 }
  0x21   : > { %p1538_p3 = scmp.ne.s32.totalorder %s2147_s21, 0 }
  0x22   : > { %s2523_s22 = smov (!%p320_p2, %s2151_s22), 1  ;;  %v2166_v2 = vmov (!%p1538_p3), 0.0  }
  0x23   : > { %s2266_s12 = scalar_select %p325_p4, %s2147_s21, 2 }
  0x24   : > { %s1714_s13 = sshll.u32 %s2523_s22, 4  ;;  %350 = sbr.rel (%p1538_p3) target bundleno = 43 (0x2b), region = 52  ;;  %351 = vst [vmem:[#allocation3] sm:$0x1] (!%p1538_p3), %v2166_v2  ;;  %352 = vst [vmem:[#allocation3 + $0x11] sm:$0x1] (!%p1538_p3), %v2166_v2 }
  0x25   : > { %s2271_s16 = scalar_lea.vmem %s2503_s0, %s1714_s13  ;;  %s1977_s17 = smul.u32 192, %s2266_s12 }
  0x26   : > { %s2278_s20 = scalar_lea.vmem %s2505_s2, %s2266_s12  ;;  %s340_s30 = scalar_lea.vmem %s2507_s4, %s2266_s12  ;;  %v353_v0 = vld [vmem:[%s2271_s16] sm:$0xff] (!%p1538_p3)  ;;  %v354_v1 = vld [vmem:[%s2271_s16 + $0x8] sm:$0xff] (!%p1538_p3) }
  0x27   : > { %s2287_s9 = scalar_lea.vmem %s2504_s1, %s1977_s17  ;;  %s2292_s11 = scalar_lea.vmem %s2506_s3, %s1977_s17  ;;  %355 = vst [vmem:[#allocation2] sm:$0xff] (!%p1538_p3), %v353_v0  ;;  %356 = vst [vmem:[#allocation2 + $0x8] sm:$0xff] (!%p1538_p3), %v354_v1 }
  0x28   : > { %s2297_s18 = scalar_lea.vmem %s2509_s6, %s1714_s13 }
  0x2b PF: > { %p1539_p5 = scmp.ge.s32.totalorder %s2147_s21, 2 }
  0x2c   : > { %v2034_v3 = vld [vmem:[%s2287_s9 + $0x40] sm:$0xff] (!%p1539_p5)   ;;  %v2167_v4 = vmov (!%p1539_p5), 0.0   ;;  %v2036_v6 = vld [vmem:[%s2287_s9 + $0x48] sm:$0xff] (!%p1539_p5)   ;;  %vm2168_vm0 = vmmov (!%p1539_p5), 0   ;;  %v2038_v8 = vld [vmem:[%s2287_s9 + $0x50] sm:$0xff] (!%p1539_p5)   ;;  %s702_s13 = sld [smem:[#allocation4 + %s2147_s21]] (!%p1539_p5) }
  0x2d   : > { %360 = sbr.rel (%p1539_p5) target bundleno = 585 (0x249), region = 56  ;;  %1797 = vmatprep.subr.bf16.mxu0 (!%p1539_p5), %v2167_v4  ;;  %1817 = vmatprep.subr.bf16.mxu1 (!%p1539_p5), %v2167_v4  ;;  %v2035_v5 = vld [vmem:[%s2287_s9] sm:$0xff] (!%p1539_p5)   ;;  %v2037_v7 = vld [vmem:[%s2287_s9 + $0x8] sm:$0xff] (!%p1539_p5)   ;;  %v2039_v9 = vld [vmem:[%s2287_s9 + $0x10] sm:$0xff] (!%p1539_p5)  }
  0x2e   : > { %1798 = vmatpush3.bf16.msra.mxu0 (!%p1539_p5), %v2034_v3  ;;  %1813 = vmatprep.mubr.msk.bf16.mxu0 (!%p1539_p5), %vm2168_vm0, %v2167_v4  ;;  %v2040_v10 = vld [vmem:[%s2287_s9 + $0x58] sm:$0xff] (!%p1539_p5)   ;;  %v2042_v12 = vld [vmem:[%s2287_s9 + $0x60] sm:$0xff] (!%p1539_p5)   ;;  %v2329_v15 = vld [vmem:[#allocation2 + $0x8] sm:$0xff] (!%p1539_p5) }
  0x2f   : > { %1818 = vmatpush3.bf16.msra.mxu1 (!%p1539_p5), %v2035_v5  ;;  %1799 = vmatprep.subr.bf16.mxu0 (!%p1539_p5), %v2167_v4  ;;  %v2041_v11 = vld [vmem:[%s2287_s9 + $0x18] sm:$0xff] (!%p1539_p5)   ;;  %v2043_v13 = vld [vmem:[%s2287_s9 + $0x20] sm:$0xff] (!%p1539_p5)   ;;  %365 = vst [vmem:[#allocation3 + $0x9] sm:$0xff] (!%p1539_p5), %v2329_v15  ;;  %v2044_v16 = vld [vmem:[%s2287_s9 + $0x68] sm:$0xff] (!%p1539_p5)  }
  0x30   : > { %1819 = vmatprep.subr.bf16.mxu1 (!%p1539_p5), %v2167_v4  ;;  %1833 = vmatprep.mubr.msk.bf16.mxu1 (!%p1539_p5), %vm2168_vm0, %v2167_v4  ;;  %v2327_v14 = vld [vmem:[#allocation2] sm:$0xff] (!%p1539_p5)  ;;  %v2045_v17 = vld [vmem:[%s2287_s9 + $0x28] sm:$0xff] (!%p1539_p5)   ;;  %v2046_v18 = vld [vmem:[%s2287_s9 + $0x70] sm:$0xff] (!%p1539_p5)  }
  0x31   : > { %364 = vst [vmem:[#allocation3 + $0x1] sm:$0xff] (!%p1539_p5), %v2327_v14  ;;  %v2047_v19 = vld [vmem:[%s2287_s9 + $0x30] sm:$0xff] (!%p1539_p5)   ;;  %v2048_v20 = vld [vmem:[%s2287_s9 + $0x78] sm:$0xff] (!%p1539_p5)   ;;  %v2050_v24 = vld [vmem:[%s2287_s9 + $0x80] sm:$0xff] (!%p1539_p5)   ;;  %v387_v25 = vpack.c.bf16 (!%p1539_p5), %v2329_v15, %v2327_v14 }
  0x32   : > { %1800 = vmatpush3.bf16.msra.mxu0 (!%p1539_p5), %v2036_v6  ;;  %v2049_v21 = vld [vmem:[%s2287_s9 + $0x38] sm:$0xff] (!%p1539_p5)   ;;  %v2051_v27 = vld [vmem:[%s2287_s9 + $0x88] sm:$0xff] (!%p1539_p5)   ;;  %v2052_v28 = vld [vmem:[%s2287_s9 + $0x90] sm:$0xff] (!%p1539_p5)   ;;  %v705_v3 = vstv (!%p1539_p5), %s702_s13 }
  0x33   : > { %1820 = vmatpush3.bf16.msra.mxu1 (!%p1539_p5), %v2037_v7  ;;  %1801 = vmatprep.subr.bf16.mxu0 (!%p1539_p5), %v2167_v4  ;;  %v2053_v29 = vld [vmem:[%s2287_s9 + $0x98] sm:$0xff] (!%p1539_p5)   ;;  %v2054_v30 = vld [vmem:[%s2287_s9 + $0xa0] sm:$0xff] (!%p1539_p5)   ;;  %v2055_v31 = vld [vmem:[%s2287_s9 + $0xa8] sm:$0xff] (!%p1539_p5)  }
  0x34   : > { %1821 = vmatprep.subr.bf16.mxu1 %v2167_v4  ;;  %v2056_v32 = vld [vmem:[%s2287_s9 + $0xb0] sm:$0xff]   ;;  %v2057_v33 = vld [vmem:[%s2287_s9 + $0xb8] sm:$0xff]   ;;  %v2058_v37 = vld [vmem:[%s2292_s11 + $0x40] sm:$0xff]  }
  0x35   : > { %v2059_v38 = vld [vmem:[%s2292_s11] sm:$0xff]   ;;  %v2060_v39 = vld [vmem:[%s2292_s11 + $0x48] sm:$0xff]   ;;  %v2062_v41 = vld [vmem:[%s2292_s11 + $0x50] sm:$0xff]  }
  0x36   : > { %1802 = vmatpush3.bf16.msra.mxu0 %v2038_v8  ;;  %v584_v35 = vld [vmem:[#allocation3 + $0xa] sm:$0xff]  ;;  %v2061_v40 = vld [vmem:[%s2292_s11 + $0x8] sm:$0xff]   ;;  %v2063_v42 = vld [vmem:[%s2292_s11 + $0x10] sm:$0xff]  }
  0x37   : > { %1822 = vmatpush3.bf16.msra.mxu1 %v2039_v9  ;;  %1803 = vmatprep.subr.bf16.mxu0 %v2167_v4  ;;  %v2064_v43 = vld [vmem:[%s2292_s11 + $0x58] sm:$0xff]   ;;  %v2066_v44 = vld [vmem:[%s2292_s11 + $0x60] sm:$0xff]   ;;  %v2068_v45 = vld [vmem:[%s2292_s11 + $0x68] sm:$0xff]  }
  0x38   : > { %1823 = vmatprep.subr.bf16.mxu1 %v2167_v4  ;;  %v366_v22 = vld [vmem:[#allocation3] sm:$0xff]  ;;  %v367_v23 = vld [vmem:[#allocation3 + $0x8] sm:$0xff]  ;;  %v2067_v48 = vld [vmem:[%s2292_s11 + $0x20] sm:$0xff]  }
  0x39   : > { %v368_v26 = vpack.c.bf16 %v367_v23, %v366_v22  ;;  %v583_v34 = vld [vmem:[#allocation3 + $0x2] sm:$0xff]  ;;  %v2069_v50 = vld [vmem:[%s2292_s11 + $0x28] sm:$0xff]   ;;  %v1596_v63 = vld [vmem:[%s2278_s20] ss:$0 sm:$0xff] }
  0x3a   : > { %1804 = vmatpush3.bf16.msra.mxu0 %v2040_v10  ;;  %v585_v36 = vpack.c.bf16 %v584_v35, %v583_v34  ;;  %v2065_v46 = vld [vmem:[%s2292_s11 + $0x18] sm:$0xff]   ;;  %v2070_v47 = vld [vmem:[%s2292_s11 + $0x70] sm:$0xff]  }
  0x3b   : > { %1824 = vmatpush3.bf16.msra.mxu1 %v2041_v11  ;;  %1805 = vmatprep.subr.bf16.mxu0 %v2167_v4  ;;  %v2072_v49 = vld [vmem:[%s2292_s11 + $0x78] sm:$0xff]   ;;  %v2071_v51 = vld [vmem:[%s2292_s11 + $0x30] sm:$0xff]  }
  0x3c   : > { %1825 = vmatprep.subr.bf16.mxu1 %v2167_v4  ;;  %v2073_v52 = vld [vmem:[%s2292_s11 + $0x38] sm:$0xff]  }
  0x3d   : > { %v2077_v23 = vld [vmem:[%s2292_s11 + $0x98] sm:$0xff]  }
  0x3e   : > { %1806 = vmatpush3.bf16.msra.mxu0 %v2042_v12 }
  0x3f   : > { %1826 = vmatpush3.bf16.msra.mxu1 %v2043_v13  ;;  %1807 = vmatprep.subr.bf16.mxu0 %v2167_v4 }
  0x40   : > { %1827 = vmatprep.subr.bf16.mxu1 %v2167_v4 }
  0x42   : > { %1808 = vmatpush3.bf16.msra.mxu0 %v2044_v16  ;;  %v2074_v16 = vld [vmem:[%s2292_s11 + $0x80] sm:$0xff]  }
  0x43   : > { %1828 = vmatpush3.bf16.msra.mxu1 %v2045_v17  ;;  %1809 = vmatprep.subr.bf16.mxu0 %v2167_v4 }
  0x44   : > { %1829 = vmatprep.subr.bf16.mxu1 %v2167_v4 }
  0x46   : > { %1810 = vmatpush3.bf16.msra.mxu0 %v2046_v18  ;;  %v2075_v18 = vld [vmem:[%s2292_s11 + $0x88] sm:$0xff]  }
  0x47   : > { %1830 = vmatpush3.bf16.msra.mxu1 %v2047_v19  ;;  %1811 = vmatprep.subr.bf16.mxu0 %v2167_v4 }
  0x48   : > { %1831 = vmatprep.subr.bf16.mxu1 %v2167_v4 }
  0x4a   : > { %1812 = vmatpush3.bf16.msra.mxu0 %v2048_v20 }
  0x4b   : > { %1832 = vmatpush3.bf16.msra.mxu1 %v2049_v21  ;;  %1837 = vmatprep.subr.bf16.mxu0 %v2167_v4  ;;  %v2076_v21 = vld [vmem:[%s2292_s11 + $0x90] sm:$0xff]  }
  0x4c   : > { %1857 = vmatprep.subr.bf16.mxu1 %v2167_v4 }
  0x4d   : > { %1814 = vmatmul.mubr.bf16.vlgmr.msra.gmra.mrb[0].mxu0 %v387_v25  ;;  %v2079_v25 = vld [vmem:[%s2292_s11 + $0xa8] sm:$0xff]  }
  0x4e   : > { %1834 = vmatmul.mubr.bf16.vlgmr.msra.gmra.mrb[0].mxu1 %v368_v26  ;;  %1838 = vmatpush3.bf16.msra.mxu0 %v2050_v24  ;;  %v2078_v24 = vld [vmem:[%s2292_s11 + $0xa0] sm:$0xff]   ;;  %v2080_v26 = vld [vmem:[%s2292_s11 + $0xb0] sm:$0xff]  }
  0x4f   : > { %1839 = vmatprep.subr.bf16.mxu0 %v2167_v4  ;;  %1853 = vmatprep.mubr.msk.bf16.mxu0 %vm2168_vm0, %v2167_v4 }
  0x50   : > { %1873 = vmatprep.mubr.msk.bf16.mxu1 %vm2168_vm0, %v2167_v4  ;;  %1858 = vmatpush3.bf16.msra.mxu1 %v2058_v37 }
  0x51   : > { %1859 = vmatprep.subr.bf16.mxu1 %v2167_v4 }
  0x52   : > { %1840 = vmatpush3.bf16.msra.mxu0 %v2051_v27  ;;  %v2081_v27 = vld [vmem:[%s2292_s11 + $0xb8] sm:$0xff]  }
  0x53   : > { %1841 = vmatprep.subr.bf16.mxu0 %v2167_v4 }
  0x54   : > { %1860 = vmatpush3.bf16.msra.mxu1 %v2060_v39 }
  0x55   : > { %1861 = vmatprep.subr.bf16.mxu1 %v2167_v4 }
  0x56   : > { %1842 = vmatpush3.bf16.msra.mxu0 %v2052_v28 }
  0x57   : > { %1843 = vmatprep.subr.bf16.mxu0 %v2167_v4 }
  0x58   : > { %1862 = vmatpush3.bf16.msra.mxu1 %v2062_v41 }
  0x59   : > { %1863 = vmatprep.subr.bf16.mxu1 %v2167_v4 }
  0x5a   : > { %1844 = vmatpush3.bf16.msra.mxu0 %v2053_v29 }
  0x5b   : > { %1845 = vmatprep.subr.bf16.mxu0 %v2167_v4 }
  0x5c   : > { %1864 = vmatpush3.bf16.msra.mxu1 %v2064_v43 }
  0x5d   : > { %1865 = vmatprep.subr.bf16.mxu1 %v2167_v4 }
  0x5e   : > { %1846 = vmatpush3.bf16.msra.mxu0 %v2054_v30 }
  0x5f   : > { %1847 = vmatprep.subr.bf16.mxu0 %v2167_v4 }
  0x60   : > { %1866 = vmatpush3.bf16.msra.mxu1 %v2066_v44 }
  0x61   : > { %1867 = vmatprep.subr.bf16.mxu1 %v2167_v4 }
  0x62   : > { %1848 = vmatpush3.bf16.msra.mxu0 %v2055_v31 }
  0x63   : > { %1849 = vmatprep.subr.bf16.mxu0 %v2167_v4 }
  0x64   : > { %1868 = vmatpush3.bf16.msra.mxu1 %v2068_v45 }
  0x65   : > { %1869 = vmatprep.subr.bf16.mxu1 %v2167_v4 }
  0x66   : > { %1850 = vmatpush3.bf16.msra.mxu0 %v2056_v32 }
  0x67   : > { %1851 = vmatprep.subr.bf16.mxu0 %v2167_v4 }
  0x68   : > { %1870 = vmatpush3.bf16.msra.mxu1 %v2070_v47 }
  0x69   : > { %1871 = vmatprep.subr.bf16.mxu1 %v2167_v4 }
  0x6a   : > { %1852 = vmatpush3.bf16.msra.mxu0 %v2057_v33 }
  0x6b   : > { %1877 = vmatprep.subr.bf16.mxu0 %v2167_v4 }
  0x6c   : > { %1872 = vmatpush3.bf16.msra.mxu1 %v2072_v49 }
  0x6d   : > { %1854 = vmatmul.mubr.bf16.vlgmr.msra.gmra.mrb[4].mxu0 %v585_v36  ;;  %1897 = vmatprep.subr.bf16.mxu1 %v2167_v4 }
  0x6e   : > { %1893 = vmatprep.mubr.msk.bf16.mxu0 %vm2168_vm0, %v2167_v4  ;;  %1878 = vmatpush3.bf16.msra.mxu0 %v2059_v38 }
  0x6f   : > { %1879 = vmatprep.subr.bf16.mxu0 %v2167_v4 }
  0x72   : > { %1880 = vmatpush3.bf16.msra.mxu0 %v2061_v40 }
  0x73   : > { %1881 = vmatprep.subr.bf16.mxu0 %v2167_v4 }
  0x76   : > { %1882 = vmatpush3.bf16.msra.mxu0 %v2063_v42 }
  0x77   : > { %1883 = vmatprep.subr.bf16.mxu0 %v2167_v4 }
  0x7a   : > { %1884 = vmatpush3.bf16.msra.mxu0 %v2065_v46 }
  0x7b   : > { %1885 = vmatprep.subr.bf16.mxu0 %v2167_v4 }
  0x7e   : > { %1886 = vmatpush3.bf16.msra.mxu0 %v2067_v48 }
  0x7f   : > { %1887 = vmatprep.subr.bf16.mxu0 %v2167_v4 }
  0x82   : > { %1888 = vmatpush3.bf16.msra.mxu0 %v2069_v50 }
  0x83   : > { %1889 = vmatprep.subr.bf16.mxu0 %v2167_v4 }
  0x86   : > { %1890 = vmatpush3.bf16.msra.mxu0 %v2071_v51 }
  0x87   : > { %1891 = vmatprep.subr.bf16.mxu0 %v2167_v4 }
  0x8a   : > { %1892 = vmatpush3.bf16.msra.mxu0 %v2073_v52 }
 0x120   : > { %v487_v53 = vpop.f32.mrb[0].mxu0 }
 0x121   : > { %v576_v54 = vpop.f32.mrb[0].mxu1  ;;  %v1815_v55 = vpop.f32.mrb[1].mxu0 }
 0x122   : > { %v577_v56 = vadd.f32 %v576_v54, %v487_v53  ;;  %v1835_v57 = vpop.f32.mrb[1].mxu1  ;;  %v490_v58 = vpop.f32.mrb[2].mxu0 }
 0x123   : > { %v579_v59 = vpop.f32.mrb[2].mxu1  ;;  %v1816_v60 = vpop.f32.mrb[3].mxu0 }
 0x124   : > { %v580_v61 = vadd.f32 %v579_v59, %v490_v58  ;;  %v1836_v62 = vpop.f32.mrb[3].mxu1 }
 0x140   : > { %v685_v0 = vpop.f32.mrb[4].mxu0 }
 0x141   : > { %v692_v1 = vadd.f32 %v685_v0, %v577_v56  ;;  %v1855_v2 = vpop.f32.mrb[5].mxu0 }
 0x142   : > { %v688_v5 = vpop.f32.mrb[6].mxu0 }
 0x143   : > { %v700_v6 = vadd.f32 %v1596_v63, %v692_v1  ;;  %v693_v7 = vadd.f32 %v688_v5, %v580_v61  ;;  %v1856_v8 = vpop.f32.mrb[7].mxu0 }
 0x145   : > { %vm703_vm1 = vcmp.ge.f32.partialorder %v700_v6, 0.0  ;;  %v706_v9 = vmul.f32 %v705_v3, %v700_v6  ;;  %v701_v10 = vadd.f32 %v1596_v63, %v693_v7 }
 0x147   : > { %v708_v11 = vsel %vm703_vm1, %v700_v6, %v706_v9  ;;  %vm704_vm2 = vcmp.ge.f32.partialorder %v701_v10, 0.0  ;;  %v707_v12 = vmul.f32 %v705_v3, %v701_v10 }
 0x148   : > { %711 = vst [vmem:[#allocation3 + $0x1] sm:$0xff] %v708_v11 }
 0x149   : > { %v709_v13 = vsel %vm704_vm2, %v701_v10, %v707_v12 }
 0x14a   : > { %712 = vst [vmem:[#allocation3 + $0x9] sm:$0xff] %v709_v13  ;;  %v734_v17 = vpack.c.bf16 %v709_v13, %v708_v11 }
 0x14c   : > { %1874 = vmatmul.mubr.bf16.vlgmr.msra.gmra.mrb[4].mxu1 %v734_v17 }
 0x14d   : > { %1898 = vmatpush3.bf16.msra.mxu1 %v2074_v16  ;;  %1913 = vmatprep.mubr.msk.bf16.mxu1 %vm2168_vm0, %v2167_v4 }
 0x14e   : > { %1899 = vmatprep.subr.bf16.mxu1 %v2167_v4 }
 0x14f   : > { %v713_v19 = vld [vmem:[#allocation3] sm:$0xff] }
 0x151   : > { %v714_v20 = vld [vmem:[#allocation3 + $0x8] sm:$0xff]  ;;  %1900 = vmatpush3.bf16.msra.mxu1 %v2075_v18 }
 0x152   : > { %v715_v22 = vpack.c.bf16 %v714_v20, %v713_v19  ;;  %1901 = vmatprep.subr.bf16.mxu1 %v2167_v4  ;;  %v930_v28 = vld [vmem:[#allocation3 + $0x2] sm:$0xff]  ;;  %v931_v29 = vld [vmem:[#allocation3 + $0xa] sm:$0xff] }
 0x153   : > { %v932_v30 = vpack.c.bf16 %v931_v29, %v930_v28 }
 0x154   : > { %1894 = vmatmul.mubr.bf16.vlgmr.msra.gmra.mrb[8].mxu0 %v715_v22 }
 0x155   : > { %1902 = vmatpush3.bf16.msra.mxu1 %v2076_v21 }
 0x156   : > { %1903 = vmatprep.subr.bf16.mxu1 %v2167_v4 }
 0x159   : > { %1904 = vmatpush3.bf16.msra.mxu1 %v2077_v23 }
 0x15a   : > { %1905 = vmatprep.subr.bf16.mxu1 %v2167_v4 }
 0x15d   : > { %1906 = vmatpush3.bf16.msra.mxu1 %v2078_v24 }
 0x15e   : > { %1907 = vmatprep.subr.bf16.mxu1 %v2167_v4 }
 0x161   : > { %1908 = vmatpush3.bf16.msra.mxu1 %v2079_v25 }
 0x162   : > { %1909 = vmatprep.subr.bf16.mxu1 %v2167_v4 }
 0x165   : > { %1910 = vmatpush3.bf16.msra.mxu1 %v2080_v26 }
 0x166   : > { %1911 = vmatprep.subr.bf16.mxu1 %v2167_v4  ;;  %v1653_v4 = vld [vmem:[%s340_s30] ss:$0 sm:$0xff] }
 0x169   : > { %1912 = vmatpush3.bf16.msra.mxu1 %v2081_v27 }
 0x16c   : > { %1914 = vmatmul.mubr.bf16.vlgmr.msra.gmra.mrb[8].mxu1 %v932_v30 }
 0x21f   : > { %v834_v31 = vpop.f32.mrb[4].mxu1 }
 0x220   : > { %v1875_v32 = vpop.f32.mrb[5].mxu1 }
 0x221   : > { %v837_v33 = vpop.f32.mrb[6].mxu1 }
 0x222   : > { %v1876_v34 = vpop.f32.mrb[7].mxu1 }
 0x227   : > { %v923_v35 = vpop.f32.mrb[8].mxu0 }
 0x228   : > { %v924_v36 = vadd.f32 %v923_v35, %v834_v31  ;;  %v1895_v37 = vpop.f32.mrb[9].mxu0 }
 0x229   : > { %v926_v38 = vpop.f32.mrb[10].mxu0 }
 0x22a   : > { %v927_v39 = vadd.f32 %v926_v38, %v837_v33  ;;  %v1896_v40 = vpop.f32.mrb[11].mxu0 }
 0x23f   : > { %v1032_v41 = vpop.f32.mrb[8].mxu1 }
 0x240   : > { %v1039_v42 = vadd.f32 %v1032_v41, %v924_v36  ;;  %v1915_v43 = vpop.f32.mrb[9].mxu1 }
 0x241   : > { %v1035_v44 = vpop.f32.mrb[10].mxu1 }
 0x242   : > { %v1047_v45 = vadd.f32 %v1653_v4, %v1039_v42  ;;  %v1040_v46 = vadd.f32 %v1035_v44, %v927_v39  ;;  %v1916_v47 = vpop.f32.mrb[11].mxu1 }
 0x244   : > { %v1049_v48 = vadd.f32 %v1047_v45, %v2327_v14  ;;  %v1048_v49 = vadd.f32 %v1653_v4, %v1040_v46 }
 0x246   : > { %1051 = vst [vmem:[#allocation2] sm:$0xff] %v1049_v48  ;;  %v1050_v50 = vadd.f32 %v1048_v49, %v2329_v15 }
 0x248   : > { %1052 = vst [vmem:[#allocation2 + $0x8] sm:$0xff] %v1050_v50 }
 0x249 PF: > { %p1654_p6 = scmp.ne.s32.totalorder %s2147_s21, 2 }
 0x24a   : > { %v2082_v51 = vld [vmem:[%s2287_s9 + $0x40] sm:$0xff] (!%p1654_p6)   ;;  %v2169_v52 = vmov (!%p1654_p6), 0.0   ;;  %v2084_v15 = vld [vmem:[%s2287_s9 + $0x48] sm:$0xff] (!%p1654_p6)   ;;  %vm2170_vm3 = vmmov (!%p1654_p6), 0   ;;  %v2086_v54 = vld [vmem:[%s2287_s9 + $0x50] sm:$0xff] (!%p1654_p6)  }
 0x24b   : > { %1056 = sbr.rel (%p1654_p6) target bundleno = 872 (0x368), region = 60  ;;  %1917 = vmatprep.subr.bf16.mxu0 (!%p1654_p6), %v2169_v52  ;;  %1937 = vmatprep.subr.bf16.mxu1 (!%p1654_p6), %v2169_v52  ;;  %v2083_v14 = vld [vmem:[%s2287_s9] sm:$0xff] (!%p1654_p6)   ;;  %v2085_v53 = vld [vmem:[%s2287_s9 + $0x8] sm:$0xff] (!%p1654_p6)   ;;  %v2087_v55 = vld [vmem:[%s2287_s9 + $0x10] sm:$0xff] (!%p1654_p6)  }
 0x24c   : > { %1918 = vmatpush3.bf16.msra.mxu0 (!%p1654_p6), %v2082_v51  ;;  %1933 = vmatprep.mubr.msk.bf16.mxu0 (!%p1654_p6), %vm2170_vm3, %v2169_v52  ;;  %v2088_v56 = vld [vmem:[%s2287_s9 + $0x58] sm:$0xff] (!%p1654_p6)   ;;  %v2090_v58 = vld [vmem:[%s2287_s9 + $0x60] sm:$0xff] (!%p1654_p6)   ;;  %v2092_v62 = vld [vmem:[%s2287_s9 + $0x68] sm:$0xff] (!%p1654_p6)  }
 0x24d   : > { %1938 = vmatpush3.bf16.msra.mxu1 (!%p1654_p6), %v2083_v14  ;;  %1919 = vmatprep.subr.bf16.mxu0 (!%p1654_p6), %v2169_v52  ;;  %v2089_v57 = vld [vmem:[%s2287_s9 + $0x18] sm:$0xff] (!%p1654_p6)   ;;  %v2091_v59 = vld [vmem:[%s2287_s9 + $0x20] sm:$0xff] (!%p1654_p6)   ;;  %v2093_v63 = vld [vmem:[%s2287_s9 + $0x28] sm:$0xff] (!%p1654_p6)  }
 0x24e   : > { %1939 = vmatprep.subr.bf16.mxu1 (!%p1654_p6), %v2169_v52  ;;  %1953 = vmatprep.mubr.msk.bf16.mxu1 (!%p1654_p6), %vm2170_vm3, %v2169_v52  ;;  %v1057_v60 = vld [vmem:[#allocation2] sm:$0xff] (!%p1654_p6)  ;;  %v2094_v0 = vld [vmem:[%s2287_s9 + $0x70] sm:$0xff] (!%p1654_p6)   ;;  %v2096_v2 = vld [vmem:[%s2287_s9 + $0x78] sm:$0xff] (!%p1654_p6)  }
 0x24f   : > { %v1058_v61 = vld [vmem:[#allocation2 + $0x8] sm:$0xff] (!%p1654_p6)  ;;  %1060 = vst [vmem:[#allocation3 + $0x1] sm:$0xff] (!%p1654_p6), %v1057_v60  ;;  %v2095_v1 = vld [vmem:[%s2287_s9 + $0x30] sm:$0xff] (!%p1654_p6)   ;;  %v2097_v3 = vld [vmem:[%s2287_s9 + $0x38] sm:$0xff] (!%p1654_p6)  }
 0x250   : > { %1920 = vmatpush3.bf16.msra.mxu0 (!%p1654_p6), %v2084_v15  ;;  %1061 = vst [vmem:[#allocation3 + $0x9] sm:$0xff] (!%p1654_p6), %v1058_v61  ;;  %v1083_v7 = vpack.c.bf16 (!%p1654_p6), %v1058_v61, %v1057_v60  ;;  %v2098_v9 = vld [vmem:[%s2287_s9 + $0x80] sm:$0xff] (!%p1654_p6)   ;;  %v2099_v10 = vld [vmem:[%s2287_s9 + $0x88] sm:$0xff] (!%p1654_p6)   ;;  %v2100_v11 = vld [vmem:[%s2287_s9 + $0x90] sm:$0xff] (!%p1654_p6)  }
 0x251   : > { %1940 = vmatpush3.bf16.msra.mxu1 (!%p1654_p6), %v2085_v53  ;;  %1921 = vmatprep.subr.bf16.mxu0 (!%p1654_p6), %v2169_v52  ;;  %v2101_v12 = vld [vmem:[%s2287_s9 + $0x98] sm:$0xff] (!%p1654_p6)   ;;  %v2102_v13 = vld [vmem:[%s2287_s9 + $0xa0] sm:$0xff] (!%p1654_p6)   ;;  %v2103_v16 = vld [vmem:[%s2287_s9 + $0xa8] sm:$0xff] (!%p1654_p6)  }
 0x252   : > { %1941 = vmatprep.subr.bf16.mxu1 %v2169_v52  ;;  %v2104_v17 = vld [vmem:[%s2287_s9 + $0xb0] sm:$0xff]   ;;  %v2105_v18 = vld [vmem:[%s2287_s9 + $0xb8] sm:$0xff]   ;;  %v1711_v32 = vld [vmem:[%s2278_s20] ss:$0 sm:$0xff] }
 0x253   : > { %v1398_v36 = vld [vmem:[%s2271_s16] sm:$0xff]  ;;  %v1399_v4 = vld [vmem:[%s2271_s16 + $0x8] sm:$0xff] }
 0x254   : > { %1922 = vmatpush3.bf16.msra.mxu0 %v2086_v54 }
 0x255   : > { %1942 = vmatpush3.bf16.msra.mxu1 %v2087_v55  ;;  %1923 = vmatprep.subr.bf16.mxu0 %v2169_v52 }
 0x256   : > { %1943 = vmatprep.subr.bf16.mxu1 %v2169_v52  ;;  %v1062_v5 = vld [vmem:[#allocation3] sm:$0xff] }
 0x257   : > { %v1063_v6 = vld [vmem:[#allocation3 + $0x8] sm:$0xff] }
 0x258   : > { %1924 = vmatpush3.bf16.msra.mxu0 %v2088_v56  ;;  %v1064_v8 = vpack.c.bf16 %v1063_v6, %v1062_v5  ;;  %v1279_v19 = vld [vmem:[#allocation3 + $0x2] sm:$0xff]  ;;  %v1280_v20 = vld [vmem:[#allocation3 + $0xa] sm:$0xff] }
 0x259   : > { %1944 = vmatpush3.bf16.msra.mxu1 %v2089_v57  ;;  %1925 = vmatprep.subr.bf16.mxu0 %v2169_v52  ;;  %v1281_v21 = vpack.c.bf16 %v1280_v20, %v1279_v19 }
 0x25a   : > { %1945 = vmatprep.subr.bf16.mxu1 %v2169_v52 }
 0x25c   : > { %1926 = vmatpush3.bf16.msra.mxu0 %v2090_v58 }
 0x25d   : > { %1946 = vmatpush3.bf16.msra.mxu1 %v2091_v59  ;;  %1927 = vmatprep.subr.bf16.mxu0 %v2169_v52 }
 0x25e   : > { %1947 = vmatprep.subr.bf16.mxu1 %v2169_v52 }
 0x260   : > { %1928 = vmatpush3.bf16.msra.mxu0 %v2092_v62 }
 0x261   : > { %1948 = vmatpush3.bf16.msra.mxu1 %v2093_v63  ;;  %1929 = vmatprep.subr.bf16.mxu0 %v2169_v52 }
 0x262   : > { %1949 = vmatprep.subr.bf16.mxu1 %v2169_v52 }
 0x264   : > { %1930 = vmatpush3.bf16.msra.mxu0 %v2094_v0 }
 0x265   : > { %1950 = vmatpush3.bf16.msra.mxu1 %v2095_v1  ;;  %1931 = vmatprep.subr.bf16.mxu0 %v2169_v52 }
 0x266   : > { %1951 = vmatprep.subr.bf16.mxu1 %v2169_v52 }
 0x268   : > { %1932 = vmatpush3.bf16.msra.mxu0 %v2096_v2 }
 0x269   : > { %1952 = vmatpush3.bf16.msra.mxu1 %v2097_v3  ;;  %1957 = vmatprep.subr.bf16.mxu0 %v2169_v52 }
 0x26b   : > { %1934 = vmatmul.mubr.bf16.vlgmr.msra.gmra.mrb[0].mxu0 %v1083_v7 }
 0x26c   : > { %1954 = vmatmul.mubr.bf16.vlgmr.msra.gmra.mrb[0].mxu1 %v1064_v8  ;;  %1958 = vmatpush3.bf16.msra.mxu0 %v2098_v9 }
 0x26d   : > { %1959 = vmatprep.subr.bf16.mxu0 %v2169_v52  ;;  %1973 = vmatprep.mubr.msk.bf16.mxu0 %vm2170_vm3, %v2169_v52 }
 0x270   : > { %1960 = vmatpush3.bf16.msra.mxu0 %v2099_v10 }
 0x271   : > { %1961 = vmatprep.subr.bf16.mxu0 %v2169_v52 }
 0x274   : > { %1962 = vmatpush3.bf16.msra.mxu0 %v2100_v11 }
 0x275   : > { %1963 = vmatprep.subr.bf16.mxu0 %v2169_v52 }
 0x278   : > { %1964 = vmatpush3.bf16.msra.mxu0 %v2101_v12 }
 0x279   : > { %1965 = vmatprep.subr.bf16.mxu0 %v2169_v52 }
 0x27c   : > { %1966 = vmatpush3.bf16.msra.mxu0 %v2102_v13 }
 0x27d   : > { %1967 = vmatprep.subr.bf16.mxu0 %v2169_v52 }
 0x280   : > { %1968 = vmatpush3.bf16.msra.mxu0 %v2103_v16 }
 0x281   : > { %1969 = vmatprep.subr.bf16.mxu0 %v2169_v52 }
 0x284   : > { %1970 = vmatpush3.bf16.msra.mxu0 %v2104_v17 }
 0x285   : > { %1971 = vmatprep.subr.bf16.mxu0 %v2169_v52 }
 0x288   : > { %1972 = vmatpush3.bf16.msra.mxu0 %v2105_v18 }
 0x28b   : > { %1974 = vmatmul.mubr.bf16.vlgmr.msra.gmra.mrb[4].mxu0 %v1281_v21 }
 0x33e   : > { %v1183_v22 = vpop.f32.mrb[0].mxu0 }
 0x33f   : > { %v1272_v23 = vpop.f32.mrb[0].mxu1  ;;  %v1935_v24 = vpop.f32.mrb[1].mxu0 }
 0x340   : > { %v1273_v25 = vadd.f32 %v1272_v23, %v1183_v22  ;;  %v1955_v26 = vpop.f32.mrb[1].mxu1  ;;  %v1186_v27 = vpop.f32.mrb[2].mxu0 }
 0x341   : > { %v1275_v28 = vpop.f32.mrb[2].mxu1  ;;  %v1936_v29 = vpop.f32.mrb[3].mxu0 }
 0x342   : > { %v1276_v30 = vadd.f32 %v1275_v28, %v1186_v27  ;;  %v1956_v31 = vpop.f32.mrb[3].mxu1 }
 0x35e   : > { %v1381_v33 = vpop.f32.mrb[4].mxu0 }
 0x35f   : > { %v1388_v34 = vadd.f32 %v1381_v33, %v1273_v25  ;;  %v1975_v35 = vpop.f32.mrb[5].mxu0 }
 0x360   : > { %v1384_v37 = vpop.f32.mrb[6].mxu0 }
 0x361   : > { %v1396_v38 = vadd.f32 %v1711_v32, %v1388_v34  ;;  %v1389_v39 = vadd.f32 %v1384_v37, %v1276_v30  ;;  %v1976_v40 = vpop.f32.mrb[7].mxu0 }
 0x363   : > { %v1400_v41 = vadd.f32 %v1398_v36, %v1396_v38  ;;  %v1397_v42 = vadd.f32 %v1711_v32, %v1389_v39 }
 0x365   : > { %1402 = vst [vmem:[%s2297_s18] sm:$0xff] %v1400_v41  ;;  %v1401_v43 = vadd.f32 %v1399_v4, %v1397_v42 }
 0x367   : > { %1403 = vst [vmem:[%s2297_s18 + $0x8] sm:$0xff] %v1401_v43 }
 0x368 PF: > { %s17_s25 = sadd.s32 1, %s2163_s25   ;;  %s2512_s21 = smov %s2155_s23 }
 0x369   : > { %p14_p7 = scmp.ge.s32.totalorder %s17_s25, 8   ;;  %s2513_s22 = smov %s2159_s24 }
 0x36a   : > { %s2514_s23 = smov %s2517_s27  ;;  %s2515_s24 = smov %s2521_s28 }
 0x36b   :  { %16 = sbr.rel (!%p14_p7) target bundleno = 3 (0x3), region = 109 }
 0x372   :  { %1425 = vsyncpa [#allocation5], 1 }
 0x373   :  { %1427 = vsyncpa [#allocation5 + $0x1], 1 }

// kernel: generator_forward.7
= control target key start
LH: loop header
LB: loop body
LE: loop exit
PB: predicated region body
PF: predicated region fallthrough
CT: control target
= control target key end

     0   :  { %s1559_s17 = smov 0   ;;  %s1891_s0 = inlined_call_operand.vmem [shape: f32[2,16,128], index: 0, kind: input, shape index: {}]   ;;  %s1892_s1 = inlined_call_operand.vmem [shape: bf16[3,128,512], index: 1, kind: input, shape index: {}]   ;;  %s1893_s2 = inlined_call_operand.vmem [shape: f32[1,512], index: 2, kind: input, shape index: {}]   ;;  %s1894_s3 = inlined_call_operand.<no memory space> [shape: f32[1], index: 3, kind: input, shape index: {}]   ;;  %s1895_s4 = inlined_call_operand.vmem [shape: f32[2,16,512], index: 4, kind: output, shape index: {}]  }
   0x1   :  { %9 = sst [smem:[#allocation3]] %s1894_s3 }
   0x2 LB: > { %s1178_s18 = sadd.s32 4294967295, %s1527_s17   ;;  %p1182_p0 = scmp.ge.s32.totalorder %s1527_s17, 1  ;;  %s1527_s17 = sphi %s1559_s17, %s15_s17  }
   0x3   : > { %p163_p1 = scmp.lt.s32.totalorder %s1527_s17, 3 }
   0x5   : > { %p164_p2 = pnand %p1182_p0, %p163_p1 }
   0x6   : > { %v1377_v0 = vld [vmem:[%s1892_s1 + $0x104] ss:$16 sps:$4 sm:$0xff] (!%p164_p2)   ;;  %v1379_v1 = vld [vmem:[%s1892_s1 + $0x10c] ss:$16 sps:$4 sm:$0xff] (!%p164_p2)   ;;  %v1529_v2 = vmov (!%p164_p2), 0   ;;  %v1530_v5 = vmov (!%p164_p2), 0.0  }
   0x7   : > { %167 = sbr.rel (%p164_p2) target bundleno = 328 (0x148), region = 36  ;;  %469 = vmatprep.mubr.bf16.mxu0 (!%p164_p2), %v1529_v2  ;;  %512 = vmatprep.mubr.bf16.mxu1 (!%p164_p2), %v1529_v2  ;;  %v1381_v3 = vld [vmem:[%s1892_s1 + $0x100] ss:$16 sps:$4 sm:$0xff] (!%p164_p2)   ;;  %v1382_v4 = vld [vmem:[%s1892_s1 + $0x108] ss:$16 sps:$4 sm:$0xff] (!%p164_p2)   ;;  %p189_p3 = scmp.lt.s32.totalorder (!%p164_p2), %s1178_s18, 1 }
   0x8   : > { %437 = vmatprep.subr.bf16.mxu0 (!%p164_p2), %v1377_v0  ;;  %200 = vst [vmem:[#allocation2] sm:$0x1] (!%p164_p2), %v1530_v5  ;;  %201 = vst [vmem:[#allocation2 + $0x11] sm:$0x1] (!%p164_p2), %v1530_v5  ;;  %480 = vmatprep.subr.bf16.mxu1 (!%p164_p2), %v1379_v1  ;;  %v1383_v6 = vld [vmem:[%s1892_s1 + $0x124] ss:$16 sps:$4 sm:$0xff] (!%p164_p2)  }
   0x9   : > { %438 = vmatpush1.bf16.msra.mxu0 (!%p164_p2), %v1381_v3  ;;  %481 = vmatpush1.bf16.msra.mxu1 (!%p164_p2), %v1382_v4  ;;  %v1385_v7 = vld [vmem:[%s1892_s1 + $0x12c] ss:$16 sps:$4 sm:$0xff] (!%p164_p2)   ;;  %v1387_v8 = vld [vmem:[%s1892_s1 + $0x120] ss:$16 sps:$4 sm:$0xff] (!%p164_p2)   ;;  %v1388_v9 = vld [vmem:[%s1892_s1 + $0x128] ss:$16 sps:$4 sm:$0xff] (!%p164_p2)  }
   0xa   : > { %439 = vmatprep.subr.bf16.mxu0 (!%p164_p2), %v1383_v6  ;;  %482 = vmatprep.subr.bf16.mxu1 (!%p164_p2), %v1385_v7  ;;  %v1389_v10 = vld [vmem:[%s1892_s1 + $0x144] ss:$16 sps:$4 sm:$0xff] (!%p164_p2)   ;;  %v1391_v11 = vld [vmem:[%s1892_s1 + $0x14c] ss:$16 sps:$4 sm:$0xff] (!%p164_p2)   ;;  %v1393_v12 = vld [vmem:[%s1892_s1 + $0x140] ss:$16 sps:$4 sm:$0xff] (!%p164_p2)  }
   0xb   : > { %v1394_v13 = vld [vmem:[%s1892_s1 + $0x148] ss:$16 sps:$4 sm:$0xff] (!%p164_p2)   ;;  %v1395_v14 = vld [vmem:[%s1892_s1 + $0x164] ss:$16 sps:$4 sm:$0xff] (!%p164_p2)   ;;  %v1397_v15 = vld [vmem:[%s1892_s1 + $0x16c] ss:$16 sps:$4 sm:$0xff] (!%p164_p2)  }
   0xc   : > { %v1399_v16 = vld [vmem:[%s1892_s1 + $0x160] ss:$16 sps:$4 sm:$0xff] (!%p164_p2)   ;;  %v1400_v17 = vld [vmem:[%s1892_s1 + $0x168] ss:$16 sps:$4 sm:$0xff] (!%p164_p2)   ;;  %v1401_v18 = vld [vmem:[%s1892_s1 + $0x184] ss:$16 sps:$4 sm:$0xff] (!%p164_p2)  }
   0xd   : > { %440 = vmatpush1.bf16.msra.mxu0 (!%p164_p2), %v1387_v8  ;;  %483 = vmatpush1.bf16.msra.mxu1 (!%p164_p2), %v1388_v9  ;;  %v1403_v19 = vld [vmem:[%s1892_s1 + $0x18c] ss:$16 sps:$4 sm:$0xff] (!%p164_p2)   ;;  %v1405_v20 = vld [vmem:[%s1892_s1 + $0x180] ss:$16 sps:$4 sm:$0xff] (!%p164_p2)   ;;  %v1406_v21 = vld [vmem:[%s1892_s1 + $0x188] ss:$16 sps:$4 sm:$0xff] (!%p164_p2)  }
   0xe   : > { %441 = vmatprep.subr.bf16.mxu0 %v1389_v10  ;;  %484 = vmatprep.subr.bf16.mxu1 %v1391_v11  ;;  %s1897_s18 = smov (!%p189_p3, %s1178_s18), 1  ;;  %v1407_v22 = vld [vmem:[%s1892_s1 + $0x1a4] ss:$16 sps:$4 sm:$0xff]   ;;  %v1409_v23 = vld [vmem:[%s1892_s1 + $0x1ac] ss:$16 sps:$4 sm:$0xff]   ;;  %s1089_s13 = sld [smem:[#allocation3]] }
   0xf   : > { %s1349_s11 = sshll.u32 %s1897_s18, 4  ;;  %v1411_v24 = vld [vmem:[%s1892_s1 + $0x1a0] ss:$16 sps:$4 sm:$0xff]   ;;  %v1412_v25 = vld [vmem:[%s1892_s1 + $0x1a8] ss:$16 sps:$4 sm:$0xff]   ;;  %s1350_s16 = sshll.u32 %s1897_s18, 6 }
  0x10   : > { %v1413_v26 = vld [vmem:[%s1892_s1 + $0x1c4] ss:$16 sps:$4 sm:$0xff]   ;;  %v1415_v27 = vld [vmem:[%s1892_s1 + $0x1cc] ss:$16 sps:$4 sm:$0xff]   ;;  %s193_s23 = scalar_lea.vmem %s1891_s0, %s1349_s11  ;;  %v1417_v28 = vld [vmem:[%s1892_s1 + $0x1c0] ss:$16 sps:$4 sm:$0xff]   ;;  %s1878_s3 = scalar_lea.vmem %s1895_s4, %s1350_s16 }
  0x11   : > { %442 = vmatpush1.bf16.msra.mxu0 %v1393_v12  ;;  %485 = vmatpush1.bf16.msra.mxu1 %v1394_v13  ;;  %v1418_v29 = vld [vmem:[%s1892_s1 + $0x1c8] ss:$16 sps:$4 sm:$0xff]   ;;  %v202_v30 = vld [vmem:[%s193_s23] sm:$0xff]  ;;  %v1421_v33 = vld [vmem:[%s1892_s1 + $0x1ec] ss:$16 sps:$4 sm:$0xff]  }
  0x12   : > { %443 = vmatprep.subr.bf16.mxu0 %v1395_v14  ;;  %486 = vmatprep.subr.bf16.mxu1 %v1397_v15  ;;  %v203_v31 = vld [vmem:[%s193_s23 + $0x8] sm:$0xff]  ;;  %v1419_v32 = vld [vmem:[%s1892_s1 + $0x1e4] ss:$16 sps:$4 sm:$0xff]   ;;  %204 = vst [vmem:[#allocation2 + $0x1] sm:$0xff] %v202_v30  ;;  %v1423_v34 = vld [vmem:[%s1892_s1 + $0x1e0] ss:$16 sps:$4 sm:$0xff]  }
  0x13   : > { %205 = vst [vmem:[#allocation2 + $0x9] sm:$0xff] %v203_v31  ;;  %v1424_v35 = vld [vmem:[%s1892_s1 + $0x1e8] ss:$16 sps:$4 sm:$0xff]   ;;  %v1427_v36 = vld [vmem:[%s1892_s1 + $0x4] ss:$16 sps:$4 sm:$0xff]   ;;  %v243_v38 = vpack.c.bf16 %v203_v31, %v202_v30 }
  0x14   : > { %v1430_v37 = vld [vmem:[%s1892_s1 + $0xc] ss:$16 sps:$4 sm:$0xff]   ;;  %v1425_v39 = vld [vmem:[%s1892_s1] ss:$16 sps:$4 sm:$0xff]   ;;  %v1428_v40 = vld [vmem:[%s1892_s1 + $0x8] ss:$16 sps:$4 sm:$0xff]  }
  0x15   : > { %444 = vmatpush1.bf16.msra.mxu0 %v1399_v16  ;;  %487 = vmatpush1.bf16.msra.mxu1 %v1400_v17  ;;  %v1433_v41 = vld [vmem:[%s1892_s1 + $0x24] ss:$16 sps:$4 sm:$0xff]   ;;  %v1436_v42 = vld [vmem:[%s1892_s1 + $0x2c] ss:$16 sps:$4 sm:$0xff]   ;;  %v1431_v43 = vld [vmem:[%s1892_s1 + $0x20] ss:$16 sps:$4 sm:$0xff]  }
  0x16   : > { %445 = vmatprep.subr.bf16.mxu0 %v1401_v18  ;;  %488 = vmatprep.subr.bf16.mxu1 %v1403_v19  ;;  %v1434_v44 = vld [vmem:[%s1892_s1 + $0x28] ss:$16 sps:$4 sm:$0xff]   ;;  %v1439_v45 = vld [vmem:[%s1892_s1 + $0x44] ss:$16 sps:$4 sm:$0xff]   ;;  %v1442_v46 = vld [vmem:[%s1892_s1 + $0x4c] ss:$16 sps:$4 sm:$0xff]  }
  0x17   : > { %v1437_v47 = vld [vmem:[%s1892_s1 + $0x40] ss:$16 sps:$4 sm:$0xff]   ;;  %v1440_v48 = vld [vmem:[%s1892_s1 + $0x48] ss:$16 sps:$4 sm:$0xff]   ;;  %v1445_v49 = vld [vmem:[%s1892_s1 + $0x64] ss:$16 sps:$4 sm:$0xff]  }
  0x18   : > { %v1448_v50 = vld [vmem:[%s1892_s1 + $0x6c] ss:$16 sps:$4 sm:$0xff]   ;;  %v1443_v51 = vld [vmem:[%s1892_s1 + $0x60] ss:$16 sps:$4 sm:$0xff]   ;;  %v1446_v52 = vld [vmem:[%s1892_s1 + $0x68] ss:$16 sps:$4 sm:$0xff]  }
  0x19   : > { %446 = vmatpush1.bf16.msra.mxu0 %v1405_v20  ;;  %489 = vmatpush1.bf16.msra.mxu1 %v1406_v21  ;;  %v1451_v53 = vld [vmem:[%s1892_s1 + $0x84] ss:$16 sps:$4 sm:$0xff]   ;;  %v1454_v54 = vld [vmem:[%s1892_s1 + $0x8c] ss:$16 sps:$4 sm:$0xff]   ;;  %v1449_v55 = vld [vmem:[%s1892_s1 + $0x80] ss:$16 sps:$4 sm:$0xff]  }
  0x1a   : > { %447 = vmatprep.subr.bf16.mxu0 %v1407_v22  ;;  %490 = vmatprep.subr.bf16.mxu1 %v1409_v23  ;;  %v1452_v56 = vld [vmem:[%s1892_s1 + $0x88] ss:$16 sps:$4 sm:$0xff]   ;;  %v1457_v57 = vld [vmem:[%s1892_s1 + $0xa4] ss:$16 sps:$4 sm:$0xff]   ;;  %v1460_v58 = vld [vmem:[%s1892_s1 + $0xac] ss:$16 sps:$4 sm:$0xff]  }
  0x1b   : > { %v1455_v59 = vld [vmem:[%s1892_s1 + $0xa0] ss:$16 sps:$4 sm:$0xff]   ;;  %v1458_v60 = vld [vmem:[%s1892_s1 + $0xa8] ss:$16 sps:$4 sm:$0xff]   ;;  %v1463_v61 = vld [vmem:[%s1892_s1 + $0xc4] ss:$16 sps:$4 sm:$0xff]  }
  0x1c   : > { %v1466_v62 = vld [vmem:[%s1892_s1 + $0xcc] ss:$16 sps:$4 sm:$0xff]   ;;  %v1461_v63 = vld [vmem:[%s1892_s1 + $0xc0] ss:$16 sps:$4 sm:$0xff]   ;;  %v1464_v0 = vld [vmem:[%s1892_s1 + $0xc8] ss:$16 sps:$4 sm:$0xff]  }
  0x1d   : > { %448 = vmatpush1.bf16.msra.mxu0 %v1411_v24  ;;  %491 = vmatpush1.bf16.msra.mxu1 %v1412_v25  ;;  %v1469_v1 = vld [vmem:[%s1892_s1 + $0xe4] ss:$16 sps:$4 sm:$0xff]   ;;  %v1472_v3 = vld [vmem:[%s1892_s1 + $0xec] ss:$16 sps:$4 sm:$0xff]   ;;  %v1467_v4 = vld [vmem:[%s1892_s1 + $0xe0] ss:$16 sps:$4 sm:$0xff]  }
  0x1e   : > { %449 = vmatprep.subr.bf16.mxu0 %v1413_v26  ;;  %492 = vmatprep.subr.bf16.mxu1 %v1415_v27  ;;  %v1470_v5 = vld [vmem:[%s1892_s1 + $0xe8] ss:$16 sps:$4 sm:$0xff]   ;;  %v1475_v6 = vld [vmem:[%s1892_s1 + $0x204] ss:$16 sps:$4 sm:$0xff]   ;;  %v1478_v9 = vld [vmem:[%s1892_s1 + $0x20c] ss:$16 sps:$4 sm:$0xff]  }
  0x1f   : > { %v206_v7 = vld [vmem:[#allocation2] sm:$0xff]  ;;  %v207_v8 = vld [vmem:[#allocation2 + $0x8] sm:$0xff] }
  0x20   : > { %v1473_v10 = vld [vmem:[%s1892_s1 + $0x200] ss:$16 sps:$4 sm:$0xff]   ;;  %v208_v11 = vpack.c.bf16 %v207_v8, %v206_v7  ;;  %v1476_v12 = vld [vmem:[%s1892_s1 + $0x208] ss:$16 sps:$4 sm:$0xff]   ;;  %v1481_v13 = vld [vmem:[%s1892_s1 + $0x224] ss:$16 sps:$4 sm:$0xff]  }
  0x21   : > { %450 = vmatpush1.bf16.msra.mxu0 %v1417_v28  ;;  %493 = vmatpush1.bf16.msra.mxu1 %v1418_v29  ;;  %v1484_v14 = vld [vmem:[%s1892_s1 + $0x22c] ss:$16 sps:$4 sm:$0xff]   ;;  %v1479_v15 = vld [vmem:[%s1892_s1 + $0x220] ss:$16 sps:$4 sm:$0xff]   ;;  %v1482_v16 = vld [vmem:[%s1892_s1 + $0x228] ss:$16 sps:$4 sm:$0xff]  }
  0x22   : > { %451 = vmatprep.subr.bf16.mxu0 %v1419_v32  ;;  %494 = vmatprep.subr.bf16.mxu1 %v1421_v33  ;;  %v1487_v17 = vld [vmem:[%s1892_s1 + $0x244] ss:$16 sps:$4 sm:$0xff]   ;;  %v1490_v18 = vld [vmem:[%s1892_s1 + $0x24c] ss:$16 sps:$4 sm:$0xff]   ;;  %v1485_v19 = vld [vmem:[%s1892_s1 + $0x240] ss:$16 sps:$4 sm:$0xff]  }
  0x23   : > { %v1488_v20 = vld [vmem:[%s1892_s1 + $0x248] ss:$16 sps:$4 sm:$0xff]   ;;  %v1493_v21 = vld [vmem:[%s1892_s1 + $0x264] ss:$16 sps:$4 sm:$0xff]   ;;  %v1491_v22 = vld [vmem:[%s1892_s1 + $0x260] ss:$16 sps:$4 sm:$0xff]  }
  0x24   : > { %v1494_v23 = vld [vmem:[%s1892_s1 + $0x268] ss:$16 sps:$4 sm:$0xff]   ;;  %v1499_v24 = vld [vmem:[%s1892_s1 + $0x284] ss:$16 sps:$4 sm:$0xff]   ;;  %v1502_v25 = vld [vmem:[%s1892_s1 + $0x28c] ss:$16 sps:$4 sm:$0xff]  }
  0x25   : > { %452 = vmatpush1.bf16.msra.mxu0 %v1423_v34  ;;  %495 = vmatpush1.bf16.msra.mxu1 %v1424_v35  ;;  %v1497_v26 = vld [vmem:[%s1892_s1 + $0x280] ss:$16 sps:$4 sm:$0xff]   ;;  %v1500_v27 = vld [vmem:[%s1892_s1 + $0x288] ss:$16 sps:$4 sm:$0xff]   ;;  %v1505_v28 = vld [vmem:[%s1892_s1 + $0x2a4] ss:$16 sps:$4 sm:$0xff]  }
  0x26   : > { %683 = vmatprep.subr.bf16.mxu0 %v1427_v36  ;;  %726 = vmatprep.subr.bf16.mxu1 %v1430_v37  ;;  %v1508_v29 = vld [vmem:[%s1892_s1 + $0x2ac] ss:$16 sps:$4 sm:$0xff]   ;;  %v1503_v30 = vld [vmem:[%s1892_s1 + $0x2a0] ss:$16 sps:$4 sm:$0xff]   ;;  %v1506_v31 = vld [vmem:[%s1892_s1 + $0x2a8] ss:$16 sps:$4 sm:$0xff]  }
  0x27   : > { %v1511_v32 = vld [vmem:[%s1892_s1 + $0x2c4] ss:$16 sps:$4 sm:$0xff]   ;;  %v1514_v33 = vld [vmem:[%s1892_s1 + $0x2cc] ss:$16 sps:$4 sm:$0xff]   ;;  %v1509_v34 = vld [vmem:[%s1892_s1 + $0x2c0] ss:$16 sps:$4 sm:$0xff]  }
  0x28   : > { %470 = vmatmul.mubr.bf16.vlgmr.msra.gmra.mrb[0].mxu0 %v243_v38  ;;  %513 = vmatmul.mubr.bf16.vlgmr.msra.gmra.mrb[0].mxu1 %v243_v38  ;;  %v1512_v35 = vld [vmem:[%s1892_s1 + $0x2c8] ss:$16 sps:$4 sm:$0xff]   ;;  %v1517_v36 = vld [vmem:[%s1892_s1 + $0x2e4] ss:$16 sps:$4 sm:$0xff]   ;;  %v1520_v37 = vld [vmem:[%s1892_s1 + $0x2ec] ss:$16 sps:$4 sm:$0xff]  }
  0x29   : > { %684 = vmatpush1.bf16.msra.mxu0 %v1425_v39  ;;  %727 = vmatpush1.bf16.msra.mxu1 %v1428_v40  ;;  %v1515_v38 = vld [vmem:[%s1892_s1 + $0x2e0] ss:$16 sps:$4 sm:$0xff]   ;;  %v1518_v39 = vld [vmem:[%s1892_s1 + $0x2e8] ss:$16 sps:$4 sm:$0xff]  }
  0x2a   : > { %685 = vmatprep.subr.bf16.mxu0 %v1433_v41  ;;  %728 = vmatprep.subr.bf16.mxu1 %v1436_v42  ;;  %v769_v40 = vld [vmem:[#allocation2 + $0x2] sm:$0xff]  ;;  %v770_v41 = vld [vmem:[#allocation2 + $0xa] sm:$0xff] }
  0x2b   : > { %715 = vmatprep.mubr.bf16.mxu0 %v1529_v2  ;;  %758 = vmatprep.mubr.bf16.mxu1 %v1529_v2  ;;  %v771_v42 = vpack.c.bf16 %v770_v41, %v769_v40 }
  0x2d   : > { %686 = vmatpush1.bf16.msra.mxu0 %v1431_v43  ;;  %729 = vmatpush1.bf16.msra.mxu1 %v1434_v44  ;;  %v1061_v43 = vlaneseq }
  0x2e   : > { %687 = vmatprep.subr.bf16.mxu0 %v1439_v45  ;;  %730 = vmatprep.subr.bf16.mxu1 %v1442_v46 }
  0x2f   : > { %v1062_v44 = vshrl.u32 %v1061_v43, 7 }
  0x31   : > { %688 = vmatpush1.bf16.msra.mxu0 %v1437_v47  ;;  %731 = vmatpush1.bf16.msra.mxu1 %v1440_v48  ;;  %v1063_v45 = vsub.s32 0, %v1062_v44  ;;  %v1071_v46 = vsub.s32 2, %v1062_v44  ;;  %v1059_v47 = vld [vmem:[%s1893_s2] sm:$0xf]  ;;  %v1067_v48 = vsub.s32 1, %v1062_v44 }
  0x32   : > { %689 = vmatprep.subr.bf16.mxu0 %v1445_v49  ;;  %732 = vmatprep.subr.bf16.mxu1 %v1448_v50  ;;  %v1075_v49 = vsub.s32 3, %v1062_v44 }
  0x33   : > { %v1064_v50 = vrot.slane %v1059_v47, %v1063_v45 }
  0x35   : > { %690 = vmatpush1.bf16.msra.mxu0 %v1443_v51  ;;  %733 = vmatpush1.bf16.msra.mxu1 %v1446_v52  ;;  %v1072_v51 = vrot.slane %v1059_v47, %v1071_v46  ;;  %v1068_v52 = vrot.slane %v1059_v47, %v1067_v48 }
  0x36   : > { %691 = vmatprep.subr.bf16.mxu0 %v1451_v53  ;;  %734 = vmatprep.subr.bf16.mxu1 %v1454_v54  ;;  %v1076_v53 = vrot.slane %v1059_v47, %v1075_v49 }
  0x39   : > { %692 = vmatpush1.bf16.msra.mxu0 %v1449_v55  ;;  %735 = vmatpush1.bf16.msra.mxu1 %v1452_v56  ;;  %v1098_v55 = vstv %s1089_s13 }
  0x3a   : > { %693 = vmatprep.subr.bf16.mxu0 %v1457_v57  ;;  %736 = vmatprep.subr.bf16.mxu1 %v1460_v58 }
  0x3d   : > { %694 = vmatpush1.bf16.msra.mxu0 %v1455_v59  ;;  %737 = vmatpush1.bf16.msra.mxu1 %v1458_v60 }
  0x3e   : > { %695 = vmatprep.subr.bf16.mxu0 %v1463_v61  ;;  %738 = vmatprep.subr.bf16.mxu1 %v1466_v62 }
  0x41   : > { %696 = vmatpush1.bf16.msra.mxu0 %v1461_v63  ;;  %739 = vmatpush1.bf16.msra.mxu1 %v1464_v0 }
  0x42   : > { %697 = vmatprep.subr.bf16.mxu0 %v1469_v1  ;;  %740 = vmatprep.subr.bf16.mxu1 %v1472_v3 }
  0x45   : > { %698 = vmatpush1.bf16.msra.mxu0 %v1467_v4  ;;  %741 = vmatpush1.bf16.msra.mxu1 %v1470_v5 }
  0x46   : > { %965 = vmatprep.subr.bf16.mxu0 %v1475_v6  ;;  %1008 = vmatprep.subr.bf16.mxu1 %v1478_v9 }
  0x48   : > { %716 = vmatmul.mubr.bf16.vlgmr.msra.gmra.mrb[0].mxu0 %v208_v11  ;;  %759 = vmatmul.mubr.bf16.vlgmr.msra.gmra.mrb[0].mxu1 %v208_v11 }
  0x49   : > { %966 = vmatpush1.bf16.msra.mxu0 %v1473_v10  ;;  %1009 = vmatpush1.bf16.msra.mxu1 %v1476_v12 }
  0x4a   : > { %967 = vmatprep.subr.bf16.mxu0 %v1481_v13  ;;  %1010 = vmatprep.subr.bf16.mxu1 %v1484_v14 }
  0x4b   : > { %997 = vmatprep.mubr.bf16.mxu0 %v1529_v2  ;;  %1040 = vmatprep.mubr.bf16.mxu1 %v1529_v2  ;;  %v1496_v2 = vld [vmem:[%s1892_s1 + $0x26c] ss:$16 sps:$4 sm:$0xff]  }
  0x4d   : > { %968 = vmatpush1.bf16.msra.mxu0 %v1479_v15  ;;  %1011 = vmatpush1.bf16.msra.mxu1 %v1482_v16 }
  0x4e   : > { %969 = vmatprep.subr.bf16.mxu0 %v1487_v17  ;;  %1012 = vmatprep.subr.bf16.mxu1 %v1490_v18 }
  0x51   : > { %970 = vmatpush1.bf16.msra.mxu0 %v1485_v19  ;;  %1013 = vmatpush1.bf16.msra.mxu1 %v1488_v20 }
  0x52   : > { %971 = vmatprep.subr.bf16.mxu0 %v1493_v21  ;;  %1014 = vmatprep.subr.bf16.mxu1 %v1496_v2 }
  0x55   : > { %972 = vmatpush1.bf16.msra.mxu0 %v1491_v22  ;;  %1015 = vmatpush1.bf16.msra.mxu1 %v1494_v23 }
  0x56   : > { %973 = vmatprep.subr.bf16.mxu0 %v1499_v24  ;;  %1016 = vmatprep.subr.bf16.mxu1 %v1502_v25 }
  0x59   : > { %974 = vmatpush1.bf16.msra.mxu0 %v1497_v26  ;;  %1017 = vmatpush1.bf16.msra.mxu1 %v1500_v27 }
  0x5a   : > { %975 = vmatprep.subr.bf16.mxu0 %v1505_v28  ;;  %1018 = vmatprep.subr.bf16.mxu1 %v1508_v29 }
  0x5d   : > { %976 = vmatpush1.bf16.msra.mxu0 %v1503_v30  ;;  %1019 = vmatpush1.bf16.msra.mxu1 %v1506_v31 }
  0x5e   : > { %977 = vmatprep.subr.bf16.mxu0 %v1511_v32  ;;  %1020 = vmatprep.subr.bf16.mxu1 %v1514_v33 }
  0x61   : > { %978 = vmatpush1.bf16.msra.mxu0 %v1509_v34  ;;  %1021 = vmatpush1.bf16.msra.mxu1 %v1512_v35 }
  0x62   : > { %979 = vmatprep.subr.bf16.mxu0 %v1517_v36  ;;  %1022 = vmatprep.subr.bf16.mxu1 %v1520_v37 }
  0x65   : > { %980 = vmatpush1.bf16.msra.mxu0 %v1515_v38  ;;  %1023 = vmatpush1.bf16.msra.mxu1 %v1518_v39 }
  0x68   : > { %998 = vmatmul.mubr.bf16.vlgmr.msra.gmra.mrb[0].mxu0 %v771_v42  ;;  %1041 = vmatmul.mubr.bf16.vlgmr.msra.gmra.mrb[0].mxu1 %v771_v42 }
 0x13b   : > { %v999_v54 = vpop.f32.mrb[0].mxu0  ;;  %v1042_v56 = vpop.f32.mrb[0].mxu1 }
 0x13c   : > { %v1081_v57 = vadd.f32 %v1064_v50, %v999_v54  ;;  %v1083_v58 = vadd.f32 %v1072_v51, %v1042_v56  ;;  %v1001_v59 = vpop.f32.mrb[1].mxu0  ;;  %v1044_v60 = vpop.f32.mrb[1].mxu1 }
 0x13d   : > { %v1082_v61 = vadd.f32 %v1068_v52, %v1001_v59  ;;  %v1084_v62 = vadd.f32 %v1076_v53, %v1044_v60  ;;  %v1003_v63 = vpop.f32.mrb[2].mxu0  ;;  %v1046_v0 = vpop.f32.mrb[2].mxu1 }
 0x13e   : > { %vm1090_vm0 = vcmp.ge.f32.partialorder %v1081_v57, 0.0  ;;  %v1099_v1 = vmul.f32 %v1098_v55, %v1081_v57  ;;  %vm1092_vm1 = vcmp.ge.f32.partialorder %v1083_v58, 0.0  ;;  %v1101_v3 = vmul.f32 %v1098_v55, %v1083_v58  ;;  %v1005_v4 = vpop.f32.mrb[3].mxu0  ;;  %v1048_v5 = vpop.f32.mrb[3].mxu1 }
 0x13f   : > { %vm1091_vm2 = vcmp.ge.f32.partialorder %v1082_v61, 0.0  ;;  %v1100_v6 = vmul.f32 %v1098_v55, %v1082_v61  ;;  %vm1093_vm3 = vcmp.ge.f32.partialorder %v1084_v62, 0.0  ;;  %v1102_v7 = vmul.f32 %v1098_v55, %v1084_v62 }
 0x140   : > { %v1107_v8 = vsel %vm1090_vm0, %v1081_v57, %v1099_v1  ;;  %v1109_v9 = vsel %vm1092_vm1, %v1083_v58, %v1101_v3  ;;  %v1085_v10 = vadd.f32 %v1064_v50, %v1003_v63  ;;  %v1087_v11 = vadd.f32 %v1072_v51, %v1046_v0 }
 0x141   : > { %1115 = vst [vmem:[%s1878_s3] sm:$0xff] %v1107_v8  ;;  %1117 = vst [vmem:[%s1878_s3 + $0x10] sm:$0xff] %v1109_v9  ;;  %v1108_v12 = vsel %vm1091_vm2, %v1082_v61, %v1100_v6  ;;  %v1110_v13 = vsel %vm1093_vm3, %v1084_v62, %v1102_v7  ;;  %v1086_v14 = vadd.f32 %v1068_v52, %v1005_v4 }
 0x142   : > { %v1088_v15 = vadd.f32 %v1076_v53, %v1048_v5  ;;  %1116 = vst [vmem:[%s1878_s3 + $0x8] sm:$0xff] %v1108_v12  ;;  %1118 = vst [vmem:[%s1878_s3 + $0x18] sm:$0xff] %v1110_v13  ;;  %vm1094_vm4 = vcmp.ge.f32.partialorder %v1085_v10, 0.0  ;;  %v1103_v16 = vmul.f32 %v1098_v55, %v1085_v10  ;;  %vm1096_vm5 = vcmp.ge.f32.partialorder %v1087_v11, 0.0 }
 0x143   : > { %v1105_v17 = vmul.f32 %v1098_v55, %v1087_v11  ;;  %vm1095_vm6 = vcmp.ge.f32.partialorder %v1086_v14, 0.0  ;;  %v1104_v18 = vmul.f32 %v1098_v55, %v1086_v14 }
 0x144   : > { %vm1097_vm7 = vcmp.ge.f32.partialorder %v1088_v15, 0.0  ;;  %v1106_v19 = vmul.f32 %v1098_v55, %v1088_v15  ;;  %v1111_v20 = vsel %vm1094_vm4, %v1085_v10, %v1103_v16 }
 0x145   : > { %v1113_v21 = vsel %vm1096_vm5, %v1087_v11, %v1105_v17  ;;  %1119 = vst [vmem:[%s1878_s3 + $0x20] sm:$0xff] %v1111_v20  ;;  %v1112_v2 = vsel %vm1095_vm6, %v1086_v14, %v1104_v18 }
 0x146   : > { %1121 = vst [vmem:[%s1878_s3 + $0x30] sm:$0xff] %v1113_v21  ;;  %v1114_v22 = vsel %vm1097_vm7, %v1088_v15, %v1106_v19  ;;  %1120 = vst [vmem:[%s1878_s3 + $0x28] sm:$0xff] %v1112_v2 }
 0x147   : > { %1122 = vst [vmem:[%s1878_s3 + $0x38] sm:$0xff] %v1114_v22 }
 0x148 PF: > { %s15_s17 = sadd.s32 1, %s1527_s17  }
 0x149   : > { %p12_p4 = scmp.ge.s32.totalorder %s15_s17, 4  }
 0x14b   :  { %14 = sbr.rel (!%p12_p4) target bundleno = 2 (0x2), region = 68 }

// kernel: generator_forward.8
= control target key start
LH: loop header
LB: loop body
LE: loop exit
PB: predicated region body
PF: predicated region fallthrough
CT: control target
= control target key end

     0   :  { %s4351_s17 = smov 0   ;;  %s5786_s0 = inlined_call_operand.vmem [shape: f32[2,32,256], index: 0, kind: input, shape index: {}]   ;;  %s5787_s1 = inlined_call_operand.vmem [shape: bf16[3,256,1024], index: 1, kind: input, shape index: {}]   ;;  %s5788_s2 = inlined_call_operand.vmem [shape: f32[1,1024], index: 2, kind: input, shape index: {}]   ;;  %s5789_s3 = inlined_call_operand.<no memory space> [shape: f32[1], index: 3, kind: input, shape index: {}]   ;;  %s5790_s4 = inlined_call_operand.vmem [shape: f32[2,32,1024], index: 4, kind: output, shape index: {}]  }
   0x1   :  { %9 = sst [smem:[#allocation3]] %s5789_s3 }
   0x2 LB: > { %s3586_s18 = sadd.s32 4294967295, %s4320_s17   ;;  %p3590_p0 = scmp.ge.s32.totalorder %s4320_s17, 1  ;;  %s4320_s17 = sphi %s4351_s17, %s15_s17  }
   0x3   : > { %p163_p1 = scmp.lt.s32.totalorder %s4320_s17, 3 }
   0x5   : > { %p164_p2 = pnand %p3590_p0, %p163_p1 }
   0x6   : > { %v3595_v0 = vld [vmem:[%s5787_s1 + $0x400] sm:$0xff] (!%p164_p2)  ;;  %v3596_v2 = vld [vmem:[%s5787_s1 + $0x408] sm:$0xff] (!%p164_p2)  ;;  %p189_p3 = scmp.lt.s32.totalorder (!%p164_p2), %s3586_s18, 1  ;;  %vm224_vm0 = vcmask (!%p164_p2), 1040384   ;;  %vm536_vm1 = vsmask.f32 (!%p164_p2), 7424 }
   0x7   : > { %167 = sbr.rel (%p164_p2) target bundleno = 626 (0x272), region = 36  ;;  %v3599_v1 = vld [vmem:[%s5787_s1 + $0x420] sm:$0xff] (!%p164_p2)  ;;  %v3600_v4 = vld [vmem:[%s5787_s1 + $0x428] sm:$0xff] (!%p164_p2)  ;;  %vm2428_vm3 = vcmask (!%p164_p2), 1046528   ;;  %s3401_s14 = sld [smem:[#allocation3]] (!%p164_p2) }
   0x8   : > { %v3724_v3 = vcombine.high (!%p164_p2), %v3595_v0, %v3599_v1  ;;  %v3723_v5 = vcombine.low (!%p164_p2), %v3595_v0, %v3599_v1  ;;  %v3603_v6 = vld [vmem:[%s5787_s1 + $0x440] sm:$0xff] (!%p164_p2)  ;;  %v3726_v8 = vcombine.high (!%p164_p2), %v3596_v2, %v3600_v4  ;;  %v3725_v9 = vcombine.low (!%p164_p2), %v3596_v2, %v3600_v4  ;;  %v3604_v11 = vld [vmem:[%s5787_s1 + $0x448] sm:$0xff] (!%p164_p2) }
   0x9   : > { %v3607_v7 = vld [vmem:[%s5787_s1 + $0x460] sm:$0xff] (!%p164_p2)  ;;  %v3608_v12 = vld [vmem:[%s5787_s1 + $0x468] sm:$0xff] (!%p164_p2) }
   0xa   : > { %v3732_v10 = vcombine.high (!%p164_p2), %v3603_v6, %v3607_v7  ;;  %v3611_v13 = vld [vmem:[%s5787_s1 + $0x480] sm:$0xff] (!%p164_p2)  ;;  %1221 = vmatprep.subr.bf16.mxu0 (!%p164_p2), %v3724_v3  ;;  %v3734_v14 = vcombine.high (!%p164_p2), %v3604_v11, %v3608_v12  ;;  %v3612_v16 = vld [vmem:[%s5787_s1 + $0x488] sm:$0xff] (!%p164_p2)  ;;  %1274 = vmatprep.subr.bf16.mxu1 (!%p164_p2), %v3726_v8  ;;  %v3731_v18 = vcombine.low (!%p164_p2), %v3603_v6, %v3607_v7 }
   0xb   : > { %v3615_v15 = vld [vmem:[%s5787_s1 + $0x4a0] sm:$0xff] (!%p164_p2)  ;;  %v3616_v17 = vld [vmem:[%s5787_s1 + $0x4a8] sm:$0xff] (!%p164_p2)  ;;  %1222 = vmatpush1.bf16.msra.mxu0 (!%p164_p2), %v3723_v5  ;;  %1275 = vmatpush1.bf16.msra.mxu1 (!%p164_p2), %v3725_v9  ;;  %v3733_v19 = vcombine.low (!%p164_p2), %v3604_v11, %v3608_v12 }
   0xc   : > { %1223 = vmatprep.subr.bf16.mxu0 (!%p164_p2), %v3732_v10  ;;  %v3740_v20 = vcombine.high (!%p164_p2), %v3611_v13, %v3615_v15  ;;  %1276 = vmatprep.subr.bf16.mxu1 (!%p164_p2), %v3734_v14  ;;  %v3742_v21 = vcombine.high (!%p164_p2), %v3612_v16, %v3616_v17  ;;  %v3619_v22 = vld [vmem:[%s5787_s1 + $0x4c0] sm:$0xff] (!%p164_p2)  ;;  %v3620_v24 = vld [vmem:[%s5787_s1 + $0x4c8] sm:$0xff] (!%p164_p2)  ;;  %v3739_v26 = vcombine.low (!%p164_p2), %v3611_v13, %v3615_v15 }
   0xd   : > { %v3623_v23 = vld [vmem:[%s5787_s1 + $0x4e0] sm:$0xff] (!%p164_p2)  ;;  %v3624_v25 = vld [vmem:[%s5787_s1 + $0x4e8] sm:$0xff] (!%p164_p2)  ;;  %v3741_v27 = vcombine.low (!%p164_p2), %v3612_v16, %v3616_v17 }
   0xe   : > { %v3748_v28 = vcombine.high %v3619_v22, %v3623_v23  ;;  %v3750_v29 = vcombine.high %v3620_v24, %v3624_v25  ;;  %v3627_v30 = vld [vmem:[%s5787_s1 + $0x500] sm:$0xff]  ;;  %v3628_v32 = vld [vmem:[%s5787_s1 + $0x508] sm:$0xff]  ;;  %s5792_s18 = smov (!%p189_p3, %s3586_s18), 1  ;;  %v3747_v34 = vcombine.low %v3619_v22, %v3623_v23  ;;  %v3749_v35 = vcombine.low %v3620_v24, %v3624_v25 }
   0xf   : > { %1224 = vmatpush1.bf16.msra.mxu0 %v3731_v18  ;;  %1277 = vmatpush1.bf16.msra.mxu1 %v3733_v19  ;;  %v3631_v31 = vld [vmem:[%s5787_s1 + $0x520] sm:$0xff]  ;;  %v3632_v33 = vld [vmem:[%s5787_s1 + $0x528] sm:$0xff]  ;;  %s4237_s15 = sshll.u32 %s5792_s18, 6  ;;  %s4238_s19 = sshll.u32 %s5792_s18, 8 }
  0x10   : > { %1225 = vmatprep.subr.bf16.mxu0 %v3740_v20  ;;  %1278 = vmatprep.subr.bf16.mxu1 %v3742_v21  ;;  %v3756_v36 = vcombine.high %v3627_v30, %v3631_v31  ;;  %v3758_v37 = vcombine.high %v3628_v32, %v3632_v33  ;;  %v3635_v38 = vld [vmem:[%s5787_s1 + $0x540] sm:$0xff]  ;;  %v3636_v40 = vld [vmem:[%s5787_s1 + $0x548] sm:$0xff]  ;;  %v3755_v42 = vcombine.low %v3627_v30, %v3631_v31  ;;  %s4447_s23 = scalar_lea.vmem %s5786_s0, %s4237_s15  ;;  %s5681_s21 = scalar_lea.vmem %s5790_s4, %s4238_s19 }
  0x11   : > { %v3639_v39 = vld [vmem:[%s5787_s1 + $0x560] sm:$0xff]  ;;  %v3640_v41 = vld [vmem:[%s5787_s1 + $0x568] sm:$0xff]  ;;  %v3757_v43 = vcombine.low %v3628_v32, %v3632_v33  ;;  %v211_v55 = vld [vmem:[%s4447_s23 + $0x18] sm:$0xff] }
  0x12   : > { %v3764_v44 = vcombine.high %v3635_v38, %v3639_v39  ;;  %v3766_v45 = vcombine.high %v3636_v40, %v3640_v41  ;;  %v3643_v46 = vld [vmem:[%s5787_s1 + $0x580] sm:$0xff]  ;;  %v3644_v48 = vld [vmem:[%s5787_s1 + $0x588] sm:$0xff]  ;;  %v3763_v50 = vcombine.low %v3635_v38, %v3639_v39  ;;  %v3765_v51 = vcombine.low %v3636_v40, %v3640_v41  ;;  %v215_v59 = vld [vmem:[%s4447_s23 + $0x38] sm:$0xff] }
  0x13   : > { %1226 = vmatpush1.bf16.msra.mxu0 %v3739_v26  ;;  %1279 = vmatpush1.bf16.msra.mxu1 %v3741_v27  ;;  %v3647_v47 = vld [vmem:[%s5787_s1 + $0x5a0] sm:$0xff]  ;;  %v3648_v49 = vld [vmem:[%s5787_s1 + $0x5a8] sm:$0xff]  ;;  %v229_v61 = vrot.slane %v211_v55, 7  ;;  %v237_v1 = vrot.slane %v215_v59, 7  ;;  %v210_v6 = vld [vmem:[%s4447_s23 + $0x10] sm:$0xff] }
  0x14   : > { %1227 = vmatprep.subr.bf16.mxu0 %v3748_v28  ;;  %1280 = vmatprep.subr.bf16.mxu1 %v3750_v29  ;;  %v3772_v52 = vcombine.high %v3643_v46, %v3647_v47  ;;  %v3651_v53 = vld [vmem:[%s5787_s1 + $0x5c0] sm:$0xff]  ;;  %v209_v54 = vld [vmem:[%s4447_s23 + $0x8] sm:$0xff]  ;;  %v3774_v56 = vcombine.high %v3644_v48, %v3648_v49  ;;  %v3771_v2 = vcombine.low %v3643_v46, %v3647_v47  ;;  %v214_v11 = vld [vmem:[%s4447_s23 + $0x30] sm:$0xff]  ;;  %v227_v16 = vrot.slane %v210_v6, 7 }
  0x15   : > { %v3655_v57 = vld [vmem:[%s5787_s1 + $0x5e0] sm:$0xff]  ;;  %v213_v58 = vld [vmem:[%s4447_s23 + $0x28] sm:$0xff]  ;;  %v226_v60 = vrot.slane %v209_v54, 7  ;;  %v3773_v3 = vcombine.low %v3644_v48, %v3648_v49  ;;  %258 = vst [vmem:[#allocation2 + $0x48] sm:$0x1] %v237_v1  ;;  %v235_v18 = vrot.slane %v214_v11, 7 }
  0x16   : > { %v3652_v62 = vld [vmem:[%s5787_s1 + $0x5c8] sm:$0xff]  ;;  %v233_v0 = vrot.slane %v213_v58, 7  ;;  %v208_v5 = vld [vmem:[%s4447_s23] sm:$0xff]  ;;  %v3780_v8 = vcombine.high %v3651_v53, %v3655_v57  ;;  %v3779_v19 = vcombine.low %v3651_v53, %v3655_v57 }
  0x17   : > { %1228 = vmatpush1.bf16.msra.mxu0 %v3747_v34  ;;  %1281 = vmatpush1.bf16.msra.mxu1 %v3749_v35  ;;  %v3656_v63 = vld [vmem:[%s5787_s1 + $0x5e8] sm:$0xff]  ;;  %v4472_v4 = vsel %vm224_vm0, %v226_v60, %v229_v61  ;;  %250 = vst [vmem:[#allocation2 + $0x8] sm:$0xfe] %v226_v60  ;;  %v212_v7 = vld [vmem:[%s4447_s23 + $0x20] sm:$0xff]  ;;  %v225_v12 = vrot.slane %v208_v5, 7 }
  0x18   : > { %1229 = vmatprep.subr.bf16.mxu0 %v3756_v36  ;;  %1282 = vmatprep.subr.bf16.mxu1 %v3758_v37  ;;  %v234_v9 = vsel %vm224_vm0, %v229_v61, %v233_v0  ;;  %v238_v10 = vsel %vm224_vm0, %v233_v0, %v237_v1  ;;  %252 = vst [vmem:[#allocation2 + $0x18] sm:$0xff] %v4472_v4  ;;  %v3659_v14 = vld [vmem:[%s5787_s1 + $0x600] sm:$0xff]  ;;  %v231_v17 = vrot.slane %v212_v7, 7  ;;  %v3660_v20 = vld [vmem:[%s5787_s1 + $0x608] sm:$0xff]  ;;  %257 = vst [vmem:[#allocation2 + $0x40] sm:$0x1] %v235_v18 }
  0x19   : > { %v3782_v13 = vcombine.high %v3652_v62, %v3656_v63  ;;  %v3663_v15 = vld [vmem:[%s5787_s1 + $0x620] sm:$0xff]  ;;  %v3664_v21 = vld [vmem:[%s5787_s1 + $0x628] sm:$0xff]  ;;  %249 = vst [vmem:[#allocation2] sm:$0xfe] %v225_v12  ;;  %v4493_v22 = vpack.c.bf16 %v238_v10, %v234_v9  ;;  %v4496_v23 = vsel %vm224_vm0, %v225_v12, %v227_v16  ;;  %v3781_v26 = vcombine.low %v3652_v62, %v3656_v63 }
  0x1a   : > { %v4499_v24 = vsel %vm224_vm0, %v227_v16, %v231_v17  ;;  %v4502_v25 = vsel %vm224_vm0, %v231_v17, %v235_v18  ;;  %v3788_v27 = vcombine.high %v3659_v14, %v3663_v15  ;;  %251 = vst [vmem:[#allocation2 + $0x10] sm:$0xff] %v4496_v23  ;;  %v3790_v28 = vcombine.high %v3660_v20, %v3664_v21  ;;  %v3667_v29 = vld [vmem:[%s5787_s1 + $0x640] sm:$0xff]  ;;  %v3668_v31 = vld [vmem:[%s5787_s1 + $0x648] sm:$0xff] }
  0x1b   : > { %1230 = vmatpush1.bf16.msra.mxu0 %v3755_v42  ;;  %1283 = vmatpush1.bf16.msra.mxu1 %v3757_v43  ;;  %v3671_v30 = vld [vmem:[%s5787_s1 + $0x660] sm:$0xff]  ;;  %v3672_v32 = vld [vmem:[%s5787_s1 + $0x668] sm:$0xff]  ;;  %v3787_v34 = vcombine.low %v3659_v14, %v3663_v15  ;;  %v557_v36 = vshll.u32 %v4493_v22, 16  ;;  %v3789_v37 = vcombine.low %v3660_v20, %v3664_v21 }
  0x1c   : > { %1231 = vmatprep.subr.bf16.mxu0 %v3764_v44  ;;  %1284 = vmatprep.subr.bf16.mxu1 %v3766_v45  ;;  %v3796_v38 = vcombine.high %v3667_v29, %v3671_v30  ;;  %v3798_v39 = vcombine.high %v3668_v31, %v3672_v32  ;;  %v3675_v40 = vld [vmem:[%s5787_s1 + $0x680] sm:$0xff]  ;;  %v3676_v44 = vld [vmem:[%s5787_s1 + $0x688] sm:$0xff]  ;;  %v3795_v46 = vcombine.low %v3667_v29, %v3671_v30 }
  0x1d   : > { %v3679_v41 = vld [vmem:[%s5787_s1 + $0x6a0] sm:$0xff]  ;;  %v3680_v45 = vld [vmem:[%s5787_s1 + $0x6a8] sm:$0xff]  ;;  %v4531_v48 = vrot.slane %v557_v36, 1  ;;  %v3797_v49 = vcombine.low %v3668_v31, %v3672_v32 }
  0x1e   : > { %v400_v33 = vld [vmem:[#allocation2 + $0x8] sm:$0xfe]  ;;  %v3687_v53 = vld [vmem:[%s5787_s1 + $0x6e0] sm:$0xff]  ;;  %v3803_v57 = vcombine.low %v3675_v40, %v3679_v41  ;;  %v3805_v59 = vcombine.low %v3676_v44, %v3680_v45 }
  0x1f   : > { %1232 = vmatpush1.bf16.msra.mxu0 %v3763_v50  ;;  %1285 = vmatpush1.bf16.msra.mxu1 %v3765_v51  ;;  %v404_v35 = vpack.c.bf16 %v4472_v4, %v400_v33  ;;  %v3804_v50 = vcombine.high %v3675_v40, %v3679_v41  ;;  %v3806_v51 = vcombine.high %v3676_v44, %v3680_v45  ;;  %v3684_v55 = vld [vmem:[%s5787_s1 + $0x6c8] sm:$0xff]  ;;  %v3691_v62 = vld [vmem:[%s5787_s1 + $0x700] sm:$0xff]  ;;  %v199_v41 = vlaneseq  ;;  %v3601_v44 = vld [vmem:[%s5787_s1 + $0x430] sm:$0xff] }
  0x20   : > { %1233 = vmatprep.subr.bf16.mxu0 %v3772_v52  ;;  %1286 = vmatprep.subr.bf16.mxu1 %v3774_v56  ;;  %v3683_v52 = vld [vmem:[%s5787_s1 + $0x6c0] sm:$0xff]  ;;  %v3688_v56 = vld [vmem:[%s5787_s1 + $0x6e8] sm:$0xff]  ;;  %v3598_v45 = vld [vmem:[%s5787_s1 + $0x418] sm:$0xff] }
  0x21   : > { %v550_v42 = vshrl.u32 %v404_v35, 16  ;;  %v552_v43 = vshll.u32 %v404_v35, 16  ;;  %v3812_v60 = vcombine.high %v3683_v52, %v3687_v53  ;;  %v3814_v61 = vcombine.high %v3684_v55, %v3688_v56  ;;  %v3695_v63 = vld [vmem:[%s5787_s1 + $0x720] sm:$0xff]  ;;  %v3692_v0 = vld [vmem:[%s5787_s1 + $0x708] sm:$0xff] }
  0x22   : > { %v3696_v1 = vld [vmem:[%s5787_s1 + $0x728] sm:$0xff]  ;;  %v3820_v5 = vcombine.high %v3691_v62, %v3695_v63  ;;  %v399_v6 = vld [vmem:[#allocation2] sm:$0xfe]  ;;  %v3819_v12 = vcombine.low %v3691_v62, %v3695_v63  ;;  %v401_v40 = vld [vmem:[#allocation2 + $0x40] sm:$0x1]  ;;  %vm201_vm2 = vcmp.lt.s32.totalorder %v199_v41, 256 }
  0x23   : > { %1234 = vmatpush1.bf16.msra.mxu0 %v3771_v2  ;;  %1287 = vmatpush1.bf16.msra.mxu1 %v3773_v3  ;;  %v554_v47 = vrot.slane %v552_v43, 1  ;;  %v3811_v2 = vcombine.low %v3683_v52, %v3687_v53  ;;  %v3813_v3 = vcombine.low %v3684_v55, %v3688_v56  ;;  %v3822_v7 = vcombine.high %v3692_v0, %v3696_v1  ;;  %v3703_v9 = vld [vmem:[%s5787_s1 + $0x760] sm:$0xff]  ;;  %v3700_v10 = vld [vmem:[%s5787_s1 + $0x748] sm:$0xff]  ;;  %v3597_v43 = vld [vmem:[%s5787_s1 + $0x410] sm:$0xff] }
  0x24   : > { %1235 = vmatprep.subr.bf16.mxu0 %v3780_v8  ;;  %1288 = vmatprep.subr.bf16.mxu1 %v3782_v13  ;;  %v3699_v8 = vld [vmem:[%s5787_s1 + $0x740] sm:$0xff]  ;;  %v3704_v11 = vld [vmem:[%s5787_s1 + $0x768] sm:$0xff]  ;;  %v403_v13 = vpack.c.bf16 %v4496_v23, %v399_v6  ;;  %v3821_v14 = vcombine.low %v3692_v0, %v3696_v1  ;;  %v4590_v23 = vpack.c.bf16 %v4502_v25, %v4499_v24  ;;  %v3610_v62 = vld [vmem:[%s5787_s1 + $0x478] sm:$0xff] }
  0x25   : > { %v555_v54 = vor.u32 %v554_v47, %v550_v42  ;;  %v3828_v15 = vcombine.high %v3699_v8, %v3703_v9  ;;  %v3830_v16 = vcombine.high %v3700_v10, %v3704_v11  ;;  %v3707_v17 = vld [vmem:[%s5787_s1 + $0x780] sm:$0xff]  ;;  %v3712_v20 = vld [vmem:[%s5787_s1 + $0x7a8] sm:$0xff]  ;;  %v3827_v21 = vcombine.low %v3699_v8, %v3703_v9  ;;  %v3613_v9 = vld [vmem:[%s5787_s1 + $0x490] sm:$0xff] }
  0x26   : > { %v3711_v18 = vld [vmem:[%s5787_s1 + $0x7a0] sm:$0xff]  ;;  %v3716_v24 = vld [vmem:[%s5787_s1 + $0x7c8] sm:$0xff]  ;;  %v538_v35 = vshrl.u32 %v403_v13, 16  ;;  %v569_v47 = vshrl.u32 %v4493_v22, 16  ;;  %v405_v53 = vpack.c.bf16 %v401_v40, %v401_v40  ;;  %v3728_v55 = vcombine.high %v3597_v43, %v3601_v44  ;;  %v3638_v40 = vld [vmem:[%s5787_s1 + $0x558] sm:$0xff] }
  0x27   : > { %1236 = vmatpush1.bf16.msra.mxu0 %v3779_v19  ;;  %1289 = vmatpush1.bf16.msra.mxu1 %v3781_v26  ;;  %v4547_v58 = vsel %vm536_vm1, %v555_v54, %v4531_v48  ;;  %v3708_v19 = vld [vmem:[%s5787_s1 + $0x788] sm:$0xff]  ;;  %v540_v26 = vshll.u32 %v403_v13, 16  ;;  %v3836_v29 = vcombine.high %v3707_v17, %v3711_v18  ;;  %v3715_v31 = vld [vmem:[%s5787_s1 + $0x7c0] sm:$0xff]  ;;  %v3727_v1 = vcombine.low %v3597_v43, %v3601_v44 }
  0x28   : > { %1237 = vmatprep.subr.bf16.mxu0 %v3788_v27  ;;  %1290 = vmatprep.subr.bf16.mxu1 %v3790_v28  ;;  %v402_v27 = vld [vmem:[#allocation2 + $0x48] sm:$0x1]  ;;  %v3829_v28 = vcombine.low %v3700_v10, %v3704_v11  ;;  %v3838_v30 = vcombine.high %v3708_v19, %v3712_v20  ;;  %v3719_v32 = vld [vmem:[%s5787_s1 + $0x7e0] sm:$0xff]  ;;  %v571_v63 = vor.u32 %v569_v47, %v4531_v48  ;;  %v3617_v48 = vld [vmem:[%s5787_s1 + $0x4b0] sm:$0xff] }
  0x29   : > { %1253 = vmatprep.mubr.bf16.mxu0 %v4547_v58  ;;  %1306 = vmatprep.mubr.bf16.mxu1 %v4547_v58  ;;  %v3720_v25 = vld [vmem:[%s5787_s1 + $0x7e8] sm:$0xff]  ;;  %v406_v33 = vpack.c.bf16 %v402_v27, %v402_v27  ;;  %v542_v36 = vrot.slane %v540_v26, 1  ;;  %v3614_v10 = vld [vmem:[%s5787_s1 + $0x498] sm:$0xff]  ;;  %v3743_v27 = vcombine.low %v3613_v9, %v3617_v48  ;;  %v3645_v47 = vld [vmem:[%s5787_s1 + $0x590] sm:$0xff] }
  0x2a   : > { %v3846_v42 = vcombine.high %v3716_v24, %v3720_v25  ;;  %v3845_v54 = vcombine.low %v3716_v24, %v3720_v25  ;;  %v3618_v11 = vld [vmem:[%s5787_s1 + $0x4b8] sm:$0xff]  ;;  %v3633_v24 = vld [vmem:[%s5787_s1 + $0x530] sm:$0xff] }
  0x2b   : > { %1238 = vmatpush1.bf16.msra.mxu0 %v3787_v34  ;;  %1291 = vmatpush1.bf16.msra.mxu1 %v3789_v37  ;;  %v3835_v34 = vcombine.low %v3707_v17, %v3711_v18  ;;  %v545_v37 = vshll.u32 %v4590_v23, 16  ;;  %v3744_v17 = vcombine.high %v3613_v9, %v3617_v48  ;;  %v3746_v18 = vcombine.high %v3614_v10, %v3618_v11  ;;  %v3626_v26 = vld [vmem:[%s5787_s1 + $0x4f8] sm:$0xff]  ;;  %v3669_v48 = vld [vmem:[%s5787_s1 + $0x650] sm:$0xff] }
  0x2c   : > { %1239 = vmatprep.subr.bf16.mxu0 %v3796_v38  ;;  %1292 = vmatprep.subr.bf16.mxu1 %v3798_v39  ;;  %v3837_v38 = vcombine.low %v3708_v19, %v3712_v20  ;;  %v3844_v39 = vcombine.high %v3715_v31, %v3719_v32  ;;  %v3621_v19 = vld [vmem:[%s5787_s1 + $0x4d0] sm:$0xff]  ;;  %v3630_v25 = vld [vmem:[%s5787_s1 + $0x518] sm:$0xff] }
  0x2d   : > { %v547_v52 = vrot.slane %v545_v37, 1  ;;  %v3625_v20 = vld [vmem:[%s5787_s1 + $0x4f0] sm:$0xff] }
  0x2f   : > { %1240 = vmatpush1.bf16.msra.mxu0 %v3795_v46  ;;  %1293 = vmatpush1.bf16.msra.mxu1 %v3797_v49  ;;  %v3602_v46 = vld [vmem:[%s5787_s1 + $0x438] sm:$0xff]  ;;  %v573_v49 = vshll.u32 %v406_v33, 16 }
  0x30   : > { %1241 = vmatprep.subr.bf16.mxu0 %v3804_v50  ;;  %1294 = vmatprep.subr.bf16.mxu1 %v3806_v51  ;;  %v3843_v50 = vcombine.low %v3715_v31, %v3719_v32  ;;  %v543_v51 = vor.u32 %v542_v36, %v538_v35  ;;  %v3730_v56 = vcombine.high %v3598_v45, %v3602_v46  ;;  %v3629_v32 = vld [vmem:[%s5787_s1 + $0x510] sm:$0xff]  ;;  %v3634_v33 = vld [vmem:[%s5787_s1 + $0x538] sm:$0xff] }
  0x31   : > { %v575_v0 = vrot.slane %v573_v49, 1  ;;  %v3729_v6 = vcombine.low %v3598_v45, %v3602_v46  ;;  %v3760_v36 = vcombine.high %v3629_v32, %v3633_v24  ;;  %v3762_v37 = vcombine.high %v3630_v25, %v3634_v33  ;;  %v3649_v49 = vld [vmem:[%s5787_s1 + $0x5b0] sm:$0xff] }
  0x32   : > { %v3759_v43 = vcombine.low %v3629_v32, %v3633_v24  ;;  %v3761_v44 = vcombine.low %v3630_v25, %v3634_v33  ;;  %v3689_v32 = vld [vmem:[%s5787_s1 + $0x6f0] sm:$0xff]  ;;  %v3686_v24 = vld [vmem:[%s5787_s1 + $0x6d8] sm:$0xff] }
  0x33   : > { %1242 = vmatpush1.bf16.msra.mxu0 %v3803_v57  ;;  %1295 = vmatpush1.bf16.msra.mxu1 %v3805_v59  ;;  %v3605_v57 = vld [vmem:[%s5787_s1 + $0x450] sm:$0xff]  ;;  %v3690_v25 = vld [vmem:[%s5787_s1 + $0x6f8] sm:$0xff] }
  0x34   : > { %1243 = vmatprep.subr.bf16.mxu0 %v3812_v60  ;;  %1296 = vmatprep.subr.bf16.mxu1 %v3814_v61  ;;  %v3609_v59 = vld [vmem:[%s5787_s1 + $0x470] sm:$0xff]  ;;  %v4322_v60 = vmov 0.0   ;;  %v3606_v61 = vld [vmem:[%s5787_s1 + $0x458] sm:$0xff] }
  0x35   : > { %203 = vst.msk [vmem:[#allocation2] ss:$8 sm:$0x3] %vm201_vm2, %v4322_v60  ;;  %206 = vst.msk [vmem:[#allocation2 + $0x41] ss:$8 sm:$0x3] %vm201_vm2, %v4322_v60  ;;  %v3738_v8 = vcombine.high %v3606_v61, %v3610_v62  ;;  %v3735_v13 = vcombine.low %v3605_v57, %v3609_v59  ;;  %v3775_v60 = vcombine.low %v3645_v47, %v3649_v49 }
  0x37   : > { %1244 = vmatpush1.bf16.msra.mxu0 %v3811_v2  ;;  %1297 = vmatpush1.bf16.msra.mxu1 %v3813_v3  ;;  %v4633_v2 = vsel %vm536_vm1, %v543_v51, %v547_v52  ;;  %v561_v3 = vshrl.u32 %v4590_v23, 16 }
  0x38   : > { %1245 = vmatprep.subr.bf16.mxu0 %v3820_v5  ;;  %1298 = vmatprep.subr.bf16.mxu1 %v3822_v7  ;;  %v565_v5 = vshll.u32 %v405_v53, 16  ;;  %v3736_v7 = vcombine.high %v3605_v57, %v3609_v59  ;;  %v3776_v53 = vcombine.high %v3645_v47, %v3649_v49  ;;  %v3654_v57 = vld [vmem:[%s5787_s1 + $0x5d8] sm:$0xff]  ;;  %v3705_v47 = vld [vmem:[%s5787_s1 + $0x770] sm:$0xff] }
  0x39   : > { %v3658_v59 = vld [vmem:[%s5787_s1 + $0x5f8] sm:$0xff] }
  0x3a   : > { %v3702_v49 = vld [vmem:[%s5787_s1 + $0x758] sm:$0xff] }
  0x3b   : > { %1246 = vmatpush1.bf16.msra.mxu0 %v3819_v12  ;;  %1299 = vmatpush1.bf16.msra.mxu1 %v3821_v14  ;;  %v4650_v12 = vsel %vm536_vm1, %v571_v63, %v575_v0  ;;  %v563_v14 = vor.u32 %v561_v3, %v547_v52  ;;  %v3786_v63 = vcombine.high %v3654_v57, %v3658_v59  ;;  %v3661_v0 = vld [vmem:[%s5787_s1 + $0x610] sm:$0xff]  ;;  %v3662_v3 = vld [vmem:[%s5787_s1 + $0x618] sm:$0xff] }
  0x3c   : > { %1247 = vmatprep.subr.bf16.mxu0 %v3828_v15  ;;  %1300 = vmatprep.subr.bf16.mxu1 %v3830_v16  ;;  %v567_v15 = vrot.slane %v565_v5, 1  ;;  %v3737_v16 = vcombine.low %v3606_v61, %v3610_v62  ;;  %v3666_v5 = vld [vmem:[%s5787_s1 + $0x638] sm:$0xff] }
  0x3d   : > { %v3794_v9 = vcombine.high %v3662_v3, %v3666_v5 }
  0x3f   : > { %1248 = vmatpush1.bf16.msra.mxu0 %v3827_v21  ;;  %1301 = vmatpush1.bf16.msra.mxu1 %v3829_v28  ;;  %v3622_v21 = vld [vmem:[%s5787_s1 + $0x4d8] sm:$0xff]  ;;  %v4668_v28 = vsel %vm536_vm1, %v563_v14, %v567_v15  ;;  %v3793_v15 = vcombine.low %v3662_v3, %v3666_v5 }
  0x40   : > { %1249 = vmatprep.subr.bf16.mxu0 %v3836_v29  ;;  %1302 = vmatprep.subr.bf16.mxu1 %v3838_v30  ;;  %v3745_v29 = vcombine.low %v3614_v10, %v3618_v11  ;;  %v3752_v30 = vcombine.high %v3621_v19, %v3625_v20  ;;  %v3754_v31 = vcombine.high %v3622_v21, %v3626_v26  ;;  %v3673_v10 = vld [vmem:[%s5787_s1 + $0x670] sm:$0xff]  ;;  %v3670_v11 = vld [vmem:[%s5787_s1 + $0x658] sm:$0xff] }
  0x41   : > { %v3753_v35 = vcombine.low %v3622_v21, %v3626_v26  ;;  %v3682_v21 = vld [vmem:[%s5787_s1 + $0x6b8] sm:$0xff]  ;;  %v3799_v26 = vcombine.low %v3669_v48, %v3673_v10 }
  0x42   : > { %v3722_v3 = vld [vmem:[%s5787_s1 + $0x7f8] sm:$0xff] }
  0x43   : > { %1250 = vmatpush1.bf16.msra.mxu0 %v3835_v34  ;;  %1303 = vmatpush1.bf16.msra.mxu1 %v3837_v38  ;;  %v3751_v34 = vcombine.low %v3621_v19, %v3625_v20  ;;  %v3637_v38 = vld [vmem:[%s5787_s1 + $0x550] sm:$0xff]  ;;  %v3678_v20 = vld [vmem:[%s5787_s1 + $0x698] sm:$0xff] }
  0x44   : > { %1251 = vmatprep.subr.bf16.mxu0 %v3844_v39  ;;  %1304 = vmatprep.subr.bf16.mxu1 %v3846_v42  ;;  %v3641_v39 = vld [vmem:[%s5787_s1 + $0x570] sm:$0xff]  ;;  %v3642_v42 = vld [vmem:[%s5787_s1 + $0x578] sm:$0xff] }
  0x45   : > { %v3768_v45 = vcombine.high %v3637_v38, %v3641_v39  ;;  %v3770_v46 = vcombine.high %v3638_v40, %v3642_v42  ;;  %v3767_v51 = vcombine.low %v3637_v38, %v3641_v39  ;;  %v3769_v52 = vcombine.low %v3638_v40, %v3642_v42  ;;  %v3681_v19 = vld [vmem:[%s5787_s1 + $0x6b0] sm:$0xff]  ;;  %v3694_v39 = vld [vmem:[%s5787_s1 + $0x718] sm:$0xff] }
  0x46   : > { %v3697_v38 = vld [vmem:[%s5787_s1 + $0x730] sm:$0xff]  ;;  %v3698_v40 = vld [vmem:[%s5787_s1 + $0x738] sm:$0xff] }
  0x47   : > { %1252 = vmatpush1.bf16.msra.mxu0 %v3843_v50  ;;  %1305 = vmatpush1.bf16.msra.mxu1 %v3845_v54  ;;  %v3650_v50 = vld [vmem:[%s5787_s1 + $0x5b8] sm:$0xff] }
  0x48   : > { %1327 = vmatprep.subr.bf16.mxu0 %v3728_v55  ;;  %1380 = vmatprep.subr.bf16.mxu1 %v3730_v56  ;;  %v3653_v55 = vld [vmem:[%s5787_s1 + $0x5d0] sm:$0xff] }
  0x49   : > { %v3657_v56 = vld [vmem:[%s5787_s1 + $0x5f0] sm:$0xff] }
  0x4a   : > { %1254 = vmatmul.mubr.bf16.vlgmr.msra.gmra.mrb[0].mxu0 %v4633_v2  ;;  %1307 = vmatmul.mubr.bf16.vlgmr.msra.gmra.mrb[0].mxu1 %v4633_v2  ;;  %v3784_v62 = vcombine.high %v3653_v55, %v3657_v56 }
  0x4b   : > { %1328 = vmatpush1.bf16.msra.mxu0 %v3727_v1  ;;  %1381 = vmatpush1.bf16.msra.mxu1 %v3729_v6  ;;  %v3665_v1 = vld [vmem:[%s5787_s1 + $0x630] sm:$0xff]  ;;  %v3783_v6 = vcombine.low %v3653_v55, %v3657_v56  ;;  %v3710_v56 = vld [vmem:[%s5787_s1 + $0x798] sm:$0xff] }
  0x4c   : > { %1329 = vmatprep.subr.bf16.mxu0 %v3736_v7  ;;  %1382 = vmatprep.subr.bf16.mxu1 %v3738_v8  ;;  %v3785_v7 = vcombine.low %v3654_v57, %v3658_v59  ;;  %v3792_v8 = vcombine.high %v3661_v0, %v3665_v1  ;;  %v3791_v14 = vcombine.low %v3661_v0, %v3665_v1  ;;  %v3713_v55 = vld [vmem:[%s5787_s1 + $0x7b0] sm:$0xff]  ;;  %v3714_v57 = vld [vmem:[%s5787_s1 + $0x7b8] sm:$0xff] }
  0x4d   : > { %1263 = vmatprep.mubr.bf16.mxu0 %v4650_v12  ;;  %1316 = vmatprep.mubr.bf16.mxu1 %v4650_v12  ;;  %v3721_v0 = vld [vmem:[%s5787_s1 + $0x7f0] sm:$0xff]  ;;  %v3718_v1 = vld [vmem:[%s5787_s1 + $0x7d8] sm:$0xff] }
  0x4f   : > { %1330 = vmatpush1.bf16.msra.mxu0 %v3735_v13  ;;  %1383 = vmatpush1.bf16.msra.mxu1 %v3737_v16  ;;  %v3674_v13 = vld [vmem:[%s5787_s1 + $0x678] sm:$0xff]  ;;  %v3800_v16 = vcombine.high %v3669_v48, %v3673_v10  ;;  %v275_v48 = vld [vmem:[%s5787_s1 + $0x20] sm:$0xff]  ;;  %v272_v10 = vld [vmem:[%s5787_s1 + $0x8] sm:$0xff] }
  0x50   : > { %1331 = vmatprep.subr.bf16.mxu0 %v3744_v17  ;;  %1384 = vmatprep.subr.bf16.mxu1 %v3746_v18  ;;  %v3802_v17 = vcombine.high %v3670_v11, %v3674_v13  ;;  %v3677_v18 = vld [vmem:[%s5787_s1 + $0x690] sm:$0xff] }
  0x51   : > { %v3807_v33 = vcombine.low %v3677_v18, %v3681_v19 }
  0x52   : > { %1264 = vmatmul.mubr.bf16.gmra.mrb[4].mxu0 %v4668_v28  ;;  %1317 = vmatmul.mubr.bf16.gmra.mrb[4].mxu1 %v4668_v28 }
  0x53   : > { %1332 = vmatpush1.bf16.msra.mxu0 %v3743_v27  ;;  %1385 = vmatpush1.bf16.msra.mxu1 %v3745_v29  ;;  %v3801_v27 = vcombine.low %v3670_v11, %v3674_v13  ;;  %v3808_v29 = vcombine.high %v3677_v18, %v3681_v19  ;;  %v276_v11 = vld [vmem:[%s5787_s1 + $0x28] sm:$0xff]  ;;  %v283_v18 = vld [vmem:[%s5787_s1 + $0x60] sm:$0xff] }
  0x54   : > { %1333 = vmatprep.subr.bf16.mxu0 %v3752_v30  ;;  %1386 = vmatprep.subr.bf16.mxu1 %v3754_v31  ;;  %v3810_v30 = vcombine.high %v3678_v20, %v3682_v21  ;;  %v3685_v31 = vld [vmem:[%s5787_s1 + $0x6d0] sm:$0xff]  ;;  %v280_v19 = vld [vmem:[%s5787_s1 + $0x48] sm:$0xff] }
  0x55   : > { %1359 = vmatprep.mubr.bf16.mxu0 %v4547_v58  ;;  %1412 = vmatprep.mubr.bf16.mxu1 %v4547_v58  ;;  %v3646_v58 = vld [vmem:[%s5787_s1 + $0x598] sm:$0xff]  ;;  %v3815_v42 = vcombine.low %v3685_v31, %v3689_v32 }
  0x56   : > { %v3778_v54 = vcombine.high %v3646_v58, %v3650_v50  ;;  %v3777_v61 = vcombine.low %v3646_v58, %v3650_v50  ;;  %v3706_v58 = vld [vmem:[%s5787_s1 + $0x778] sm:$0xff] }
  0x57   : > { %1334 = vmatpush1.bf16.msra.mxu0 %v3751_v34  ;;  %1387 = vmatpush1.bf16.msra.mxu1 %v3753_v35  ;;  %v3809_v34 = vcombine.low %v3678_v20, %v3682_v21  ;;  %v3816_v35 = vcombine.high %v3685_v31, %v3689_v32  ;;  %v284_v20 = vld [vmem:[%s5787_s1 + $0x68] sm:$0xff]  ;;  %v291_v31 = vld [vmem:[%s5787_s1 + $0xa0] sm:$0xff] }
  0x58   : > { %1335 = vmatprep.subr.bf16.mxu0 %v3760_v36  ;;  %1388 = vmatprep.subr.bf16.mxu1 %v3762_v37  ;;  %v3818_v36 = vcombine.high %v3686_v24, %v3690_v25  ;;  %v3693_v37 = vld [vmem:[%s5787_s1 + $0x710] sm:$0xff]  ;;  %v288_v32 = vld [vmem:[%s5787_s1 + $0x88] sm:$0xff] }
  0x59   : > { %v3823_v50 = vcombine.low %v3693_v37, %v3697_v38 }
  0x5b   : > { %1336 = vmatpush1.bf16.msra.mxu0 %v3759_v43  ;;  %1389 = vmatpush1.bf16.msra.mxu1 %v3761_v44  ;;  %v3817_v43 = vcombine.low %v3686_v24, %v3690_v25  ;;  %v3824_v44 = vcombine.high %v3693_v37, %v3697_v38  ;;  %v292_v24 = vld [vmem:[%s5787_s1 + $0xa8] sm:$0xff]  ;;  %v299_v37 = vld [vmem:[%s5787_s1 + $0xe0] sm:$0xff] }
  0x5c   : > { %1337 = vmatprep.subr.bf16.mxu0 %v3768_v45  ;;  %1390 = vmatprep.subr.bf16.mxu1 %v3770_v46  ;;  %v3826_v45 = vcombine.high %v3694_v39, %v3698_v40  ;;  %v3701_v46 = vld [vmem:[%s5787_s1 + $0x750] sm:$0xff]  ;;  %v300_v38 = vld [vmem:[%s5787_s1 + $0xe8] sm:$0xff] }
  0x5d   : > { %v3831_v59 = vcombine.low %v3701_v46, %v3705_v47 }
  0x5f   : > { %1338 = vmatpush1.bf16.msra.mxu0 %v3767_v51  ;;  %1391 = vmatpush1.bf16.msra.mxu1 %v3769_v52  ;;  %v3825_v51 = vcombine.low %v3694_v39, %v3698_v40  ;;  %v3832_v52 = vcombine.high %v3701_v46, %v3705_v47  ;;  %v260_v39 = vld [vmem:[#allocation2 + $0x8] sm:$0xff]  ;;  %v307_v46 = vld [vmem:[%s5787_s1 + $0x120] sm:$0xff] }
  0x60   : > { %1339 = vmatprep.subr.bf16.mxu0 %v3776_v53  ;;  %1392 = vmatprep.subr.bf16.mxu1 %v3778_v54  ;;  %v3834_v53 = vcombine.high %v3702_v49, %v3706_v58  ;;  %v3709_v54 = vld [vmem:[%s5787_s1 + $0x790] sm:$0xff]  ;;  %v4877_v47 = vpack.c.bf16 %v4472_v4, %v260_v39 }
  0x61   : > { %v3839_v5 = vcombine.low %v3709_v54, %v3713_v55 }
  0x63   : > { %1340 = vmatpush1.bf16.msra.mxu0 %v3775_v60  ;;  %1393 = vmatpush1.bf16.msra.mxu1 %v3777_v61  ;;  %v3833_v60 = vcombine.low %v3702_v49, %v3706_v58  ;;  %v3840_v61 = vcombine.high %v3709_v54, %v3713_v55  ;;  %v308_v49 = vld [vmem:[%s5787_s1 + $0x128] sm:$0xff] }
  0x64   : > { %1341 = vmatprep.subr.bf16.mxu0 %v3784_v62  ;;  %1394 = vmatprep.subr.bf16.mxu1 %v3786_v63  ;;  %v3842_v62 = vcombine.high %v3710_v56, %v3714_v57  ;;  %v3717_v63 = vld [vmem:[%s5787_s1 + $0x7d0] sm:$0xff]  ;;  %v316_v54 = vld [vmem:[%s5787_s1 + $0x168] sm:$0xff] }
  0x65   : > { %v3847_v13 = vcombine.low %v3717_v63, %v3721_v0 }
  0x67   : > { %1342 = vmatpush1.bf16.msra.mxu0 %v3783_v6  ;;  %1395 = vmatpush1.bf16.msra.mxu1 %v3785_v7  ;;  %v3841_v6 = vcombine.low %v3710_v56, %v3714_v57  ;;  %v3848_v7 = vcombine.high %v3717_v63, %v3721_v0  ;;  %v324_v63 = vld [vmem:[%s5787_s1 + $0x1a8] sm:$0xff] }
  0x68   : > { %1343 = vmatprep.subr.bf16.mxu0 %v3792_v8  ;;  %1396 = vmatprep.subr.bf16.mxu1 %v3794_v9  ;;  %v3850_v8 = vcombine.high %v3718_v1, %v3722_v3  ;;  %v271_v9 = vld [vmem:[%s5787_s1] sm:$0xff] }
  0x69   : > { %v3851_v21 = vcombine.low %v271_v9, %v275_v48 }
  0x6b   : > { %1344 = vmatpush1.bf16.msra.mxu0 %v3791_v14  ;;  %1397 = vmatpush1.bf16.msra.mxu1 %v3793_v15  ;;  %v3849_v14 = vcombine.low %v3718_v1, %v3722_v3  ;;  %v3852_v15 = vcombine.high %v271_v9, %v275_v48  ;;  %v332_v9 = vld [vmem:[%s5787_s1 + $0x1e8] sm:$0xff] }
  0x6c   : > { %1345 = vmatprep.subr.bf16.mxu0 %v3800_v16  ;;  %1398 = vmatprep.subr.bf16.mxu1 %v3802_v17  ;;  %v3854_v16 = vcombine.high %v272_v10, %v276_v11  ;;  %v279_v17 = vld [vmem:[%s5787_s1 + $0x40] sm:$0xff] }
  0x6d   : > { %v3859_v25 = vcombine.low %v279_v17, %v283_v18 }
  0x6f   : > { %1346 = vmatpush1.bf16.msra.mxu0 %v3799_v26  ;;  %1399 = vmatpush1.bf16.msra.mxu1 %v3801_v27  ;;  %v3853_v26 = vcombine.low %v272_v10, %v276_v11  ;;  %v3860_v27 = vcombine.high %v279_v17, %v283_v18  ;;  %v340_v17 = vld [vmem:[%s5787_s1 + $0x228] sm:$0xff] }
  0x70   : > { %1347 = vmatprep.subr.bf16.mxu0 %v3808_v29  ;;  %1400 = vmatprep.subr.bf16.mxu1 %v3810_v30  ;;  %v3862_v29 = vcombine.high %v280_v19, %v284_v20  ;;  %v287_v30 = vld [vmem:[%s5787_s1 + $0x80] sm:$0xff] }
  0x71   : > { %v3867_v40 = vcombine.low %v287_v30, %v291_v31 }
  0x73   : > { %1348 = vmatpush1.bf16.msra.mxu0 %v3807_v33  ;;  %1401 = vmatpush1.bf16.msra.mxu1 %v3809_v34  ;;  %v3861_v33 = vcombine.low %v280_v19, %v284_v20  ;;  %v3868_v34 = vcombine.high %v287_v30, %v291_v31  ;;  %v348_v30 = vld [vmem:[%s5787_s1 + $0x268] sm:$0xff] }
  0x74   : > { %1349 = vmatprep.subr.bf16.mxu0 %v3816_v35  ;;  %1402 = vmatprep.subr.bf16.mxu1 %v3818_v36  ;;  %v3870_v35 = vcombine.high %v288_v32, %v292_v24  ;;  %v295_v36 = vld [vmem:[%s5787_s1 + $0xc0] sm:$0xff] }
  0x75   : > { %v3875_v58 = vcombine.low %v295_v36, %v299_v37 }
  0x77   : > { %1350 = vmatpush1.bf16.msra.mxu0 %v3815_v42  ;;  %1403 = vmatpush1.bf16.msra.mxu1 %v3817_v43  ;;  %v3869_v42 = vcombine.low %v288_v32, %v292_v24  ;;  %v3876_v43 = vcombine.high %v295_v36, %v299_v37  ;;  %v356_v36 = vld [vmem:[%s5787_s1 + $0x2a8] sm:$0xff] }
  0x78   : > { %1351 = vmatprep.subr.bf16.mxu0 %v3824_v44  ;;  %1404 = vmatprep.subr.bf16.mxu1 %v3826_v45  ;;  %v303_v45 = vld [vmem:[%s5787_s1 + $0x100] sm:$0xff] }
  0x79   : > { %v3883_v55 = vcombine.low %v303_v45, %v307_v46 }
  0x7b   : > { %1352 = vmatpush1.bf16.msra.mxu0 %v3823_v50  ;;  %1405 = vmatpush1.bf16.msra.mxu1 %v3825_v51  ;;  %v3884_v51 = vcombine.high %v303_v45, %v307_v46 }
  0x7c   : > { %1353 = vmatprep.subr.bf16.mxu0 %v3832_v52  ;;  %1406 = vmatprep.subr.bf16.mxu1 %v3834_v53  ;;  %v311_v52 = vld [vmem:[%s5787_s1 + $0x140] sm:$0xff] }
  0x7d   : > { %v315_v53 = vld [vmem:[%s5787_s1 + $0x160] sm:$0xff] }
  0x7e   : > { %v3892_v57 = vcombine.high %v311_v52, %v315_v53  ;;  %v3891_v0 = vcombine.low %v311_v52, %v315_v53 }
  0x7f   : > { %1354 = vmatpush1.bf16.msra.mxu0 %v3831_v59  ;;  %1407 = vmatpush1.bf16.msra.mxu1 %v3833_v60  ;;  %v319_v60 = vld [vmem:[%s5787_s1 + $0x180] sm:$0xff] }
  0x80   : > { %1355 = vmatprep.subr.bf16.mxu0 %v3840_v61  ;;  %1408 = vmatprep.subr.bf16.mxu1 %v3842_v62  ;;  %v323_v61 = vld [vmem:[%s5787_s1 + $0x1a0] sm:$0xff]  ;;  %v320_v62 = vld [vmem:[%s5787_s1 + $0x188] sm:$0xff] }
  0x81   : > { %v3900_v3 = vcombine.high %v319_v60, %v323_v61  ;;  %v3899_v48 = vcombine.low %v319_v60, %v323_v61  ;;  %v3901_v10 = vcombine.low %v320_v62, %v324_v63 }
  0x83   : > { %1356 = vmatpush1.bf16.msra.mxu0 %v3839_v5  ;;  %1409 = vmatpush1.bf16.msra.mxu1 %v3841_v6  ;;  %v3902_v5 = vcombine.high %v320_v62, %v324_v63  ;;  %v327_v6 = vld [vmem:[%s5787_s1 + $0x1c0] sm:$0xff] }
  0x84   : > { %1357 = vmatprep.subr.bf16.mxu0 %v3848_v7  ;;  %1410 = vmatprep.subr.bf16.mxu1 %v3850_v8  ;;  %v331_v7 = vld [vmem:[%s5787_s1 + $0x1e0] sm:$0xff]  ;;  %v328_v8 = vld [vmem:[%s5787_s1 + $0x1c8] sm:$0xff] }
  0x85   : > { %v3908_v11 = vcombine.high %v327_v6, %v331_v7  ;;  %v3907_v18 = vcombine.low %v327_v6, %v331_v7  ;;  %v3909_v19 = vcombine.low %v328_v8, %v332_v9 }
  0x87   : > { %1358 = vmatpush1.bf16.msra.mxu0 %v3847_v13  ;;  %1411 = vmatpush1.bf16.msra.mxu1 %v3849_v14  ;;  %v3910_v13 = vcombine.high %v328_v8, %v332_v9  ;;  %v335_v14 = vld [vmem:[%s5787_s1 + $0x200] sm:$0xff] }
  0x88   : > { %2073 = vmatprep.subr.bf16.mxu0 %v3852_v15  ;;  %2126 = vmatprep.subr.bf16.mxu1 %v3854_v16  ;;  %v339_v15 = vld [vmem:[%s5787_s1 + $0x220] sm:$0xff]  ;;  %v336_v16 = vld [vmem:[%s5787_s1 + $0x208] sm:$0xff] }
  0x89   : > { %v3916_v20 = vcombine.high %v335_v14, %v339_v15  ;;  %v3915_v31 = vcombine.low %v335_v14, %v339_v15  ;;  %v3917_v32 = vcombine.low %v336_v16, %v340_v17 }
  0x8a   : > { %1360 = vmatmul.mubr.bf16.vlgmr.msra.gmra.mrb[8].mxu0 %v4633_v2  ;;  %1413 = vmatmul.mubr.bf16.vlgmr.msra.gmra.mrb[8].mxu1 %v4633_v2  ;;  %v296_v2 = vld [vmem:[%s5787_s1 + $0xc8] sm:$0xff] }
  0x8b   : > { %2074 = vmatpush1.bf16.msra.mxu0 %v3851_v21  ;;  %2127 = vmatpush1.bf16.msra.mxu1 %v3853_v26  ;;  %v3878_v44 = vcombine.high %v296_v2, %v300_v38  ;;  %v3877_v50 = vcombine.low %v296_v2, %v300_v38  ;;  %v3918_v21 = vcombine.high %v336_v16, %v340_v17  ;;  %v343_v26 = vld [vmem:[%s5787_s1 + $0x240] sm:$0xff] }
  0x8c   : > { %2075 = vmatprep.subr.bf16.mxu0 %v3860_v27  ;;  %2128 = vmatprep.subr.bf16.mxu1 %v3862_v29  ;;  %v347_v27 = vld [vmem:[%s5787_s1 + $0x260] sm:$0xff]  ;;  %v344_v29 = vld [vmem:[%s5787_s1 + $0x248] sm:$0xff] }
  0x8d   : > { %1369 = vmatprep.mubr.bf16.mxu0 %v4650_v12  ;;  %1422 = vmatprep.mubr.bf16.mxu1 %v4650_v12  ;;  %v304_v12 = vld [vmem:[%s5787_s1 + $0x108] sm:$0xff]  ;;  %v3924_v24 = vcombine.high %v343_v26, %v347_v27  ;;  %v3923_v37 = vcombine.low %v343_v26, %v347_v27  ;;  %v3925_v2 = vcombine.low %v344_v29, %v348_v30  ;;  %v259_v27 = vld [vmem:[#allocation2] sm:$0xff] }
  0x8e   : > { %v3886_v4 = vcombine.high %v304_v12, %v308_v49  ;;  %v3885_v56 = vcombine.low %v304_v12, %v308_v49 }
  0x8f   : > { %2076 = vmatpush1.bf16.msra.mxu0 %v3859_v25  ;;  %2129 = vmatpush1.bf16.msra.mxu1 %v3861_v33  ;;  %v3926_v25 = vcombine.high %v344_v29, %v348_v30  ;;  %v351_v33 = vld [vmem:[%s5787_s1 + $0x280] sm:$0xff] }
  0x90   : > { %2077 = vmatprep.subr.bf16.mxu0 %v3868_v34  ;;  %2130 = vmatprep.subr.bf16.mxu1 %v3870_v35  ;;  %v355_v34 = vld [vmem:[%s5787_s1 + $0x2a0] sm:$0xff]  ;;  %v352_v35 = vld [vmem:[%s5787_s1 + $0x288] sm:$0xff] }
  0x91   : > { %v3932_v38 = vcombine.high %v351_v33, %v355_v34  ;;  %v3934_v39 = vcombine.high %v352_v35, %v356_v36  ;;  %v3931_v45 = vcombine.low %v351_v33, %v355_v34  ;;  %v3933_v46 = vcombine.low %v352_v35, %v356_v36  ;;  %v282_v34 = vld [vmem:[%s5787_s1 + $0x58] sm:$0xff] }
  0x92   : > { %1370 = vmatmul.mubr.bf16.gmra.mrb[12].mxu0 %v4668_v28  ;;  %1423 = vmatmul.mubr.bf16.gmra.mrb[12].mxu1 %v4668_v28  ;;  %v312_v28 = vld [vmem:[%s5787_s1 + $0x148] sm:$0xff]  ;;  %v286_v35 = vld [vmem:[%s5787_s1 + $0x78] sm:$0xff] }
  0x93   : > { %2078 = vmatpush1.bf16.msra.mxu0 %v3867_v40  ;;  %2131 = vmatpush1.bf16.msra.mxu1 %v3869_v42  ;;  %v3894_v59 = vcombine.high %v312_v28, %v316_v54  ;;  %v3893_v1 = vcombine.low %v312_v28, %v316_v54  ;;  %v359_v40 = vld [vmem:[%s5787_s1 + $0x2c0] sm:$0xff] }
  0x94   : > { %2079 = vmatprep.subr.bf16.mxu0 %v3876_v43  ;;  %2132 = vmatprep.subr.bf16.mxu1 %v3878_v44  ;;  %v363_v42 = vld [vmem:[%s5787_s1 + $0x2e0] sm:$0xff]  ;;  %v360_v43 = vld [vmem:[%s5787_s1 + $0x2c8] sm:$0xff] }
  0x95   : > { %2105 = vmatprep.mubr.bf16.mxu0 %v4877_v47  ;;  %2158 = vmatprep.mubr.bf16.mxu1 %v4877_v47  ;;  %v364_v44 = vld [vmem:[%s5787_s1 + $0x2e8] sm:$0xff]  ;;  %v3940_v12 = vcombine.high %v359_v40, %v363_v42  ;;  %v3939_v52 = vcombine.low %v359_v40, %v363_v42  ;;  %v293_v40 = vld [vmem:[%s5787_s1 + $0xb0] sm:$0xff]  ;;  %v290_v42 = vld [vmem:[%s5787_s1 + $0x98] sm:$0xff] }
  0x96   : > { %v3942_v49 = vcombine.high %v360_v43, %v364_v44  ;;  %v3941_v53 = vcombine.low %v360_v43, %v364_v44  ;;  %v294_v43 = vld [vmem:[%s5787_s1 + $0xb8] sm:$0xff] }
  0x97   : > { %2080 = vmatpush1.bf16.msra.mxu0 %v3875_v58  ;;  %2133 = vmatpush1.bf16.msra.mxu1 %v3877_v50  ;;  %v367_v58 = vld [vmem:[%s5787_s1 + $0x300] sm:$0xff] }
  0x98   : > { %2081 = vmatprep.subr.bf16.mxu0 %v3884_v51  ;;  %2134 = vmatprep.subr.bf16.mxu1 %v3886_v4  ;;  %v371_v50 = vld [vmem:[%s5787_s1 + $0x320] sm:$0xff]  ;;  %v368_v51 = vld [vmem:[%s5787_s1 + $0x308] sm:$0xff] }
  0x99   : > { %v372_v4 = vld [vmem:[%s5787_s1 + $0x328] sm:$0xff]  ;;  %v3948_v28 = vcombine.high %v367_v58, %v371_v50  ;;  %v3947_v60 = vcombine.low %v367_v58, %v371_v50  ;;  %v301_v58 = vld [vmem:[%s5787_s1 + $0xf0] sm:$0xff]  ;;  %v298_v50 = vld [vmem:[%s5787_s1 + $0xd8] sm:$0xff] }
  0x9a   : > { %v3950_v54 = vcombine.high %v368_v51, %v372_v4  ;;  %v3949_v61 = vcombine.low %v368_v51, %v372_v4  ;;  %v302_v51 = vld [vmem:[%s5787_s1 + $0xf8] sm:$0xff] }
  0x9b   : > { %2082 = vmatpush1.bf16.msra.mxu0 %v3883_v55  ;;  %2135 = vmatpush1.bf16.msra.mxu1 %v3885_v56  ;;  %v375_v55 = vld [vmem:[%s5787_s1 + $0x340] sm:$0xff] }
  0x9c   : > { %2083 = vmatprep.subr.bf16.mxu0 %v3892_v57  ;;  %2136 = vmatprep.subr.bf16.mxu1 %v3894_v59  ;;  %v379_v56 = vld [vmem:[%s5787_s1 + $0x360] sm:$0xff]  ;;  %v376_v57 = vld [vmem:[%s5787_s1 + $0x348] sm:$0xff] }
  0x9d   : > { %v380_v59 = vld [vmem:[%s5787_s1 + $0x368] sm:$0xff]  ;;  %v3956_v62 = vcombine.high %v375_v55, %v379_v56  ;;  %v3955_v6 = vcombine.low %v375_v55, %v379_v56  ;;  %v309_v55 = vld [vmem:[%s5787_s1 + $0x130] sm:$0xff]  ;;  %v306_v56 = vld [vmem:[%s5787_s1 + $0x118] sm:$0xff] }
  0x9e   : > { %v3958_v63 = vcombine.high %v376_v57, %v380_v59  ;;  %v3957_v7 = vcombine.low %v376_v57, %v380_v59  ;;  %v310_v57 = vld [vmem:[%s5787_s1 + $0x138] sm:$0xff] }
  0x9f   : > { %2084 = vmatpush1.bf16.msra.mxu0 %v3891_v0  ;;  %2137 = vmatpush1.bf16.msra.mxu1 %v3893_v1  ;;  %v383_v0 = vld [vmem:[%s5787_s1 + $0x380] sm:$0xff] }
  0xa0   : > { %2085 = vmatprep.subr.bf16.mxu0 %v3900_v3  ;;  %2138 = vmatprep.subr.bf16.mxu1 %v3902_v5  ;;  %v387_v1 = vld [vmem:[%s5787_s1 + $0x3a0] sm:$0xff]  ;;  %v384_v3 = vld [vmem:[%s5787_s1 + $0x388] sm:$0xff] }
  0xa1   : > { %v388_v5 = vld [vmem:[%s5787_s1 + $0x3a8] sm:$0xff]  ;;  %v3964_v8 = vcombine.high %v383_v0, %v387_v1  ;;  %v3963_v14 = vcombine.low %v383_v0, %v387_v1  ;;  %v317_v0 = vld [vmem:[%s5787_s1 + $0x170] sm:$0xff]  ;;  %v314_v1 = vld [vmem:[%s5787_s1 + $0x158] sm:$0xff] }
  0xa2   : > { %v3966_v9 = vcombine.high %v384_v3, %v388_v5  ;;  %v3965_v15 = vcombine.low %v384_v3, %v388_v5  ;;  %v318_v3 = vld [vmem:[%s5787_s1 + $0x178] sm:$0xff] }
  0xa3   : > { %2086 = vmatpush1.bf16.msra.mxu0 %v3899_v48  ;;  %2139 = vmatpush1.bf16.msra.mxu1 %v3901_v10  ;;  %v391_v48 = vld [vmem:[%s5787_s1 + $0x3c0] sm:$0xff] }
  0xa4   : > { %2087 = vmatprep.subr.bf16.mxu0 %v3908_v11  ;;  %2140 = vmatprep.subr.bf16.mxu1 %v3910_v13  ;;  %v395_v10 = vld [vmem:[%s5787_s1 + $0x3e0] sm:$0xff]  ;;  %v392_v11 = vld [vmem:[%s5787_s1 + $0x3c8] sm:$0xff] }
  0xa5   : > { %v396_v13 = vld [vmem:[%s5787_s1 + $0x3e8] sm:$0xff]  ;;  %v3972_v16 = vcombine.high %v391_v48, %v395_v10  ;;  %v3971_v26 = vcombine.low %v391_v48, %v395_v10  ;;  %v325_v48 = vld [vmem:[%s5787_s1 + $0x1b0] sm:$0xff]  ;;  %v326_v10 = vld [vmem:[%s5787_s1 + $0x1b8] sm:$0xff] }
  0xa6   : > { %v3974_v17 = vcombine.high %v392_v11, %v396_v13  ;;  %v3973_v29 = vcombine.low %v392_v11, %v396_v13  ;;  %v3897_v13 = vcombine.low %v314_v1, %v318_v3 }
  0xa7   : > { %2088 = vmatpush1.bf16.msra.mxu0 %v3907_v18  ;;  %2141 = vmatpush1.bf16.msra.mxu1 %v3909_v19  ;;  %v273_v18 = vld [vmem:[%s5787_s1 + $0x10] sm:$0xff] }
  0xa8   : > { %2089 = vmatprep.subr.bf16.mxu0 %v3916_v20  ;;  %2142 = vmatprep.subr.bf16.mxu1 %v3918_v21  ;;  %v277_v19 = vld [vmem:[%s5787_s1 + $0x30] sm:$0xff]  ;;  %v274_v20 = vld [vmem:[%s5787_s1 + $0x18] sm:$0xff] }
  0xa9   : > { %v278_v21 = vld [vmem:[%s5787_s1 + $0x38] sm:$0xff]  ;;  %v3856_v30 = vcombine.high %v273_v18, %v277_v19  ;;  %v3855_v36 = vcombine.low %v273_v18, %v277_v19 }
  0xaa   : > { %v330_v18 = vld [vmem:[%s5787_s1 + $0x1d8] sm:$0xff] }
  0xab   : > { %2090 = vmatpush1.bf16.msra.mxu0 %v3915_v31  ;;  %2143 = vmatpush1.bf16.msra.mxu1 %v3917_v32  ;;  %v3858_v31 = vcombine.high %v274_v20, %v278_v21  ;;  %v281_v32 = vld [vmem:[%s5787_s1 + $0x50] sm:$0xff]  ;;  %v334_v19 = vld [vmem:[%s5787_s1 + $0x1f8] sm:$0xff] }
  0xac   : > { %2091 = vmatprep.subr.bf16.mxu0 %v3924_v24  ;;  %2144 = vmatprep.subr.bf16.mxu1 %v3926_v25  ;;  %v285_v24 = vld [vmem:[%s5787_s1 + $0x70] sm:$0xff] }
  0xad   : > { %v5039_v25 = vld [vmem:[#allocation2 + $0x10] sm:$0xff]  ;;  %v3863_v44 = vcombine.low %v281_v32, %v285_v24 }
  0xae   : > { %v5042_v33 = vpack.c.bf16 %v5039_v25, %v259_v27  ;;  %v3914_v27 = vcombine.high %v330_v18, %v334_v19 }
  0xaf   : > { %2092 = vmatpush1.bf16.msra.mxu0 %v3923_v37  ;;  %2145 = vmatpush1.bf16.msra.mxu1 %v3925_v2  ;;  %v3857_v37 = vcombine.low %v274_v20, %v278_v21  ;;  %v3864_v2 = vcombine.high %v281_v32, %v285_v24  ;;  %v342_v32 = vld [vmem:[%s5787_s1 + $0x238] sm:$0xff] }
  0xb0   : > { %2093 = vmatprep.subr.bf16.mxu0 %v3932_v38  ;;  %2146 = vmatprep.subr.bf16.mxu1 %v3934_v39  ;;  %v3866_v38 = vcombine.high %v282_v34, %v286_v35  ;;  %v289_v39 = vld [vmem:[%s5787_s1 + $0x90] sm:$0xff] }
  0xb1   : > { %v3871_v4 = vcombine.low %v289_v39, %v293_v40 }
  0xb3   : > { %2094 = vmatpush1.bf16.msra.mxu0 %v3931_v45  ;;  %2147 = vmatpush1.bf16.msra.mxu1 %v3933_v46  ;;  %v3865_v45 = vcombine.low %v282_v34, %v286_v35  ;;  %v3872_v46 = vcombine.high %v289_v39, %v293_v40  ;;  %v3913_v34 = vcombine.low %v330_v18, %v334_v19  ;;  %v350_v39 = vld [vmem:[%s5787_s1 + $0x278] sm:$0xff] }
  0xb4   : > { %2095 = vmatprep.subr.bf16.mxu0 %v3940_v12  ;;  %2148 = vmatprep.subr.bf16.mxu1 %v3942_v49  ;;  %v3874_v12 = vcombine.high %v290_v42, %v294_v43  ;;  %v297_v49 = vld [vmem:[%s5787_s1 + $0xd0] sm:$0xff] }
  0xb5   : > { %v3879_v59 = vcombine.low %v297_v49, %v301_v58 }
  0xb7   : > { %2096 = vmatpush1.bf16.msra.mxu0 %v3939_v52  ;;  %2149 = vmatpush1.bf16.msra.mxu1 %v3941_v53  ;;  %v3873_v52 = vcombine.low %v290_v42, %v294_v43  ;;  %v3880_v53 = vcombine.high %v297_v49, %v301_v58  ;;  %v358_v49 = vld [vmem:[%s5787_s1 + $0x2b8] sm:$0xff] }
  0xb8   : > { %2097 = vmatprep.subr.bf16.mxu0 %v3948_v28  ;;  %2150 = vmatprep.subr.bf16.mxu1 %v3950_v54  ;;  %v3882_v28 = vcombine.high %v298_v50, %v302_v51  ;;  %v305_v54 = vld [vmem:[%s5787_s1 + $0x110] sm:$0xff] }
  0xb9   : > { %v3887_v5 = vcombine.low %v305_v54, %v309_v55 }
  0xbb   : > { %2098 = vmatpush1.bf16.msra.mxu0 %v3947_v60  ;;  %2151 = vmatpush1.bf16.msra.mxu1 %v3949_v61  ;;  %v3881_v60 = vcombine.low %v298_v50, %v302_v51  ;;  %v3888_v61 = vcombine.high %v305_v54, %v309_v55  ;;  %v366_v54 = vld [vmem:[%s5787_s1 + $0x2f8] sm:$0xff] }
  0xbc   : > { %2099 = vmatprep.subr.bf16.mxu0 %v3956_v62  ;;  %2152 = vmatprep.subr.bf16.mxu1 %v3958_v63  ;;  %v3890_v62 = vcombine.high %v306_v56, %v310_v57  ;;  %v313_v63 = vld [vmem:[%s5787_s1 + $0x150] sm:$0xff] }
  0xbd   : > { %v3895_v11 = vcombine.low %v313_v63, %v317_v0 }
  0xbf   : > { %2100 = vmatpush1.bf16.msra.mxu0 %v3955_v6  ;;  %2153 = vmatpush1.bf16.msra.mxu1 %v3957_v7  ;;  %v3889_v6 = vcombine.low %v306_v56, %v310_v57  ;;  %v3896_v7 = vcombine.high %v313_v63, %v317_v0  ;;  %v374_v63 = vld [vmem:[%s5787_s1 + $0x338] sm:$0xff] }
  0xc0   : > { %2101 = vmatprep.subr.bf16.mxu0 %v3964_v8  ;;  %2154 = vmatprep.subr.bf16.mxu1 %v3966_v9  ;;  %v3898_v8 = vcombine.high %v314_v1, %v318_v3  ;;  %v321_v9 = vld [vmem:[%s5787_s1 + $0x190] sm:$0xff] }
  0xc1   : > { %v3903_v20 = vcombine.low %v321_v9, %v325_v48 }
  0xc3   : > { %2102 = vmatpush1.bf16.msra.mxu0 %v3963_v14  ;;  %2155 = vmatpush1.bf16.msra.mxu1 %v3965_v15  ;;  %v3904_v14 = vcombine.high %v321_v9, %v325_v48  ;;  %v382_v9 = vld [vmem:[%s5787_s1 + $0x378] sm:$0xff] }
  0xc4   : > { %2103 = vmatprep.subr.bf16.mxu0 %v3972_v16  ;;  %2156 = vmatprep.subr.bf16.mxu1 %v3974_v17  ;;  %v329_v16 = vld [vmem:[%s5787_s1 + $0x1d0] sm:$0xff] }
  0xc5   : > { %v333_v17 = vld [vmem:[%s5787_s1 + $0x1f0] sm:$0xff] }
  0xc6   : > { %v3911_v24 = vcombine.low %v329_v16, %v333_v17 }
  0xc7   : > { %2104 = vmatpush1.bf16.msra.mxu0 %v3971_v26  ;;  %2157 = vmatpush1.bf16.msra.mxu1 %v3973_v29  ;;  %v3912_v26 = vcombine.high %v329_v16, %v333_v17  ;;  %v337_v29 = vld [vmem:[%s5787_s1 + $0x210] sm:$0xff]  ;;  %v390_v16 = vld [vmem:[%s5787_s1 + $0x3b8] sm:$0xff] }
  0xc8   : > { %2179 = vmatprep.subr.bf16.mxu0 %v3856_v30  ;;  %2232 = vmatprep.subr.bf16.mxu1 %v3858_v31  ;;  %v341_v30 = vld [vmem:[%s5787_s1 + $0x230] sm:$0xff]  ;;  %v338_v31 = vld [vmem:[%s5787_s1 + $0x218] sm:$0xff] }
  0xc9   : > { %v3920_v35 = vcombine.high %v337_v29, %v341_v30  ;;  %v3919_v40 = vcombine.low %v337_v29, %v341_v30  ;;  %v3921_v42 = vcombine.low %v338_v31, %v342_v32  ;;  %v398_v29 = vld [vmem:[%s5787_s1 + $0x3f8] sm:$0xff] }
  0xca   : > { %2106 = vmatmul.mubr.bf16.vlgmr.msra.gmra.mrb[0].mxu0 %v5042_v33  ;;  %2159 = vmatmul.mubr.bf16.vlgmr.msra.gmra.mrb[0].mxu1 %v5042_v33 }
  0xcb   : > { %2180 = vmatpush1.bf16.msra.mxu0 %v3855_v36  ;;  %2233 = vmatpush1.bf16.msra.mxu1 %v3857_v37  ;;  %v3922_v36 = vcombine.high %v338_v31, %v342_v32  ;;  %v345_v37 = vld [vmem:[%s5787_s1 + $0x250] sm:$0xff] }
  0xcc   : > { %2181 = vmatprep.subr.bf16.mxu0 %v3864_v2  ;;  %2234 = vmatprep.subr.bf16.mxu1 %v3866_v38  ;;  %v349_v2 = vld [vmem:[%s5787_s1 + $0x270] sm:$0xff]  ;;  %v346_v38 = vld [vmem:[%s5787_s1 + $0x258] sm:$0xff] }
  0xcd   : > { %2115 = vmatprep.mubr.bf16.mxu0 %v4493_v22  ;;  %2168 = vmatprep.mubr.bf16.mxu1 %v4493_v22  ;;  %v3928_v43 = vcombine.high %v345_v37, %v349_v2  ;;  %v3927_v58 = vcombine.low %v345_v37, %v349_v2  ;;  %v3929_v50 = vcombine.low %v346_v38, %v350_v39  ;;  %v3984_v37 = vld [vmem:[%s5787_s1 + $0x828] sm:$0xff] }
  0xcf   : > { %2182 = vmatpush1.bf16.msra.mxu0 %v3863_v44  ;;  %2235 = vmatpush1.bf16.msra.mxu1 %v3865_v45  ;;  %v3930_v44 = vcombine.high %v346_v38, %v350_v39  ;;  %v353_v45 = vld [vmem:[%s5787_s1 + $0x290] sm:$0xff] }
  0xd0   : > { %2183 = vmatprep.subr.bf16.mxu0 %v3872_v46  ;;  %2236 = vmatprep.subr.bf16.mxu1 %v3874_v12  ;;  %v357_v46 = vld [vmem:[%s5787_s1 + $0x2b0] sm:$0xff]  ;;  %v354_v12 = vld [vmem:[%s5787_s1 + $0x298] sm:$0xff] }
  0xd1   : > { %v3936_v51 = vcombine.high %v353_v45, %v357_v46  ;;  %v3935_v55 = vcombine.low %v353_v45, %v357_v46  ;;  %v3937_v56 = vcombine.low %v354_v12, %v358_v49  ;;  %v3992_v45 = vld [vmem:[%s5787_s1 + $0x868] sm:$0xff] }
  0xd2   : > { %2116 = vmatmul.mubr.bf16.gmra.mrb[4].mxu0 %v4590_v23  ;;  %2169 = vmatmul.mubr.bf16.gmra.mrb[4].mxu1 %v4590_v23 }
  0xd3   : > { %2184 = vmatpush1.bf16.msra.mxu0 %v3871_v4  ;;  %2237 = vmatpush1.bf16.msra.mxu1 %v3873_v52  ;;  %v3938_v4 = vcombine.high %v354_v12, %v358_v49  ;;  %v361_v52 = vld [vmem:[%s5787_s1 + $0x2d0] sm:$0xff]  ;;  %v2286_v12 = vld [vmem:[#allocation2 + $0x8] sm:$0xfc] }
  0xd4   : > { %2185 = vmatprep.subr.bf16.mxu0 %v3880_v53  ;;  %2238 = vmatprep.subr.bf16.mxu1 %v3882_v28  ;;  %v365_v53 = vld [vmem:[%s5787_s1 + $0x2f0] sm:$0xff]  ;;  %v362_v28 = vld [vmem:[%s5787_s1 + $0x2d8] sm:$0xff] }
  0xd5   : > { %2211 = vmatprep.mubr.bf16.mxu0 %v4877_v47  ;;  %2264 = vmatprep.mubr.bf16.mxu1 %v4877_v47  ;;  %v322_v47 = vld [vmem:[%s5787_s1 + $0x198] sm:$0xff]  ;;  %v3944_v57 = vcombine.high %v361_v52, %v365_v53  ;;  %v3943_v0 = vcombine.low %v361_v52, %v365_v53  ;;  %v3945_v1 = vcombine.low %v362_v28, %v366_v54  ;;  %v3996_v52 = vld [vmem:[%s5787_s1 + $0x888] sm:$0xff] }
  0xd6   : > { %v3906_v15 = vcombine.high %v322_v47, %v326_v10  ;;  %v3905_v21 = vcombine.low %v322_v47, %v326_v10  ;;  %v4000_v53 = vld [vmem:[%s5787_s1 + $0x8a8] sm:$0xff] }
  0xd7   : > { %2186 = vmatpush1.bf16.msra.mxu0 %v3879_v59  ;;  %2239 = vmatpush1.bf16.msra.mxu1 %v3881_v60  ;;  %v3946_v59 = vcombine.high %v362_v28, %v366_v54  ;;  %v369_v60 = vld [vmem:[%s5787_s1 + $0x310] sm:$0xff]  ;;  %v4313_v28 = vld [vmem:[#allocation2 + $0x18] sm:$0xff] }
  0xd8   : > { %2187 = vmatprep.subr.bf16.mxu0 %v3888_v61  ;;  %2240 = vmatprep.subr.bf16.mxu1 %v3890_v62  ;;  %v373_v61 = vld [vmem:[%s5787_s1 + $0x330] sm:$0xff]  ;;  %v370_v62 = vld [vmem:[%s5787_s1 + $0x318] sm:$0xff]  ;;  %v2290_v54 = vpack.c.bf16 %v4313_v28, %v2286_v12  ;;  %v4048_v12 = vld [vmem:[%s5787_s1 + $0xa28] sm:$0xff] }
  0xd9   : > { %v3952_v3 = vcombine.high %v369_v60, %v373_v61  ;;  %v3951_v48 = vcombine.low %v369_v60, %v373_v61  ;;  %v3953_v47 = vcombine.low %v370_v62, %v374_v63  ;;  %v4003_v60 = vld [vmem:[%s5787_s1 + $0x8c0] sm:$0xff]  ;;  %v4056_v28 = vld [vmem:[%s5787_s1 + $0xa68] sm:$0xff] }
  0xda   : > { %v4007_v61 = vld [vmem:[%s5787_s1 + $0x8e0] sm:$0xff] }
  0xdb   : > { %2188 = vmatpush1.bf16.msra.mxu0 %v3887_v5  ;;  %2241 = vmatpush1.bf16.msra.mxu1 %v3889_v6  ;;  %v3954_v5 = vcombine.high %v370_v62, %v374_v63  ;;  %v377_v6 = vld [vmem:[%s5787_s1 + $0x350] sm:$0xff]  ;;  %v4008_v62 = vld [vmem:[%s5787_s1 + $0x8e8] sm:$0xff]  ;;  %v2432_v63 = vrot.slane %v2290_v54, 1 }
  0xdc   : > { %2189 = vmatprep.subr.bf16.mxu0 %v3896_v7  ;;  %2242 = vmatprep.subr.bf16.mxu1 %v3898_v8  ;;  %v381_v7 = vld [vmem:[%s5787_s1 + $0x370] sm:$0xff]  ;;  %v378_v8 = vld [vmem:[%s5787_s1 + $0x358] sm:$0xff] }
  0xdd   : > { %v3960_v10 = vcombine.high %v377_v6, %v381_v7  ;;  %v3959_v17 = vcombine.low %v377_v6, %v381_v7  ;;  %v3961_v18 = vcombine.low %v378_v8, %v382_v9  ;;  %v4011_v7 = vld [vmem:[%s5787_s1 + $0x900] sm:$0xff] }
  0xdf   : > { %2190 = vmatpush1.bf16.msra.mxu0 %v3895_v11  ;;  %2243 = vmatpush1.bf16.msra.mxu1 %v3897_v13  ;;  %v3962_v11 = vcombine.high %v378_v8, %v382_v9  ;;  %v385_v13 = vld [vmem:[%s5787_s1 + $0x390] sm:$0xff]  ;;  %v4015_v8 = vld [vmem:[%s5787_s1 + $0x920] sm:$0xff]  ;;  %v4012_v9 = vld [vmem:[%s5787_s1 + $0x908] sm:$0xff] }
  0xe0   : > { %2191 = vmatprep.subr.bf16.mxu0 %v3904_v14  ;;  %2244 = vmatprep.subr.bf16.mxu1 %v3906_v15  ;;  %v389_v14 = vld [vmem:[%s5787_s1 + $0x3b0] sm:$0xff]  ;;  %v386_v15 = vld [vmem:[%s5787_s1 + $0x398] sm:$0xff] }
  0xe1   : > { %v3968_v19 = vcombine.high %v385_v13, %v389_v14  ;;  %v3967_v30 = vcombine.low %v385_v13, %v389_v14  ;;  %v3969_v31 = vcombine.low %v386_v15, %v390_v16  ;;  %v4140_v13 = vcombine.high %v4011_v7, %v4015_v8 }
  0xe3   : > { %2192 = vmatpush1.bf16.msra.mxu0 %v3903_v20  ;;  %2245 = vmatpush1.bf16.msra.mxu1 %v3905_v21  ;;  %v3970_v20 = vcombine.high %v386_v15, %v390_v16  ;;  %v393_v21 = vld [vmem:[%s5787_s1 + $0x3d0] sm:$0xff]  ;;  %v4019_v15 = vld [vmem:[%s5787_s1 + $0x940] sm:$0xff] }
  0xe4   : > { %2193 = vmatprep.subr.bf16.mxu0 %v3912_v26  ;;  %2246 = vmatprep.subr.bf16.mxu1 %v3914_v27  ;;  %v397_v26 = vld [vmem:[%s5787_s1 + $0x3f0] sm:$0xff]  ;;  %v394_v27 = vld [vmem:[%s5787_s1 + $0x3d8] sm:$0xff]  ;;  %v4023_v16 = vld [vmem:[%s5787_s1 + $0x960] sm:$0xff] }
  0xe5   : > { %v3976_v32 = vcombine.high %v393_v21, %v397_v26  ;;  %v3975_v2 = vcombine.low %v393_v21, %v397_v26  ;;  %v3977_v38 = vcombine.low %v394_v27, %v398_v29  ;;  %v4148_v21 = vcombine.high %v4019_v15, %v4023_v16 }
  0xe7   : > { %2194 = vmatpush1.bf16.msra.mxu0 %v3911_v24  ;;  %2247 = vmatpush1.bf16.msra.mxu1 %v3913_v34  ;;  %v3978_v24 = vcombine.high %v394_v27, %v398_v29  ;;  %v3979_v34 = vld [vmem:[%s5787_s1 + $0x800] sm:$0xff] }
  0xe8   : > { %2195 = vmatprep.subr.bf16.mxu0 %v3920_v35  ;;  %2248 = vmatprep.subr.bf16.mxu1 %v3922_v36  ;;  %v3983_v35 = vld [vmem:[%s5787_s1 + $0x820] sm:$0xff]  ;;  %v3980_v36 = vld [vmem:[%s5787_s1 + $0x808] sm:$0xff] }
  0xe9   : > { %v4108_v39 = vcombine.high %v3979_v34, %v3983_v35  ;;  %v4107_v46 = vcombine.low %v3979_v34, %v3983_v35  ;;  %v4109_v49 = vcombine.low %v3980_v36, %v3984_v37  ;;  %v4027_v27 = vld [vmem:[%s5787_s1 + $0x980] sm:$0xff] }
  0xea   : > { %v4031_v29 = vld [vmem:[%s5787_s1 + $0x9a0] sm:$0xff] }
  0xeb   : > { %2196 = vmatpush1.bf16.msra.mxu0 %v3919_v40  ;;  %2249 = vmatpush1.bf16.msra.mxu1 %v3921_v42  ;;  %v4110_v40 = vcombine.high %v3980_v36, %v3984_v37  ;;  %v3987_v42 = vld [vmem:[%s5787_s1 + $0x840] sm:$0xff]  ;;  %v4156_v34 = vcombine.high %v4027_v27, %v4031_v29 }
  0xec   : > { %2197 = vmatprep.subr.bf16.mxu0 %v3928_v43  ;;  %2250 = vmatprep.subr.bf16.mxu1 %v3930_v44  ;;  %v3991_v43 = vld [vmem:[%s5787_s1 + $0x860] sm:$0xff]  ;;  %v3988_v44 = vld [vmem:[%s5787_s1 + $0x848] sm:$0xff] }
  0xed   : > { %v4035_v36 = vld [vmem:[%s5787_s1 + $0x9c0] sm:$0xff] }
  0xee   : > { %v4039_v37 = vld [vmem:[%s5787_s1 + $0x9e0] sm:$0xff] }
  0xef   : > { %2198 = vmatpush1.bf16.msra.mxu0 %v3927_v58  ;;  %2251 = vmatpush1.bf16.msra.mxu1 %v3929_v50  ;;  %v4116_v58 = vcombine.high %v3987_v42, %v3991_v43  ;;  %v4118_v50 = vcombine.high %v3988_v44, %v3992_v45 }
  0xf0   : > { %2199 = vmatprep.subr.bf16.mxu0 %v3936_v51  ;;  %2252 = vmatprep.subr.bf16.mxu1 %v3938_v4  ;;  %v3995_v51 = vld [vmem:[%s5787_s1 + $0x880] sm:$0xff] }
  0xf1   : > { %v3999_v4 = vld [vmem:[%s5787_s1 + $0x8a0] sm:$0xff] }
  0xf3   : > { %2200 = vmatpush1.bf16.msra.mxu0 %v3935_v55  ;;  %2253 = vmatpush1.bf16.msra.mxu1 %v3937_v56  ;;  %v4115_v55 = vcombine.low %v3987_v42, %v3991_v43  ;;  %v4117_v56 = vcombine.low %v3988_v44, %v3992_v45  ;;  %v4164_v42 = vcombine.high %v4035_v36, %v4039_v37  ;;  %v4043_v44 = vld [vmem:[%s5787_s1 + $0xa00] sm:$0xff] }
  0xf4   : > { %2201 = vmatprep.subr.bf16.mxu0 %v3944_v57  ;;  %2254 = vmatprep.subr.bf16.mxu1 %v3946_v59  ;;  %v4124_v57 = vcombine.high %v3995_v51, %v3999_v4  ;;  %v4126_v59 = vcombine.high %v3996_v52, %v4000_v53  ;;  %v4047_v45 = vld [vmem:[%s5787_s1 + $0xa20] sm:$0xff] }
  0xf5   : > { %v4171_v54 = vcombine.low %v4043_v44, %v4047_v45 }
  0xf7   : > { %2202 = vmatpush1.bf16.msra.mxu0 %v3943_v0  ;;  %2255 = vmatpush1.bf16.msra.mxu1 %v3945_v1  ;;  %v2433_v0 = vrot.slane %v4493_v22, 1  ;;  %v4123_v1 = vcombine.low %v3995_v51, %v3999_v4  ;;  %v4051_v4 = vld [vmem:[%s5787_s1 + $0xa40] sm:$0xff] }
  0xf8   : > { %2203 = vmatprep.subr.bf16.mxu0 %v3952_v3  ;;  %2256 = vmatprep.subr.bf16.mxu1 %v3954_v5  ;;  %v4125_v3 = vcombine.low %v3996_v52, %v4000_v53  ;;  %v4132_v5 = vcombine.high %v4003_v60, %v4007_v61  ;;  %v4055_v52 = vld [vmem:[%s5787_s1 + $0xa60] sm:$0xff]  ;;  %v4052_v53 = vld [vmem:[%s5787_s1 + $0xa48] sm:$0xff] }
  0xfb   : > { %2204 = vmatpush1.bf16.msra.mxu0 %v3951_v48  ;;  %2257 = vmatpush1.bf16.msra.mxu1 %v3953_v47  ;;  %v4016_v48 = vld [vmem:[%s5787_s1 + $0x928] sm:$0xff]  ;;  %v5295_v47 = vsel %vm2428_vm3, %v2432_v63, %v2433_v0  ;;  %v4181_v63 = vcombine.low %v4052_v53, %v4056_v28 }
  0xfc   : > { %2205 = vmatprep.subr.bf16.mxu0 %v3960_v10  ;;  %2258 = vmatprep.subr.bf16.mxu1 %v3962_v11  ;;  %v4131_v10 = vcombine.low %v4003_v60, %v4007_v61  ;;  %v4142_v14 = vcombine.high %v4012_v9, %v4016_v48  ;;  %v4063_v60 = vld [vmem:[%s5787_s1 + $0xaa0] sm:$0xff]  ;;  %v4060_v61 = vld [vmem:[%s5787_s1 + $0xa88] sm:$0xff] }
  0xff   : > { %2206 = vmatpush1.bf16.msra.mxu0 %v3959_v17  ;;  %2259 = vmatpush1.bf16.msra.mxu1 %v3961_v18  ;;  %v4020_v17 = vld [vmem:[%s5787_s1 + $0x948] sm:$0xff] }
 0x100   : > { %2207 = vmatprep.subr.bf16.mxu0 %v3968_v19  ;;  %2260 = vmatprep.subr.bf16.mxu1 %v3970_v20  ;;  %v4024_v18 = vld [vmem:[%s5787_s1 + $0x968] sm:$0xff]  ;;  %v4139_v19 = vcombine.low %v4011_v7, %v4015_v8  ;;  %v4141_v20 = vcombine.low %v4012_v9, %v4016_v48 }
 0x101   : > { %v4150_v26 = vcombine.high %v4020_v17, %v4024_v18  ;;  %v4068_v7 = vld [vmem:[%s5787_s1 + $0xac8] sm:$0xff] }
 0x102   : > { %v4072_v8 = vld [vmem:[%s5787_s1 + $0xae8] sm:$0xff] }
 0x103   : > { %2208 = vmatpush1.bf16.msra.mxu0 %v3967_v30  ;;  %2261 = vmatpush1.bf16.msra.mxu1 %v3969_v31  ;;  %v4028_v30 = vld [vmem:[%s5787_s1 + $0x988] sm:$0xff] }
 0x104   : > { %2209 = vmatprep.subr.bf16.mxu0 %v3976_v32  ;;  %2262 = vmatprep.subr.bf16.mxu1 %v3978_v24  ;;  %v4032_v31 = vld [vmem:[%s5787_s1 + $0x9a8] sm:$0xff]  ;;  %v4147_v32 = vcombine.low %v4019_v15, %v4023_v16  ;;  %v4149_v24 = vcombine.low %v4020_v17, %v4024_v18  ;;  %v4197_v18 = vcombine.low %v4068_v7, %v4072_v8 }
 0x105   : > { %v4158_v35 = vcombine.high %v4028_v30, %v4032_v31  ;;  %v4076_v15 = vld [vmem:[%s5787_s1 + $0xb08] sm:$0xff] }
 0x106   : > { %v4080_v16 = vld [vmem:[%s5787_s1 + $0xb28] sm:$0xff] }
 0x107   : > { %2210 = vmatpush1.bf16.msra.mxu0 %v3975_v2  ;;  %2263 = vmatpush1.bf16.msra.mxu1 %v3977_v38  ;;  %v4036_v2 = vld [vmem:[%s5787_s1 + $0x9c8] sm:$0xff] }
 0x108   : > { %3083 = vmatprep.subr.bf16.mxu0 %v4108_v39  ;;  %3136 = vmatprep.subr.bf16.mxu1 %v4110_v40  ;;  %v4040_v38 = vld [vmem:[%s5787_s1 + $0x9e8] sm:$0xff]  ;;  %v4155_v39 = vcombine.low %v4027_v27, %v4031_v29  ;;  %v4157_v40 = vcombine.low %v4028_v30, %v4032_v31  ;;  %v4205_v31 = vcombine.low %v4076_v15, %v4080_v16 }
 0x109   : > { %v4166_v43 = vcombine.high %v4036_v2, %v4040_v38  ;;  %v4084_v27 = vld [vmem:[%s5787_s1 + $0xb48] sm:$0xff] }
 0x10a   : > { %2212 = vmatmul.mubr.bf16.vlgmr.msra.gmra.mrb[8].mxu0 %v5042_v33  ;;  %2265 = vmatmul.mubr.bf16.vlgmr.msra.gmra.mrb[8].mxu1 %v5042_v33  ;;  %v4004_v33 = vld [vmem:[%s5787_s1 + $0x8c8] sm:$0xff] }
 0x10b   : > { %3084 = vmatpush1.bf16.msra.mxu0 %v4107_v46  ;;  %3137 = vmatpush1.bf16.msra.mxu1 %v4109_v49  ;;  %v4134_v6 = vcombine.high %v4004_v33, %v4008_v62  ;;  %v4133_v11 = vcombine.low %v4004_v33, %v4008_v62  ;;  %v4044_v46 = vld [vmem:[%s5787_s1 + $0xa08] sm:$0xff]  ;;  %v4163_v49 = vcombine.low %v4035_v36, %v4039_v37 }
 0x10c   : > { %3085 = vmatprep.subr.bf16.mxu0 %v4116_v58  ;;  %3138 = vmatprep.subr.bf16.mxu1 %v4118_v50  ;;  %v4165_v58 = vcombine.low %v4036_v2, %v4040_v38  ;;  %v4172_v50 = vcombine.high %v4043_v44, %v4047_v45  ;;  %v4174_v51 = vcombine.high %v4044_v46, %v4048_v12  ;;  %v4064_v33 = vld [vmem:[%s5787_s1 + $0xaa8] sm:$0xff]  ;;  %v4103_v44 = vld [vmem:[%s5787_s1 + $0xbe0] sm:$0xff] }
 0x10d   : > { %2221 = vmatprep.mubr.bf16.mxu0 %v4493_v22  ;;  %2274 = vmatprep.mubr.bf16.mxu1 %v4493_v22  ;;  %v4179_v62 = vcombine.low %v4051_v4, %v4055_v52  ;;  %v4189_v48 = vcombine.low %v4060_v61, %v4064_v33  ;;  %v4088_v29 = vld [vmem:[%s5787_s1 + $0xb68] sm:$0xff] }
 0x10e   : > { %v4092_v36 = vld [vmem:[%s5787_s1 + $0xb88] sm:$0xff]  ;;  %v4213_v38 = vcombine.low %v4084_v27, %v4088_v29 }
 0x10f   : > { %3086 = vmatpush1.bf16.msra.mxu0 %v4115_v55  ;;  %3139 = vmatpush1.bf16.msra.mxu1 %v4117_v56  ;;  %v4173_v55 = vcombine.low %v4044_v46, %v4048_v12  ;;  %v4180_v56 = vcombine.high %v4051_v4, %v4055_v52  ;;  %v4096_v37 = vld [vmem:[%s5787_s1 + $0xba8] sm:$0xff]  ;;  %v3981_v52 = vld [vmem:[%s5787_s1 + $0x810] sm:$0xff] }
 0x110   : > { %3087 = vmatprep.subr.bf16.mxu0 %v4124_v57  ;;  %3140 = vmatprep.subr.bf16.mxu1 %v4126_v59  ;;  %v4182_v57 = vcombine.high %v4052_v53, %v4056_v28  ;;  %v4059_v59 = vld [vmem:[%s5787_s1 + $0xa80] sm:$0xff]  ;;  %v4100_v45 = vld [vmem:[%s5787_s1 + $0xbc8] sm:$0xff]  ;;  %v3985_v53 = vld [vmem:[%s5787_s1 + $0x830] sm:$0xff] }
 0x111   : > { %v4187_v9 = vcombine.low %v4059_v59, %v4063_v60  ;;  %v4104_v46 = vld [vmem:[%s5787_s1 + $0xbe8] sm:$0xff]  ;;  %v3982_v28 = vld [vmem:[%s5787_s1 + $0x818] sm:$0xff] }
 0x112   : > { %2222 = vmatmul.mubr.bf16.gmra.mrb[12].mxu0 %v4590_v23  ;;  %2275 = vmatmul.mubr.bf16.gmra.mrb[12].mxu1 %v4590_v23  ;;  %v4230_v4 = vcombine.high %v4100_v45, %v4104_v46 }
 0x113   : > { %3088 = vmatpush1.bf16.msra.mxu0 %v4123_v1  ;;  %3141 = vmatpush1.bf16.msra.mxu1 %v4125_v3  ;;  %v4188_v1 = vcombine.high %v4059_v59, %v4063_v60  ;;  %v4190_v3 = vcombine.high %v4060_v61, %v4064_v33  ;;  %v4229_v59 = vcombine.low %v4100_v45, %v4104_v46  ;;  %v2287_v61 = vld [vmem:[#allocation2 + $0x40] sm:$0x3] }
 0x114   : > { %3089 = vmatprep.subr.bf16.mxu0 %v4132_v5  ;;  %3142 = vmatprep.subr.bf16.mxu1 %v4134_v6  ;;  %v4067_v5 = vld [vmem:[%s5787_s1 + $0xac0] sm:$0xff]  ;;  %v4112_v60 = vcombine.high %v3981_v52, %v3985_v53 }
 0x115   : > { %3115 = vmatprep.mubr.bf16.mxu0 %v5295_v47  ;;  %3168 = vmatprep.mubr.bf16.mxu1 %v5295_v47  ;;  %v4071_v6 = vld [vmem:[%s5787_s1 + $0xae0] sm:$0xff] }
 0x116   : > { %v4195_v17 = vcombine.low %v4067_v5, %v4071_v6 }
 0x117   : > { %3090 = vmatpush1.bf16.msra.mxu0 %v4131_v10  ;;  %3143 = vmatpush1.bf16.msra.mxu1 %v4133_v11  ;;  %v4196_v10 = vcombine.high %v4067_v5, %v4071_v6  ;;  %v4198_v11 = vcombine.high %v4068_v7, %v4072_v8  ;;  %v4111_v6 = vcombine.low %v3981_v52, %v3985_v53 }
 0x118   : > { %3091 = vmatprep.subr.bf16.mxu0 %v4140_v13  ;;  %3144 = vmatprep.subr.bf16.mxu1 %v4142_v14  ;;  %v4075_v13 = vld [vmem:[%s5787_s1 + $0xb00] sm:$0xff]  ;;  %v2291_v7 = vpack.c.bf16 %v2287_v61, %v2287_v61 }
 0x119   : > { %v4079_v14 = vld [vmem:[%s5787_s1 + $0xb20] sm:$0xff] }
 0x11a   : > { %v4203_v30 = vcombine.low %v4075_v13, %v4079_v14 }
 0x11b   : > { %3092 = vmatpush1.bf16.msra.mxu0 %v4139_v19  ;;  %3145 = vmatpush1.bf16.msra.mxu1 %v4141_v20  ;;  %v4204_v19 = vcombine.high %v4075_v13, %v4079_v14  ;;  %v4206_v20 = vcombine.high %v4076_v15, %v4080_v16  ;;  %v3998_v14 = vld [vmem:[%s5787_s1 + $0x898] sm:$0xff] }
 0x11c   : > { %3093 = vmatprep.subr.bf16.mxu0 %v4148_v21  ;;  %3146 = vmatprep.subr.bf16.mxu1 %v4150_v26  ;;  %v4083_v21 = vld [vmem:[%s5787_s1 + $0xb40] sm:$0xff]  ;;  %v4002_v15 = vld [vmem:[%s5787_s1 + $0x8b8] sm:$0xff] }
 0x11d   : > { %v4087_v26 = vld [vmem:[%s5787_s1 + $0xb60] sm:$0xff] }
 0x11e   : > { %v4211_v2 = vcombine.low %v4083_v21, %v4087_v26 }
 0x11f   : > { %3094 = vmatpush1.bf16.msra.mxu0 %v4147_v32  ;;  %3147 = vmatpush1.bf16.msra.mxu1 %v4149_v24  ;;  %v4212_v32 = vcombine.high %v4083_v21, %v4087_v26  ;;  %v4214_v24 = vcombine.high %v4084_v27, %v4088_v29  ;;  %v4006_v21 = vld [vmem:[%s5787_s1 + $0x8d8] sm:$0xff] }
 0x120   : > { %3095 = vmatprep.subr.bf16.mxu0 %v4156_v34  ;;  %3148 = vmatprep.subr.bf16.mxu1 %v4158_v35  ;;  %v4091_v34 = vld [vmem:[%s5787_s1 + $0xb80] sm:$0xff]  ;;  %v4010_v26 = vld [vmem:[%s5787_s1 + $0x8f8] sm:$0xff] }
 0x121   : > { %v4095_v35 = vld [vmem:[%s5787_s1 + $0xba0] sm:$0xff] }
 0x122   : > { %v4219_v12 = vcombine.low %v4091_v34, %v4095_v35 }
 0x123   : > { %3096 = vmatpush1.bf16.msra.mxu0 %v4155_v39  ;;  %3149 = vmatpush1.bf16.msra.mxu1 %v4157_v40  ;;  %v4220_v39 = vcombine.high %v4091_v34, %v4095_v35  ;;  %v2285_v40 = vld [vmem:[#allocation2] sm:$0xfc]  ;;  %v4017_v34 = vld [vmem:[%s5787_s1 + $0x930] sm:$0xff]  ;;  %v4014_v35 = vld [vmem:[%s5787_s1 + $0x918] sm:$0xff] }
 0x124   : > { %3097 = vmatprep.subr.bf16.mxu0 %v4164_v42  ;;  %3150 = vmatprep.subr.bf16.mxu1 %v4166_v43  ;;  %v4222_v42 = vcombine.high %v4092_v36, %v4096_v37  ;;  %v4099_v43 = vld [vmem:[%s5787_s1 + $0xbc0] sm:$0xff] }
 0x127   : > { %3098 = vmatpush1.bf16.msra.mxu0 %v4163_v49  ;;  %3151 = vmatpush1.bf16.msra.mxu1 %v4165_v58  ;;  %v2289_v49 = vpack.c.bf16 %v5039_v25, %v2285_v40  ;;  %v2288_v58 = vld [vmem:[#allocation2 + $0x48] sm:$0x3]  ;;  %v3986_v25 = vld [vmem:[%s5787_s1 + $0x838] sm:$0xff]  ;;  %v4021_v40 = vld [vmem:[%s5787_s1 + $0x950] sm:$0xff] }
 0x128   : > { %3099 = vmatprep.subr.bf16.mxu0 %v4172_v50  ;;  %3152 = vmatprep.subr.bf16.mxu1 %v4174_v51  ;;  %v4221_v50 = vcombine.low %v4092_v36, %v4096_v37  ;;  %v4228_v51 = vcombine.high %v4099_v43, %v4103_v44  ;;  %v4114_v33 = vcombine.high %v3982_v28, %v3986_v25  ;;  %v4018_v36 = vld [vmem:[%s5787_s1 + $0x938] sm:$0xff] }
 0x129   : > { %v4113_v8 = vcombine.low %v3982_v28, %v3986_v25  ;;  %v4145_v46 = vcombine.low %v4014_v35, %v4018_v36  ;;  %v4037_v25 = vld [vmem:[%s5787_s1 + $0x9d0] sm:$0xff] }
 0x12b   : > { %3100 = vmatpush1.bf16.msra.mxu0 %v4171_v54  ;;  %3153 = vmatpush1.bf16.msra.mxu1 %v4173_v55  ;;  %v2292_v54 = vpack.c.bf16 %v2288_v58, %v2288_v58  ;;  %v4227_v55 = vcombine.low %v4099_v43, %v4103_v44  ;;  %v4022_v43 = vld [vmem:[%s5787_s1 + $0x958] sm:$0xff]  ;;  %v4029_v58 = vld [vmem:[%s5787_s1 + $0x990] sm:$0xff] }
 0x12c   : > { %3101 = vmatprep.subr.bf16.mxu0 %v4180_v56  ;;  %3154 = vmatprep.subr.bf16.mxu1 %v4182_v57  ;;  %v2429_v56 = vrot.slane %v2289_v49, 1  ;;  %v2430_v57 = vrot.slane %v4590_v23, 1  ;;  %v3994_v23 = vld [vmem:[%s5787_s1 + $0x878] sm:$0xff] }
 0x12d   : > { %v4026_v44 = vld [vmem:[%s5787_s1 + $0x978] sm:$0xff] }
 0x12e   : > { %v5459_v5 = vsel %vm2428_vm3, %v2429_v56, %v2430_v57  ;;  %v4154_v49 = vcombine.high %v4022_v43, %v4026_v44  ;;  %v4153_v52 = vcombine.low %v4022_v43, %v4026_v44  ;;  %v4042_v56 = vld [vmem:[%s5787_s1 + $0x9f8] sm:$0xff] }
 0x12f   : > { %3102 = vmatpush1.bf16.msra.mxu0 %v4179_v62  ;;  %3155 = vmatpush1.bf16.msra.mxu1 %v4181_v63  ;;  %v3989_v62 = vld [vmem:[%s5787_s1 + $0x850] sm:$0xff] }
 0x130   : > { %3103 = vmatprep.subr.bf16.mxu0 %v4188_v1  ;;  %3156 = vmatprep.subr.bf16.mxu1 %v4190_v3  ;;  %v3993_v63 = vld [vmem:[%s5787_s1 + $0x870] sm:$0xff]  ;;  %v3990_v1 = vld [vmem:[%s5787_s1 + $0x858] sm:$0xff]  ;;  %v2437_v3 = vrot.slane %v2292_v54, 1 }
 0x131   : > { %v4119_v16 = vcombine.low %v3989_v62, %v3993_v63  ;;  %v4041_v54 = vld [vmem:[%s5787_s1 + $0x9f0] sm:$0xff] }
 0x132   : > { %v5471_v13 = vsel %vm2428_vm3, %v2433_v0, %v2437_v3  ;;  %v4130_v0 = vcombine.high %v3998_v14, %v4002_v15 }
 0x133   : > { %3104 = vmatpush1.bf16.msra.mxu0 %v4187_v9  ;;  %3157 = vmatpush1.bf16.msra.mxu1 %v4189_v48  ;;  %v4120_v9 = vcombine.high %v3989_v62, %v3993_v63  ;;  %v4122_v48 = vcombine.high %v3990_v1, %v3994_v23  ;;  %v4049_v62 = vld [vmem:[%s5787_s1 + $0xa30] sm:$0xff]  ;;  %v4046_v63 = vld [vmem:[%s5787_s1 + $0xa18] sm:$0xff] }
 0x134   : > { %3105 = vmatprep.subr.bf16.mxu0 %v4196_v10  ;;  %3158 = vmatprep.subr.bf16.mxu1 %v4198_v11  ;;  %v3997_v10 = vld [vmem:[%s5787_s1 + $0x890] sm:$0xff] }
 0x135   : > { %v4001_v11 = vld [vmem:[%s5787_s1 + $0x8b0] sm:$0xff] }
 0x136   : > { %v4128_v22 = vcombine.high %v3997_v10, %v4001_v11  ;;  %v4127_v29 = vcombine.low %v3997_v10, %v4001_v11  ;;  %v4058_v10 = vld [vmem:[%s5787_s1 + $0xa78] sm:$0xff] }
 0x137   : > { %3106 = vmatpush1.bf16.msra.mxu0 %v4195_v17  ;;  %3159 = vmatpush1.bf16.msra.mxu1 %v4197_v18  ;;  %v2435_v17 = vrot.slane %v2291_v7, 1  ;;  %v4121_v18 = vcombine.low %v3990_v1, %v3994_v23  ;;  %v4050_v1 = vld [vmem:[%s5787_s1 + $0xa38] sm:$0xff]  ;;  %v4167_v23 = vcombine.low %v4037_v25, %v4041_v54 }
 0x138   : > { %3107 = vmatprep.subr.bf16.mxu0 %v4204_v19  ;;  %3160 = vmatprep.subr.bf16.mxu1 %v4206_v20  ;;  %v4005_v19 = vld [vmem:[%s5787_s1 + $0x8d0] sm:$0xff]  ;;  %v4178_v7 = vcombine.high %v4046_v63, %v4050_v1 }
 0x139   : > { %v4009_v20 = vld [vmem:[%s5787_s1 + $0x8f0] sm:$0xff]  ;;  %v5495_v27 = vsel %vm2428_vm3, %v2430_v57, %v2435_v17 }
 0x13a   : > { %v4135_v37 = vcombine.low %v4005_v19, %v4009_v20  ;;  %v4061_v17 = vld [vmem:[%s5787_s1 + $0xa90] sm:$0xff] }
 0x13b   : > { %3108 = vmatpush1.bf16.msra.mxu0 %v4203_v30  ;;  %3161 = vmatpush1.bf16.msra.mxu1 %v4205_v31  ;;  %v4129_v30 = vcombine.low %v3998_v14, %v4002_v15  ;;  %v4136_v31 = vcombine.high %v4005_v19, %v4009_v20  ;;  %v4177_v14 = vcombine.low %v4046_v63, %v4050_v1 }
 0x13c   : > { %3109 = vmatprep.subr.bf16.mxu0 %v4212_v32  ;;  %3162 = vmatprep.subr.bf16.mxu1 %v4214_v24  ;;  %v4138_v32 = vcombine.high %v4006_v21, %v4010_v26  ;;  %v4013_v24 = vld [vmem:[%s5787_s1 + $0x910] sm:$0xff] }
 0x13d   : > { %v4143_v45 = vcombine.low %v4013_v24, %v4017_v34 }
 0x13f   : > { %3110 = vmatpush1.bf16.msra.mxu0 %v4211_v2  ;;  %3163 = vmatpush1.bf16.msra.mxu1 %v4213_v38  ;;  %v4137_v2 = vcombine.low %v4006_v21, %v4010_v26  ;;  %v4144_v38 = vcombine.high %v4013_v24, %v4017_v34 }
 0x140   : > { %3111 = vmatprep.subr.bf16.mxu0 %v4220_v39  ;;  %3164 = vmatprep.subr.bf16.mxu1 %v4222_v42  ;;  %v4146_v39 = vcombine.high %v4014_v35, %v4018_v36  ;;  %v4025_v42 = vld [vmem:[%s5787_s1 + $0x970] sm:$0xff] }
 0x143   : > { %3112 = vmatpush1.bf16.msra.mxu0 %v4219_v12  ;;  %3165 = vmatpush1.bf16.msra.mxu1 %v4221_v50  ;;  %v4152_v12 = vcombine.high %v4021_v40, %v4025_v42  ;;  %v4033_v50 = vld [vmem:[%s5787_s1 + $0x9b0] sm:$0xff] }
 0x144   : > { %3113 = vmatprep.subr.bf16.mxu0 %v4228_v51  ;;  %3166 = vmatprep.subr.bf16.mxu1 %v4230_v4  ;;  %v4034_v51 = vld [vmem:[%s5787_s1 + $0x9b8] sm:$0xff]  ;;  %v4151_v4 = vcombine.low %v4021_v40, %v4025_v42  ;;  %v4160_v53 = vcombine.high %v4029_v58, %v4033_v50  ;;  %v4159_v57 = vcombine.low %v4029_v58, %v4033_v50 }
 0x147   : > { %3114 = vmatpush1.bf16.msra.mxu0 %v4227_v55  ;;  %3167 = vmatpush1.bf16.msra.mxu1 %v4229_v59  ;;  %v4038_v55 = vld [vmem:[%s5787_s1 + $0x9d8] sm:$0xff] }
 0x148   : > { %3189 = vmatprep.subr.bf16.mxu0 %v4112_v60  ;;  %3242 = vmatprep.subr.bf16.mxu1 %v4114_v33  ;;  %v4168_v60 = vcombine.high %v4037_v25, %v4041_v54  ;;  %v4170_v61 = vcombine.high %v4038_v55, %v4042_v56  ;;  %v4045_v33 = vld [vmem:[%s5787_s1 + $0xa10] sm:$0xff]  ;;  %v4169_v3 = vcombine.low %v4038_v55, %v4042_v56 }
 0x149   : > { %v4175_v11 = vcombine.low %v4045_v33, %v4049_v62 }
 0x14a   : > { %3116 = vmatmul.mubr.bf16.vlgmr.msra.gmra.mrb[0].mxu0 %v5459_v5  ;;  %3169 = vmatmul.mubr.bf16.vlgmr.msra.gmra.mrb[0].mxu1 %v5459_v5 }
 0x14b   : > { %3190 = vmatpush1.bf16.msra.mxu0 %v4111_v6  ;;  %3243 = vmatpush1.bf16.msra.mxu1 %v4113_v8  ;;  %v4176_v6 = vcombine.high %v4045_v33, %v4049_v62  ;;  %v4053_v8 = vld [vmem:[%s5787_s1 + $0xa50] sm:$0xff] }
 0x14c   : > { %3191 = vmatprep.subr.bf16.mxu0 %v4120_v9  ;;  %3244 = vmatprep.subr.bf16.mxu1 %v4122_v48  ;;  %v4057_v9 = vld [vmem:[%s5787_s1 + $0xa70] sm:$0xff]  ;;  %v4054_v48 = vld [vmem:[%s5787_s1 + $0xa58] sm:$0xff] }
 0x14d   : > { %3125 = vmatprep.mubr.bf16.mxu0 %v5471_v13  ;;  %3178 = vmatprep.mubr.bf16.mxu1 %v5471_v13  ;;  %v4184_v15 = vcombine.high %v4053_v8, %v4057_v9  ;;  %v4183_v19 = vcombine.low %v4053_v8, %v4057_v9  ;;  %v4185_v20 = vcombine.low %v4054_v48, %v4058_v10  ;;  %v5658_v8 = vld [vmem:[%s5788_s2] sm:$0xff] }
 0x14f   : > { %3192 = vmatpush1.bf16.msra.mxu0 %v4119_v16  ;;  %3245 = vmatpush1.bf16.msra.mxu1 %v4121_v18  ;;  %v4186_v16 = vcombine.high %v4054_v48, %v4058_v10  ;;  %v4065_v18 = vld [vmem:[%s5787_s1 + $0xab0] sm:$0xff] }
 0x150   : > { %3193 = vmatprep.subr.bf16.mxu0 %v4128_v22  ;;  %3246 = vmatprep.subr.bf16.mxu1 %v4130_v0  ;;  %v4062_v22 = vld [vmem:[%s5787_s1 + $0xa98] sm:$0xff]  ;;  %v4192_v21 = vcombine.high %v4061_v17, %v4065_v18  ;;  %v4191_v24 = vcombine.low %v4061_v17, %v4065_v18 }
 0x151   : > { %v4066_v0 = vld [vmem:[%s5787_s1 + $0xab8] sm:$0xff] }
 0x152   : > { %3126 = vmatmul.mubr.bf16.gmra.mrb[4].mxu0 %v5495_v27  ;;  %3179 = vmatmul.mubr.bf16.gmra.mrb[4].mxu1 %v5495_v27  ;;  %v4194_v26 = vcombine.high %v4062_v22, %v4066_v0  ;;  %v4193_v34 = vcombine.low %v4062_v22, %v4066_v0 }
 0x153   : > { %3194 = vmatpush1.bf16.msra.mxu0 %v4127_v29  ;;  %3247 = vmatpush1.bf16.msra.mxu1 %v4129_v30  ;;  %v4069_v29 = vld [vmem:[%s5787_s1 + $0xad0] sm:$0xff] }
 0x154   : > { %3195 = vmatprep.subr.bf16.mxu0 %v4136_v31  ;;  %3248 = vmatprep.subr.bf16.mxu1 %v4138_v32  ;;  %v4073_v30 = vld [vmem:[%s5787_s1 + $0xaf0] sm:$0xff]  ;;  %v4070_v31 = vld [vmem:[%s5787_s1 + $0xad8] sm:$0xff] }
 0x155   : > { %3221 = vmatprep.mubr.bf16.mxu0 %v5295_v47  ;;  %3274 = vmatprep.mubr.bf16.mxu1 %v5295_v47  ;;  %v4030_v47 = vld [vmem:[%s5787_s1 + $0x998] sm:$0xff]  ;;  %v4200_v35 = vcombine.high %v4069_v29, %v4073_v30  ;;  %v4199_v40 = vcombine.low %v4069_v29, %v4073_v30 }
 0x156   : > { %v4162_v28 = vcombine.high %v4030_v47, %v4034_v51  ;;  %v4161_v59 = vcombine.low %v4030_v47, %v4034_v51  ;;  %v4074_v32 = vld [vmem:[%s5787_s1 + $0xaf8] sm:$0xff] }
 0x157   : > { %3196 = vmatpush1.bf16.msra.mxu0 %v4135_v37  ;;  %3249 = vmatpush1.bf16.msra.mxu1 %v4137_v2  ;;  %v4202_v36 = vcombine.high %v4070_v31, %v4074_v32  ;;  %v4077_v37 = vld [vmem:[%s5787_s1 + $0xb10] sm:$0xff]  ;;  %v4201_v42 = vcombine.low %v4070_v31, %v4074_v32 }
 0x158   : > { %3197 = vmatprep.subr.bf16.mxu0 %v4144_v38  ;;  %3250 = vmatprep.subr.bf16.mxu1 %v4146_v39  ;;  %v4081_v2 = vld [vmem:[%s5787_s1 + $0xb30] sm:$0xff]  ;;  %v4078_v38 = vld [vmem:[%s5787_s1 + $0xb18] sm:$0xff] }
 0x159   : > { %v4082_v39 = vld [vmem:[%s5787_s1 + $0xb38] sm:$0xff]  ;;  %v4208_v43 = vcombine.high %v4077_v37, %v4081_v2  ;;  %v4207_v58 = vcombine.low %v4077_v37, %v4081_v2 }
 0x15a   : > { %v4210_v44 = vcombine.high %v4078_v38, %v4082_v39  ;;  %v4209_v50 = vcombine.low %v4078_v38, %v4082_v39 }
 0x15b   : > { %3198 = vmatpush1.bf16.msra.mxu0 %v4143_v45  ;;  %3251 = vmatpush1.bf16.msra.mxu1 %v4145_v46  ;;  %v4085_v45 = vld [vmem:[%s5787_s1 + $0xb50] sm:$0xff] }
 0x15c   : > { %3199 = vmatprep.subr.bf16.mxu0 %v4152_v12  ;;  %3252 = vmatprep.subr.bf16.mxu1 %v4154_v49  ;;  %v4089_v46 = vld [vmem:[%s5787_s1 + $0xb70] sm:$0xff]  ;;  %v4086_v12 = vld [vmem:[%s5787_s1 + $0xb58] sm:$0xff] }
 0x15d   : > { %v4090_v49 = vld [vmem:[%s5787_s1 + $0xb78] sm:$0xff]  ;;  %v4216_v47 = vcombine.high %v4085_v45, %v4089_v46  ;;  %v4215_v25 = vcombine.low %v4085_v45, %v4089_v46 }
 0x15e   : > { %v4218_v51 = vcombine.high %v4086_v12, %v4090_v49  ;;  %v4217_v54 = vcombine.low %v4086_v12, %v4090_v49 }
 0x15f   : > { %3200 = vmatpush1.bf16.msra.mxu0 %v4151_v4  ;;  %3253 = vmatpush1.bf16.msra.mxu1 %v4153_v52  ;;  %v4093_v4 = vld [vmem:[%s5787_s1 + $0xb90] sm:$0xff] }
 0x160   : > { %3201 = vmatprep.subr.bf16.mxu0 %v4160_v53  ;;  %3254 = vmatprep.subr.bf16.mxu1 %v4162_v28  ;;  %v4097_v52 = vld [vmem:[%s5787_s1 + $0xbb0] sm:$0xff]  ;;  %v4094_v53 = vld [vmem:[%s5787_s1 + $0xb98] sm:$0xff] }
 0x161   : > { %v4098_v28 = vld [vmem:[%s5787_s1 + $0xbb8] sm:$0xff]  ;;  %v4224_v55 = vcombine.high %v4093_v4, %v4097_v52  ;;  %v4223_v33 = vcombine.low %v4093_v4, %v4097_v52 }
 0x162   : > { %v4226_v56 = vcombine.high %v4094_v53, %v4098_v28  ;;  %v4225_v62 = vcombine.low %v4094_v53, %v4098_v28 }
 0x163   : > { %3202 = vmatpush1.bf16.msra.mxu0 %v4159_v57  ;;  %3255 = vmatpush1.bf16.msra.mxu1 %v4161_v59  ;;  %v4101_v57 = vld [vmem:[%s5787_s1 + $0xbd0] sm:$0xff] }
 0x164   : > { %3203 = vmatprep.subr.bf16.mxu0 %v4168_v60  ;;  %3256 = vmatprep.subr.bf16.mxu1 %v4170_v61  ;;  %v4105_v59 = vld [vmem:[%s5787_s1 + $0xbf0] sm:$0xff]  ;;  %v4102_v60 = vld [vmem:[%s5787_s1 + $0xbd8] sm:$0xff] }
 0x165   : > { %v4106_v61 = vld [vmem:[%s5787_s1 + $0xbf8] sm:$0xff]  ;;  %v4232_v63 = vcombine.high %v4101_v57, %v4105_v59 }
 0x166   : > { %v4234_v1 = vcombine.high %v4102_v60, %v4106_v61 }
 0x167   : > { %3204 = vmatpush1.bf16.msra.mxu0 %v4167_v23  ;;  %3257 = vmatpush1.bf16.msra.mxu1 %v4169_v3  ;;  %v4231_v23 = vcombine.low %v4101_v57, %v4105_v59  ;;  %v4233_v3 = vcombine.low %v4102_v60, %v4106_v61 }
 0x168   : > { %3205 = vmatprep.subr.bf16.mxu0 %v4176_v6  ;;  %3258 = vmatprep.subr.bf16.mxu1 %v4178_v7  ;;  %v5652_v6 = vshrl.u32 %v199_v41, 7 }
 0x16a   : > { %v3331_v7 = vsub.s32 0, %v5652_v6  ;;  %v3335_v9 = vsub.s32 1, %v5652_v6 }
 0x16b   : > { %3206 = vmatpush1.bf16.msra.mxu0 %v4175_v11  ;;  %3259 = vmatpush1.bf16.msra.mxu1 %v4177_v14  ;;  %v5674_v14 = vstv %s3401_s14 }
 0x16c   : > { %3207 = vmatprep.subr.bf16.mxu0 %v4184_v15  ;;  %3260 = vmatprep.subr.bf16.mxu1 %v4186_v16  ;;  %v3332_v48 = vrot.slane %v5658_v8, %v3331_v7  ;;  %v5668_v41 = vrot.slane %v5658_v8, %v3335_v9 }
 0x16f   : > { %3208 = vmatpush1.bf16.msra.mxu0 %v4183_v19  ;;  %3261 = vmatpush1.bf16.msra.mxu1 %v4185_v20 }
 0x170   : > { %3209 = vmatprep.subr.bf16.mxu0 %v4192_v21  ;;  %3262 = vmatprep.subr.bf16.mxu1 %v4194_v26 }
 0x173   : > { %3210 = vmatpush1.bf16.msra.mxu0 %v4191_v24  ;;  %3263 = vmatpush1.bf16.msra.mxu1 %v4193_v34 }
 0x174   : > { %3211 = vmatprep.subr.bf16.mxu0 %v4200_v35  ;;  %3264 = vmatprep.subr.bf16.mxu1 %v4202_v36 }
 0x177   : > { %3212 = vmatpush1.bf16.msra.mxu0 %v4199_v40  ;;  %3265 = vmatpush1.bf16.msra.mxu1 %v4201_v42 }
 0x178   : > { %3213 = vmatprep.subr.bf16.mxu0 %v4208_v43  ;;  %3266 = vmatprep.subr.bf16.mxu1 %v4210_v44 }
 0x17b   : > { %3214 = vmatpush1.bf16.msra.mxu0 %v4207_v58  ;;  %3267 = vmatpush1.bf16.msra.mxu1 %v4209_v50 }
 0x17c   : > { %3215 = vmatprep.subr.bf16.mxu0 %v4216_v47  ;;  %3268 = vmatprep.subr.bf16.mxu1 %v4218_v51 }
 0x17f   : > { %3216 = vmatpush1.bf16.msra.mxu0 %v4215_v25  ;;  %3269 = vmatpush1.bf16.msra.mxu1 %v4217_v54 }
 0x180   : > { %3217 = vmatprep.subr.bf16.mxu0 %v4224_v55  ;;  %3270 = vmatprep.subr.bf16.mxu1 %v4226_v56 }
 0x183   : > { %3218 = vmatpush1.bf16.msra.mxu0 %v4223_v33  ;;  %3271 = vmatpush1.bf16.msra.mxu1 %v4225_v62 }
 0x184   : > { %3219 = vmatprep.subr.bf16.mxu0 %v4232_v63  ;;  %3272 = vmatprep.subr.bf16.mxu1 %v4234_v1 }
 0x187   : > { %3220 = vmatpush1.bf16.msra.mxu0 %v4231_v23  ;;  %3273 = vmatpush1.bf16.msra.mxu1 %v4233_v3 }
 0x18a   : > { %3222 = vmatmul.mubr.bf16.vlgmr.msra.gmra.mrb[8].mxu0 %v5459_v5  ;;  %3275 = vmatmul.mubr.bf16.vlgmr.msra.gmra.mrb[8].mxu1 %v5459_v5  ;;  %v3339_v5 = vsub.s32 2, %v5652_v6 }
 0x18b   : > { %3231 = vmatprep.mubr.bf16.mxu0 %v5471_v13  ;;  %3284 = vmatprep.mubr.bf16.mxu1 %v5471_v13  ;;  %v3343_v13 = vsub.s32 3, %v5652_v6 }
 0x18d   : > { %v5671_v10 = vrot.slane %v5658_v8, %v3343_v13 }
 0x192   : > { %3232 = vmatmul.mubr.bf16.gmra.mrb[12].mxu0 %v5495_v27  ;;  %3285 = vmatmul.mubr.bf16.gmra.mrb[12].mxu1 %v5495_v27  ;;  %v5665_v27 = vrot.slane %v5658_v8, %v3339_v5 }
 0x21d   : > { %v3117_v11 = vpop.f32.mrb[0].mxu0  ;;  %v3170_v16 = vpop.f32.mrb[0].mxu1 }
 0x21e   : > { %v3369_v15 = vadd.f32 %v3332_v48, %v3117_v11  ;;  %v3119_v17 = vpop.f32.mrb[1].mxu0  ;;  %v3371_v18 = vadd.f32 %v5665_v27, %v3170_v16  ;;  %v3172_v0 = vpop.f32.mrb[1].mxu1 }
 0x21f   : > { %v3370_v22 = vadd.f32 %v5668_v41, %v3119_v17  ;;  %v3121_v19 = vpop.f32.mrb[2].mxu0  ;;  %v3372_v21 = vadd.f32 %v5671_v10, %v3172_v0  ;;  %v3174_v29 = vpop.f32.mrb[2].mxu1  ;;  %v3359_v0 = vsub.s32 7, %v5652_v6 }
 0x220   : > { %vm3402_vm4 = vcmp.ge.f32.partialorder %v3369_v15, 0.0  ;;  %v3435_v20 = vmul.f32 %v5674_v14, %v3369_v15  ;;  %v3377_v26 = vadd.f32 %v3332_v48, %v3121_v19  ;;  %v3123_v30 = vpop.f32.mrb[3].mxu0  ;;  %vm3404_vm5 = vcmp.ge.f32.partialorder %v3371_v18, 0.0  ;;  %v3176_v24 = vpop.f32.mrb[3].mxu1 }
 0x221   : > { %v3437_v31 = vmul.f32 %v5674_v14, %v3371_v18  ;;  %vm3403_vm6 = vcmp.ge.f32.partialorder %v3370_v22, 0.0  ;;  %v3436_v32 = vmul.f32 %v5674_v14, %v3370_v22  ;;  %vm3405_vm7 = vcmp.ge.f32.partialorder %v3372_v21, 0.0 }
 0x222   : > { %v3467_v34 = vsel %vm3402_vm4, %v3369_v15, %v3435_v20  ;;  %v3438_v35 = vmul.f32 %v5674_v14, %v3372_v21  ;;  %vm3410_vm8 = vcmp.ge.f32.partialorder %v3377_v26, 0.0  ;;  %v3443_v2 = vmul.f32 %v5674_v14, %v3377_v26 }
 0x223   : > { %3499 = vst [vmem:[%s5681_s21] sm:$0xff] %v3467_v34  ;;  %v3469_v36 = vsel %vm3404_vm5, %v3371_v18, %v3437_v31  ;;  %v3468_v37 = vsel %vm3403_vm6, %v3370_v22, %v3436_v32  ;;  %v3379_v38 = vadd.f32 %v5665_v27, %v3174_v29  ;;  %v3378_v40 = vadd.f32 %v5668_v41, %v3123_v30 }
 0x224   : > { %3501 = vst [vmem:[%s5681_s21 + $0x10] sm:$0xff] %v3469_v36  ;;  %3500 = vst [vmem:[%s5681_s21 + $0x8] sm:$0xff] %v3468_v37  ;;  %v3470_v39 = vsel %vm3405_vm7, %v3372_v21, %v3438_v35  ;;  %v3380_v42 = vadd.f32 %v5671_v10, %v3176_v24  ;;  %v3475_v43 = vsel %vm3410_vm8, %v3377_v26, %v3443_v2  ;;  %v3347_v18 = vsub.s32 4, %v5652_v6 }
 0x225   : > { %3502 = vst [vmem:[%s5681_s21 + $0x18] sm:$0xff] %v3470_v39  ;;  %vm3412_vm9 = vcmp.ge.f32.partialorder %v3379_v38, 0.0  ;;  %v3445_v44 = vmul.f32 %v5674_v14, %v3379_v38  ;;  %v3127_v45 = vpop.f32.mrb[4].mxu0  ;;  %3507 = vst [vmem:[%s5681_s21 + $0x40] sm:$0xff] %v3475_v43  ;;  %vm3411_vm10 = vcmp.ge.f32.partialorder %v3378_v40, 0.0  ;;  %v3444_v46 = vmul.f32 %v5674_v14, %v3378_v40  ;;  %v3180_v49 = vpop.f32.mrb[4].mxu1 }
 0x226   : > { %vm3413_vm11 = vcmp.ge.f32.partialorder %v3380_v42, 0.0  ;;  %v3446_v12 = vmul.f32 %v5674_v14, %v3380_v42  ;;  %v3129_v58 = vpop.f32.mrb[5].mxu0  ;;  %v3385_v47 = vadd.f32 %v3332_v48, %v3127_v45  ;;  %v3387_v51 = vadd.f32 %v5665_v27, %v3180_v49  ;;  %v3182_v52 = vpop.f32.mrb[5].mxu1 }
 0x227   : > { %v3477_v50 = vsel %vm3412_vm9, %v3379_v38, %v3445_v44  ;;  %v3386_v4 = vadd.f32 %v5668_v41, %v3129_v58  ;;  %v3131_v53 = vpop.f32.mrb[6].mxu0  ;;  %v3476_v28 = vsel %vm3411_vm10, %v3378_v40, %v3444_v46  ;;  %v3388_v54 = vadd.f32 %v5671_v10, %v3182_v52  ;;  %v3184_v56 = vpop.f32.mrb[6].mxu1 }
 0x228   : > { %3509 = vst [vmem:[%s5681_s21 + $0x50] sm:$0xff] %v3477_v50  ;;  %v3478_v25 = vsel %vm3413_vm11, %v3380_v42, %v3446_v12  ;;  %v3393_v55 = vadd.f32 %v3332_v48, %v3131_v53  ;;  %v3133_v57 = vpop.f32.mrb[7].mxu0  ;;  %3508 = vst [vmem:[%s5681_s21 + $0x48] sm:$0xff] %v3476_v28  ;;  %vm3418_vm12 = vcmp.ge.f32.partialorder %v3385_v47, 0.0  ;;  %v3451_v59 = vmul.f32 %v5674_v14, %v3385_v47  ;;  %v3186_v61 = vpop.f32.mrb[7].mxu1 }
 0x229   : > { %3510 = vst [vmem:[%s5681_s21 + $0x58] sm:$0xff] %v3478_v25  ;;  %vm3420_vm13 = vcmp.ge.f32.partialorder %v3387_v51, 0.0  ;;  %v3453_v60 = vmul.f32 %v5674_v14, %v3387_v51  ;;  %vm3419_vm14 = vcmp.ge.f32.partialorder %v3386_v4, 0.0  ;;  %v3452_v33 = vmul.f32 %v5674_v14, %v3386_v4 }
 0x22a   : > { %vm3421_vm15 = vcmp.ge.f32.partialorder %v3388_v54, 0.0  ;;  %v3454_v62 = vmul.f32 %v5674_v14, %v3388_v54  ;;  %v3483_v63 = vsel %vm3418_vm12, %v3385_v47, %v3451_v59  ;;  %vm3426_vm0 = vcmp.ge.f32.partialorder %v3393_v55, 0.0 }
 0x22b   : > { %v3485_v1 = vsel %vm3420_vm13, %v3387_v51, %v3453_v60  ;;  %v3459_v23 = vmul.f32 %v5674_v14, %v3393_v55  ;;  %3515 = vst [vmem:[%s5681_s21 + $0x80] sm:$0xff] %v3483_v63  ;;  %v3484_v3 = vsel %vm3419_vm14, %v3386_v4, %v3452_v33  ;;  %v3395_v5 = vadd.f32 %v5665_v27, %v3184_v56 }
 0x22c   : > { %3517 = vst [vmem:[%s5681_s21 + $0x90] sm:$0xff] %v3485_v1  ;;  %v3486_v7 = vsel %vm3421_vm15, %v3388_v54, %v3454_v62  ;;  %v3394_v9 = vadd.f32 %v5668_v41, %v3133_v57  ;;  %3516 = vst [vmem:[%s5681_s21 + $0x88] sm:$0xff] %v3484_v3  ;;  %v3396_v48 = vadd.f32 %v5671_v10, %v3186_v61  ;;  %v3355_v10 = vsub.s32 6, %v5652_v6 }
 0x22d   : > { %3518 = vst [vmem:[%s5681_s21 + $0x98] sm:$0xff] %v3486_v7  ;;  %v3491_v13 = vsel %vm3426_vm0, %v3393_v55, %v3459_v23  ;;  %vm3428_vm1 = vcmp.ge.f32.partialorder %v3395_v5, 0.0  ;;  %v3461_v11 = vmul.f32 %v5674_v14, %v3395_v5  ;;  %v3351_v22 = vsub.s32 5, %v5652_v6 }
 0x22e   : > { %3523 = vst [vmem:[%s5681_s21 + $0xc0] sm:$0xff] %v3491_v13  ;;  %vm3427_vm2 = vcmp.ge.f32.partialorder %v3394_v9, 0.0  ;;  %v3460_v15 = vmul.f32 %v5674_v14, %v3394_v9  ;;  %vm3429_vm3 = vcmp.ge.f32.partialorder %v3396_v48, 0.0  ;;  %v3462_v16 = vmul.f32 %v5674_v14, %v3396_v48 }
 0x22f   : > { %v3493_v27 = vsel %vm3428_vm1, %v3395_v5, %v3461_v11  ;;  %v3348_v19 = vrot.slane %v5658_v8, %v3347_v18  ;;  %v5731_v20 = vrot.slane %v5658_v8, %v3355_v10  ;;  %v5734_v21 = vrot.slane %v5658_v8, %v3351_v22 }
 0x230   : > { %v3492_v17 = vsel %vm3427_vm2, %v3394_v9, %v3460_v15  ;;  %3525 = vst [vmem:[%s5681_s21 + $0xd0] sm:$0xff] %v3493_v27  ;;  %v3494_v41 = vsel %vm3429_vm3, %v3396_v48, %v3462_v16  ;;  %v5737_v26 = vrot.slane %v5658_v8, %v3359_v0 }
 0x231   : > { %3524 = vst [vmem:[%s5681_s21 + $0xc8] sm:$0xff] %v3492_v17  ;;  %3526 = vst [vmem:[%s5681_s21 + $0xd8] sm:$0xff] %v3494_v41 }
 0x25d   : > { %v3223_v29 = vpop.f32.mrb[8].mxu0  ;;  %v3276_v31 = vpop.f32.mrb[8].mxu1 }
 0x25e   : > { %v3373_v30 = vadd.f32 %v3348_v19, %v3223_v29  ;;  %v3225_v32 = vpop.f32.mrb[9].mxu0  ;;  %v3375_v24 = vadd.f32 %v5731_v20, %v3276_v31  ;;  %v3278_v6 = vpop.f32.mrb[9].mxu1 }
 0x25f   : > { %v3374_v34 = vadd.f32 %v5734_v21, %v3225_v32  ;;  %v3227_v35 = vpop.f32.mrb[10].mxu0  ;;  %v3376_v37 = vadd.f32 %v5737_v26, %v3278_v6  ;;  %v3280_v38 = vpop.f32.mrb[10].mxu1 }
 0x260   : > { %vm3406_vm4 = vcmp.ge.f32.partialorder %v3373_v30, 0.0  ;;  %v3439_v36 = vmul.f32 %v5674_v14, %v3373_v30  ;;  %v3381_v2 = vadd.f32 %v3348_v19, %v3227_v35  ;;  %v3229_v8 = vpop.f32.mrb[11].mxu0  ;;  %vm3408_vm5 = vcmp.ge.f32.partialorder %v3375_v24, 0.0  ;;  %v3282_v42 = vpop.f32.mrb[11].mxu1 }
 0x261   : > { %v3441_v39 = vmul.f32 %v5674_v14, %v3375_v24  ;;  %vm3407_vm6 = vcmp.ge.f32.partialorder %v3374_v34, 0.0  ;;  %v3440_v40 = vmul.f32 %v5674_v14, %v3374_v34  ;;  %vm3409_vm7 = vcmp.ge.f32.partialorder %v3376_v37, 0.0 }
 0x262   : > { %v3471_v43 = vsel %vm3406_vm4, %v3373_v30, %v3439_v36  ;;  %v3442_v44 = vmul.f32 %v5674_v14, %v3376_v37  ;;  %vm3414_vm8 = vcmp.ge.f32.partialorder %v3381_v2, 0.0  ;;  %v3447_v12 = vmul.f32 %v5674_v14, %v3381_v2 }
 0x263   : > { %3503 = vst [vmem:[%s5681_s21 + $0x20] sm:$0xff] %v3471_v43  ;;  %v3473_v45 = vsel %vm3408_vm5, %v3375_v24, %v3441_v39  ;;  %v3472_v46 = vsel %vm3407_vm6, %v3374_v34, %v3440_v40  ;;  %v3383_v49 = vadd.f32 %v5731_v20, %v3280_v38  ;;  %v3382_v50 = vadd.f32 %v5734_v21, %v3229_v8 }
 0x264   : > { %3505 = vst [vmem:[%s5681_s21 + $0x30] sm:$0xff] %v3473_v45  ;;  %3504 = vst [vmem:[%s5681_s21 + $0x28] sm:$0xff] %v3472_v46  ;;  %v3474_v58 = vsel %vm3409_vm7, %v3376_v37, %v3442_v44  ;;  %v3384_v47 = vadd.f32 %v5737_v26, %v3282_v42  ;;  %v3479_v51 = vsel %vm3414_vm8, %v3381_v2, %v3447_v12 }
 0x265   : > { %3506 = vst [vmem:[%s5681_s21 + $0x38] sm:$0xff] %v3474_v58  ;;  %vm3416_vm9 = vcmp.ge.f32.partialorder %v3383_v49, 0.0  ;;  %v3449_v4 = vmul.f32 %v5674_v14, %v3383_v49  ;;  %v3233_v52 = vpop.f32.mrb[12].mxu0  ;;  %3511 = vst [vmem:[%s5681_s21 + $0x60] sm:$0xff] %v3479_v51  ;;  %vm3415_vm10 = vcmp.ge.f32.partialorder %v3382_v50, 0.0  ;;  %v3448_v53 = vmul.f32 %v5674_v14, %v3382_v50  ;;  %v3286_v25 = vpop.f32.mrb[12].mxu1 }
 0x266   : > { %vm3417_vm11 = vcmp.ge.f32.partialorder %v3384_v47, 0.0  ;;  %v3450_v28 = vmul.f32 %v5674_v14, %v3384_v47  ;;  %v3235_v54 = vpop.f32.mrb[13].mxu0  ;;  %v3389_v56 = vadd.f32 %v3348_v19, %v3233_v52  ;;  %v3391_v57 = vadd.f32 %v5731_v20, %v3286_v25  ;;  %v3288_v60 = vpop.f32.mrb[13].mxu1 }
 0x267   : > { %v3481_v55 = vsel %vm3416_vm9, %v3383_v49, %v3449_v4  ;;  %v3390_v59 = vadd.f32 %v5734_v21, %v3235_v54  ;;  %v3237_v61 = vpop.f32.mrb[14].mxu0  ;;  %v3480_v33 = vsel %vm3415_vm10, %v3382_v50, %v3448_v53  ;;  %v3392_v63 = vadd.f32 %v5737_v26, %v3288_v60  ;;  %v3290_v23 = vpop.f32.mrb[14].mxu1 }
 0x268   : > { %3513 = vst [vmem:[%s5681_s21 + $0x70] sm:$0xff] %v3481_v55  ;;  %v3482_v62 = vsel %vm3417_vm11, %v3384_v47, %v3450_v28  ;;  %v3397_v1 = vadd.f32 %v3348_v19, %v3237_v61  ;;  %v3239_v3 = vpop.f32.mrb[15].mxu0  ;;  %3512 = vst [vmem:[%s5681_s21 + $0x68] sm:$0xff] %v3480_v33  ;;  %vm3422_vm12 = vcmp.ge.f32.partialorder %v3389_v56, 0.0  ;;  %v3455_v7 = vmul.f32 %v5674_v14, %v3389_v56  ;;  %v3292_v9 = vpop.f32.mrb[15].mxu1 }
 0x269   : > { %3514 = vst [vmem:[%s5681_s21 + $0x78] sm:$0xff] %v3482_v62  ;;  %vm3424_vm13 = vcmp.ge.f32.partialorder %v3391_v57, 0.0  ;;  %v3457_v5 = vmul.f32 %v5674_v14, %v3391_v57  ;;  %vm3423_vm14 = vcmp.ge.f32.partialorder %v3390_v59, 0.0  ;;  %v3456_v13 = vmul.f32 %v5674_v14, %v3390_v59 }
 0x26a   : > { %vm3425_vm15 = vcmp.ge.f32.partialorder %v3392_v63, 0.0  ;;  %v3458_v48 = vmul.f32 %v5674_v14, %v3392_v63  ;;  %v3487_v11 = vsel %vm3422_vm12, %v3389_v56, %v3455_v7  ;;  %vm3430_vm0 = vcmp.ge.f32.partialorder %v3397_v1, 0.0 }
 0x26b   : > { %v3489_v15 = vsel %vm3424_vm13, %v3391_v57, %v3457_v5  ;;  %v3463_v16 = vmul.f32 %v5674_v14, %v3397_v1  ;;  %3519 = vst [vmem:[%s5681_s21 + $0xa0] sm:$0xff] %v3487_v11  ;;  %v3488_v27 = vsel %vm3423_vm14, %v3390_v59, %v3456_v13  ;;  %v3399_v41 = vadd.f32 %v5731_v20, %v3290_v23 }
 0x26c   : > { %3521 = vst [vmem:[%s5681_s21 + $0xb0] sm:$0xff] %v3489_v15  ;;  %v3490_v17 = vsel %vm3425_vm15, %v3392_v63, %v3458_v48  ;;  %v3398_v18 = vadd.f32 %v5734_v21, %v3239_v3  ;;  %3520 = vst [vmem:[%s5681_s21 + $0xa8] sm:$0xff] %v3488_v27  ;;  %v3400_v22 = vadd.f32 %v5737_v26, %v3292_v9 }
 0x26d   : > { %3522 = vst [vmem:[%s5681_s21 + $0xb8] sm:$0xff] %v3490_v17  ;;  %v3495_v10 = vsel %vm3430_vm0, %v3397_v1, %v3463_v16  ;;  %vm3432_vm1 = vcmp.ge.f32.partialorder %v3399_v41, 0.0  ;;  %v3465_v0 = vmul.f32 %v5674_v14, %v3399_v41 }
 0x26e   : > { %3527 = vst [vmem:[%s5681_s21 + $0xe0] sm:$0xff] %v3495_v10  ;;  %vm3431_vm2 = vcmp.ge.f32.partialorder %v3398_v18, 0.0  ;;  %v3464_v19 = vmul.f32 %v5674_v14, %v3398_v18  ;;  %vm3433_vm3 = vcmp.ge.f32.partialorder %v3400_v22, 0.0  ;;  %v3466_v29 = vmul.f32 %v5674_v14, %v3400_v22 }
 0x26f   : > { %v3497_v20 = vsel %vm3432_vm1, %v3399_v41, %v3465_v0 }
 0x270   : > { %v3496_v30 = vsel %vm3431_vm2, %v3398_v18, %v3464_v19  ;;  %3529 = vst [vmem:[%s5681_s21 + $0xf0] sm:$0xff] %v3497_v20  ;;  %v3498_v21 = vsel %vm3433_vm3, %v3400_v22, %v3466_v29 }
 0x271   : > { %3528 = vst [vmem:[%s5681_s21 + $0xe8] sm:$0xff] %v3496_v30  ;;  %3530 = vst [vmem:[%s5681_s21 + $0xf8] sm:$0xff] %v3498_v21 }
 0x272 PF: > { %s15_s17 = sadd.s32 1, %s4320_s17  }
 0x273   : > { %p12_p4 = scmp.ge.s32.totalorder %s15_s17, 4  }
 0x275   :  { %14 = sbr.rel (!%p12_p4) target bundleno = 2 (0x2), region = 69 }

// kernel: tile.88
= control target key start
LH: loop header
LB: loop body
LE: loop exit
PB: predicated region body
PF: predicated region fallthrough
CT: control target
= control target key end

     0   :  { %s64_s0 = inlined_call_operand.vmem [shape: f32[4], index: 0, kind: input, shape index: {}]   ;;  %s65_s1 = inlined_call_operand.vmem [shape: f32[64,4], index: 1, kind: output, shape index: {}]  }
   0x1   :  { %v4_v0 = vld [vmem:[%s64_s0] ss:$0 sm:$0xff] }
   0x2   :  { %5 = vst [vmem:[%s65_s1] sm:$0xff] %v4_v0  ;;  %20 = vst [vmem:[%s65_s1 + $0x8] sm:$0xff] %v4_v0 }
   0x3   :  { %21 = vst [vmem:[%s65_s1 + $0x10] sm:$0xff] %v4_v0  ;;  %22 = vst [vmem:[%s65_s1 + $0x18] sm:$0xff] %v4_v0 }
   0x4   :  { %23 = vst [vmem:[%s65_s1 + $0x20] sm:$0xff] %v4_v0  ;;  %24 = vst [vmem:[%s65_s1 + $0x28] sm:$0xff] %v4_v0 }
   0x5   :  { %25 = vst [vmem:[%s65_s1 + $0x30] sm:$0xff] %v4_v0  ;;  %26 = vst [vmem:[%s65_s1 + $0x38] sm:$0xff] %v4_v0 }

// kernel: tile.89
= control target key start
LH: loop header
LB: loop body
LE: loop exit
PB: predicated region body
PF: predicated region fallthrough
CT: control target
= control target key end

     0   :  { %vm5_vm0 = vcmask 1041409   ;;  %s425_s14 = smov 124   ;;  %s426_s21 = smov 116   ;;  %vm7_vm1 = vcmask 31744   ;;  %vm17_vm2 = vcmask 1048544   ;;  %vm27_vm3 = vcmask 1015744   ;;  %s696_s0 = inlined_call_operand.vmem [shape: f32[64,4], index: 0, kind: input, shape index: {}]   ;;  %s697_s1 = inlined_call_operand.vmem [shape: f32[1,256], index: 1, kind: output, shape index: {}]  }
   0x1   :  { %v331_v0 = vld [vmem:[%s696_s0 + $0x1f] sm:$0x1]   ;;  %v335_v3 = vld [vmem:[%s696_s0 + $0x1d] sm:$0x1]   ;;  %v333_v6 = vld [vmem:[%s696_s0 + $0x1e] sm:$0x1]  }
   0x2   :  { %v332_v1 = vld [vmem:[%s696_s0 + $0x3e] sm:$0x2]   ;;  %v336_v4 = vld [vmem:[%s696_s0 + $0x3c] sm:$0x2]   ;;  %v334_v7 = vld [vmem:[%s696_s0 + $0x3d] sm:$0x2]  }
   0x3   :  { %v14_v2 = vsel %vm5_vm0, %v332_v1, %v331_v0  ;;  %v34_v5 = vsel %vm5_vm0, %v336_v4, %v335_v3  ;;  %v337_v8 = vld [vmem:[%s696_s0 + $0x1c] sm:$0x1]   ;;  %v24_v9 = vsel %vm5_vm0, %v334_v7, %v333_v6  ;;  %v339_v12 = vld [vmem:[%s696_s0 + $0x1b] sm:$0x1]   ;;  %v341_v14 = vld [vmem:[%s696_s0 + $0x1a] sm:$0x1]  }
   0x4   :  { %15 = vrot.lane.b32.xlu0 %v14_v2, %s425_s14  ;;  %35 = vrot.lane.b32.xlu1 %v34_v5, %s426_s21  ;;  %v338_v10 = vld [vmem:[%s696_s0 + $0x3b] sm:$0x2]   ;;  %v340_v13 = vld [vmem:[%s696_s0 + $0x3a] sm:$0x2]   ;;  %s427_s3 = smov 120   ;;  %s428_s4 = smov 112  }
   0x5   :  { %v44_v11 = vsel %vm5_vm0, %v338_v10, %v337_v8  ;;  %v342_v15 = vld [vmem:[%s696_s0 + $0x39] sm:$0x2]   ;;  %v54_v16 = vsel %vm5_vm0, %v340_v13, %v339_v12  ;;  %v343_v18 = vld [vmem:[%s696_s0 + $0x19] sm:$0x1]   ;;  %v345_v20 = vld [vmem:[%s696_s0 + $0x18] sm:$0x1]  }
   0x6   :  { %v64_v17 = vsel %vm5_vm0, %v342_v15, %v341_v14  ;;  %v344_v19 = vld [vmem:[%s696_s0 + $0x38] sm:$0x2]   ;;  %v346_v21 = vld [vmem:[%s696_s0 + $0x37] sm:$0x2]   ;;  %s429_s13 = smov 108   ;;  %s430_s14 = smov 104  }
   0x7   :  { %v74_v22 = vsel %vm5_vm0, %v344_v19, %v343_v18  ;;  %v84_v23 = vsel %vm5_vm0, %v346_v21, %v345_v20  ;;  %v347_v24 = vld [vmem:[%s696_s0 + $0x17] sm:$0x1]   ;;  %v349_v26 = vld [vmem:[%s696_s0 + $0x16] sm:$0x1]   ;;  %s431_s23 = smov 100   ;;  %s432_s24 = smov 96  }
   0x8   :  { %25 = vrot.lane.b32.xlu0 %v24_v9, %s427_s3  ;;  %45 = vrot.lane.b32.xlu1 %v44_v11, %s428_s4  ;;  %v348_v25 = vld [vmem:[%s696_s0 + $0x36] sm:$0x2]   ;;  %v350_v27 = vld [vmem:[%s696_s0 + $0x35] sm:$0x2]   ;;  %s433_s4 = smov 92   ;;  %s434_s5 = smov 88  }
   0x9   :  { %v94_v28 = vsel %vm5_vm0, %v348_v25, %v347_v24  ;;  %v104_v29 = vsel %vm5_vm0, %v350_v27, %v349_v26  ;;  %v351_v30 = vld [vmem:[%s696_s0 + $0x15] sm:$0x1]   ;;  %v353_v32 = vld [vmem:[%s696_s0 + $0x14] sm:$0x1]   ;;  %v355_v36 = vld [vmem:[%s696_s0 + $0x13] sm:$0x1]  }
   0xa   :  { %v352_v31 = vld [vmem:[%s696_s0 + $0x34] sm:$0x2]   ;;  %v354_v33 = vld [vmem:[%s696_s0 + $0x33] sm:$0x2]   ;;  %v356_v37 = vld [vmem:[%s696_s0 + $0x32] sm:$0x2]  }
   0xb   :  { %v114_v34 = vsel %vm5_vm0, %v352_v31, %v351_v30  ;;  %v124_v35 = vsel %vm5_vm0, %v354_v33, %v353_v32  ;;  %v357_v38 = vld [vmem:[%s696_s0 + $0x12] sm:$0x1]   ;;  %s436_s15 = smov 80   ;;  %v134_v40 = vsel %vm5_vm0, %v356_v37, %v355_v36  ;;  %v359_v42 = vld [vmem:[%s696_s0 + $0x11] sm:$0x1]   ;;  %s438_s29 = smov 72  }
   0xc   :  { %55 = vrot.lane.b32.xlu0 %v54_v16, %s429_s13  ;;  %65 = vrot.lane.b32.xlu1 %v64_v17, %s430_s14  ;;  %v358_v39 = vld [vmem:[%s696_s0 + $0x31] sm:$0x2]   ;;  %s435_s14 = smov 84   ;;  %v360_v43 = vld [vmem:[%s696_s0 + $0x30] sm:$0x2]   ;;  %s439_s9 = smov 68  }
   0xd   :  { %v144_v41 = vsel %vm5_vm0, %v358_v39, %v357_v38  ;;  %v361_v44 = vld [vmem:[%s696_s0 + $0x10] sm:$0x1]   ;;  %v2_v46 = vld [vmem:[%s696_s0] sm:$0x1]   ;;  %v154_v48 = vsel %vm5_vm0, %v360_v43, %v359_v42  ;;  %v363_v51 = vld [vmem:[%s696_s0 + $0xf] sm:$0x1]  }
   0xe   :  { %v362_v45 = vld [vmem:[%s696_s0 + $0x2f] sm:$0x2]   ;;  %v330_v47 = vld [vmem:[%s696_s0 + $0x1f] sm:$0x2]   ;;  %v364_v52 = vld [vmem:[%s696_s0 + $0x2e] sm:$0x2]  }
   0xf   :  { %v6_v49 = vsel %vm5_vm0, %v330_v47, %v2_v46  ;;  %v164_v50 = vsel %vm5_vm0, %v362_v45, %v361_v44  ;;  %v365_v53 = vld [vmem:[%s696_s0 + $0xe] sm:$0x1]   ;;  %s440_s10 = smov 64   ;;  %v174_v55 = vsel %vm5_vm0, %v364_v52, %v363_v51  ;;  %v367_v57 = vld [vmem:[%s696_s0 + $0xd] sm:$0x1]   ;;  %s441_s19 = smov 60  }
  0x10   :  { %75 = vrot.lane.b32.xlu0 %v74_v22, %s431_s23  ;;  %85 = vrot.lane.b32.xlu1 %v84_v23, %s432_s24  ;;  %s437_s24 = smov 76   ;;  %8 = vst.msk [vmem:[#allocation0] ss:$8 sm:$0x3] %vm7_vm1, %v6_v49   ;;  %v366_v54 = vld [vmem:[%s696_s0 + $0x2d] sm:$0x2]  }
  0x11   :  { %v184_v56 = vsel %vm5_vm0, %v366_v54, %v365_v53  ;;  %v368_v58 = vld [vmem:[%s696_s0 + $0x2c] sm:$0x2]   ;;  %v369_v59 = vld [vmem:[%s696_s0 + $0xc] sm:$0x1]   ;;  %s442_s20 = smov 56   ;;  %s444_s30 = smov 48  }
  0x12   :  { %v370_v60 = vld [vmem:[%s696_s0 + $0x2b] sm:$0x2]   ;;  %v194_v61 = vsel %vm5_vm0, %v368_v58, %v367_v57  ;;  %v371_v63 = vld [vmem:[%s696_s0 + $0xb] sm:$0x1]   ;;  %v373_v1 = vld [vmem:[%s696_s0 + $0xa] sm:$0x1]  }
  0x13   :  { %v204_v62 = vsel %vm5_vm0, %v370_v60, %v369_v59  ;;  %v372_v0 = vld [vmem:[%s696_s0 + $0x2a] sm:$0x2]   ;;  %v374_v2 = vld [vmem:[%s696_s0 + $0x29] sm:$0x2]   ;;  %v375_v5 = vld [vmem:[%s696_s0 + $0x9] sm:$0x1]  }
  0x14   :  { %95 = vrot.lane.b32.xlu0 %v94_v28, %s433_s4  ;;  %105 = vrot.lane.b32.xlu1 %v104_v29, %s434_s5  ;;  %v214_v3 = vsel %vm5_vm0, %v372_v0, %v371_v63  ;;  %v224_v4 = vsel %vm5_vm0, %v374_v2, %v373_v1  ;;  %v376_v6 = vld [vmem:[%s696_s0 + $0x28] sm:$0x2]   ;;  %v377_v7 = vld [vmem:[%s696_s0 + $0x8] sm:$0x1]   ;;  %s446_s11 = smov 40   ;;  %s448_s21 = smov 32  }
  0x15   :  { %v378_v8 = vld [vmem:[%s696_s0 + $0x27] sm:$0x2]   ;;  %v234_v9 = vsel %vm5_vm0, %v376_v6, %v375_v5  ;;  %v379_v11 = vld [vmem:[%s696_s0 + $0x7] sm:$0x1]   ;;  %v381_v13 = vld [vmem:[%s696_s0 + $0x6] sm:$0x1]  }
  0x16   :  { %v244_v10 = vsel %vm5_vm0, %v378_v8, %v377_v7  ;;  %v380_v12 = vld [vmem:[%s696_s0 + $0x26] sm:$0x2]   ;;  %v382_v14 = vld [vmem:[%s696_s0 + $0x25] sm:$0x2]   ;;  %v383_v17 = vld [vmem:[%s696_s0 + $0x5] sm:$0x1]  }
  0x17   :  { %v254_v15 = vsel %vm5_vm0, %v380_v12, %v379_v11  ;;  %v264_v16 = vsel %vm5_vm0, %v382_v14, %v381_v13  ;;  %v384_v18 = vld [vmem:[%s696_s0 + $0x24] sm:$0x2]   ;;  %v385_v19 = vld [vmem:[%s696_s0 + $0x4] sm:$0x1]   ;;  %s450_s2 = smov 24   ;;  %s452_s12 = smov 16  }
  0x18   :  { %115 = vrot.lane.b32.xlu0 %v114_v34, %s435_s14  ;;  %125 = vrot.lane.b32.xlu1 %v124_v35, %s436_s15  ;;  %v386_v20 = vld [vmem:[%s696_s0 + $0x23] sm:$0x2]   ;;  %v274_v21 = vsel %vm5_vm0, %v384_v18, %v383_v17  ;;  %v387_v23 = vld [vmem:[%s696_s0 + $0x3] sm:$0x1]   ;;  %s454_s17 = smov 8   ;;  %s455_s18 = smov 4  }
  0x19   :  { %v284_v22 = vsel %vm5_vm0, %v386_v20, %v385_v19  ;;  %v388_v24 = vld [vmem:[%s696_s0 + $0x22] sm:$0x2]   ;;  %v389_v25 = vld [vmem:[%s696_s0 + $0x2] sm:$0x1]   ;;  %v391_v29 = vld [vmem:[%s696_s0 + $0x1] sm:$0x1]  }
  0x1a   :  { %v390_v26 = vld [vmem:[%s696_s0 + $0x21] sm:$0x2]   ;;  %v294_v27 = vsel %vm5_vm0, %v388_v24, %v387_v23  ;;  %v392_v30 = vld [vmem:[%s696_s0 + $0x20] sm:$0x2]   ;;  %s453_s0 = smov 12   ;;  %vm37_vm4 = vcmask 982944  }
  0x1b   :  { %v304_v28 = vsel %vm5_vm0, %v390_v26, %v389_v25  ;;  %v314_v31 = vsel %vm5_vm0, %v392_v30, %v391_v29  ;;  %vm47_vm5 = vcmask 950144   ;;  %vm57_vm6 = vcmask 917344  }
  0x1c   :  { %135 = vrot.lane.b32.xlu0 %v134_v40, %s437_s24  ;;  %145 = vrot.lane.b32.xlu1 %v144_v41, %s438_s29  ;;  %s443_s29 = smov 52   ;;  %vm67_vm7 = vcmask 884544   ;;  %vm77_vm8 = vcmask 851744   ;;  %vm87_vm9 = vcmask 818944   ;;  %vm97_vm10 = vcmask 786144  }
  0x1d   :  { %vm107_vm11 = vcmask 753344   ;;  %vm117_vm12 = vcmask 720544   ;;  %vm127_vm13 = vcmask 687744   ;;  %vm137_vm14 = vcmask 654944  }
  0x1e   :  { %vm147_vm15 = vcmask 622144   ;;  %vm157_vm0 = vcmask 589344   ;;  %vm167_vm1 = vcmask 556544  }
  0x20   :  { %155 = vrot.lane.b32.xlu0 %v154_v48, %s439_s9  ;;  %165 = vrot.lane.b32.xlu1 %v164_v50, %s440_s10  ;;  %s445_s10 = smov 44  }
  0x24   :  { %175 = vrot.lane.b32.xlu0 %v174_v55, %s441_s19  ;;  %185 = vrot.lane.b32.xlu1 %v184_v56, %s442_s20  ;;  %s447_s20 = smov 36  }
  0x28   :  { %195 = vrot.lane.b32.xlu0 %v194_v61, %s443_s29  ;;  %205 = vrot.lane.b32.xlu1 %v204_v62, %s444_s30  ;;  %s449_s30 = smov 28  }
  0x2c   :  { %215 = vrot.lane.b32.xlu0 %v214_v3, %s445_s10  ;;  %225 = vrot.lane.b32.xlu1 %v224_v4, %s446_s11  ;;  %s451_s11 = smov 20  }
  0x30   :  { %235 = vrot.lane.b32.xlu0 %v234_v9, %s447_s20  ;;  %245 = vrot.lane.b32.xlu1 %v244_v10, %s448_s21 }
  0x34   :  { %255 = vrot.lane.b32.xlu0 %v254_v15, %s449_s30  ;;  %265 = vrot.lane.b32.xlu1 %v264_v16, %s450_s2 }
  0x38   :  { %275 = vrot.lane.b32.xlu0 %v274_v21, %s451_s11  ;;  %285 = vrot.lane.b32.xlu1 %v284_v22, %s452_s12 }
  0x3c   :  { %295 = vrot.lane.b32.xlu0 %v294_v27, %s453_s0  ;;  %305 = vrot.lane.b32.xlu1 %v304_v28, %s454_s17 }
  0x40   :  { %315 = vrot.lane.b32.xlu0 %v314_v31, %s455_s18 }
  0x76   :  { %v16_v32 = vpop.permute.xlu0 %15   ;;  %v36_v33 = vpop.permute.xlu1 %35  }
  0x77   :  { %18 = vst.msk [vmem:[#allocation0] ss:$8 sm:$0x3] %vm17_vm2, %v16_v32   ;;  %vm177_vm2 = vcmask 523744  }
  0x7a   :  { %v26_v34 = vpop.permute.xlu0 %25   ;;  %v46_v35 = vpop.permute.xlu1 %45  }
  0x7b   :  { %28 = vst.msk [vmem:[#allocation0] ss:$8 sm:$0x3] %vm27_vm3, %v26_v34   ;;  %vm187_vm3 = vcmask 490944  }
  0x7c   :  { %38 = vst.msk [vmem:[#allocation0] ss:$8 sm:$0x3] %vm37_vm4, %v36_v33   ;;  %vm197_vm4 = vcmask 458144  }
  0x7d   :  { %48 = vst.msk [vmem:[#allocation0] ss:$8 sm:$0x3] %vm47_vm5, %v46_v35   ;;  %vm207_vm5 = vcmask 425344  }
  0x7e   :  { %v56_v36 = vpop.permute.xlu0 %55   ;;  %v66_v37 = vpop.permute.xlu1 %65  }
  0x7f   :  { %58 = vst.msk [vmem:[#allocation0] ss:$8 sm:$0x3] %vm57_vm6, %v56_v36   ;;  %vm217_vm6 = vcmask 392544  }
  0x80   :  { %68 = vst.msk [vmem:[#allocation0] ss:$8 sm:$0x3] %vm67_vm7, %v66_v37   ;;  %vm227_vm7 = vcmask 359744  }
  0x82   :  { %v76_v38 = vpop.permute.xlu0 %75   ;;  %v86_v39 = vpop.permute.xlu1 %85  }
  0x83   :  { %78 = vst.msk [vmem:[#allocation0] ss:$8 sm:$0x3] %vm77_vm8, %v76_v38   ;;  %vm237_vm8 = vcmask 326944  }
  0x84   :  { %88 = vst.msk [vmem:[#allocation0] ss:$8 sm:$0x3] %vm87_vm9, %v86_v39   ;;  %vm247_vm9 = vcmask 294144  }
  0x86   :  { %v96_v40 = vpop.permute.xlu0 %95   ;;  %v106_v41 = vpop.permute.xlu1 %105  }
  0x87   :  { %98 = vst.msk [vmem:[#allocation0] ss:$8 sm:$0x3] %vm97_vm10, %v96_v40   ;;  %vm257_vm10 = vcmask 261344  }
  0x88   :  { %108 = vst.msk [vmem:[#allocation0] ss:$8 sm:$0x3] %vm107_vm11, %v106_v41   ;;  %vm267_vm11 = vcmask 228544  }
  0x8a   :  { %v116_v42 = vpop.permute.xlu0 %115   ;;  %v126_v43 = vpop.permute.xlu1 %125  }
  0x8b   :  { %118 = vst.msk [vmem:[#allocation0] ss:$8 sm:$0x3] %vm117_vm12, %v116_v42   ;;  %vm277_vm12 = vcmask 195744  }
  0x8c   :  { %128 = vst.msk [vmem:[#allocation0] ss:$8 sm:$0x3] %vm127_vm13, %v126_v43   ;;  %vm287_vm13 = vcmask 162944  }
  0x8e   :  { %v136_v44 = vpop.permute.xlu0 %135   ;;  %v146_v45 = vpop.permute.xlu1 %145  }
  0x8f   :  { %138 = vst.msk [vmem:[#allocation0] ss:$8 sm:$0x3] %vm137_vm14, %v136_v44   ;;  %vm297_vm14 = vcmask 130144  }
  0x90   :  { %148 = vst.msk [vmem:[#allocation0] ss:$8 sm:$0x3] %vm147_vm15, %v146_v45   ;;  %vm307_vm15 = vcmask 97344  }
  0x92   :  { %v156_v46 = vpop.permute.xlu0 %155   ;;  %v166_v47 = vpop.permute.xlu1 %165  }
  0x93   :  { %158 = vst.msk [vmem:[#allocation0] ss:$8 sm:$0x3] %vm157_vm0, %v156_v46   ;;  %vm317_vm0 = vcmask 64544  }
  0x94   :  { %168 = vst.msk [vmem:[#allocation0] ss:$8 sm:$0x3] %vm167_vm1, %v166_v47  }
  0x96   :  { %v176_v48 = vpop.permute.xlu0 %175   ;;  %v186_v49 = vpop.permute.xlu1 %185  }
  0x97   :  { %178 = vst.msk [vmem:[#allocation0] ss:$8 sm:$0x3] %vm177_vm2, %v176_v48  }
  0x98   :  { %188 = vst.msk [vmem:[#allocation0] ss:$8 sm:$0x3] %vm187_vm3, %v186_v49  }
  0x9a   :  { %v196_v50 = vpop.permute.xlu0 %195   ;;  %v206_v51 = vpop.permute.xlu1 %205  }
  0x9b   :  { %198 = vst.msk [vmem:[#allocation0] ss:$8 sm:$0x3] %vm197_vm4, %v196_v50  }
  0x9c   :  { %208 = vst.msk [vmem:[#allocation0] ss:$8 sm:$0x3] %vm207_vm5, %v206_v51  }
  0x9e   :  { %v216_v52 = vpop.permute.xlu0 %215   ;;  %v226_v53 = vpop.permute.xlu1 %225  }
  0x9f   :  { %218 = vst.msk [vmem:[#allocation0] ss:$8 sm:$0x3] %vm217_vm6, %v216_v52  }
  0xa0   :  { %228 = vst.msk [vmem:[#allocation0] ss:$8 sm:$0x3] %vm227_vm7, %v226_v53  }
  0xa2   :  { %v236_v54 = vpop.permute.xlu0 %235   ;;  %v246_v55 = vpop.permute.xlu1 %245  }
  0xa3   :  { %238 = vst.msk [vmem:[#allocation0] ss:$8 sm:$0x3] %vm237_vm8, %v236_v54  }
  0xa4   :  { %248 = vst.msk [vmem:[#allocation0] ss:$8 sm:$0x3] %vm247_vm9, %v246_v55  }
  0xa6   :  { %v256_v56 = vpop.permute.xlu0 %255   ;;  %v266_v57 = vpop.permute.xlu1 %265  }
  0xa7   :  { %258 = vst.msk [vmem:[#allocation0] ss:$8 sm:$0x3] %vm257_vm10, %v256_v56  }
  0xa8   :  { %268 = vst.msk [vmem:[#allocation0] ss:$8 sm:$0x3] %vm267_vm11, %v266_v57  }
  0xaa   :  { %v276_v58 = vpop.permute.xlu0 %275   ;;  %v286_v59 = vpop.permute.xlu1 %285  }
  0xab   :  { %278 = vst.msk [vmem:[#allocation0] ss:$8 sm:$0x3] %vm277_vm12, %v276_v58  }
  0xac   :  { %288 = vst.msk [vmem:[#allocation0] ss:$8 sm:$0x3] %vm287_vm13, %v286_v59  }
  0xae   :  { %v296_v60 = vpop.permute.xlu0 %295   ;;  %v306_v61 = vpop.permute.xlu1 %305  }
  0xaf   :  { %298 = vst.msk [vmem:[#allocation0] ss:$8 sm:$0x3] %vm297_vm14, %v296_v60  }
  0xb0   :  { %308 = vst.msk [vmem:[#allocation0] ss:$8 sm:$0x3] %vm307_vm15, %v306_v61  }
  0xb2   :  { %v316_v62 = vpop.permute.xlu0 %315  }
  0xb3   :  { %318 = vst.msk [vmem:[#allocation0] ss:$8 sm:$0x3] %vm317_vm0, %v316_v62  }
  0xba   :  { %v322_v63 = vld [vmem:[#allocation0] sm:$0x1]  ;;  %v326_v0 = vld [vmem:[#allocation0 + $0x8] sm:$0x1] }
  0xbb   :  { %324 = vst [vmem:[%s697_s1] sm:$0x1] %v322_v63  ;;  %393 = vst [vmem:[%s697_s1 + $0x1] sm:$0x1] %v326_v0 }

// kernel: generator_forward.9
= control target key start
LH: loop header
LB: loop body
LE: loop exit
PB: predicated region body
PF: predicated region fallthrough
CT: control target
= control target key end

     0   :  { %s8652_s12 = smov 0   ;;  %s11101_s0 = inlined_call_operand.vmem [shape: f32[2,64,512], index: 0, kind: input, shape index: {}]   ;;  %s11102_s1 = inlined_call_operand.vmem [shape: bf16[9,512,256], index: 1, kind: input, shape index: {}]   ;;  %s11103_s2 = inlined_call_operand.vmem [shape: f32[1,256], index: 2, kind: input, shape index: {}]   ;;  %s11104_s3 = inlined_call_operand.vmem [shape: f32[2,64,256], index: 3, kind: output, shape index: {}]  }
   0x1 LB: > { %s6340_s13 = sadd.s32 4294967295, %s8629_s12   ;;  %p6344_p0 = scmp.ge.s32.totalorder %s8629_s12, 1  ;;  %s8629_s12 = sphi %s8652_s12, %s13_s12  }
   0x2   : > { %p137_p1 = scmp.lt.s32.totalorder %s8629_s12, 3 }
   0x4   : > { %p138_p2 = pnand %p6344_p0, %p137_p1 }
   0x6   : > { %141 = sbr.rel (%p138_p2) target bundleno = 835 (0x343), region = 32 }
   0xd   : > { %v7722_v0 = vld [vmem:[%s11102_s1 + $0x204] ss:$8 sps:$4 sm:$0xff]   ;;  %v8631_v2 = vmov 0.0   ;;  %v7726_v3 = vld [vmem:[%s11102_s1 + $0x200] ss:$8 sps:$4 sm:$0xff]   ;;  %p161_p3 = scmp.lt.s32.totalorder %s6340_s13, 1 }
   0xe   : > { %v7724_v1 = vld [vmem:[%s11102_s1 + $0x904] ss:$8 sps:$4 sm:$0xff]   ;;  %172 = vst [vmem:[#allocation2 + $0x8] sm:$0xf] %v8631_v2  ;;  %171 = vst [vmem:[#allocation2] sm:$0xf] %v8631_v2  ;;  %1090 = vmatprep.subr.bf16.mxu1 %v7722_v0 }
   0xf   : > { %173 = vst [vmem:[#allocation2 + $0x10] sm:$0xf] %v8631_v2  ;;  %174 = vst [vmem:[#allocation2 + $0x18] sm:$0xf] %v8631_v2  ;;  %v7727_v4 = vld [vmem:[%s11102_s1 + $0x900] ss:$8 sps:$4 sm:$0xff]   ;;  %3569 = vmatprep.subr.bf16.mxu0 %v7724_v1  ;;  %1091 = vmatpush1.bf16.msra.mxu1 %v7726_v3 }
  0x10   : > { %175 = vst [vmem:[#allocation2 + $0x100] sm:$0xf0] %v8631_v2  ;;  %176 = vst [vmem:[#allocation2 + $0x108] sm:$0xf0] %v8631_v2  ;;  %v7728_v5 = vld [vmem:[%s11102_s1 + $0x214] ss:$8 sps:$4 sm:$0xff]   ;;  %3570 = vmatpush1.bf16.msra.mxu0 %v7727_v4 }
  0x11   : > { %177 = vst [vmem:[#allocation2 + $0x110] sm:$0xf0] %v8631_v2  ;;  %178 = vst [vmem:[#allocation2 + $0x118] sm:$0xf0] %v8631_v2  ;;  %v7730_v6 = vld [vmem:[%s11102_s1 + $0x914] ss:$8 sps:$4 sm:$0xff]   ;;  %1092 = vmatprep.subr.bf16.mxu1 %v7728_v5 }
  0x12   : > { %v7732_v7 = vld [vmem:[%s11102_s1 + $0x210] ss:$8 sps:$4 sm:$0xff]   ;;  %3571 = vmatprep.subr.bf16.mxu0 %v7730_v6  ;;  %v7734_v9 = vld [vmem:[%s11102_s1 + $0x224] ss:$8 sps:$4 sm:$0xff]   ;;  %v7738_v11 = vld [vmem:[%s11102_s1 + $0x220] ss:$8 sps:$4 sm:$0xff]  }
  0x13   : > { %v7733_v8 = vld [vmem:[%s11102_s1 + $0x910] ss:$8 sps:$4 sm:$0xff]   ;;  %v7736_v10 = vld [vmem:[%s11102_s1 + $0x924] ss:$8 sps:$4 sm:$0xff]   ;;  %v7739_v12 = vld [vmem:[%s11102_s1 + $0x920] ss:$8 sps:$4 sm:$0xff]   ;;  %1093 = vmatpush1.bf16.msra.mxu1 %v7732_v7 }
  0x14   : > { %3572 = vmatpush1.bf16.msra.mxu0 %v7733_v8  ;;  %v7740_v13 = vld [vmem:[%s11102_s1 + $0x234] ss:$8 sps:$4 sm:$0xff]   ;;  %1094 = vmatprep.subr.bf16.mxu1 %v7734_v9  ;;  %v7744_v15 = vld [vmem:[%s11102_s1 + $0x230] ss:$8 sps:$4 sm:$0xff]   ;;  %v7746_v17 = vld [vmem:[%s11102_s1 + $0x244] ss:$8 sps:$4 sm:$0xff]  }
  0x15   : > { %3573 = vmatprep.subr.bf16.mxu0 %v7736_v10  ;;  %v7742_v14 = vld [vmem:[%s11102_s1 + $0x934] ss:$8 sps:$4 sm:$0xff]   ;;  %v7745_v16 = vld [vmem:[%s11102_s1 + $0x930] ss:$8 sps:$4 sm:$0xff]   ;;  %v7748_v18 = vld [vmem:[%s11102_s1 + $0x944] ss:$8 sps:$4 sm:$0xff]  }
  0x16   : > { %v7750_v19 = vld [vmem:[%s11102_s1 + $0x240] ss:$8 sps:$4 sm:$0xff]   ;;  %v7752_v21 = vld [vmem:[%s11102_s1 + $0x254] ss:$8 sps:$4 sm:$0xff]   ;;  %v7756_v23 = vld [vmem:[%s11102_s1 + $0x250] ss:$8 sps:$4 sm:$0xff]  }
  0x17   : > { %1095 = vmatpush1.bf16.msra.mxu1 %v7738_v11  ;;  %v7751_v20 = vld [vmem:[%s11102_s1 + $0x940] ss:$8 sps:$4 sm:$0xff]   ;;  %v7754_v22 = vld [vmem:[%s11102_s1 + $0x954] ss:$8 sps:$4 sm:$0xff]   ;;  %v7757_v24 = vld [vmem:[%s11102_s1 + $0x950] ss:$8 sps:$4 sm:$0xff]  }
  0x18   : > { %3574 = vmatpush1.bf16.msra.mxu0 %v7739_v12  ;;  %1096 = vmatprep.subr.bf16.mxu1 %v7740_v13  ;;  %v7758_v25 = vld [vmem:[%s11102_s1 + $0x264] ss:$8 sps:$4 sm:$0xff]   ;;  %v7762_v27 = vld [vmem:[%s11102_s1 + $0x260] ss:$8 sps:$4 sm:$0xff]   ;;  %v7764_v29 = vld [vmem:[%s11102_s1 + $0x274] ss:$8 sps:$4 sm:$0xff]  }
  0x19   : > { %3575 = vmatprep.subr.bf16.mxu0 %v7742_v14  ;;  %v7760_v26 = vld [vmem:[%s11102_s1 + $0x964] ss:$8 sps:$4 sm:$0xff]   ;;  %v7763_v28 = vld [vmem:[%s11102_s1 + $0x960] ss:$8 sps:$4 sm:$0xff]   ;;  %v7766_v30 = vld [vmem:[%s11102_s1 + $0x974] ss:$8 sps:$4 sm:$0xff]  }
  0x1a   : > { %v7768_v31 = vld [vmem:[%s11102_s1 + $0x270] ss:$8 sps:$4 sm:$0xff]   ;;  %v7770_v33 = vld [vmem:[%s11102_s1 + $0x284] ss:$8 sps:$4 sm:$0xff]   ;;  %v7774_v35 = vld [vmem:[%s11102_s1 + $0x280] ss:$8 sps:$4 sm:$0xff]  }
  0x1b   : > { %1097 = vmatpush1.bf16.msra.mxu1 %v7744_v15  ;;  %v7769_v32 = vld [vmem:[%s11102_s1 + $0x970] ss:$8 sps:$4 sm:$0xff]   ;;  %v7772_v34 = vld [vmem:[%s11102_s1 + $0x984] ss:$8 sps:$4 sm:$0xff]   ;;  %v7775_v36 = vld [vmem:[%s11102_s1 + $0x980] ss:$8 sps:$4 sm:$0xff]  }
  0x1c   : > { %3576 = vmatpush1.bf16.msra.mxu0 %v7745_v16  ;;  %1098 = vmatprep.subr.bf16.mxu1 %v7746_v17  ;;  %v7776_v37 = vld [vmem:[%s11102_s1 + $0x294] ss:$8 sps:$4 sm:$0xff]   ;;  %s11115_s13 = smov (!%p161_p3, %s6340_s13), 1  ;;  %v7780_v39 = vld [vmem:[%s11102_s1 + $0x290] ss:$8 sps:$4 sm:$0xff]   ;;  %vm243_vm0 = vcmask 1043456  }
  0x1d   : > { %3577 = vmatprep.subr.bf16.mxu0 %v7748_v18  ;;  %v7778_v38 = vld [vmem:[%s11102_s1 + $0x994] ss:$8 sps:$4 sm:$0xff]   ;;  %v7781_v40 = vld [vmem:[%s11102_s1 + $0x990] ss:$8 sps:$4 sm:$0xff]   ;;  %v7782_v41 = vld [vmem:[%s11102_s1 + $0x2a4] ss:$8 sps:$4 sm:$0xff]  }
  0x1e   : > { %s7439_s21 = sshll.u32 %s11115_s13, 8  ;;  %v7784_v42 = vld [vmem:[%s11102_s1 + $0x9a4] ss:$8 sps:$4 sm:$0xff]   ;;  %v7786_v43 = vld [vmem:[%s11102_s1 + $0x2a0] ss:$8 sps:$4 sm:$0xff]   ;;  %vm3123_vm1 = vcmask 1045504  }
  0x1f   : > { %1099 = vmatpush1.bf16.msra.mxu1 %v7750_v19  ;;  %v7787_v44 = vld [vmem:[%s11102_s1 + $0x9a0] ss:$8 sps:$4 sm:$0xff]   ;;  %s8802_s30 = scalar_lea.vmem %s11101_s0, %s7439_s21  ;;  %v7788_v45 = vld [vmem:[%s11102_s1 + $0x2b4] ss:$8 sps:$4 sm:$0xff]   ;;  %v7792_v47 = vld [vmem:[%s11102_s1 + $0x2b0] ss:$8 sps:$4 sm:$0xff]  }
  0x20   : > { %3578 = vmatpush1.bf16.msra.mxu0 %v7751_v20  ;;  %1100 = vmatprep.subr.bf16.mxu1 %v7752_v21  ;;  %v7790_v46 = vld [vmem:[%s11102_s1 + $0x9b4] ss:$8 sps:$4 sm:$0xff]   ;;  %v7793_v48 = vld [vmem:[%s11102_s1 + $0x9b0] ss:$8 sps:$4 sm:$0xff]   ;;  %v180_v49 = vld [vmem:[%s8802_s30 + $0x8] sm:$0xff]  ;;  %vm4443_vm4 = vcmask 1044480  }
  0x21   : > { %3579 = vmatprep.subr.bf16.mxu0 %v7754_v22  ;;  %v184_v50 = vld [vmem:[%s8802_s30 + $0x28] sm:$0xff]  ;;  %v245_v53 = vrot.slane %v180_v49, 4  ;;  %v182_v57 = vld [vmem:[%s8802_s30 + $0x18] sm:$0xff]  ;;  %v179_v9 = vld [vmem:[%s8802_s30] sm:$0xff]  ;;  %vm609_vm2 = vsmask.f32 7424 }
  0x22   : > { %v188_v51 = vld [vmem:[%s8802_s30 + $0x48] sm:$0xff]  ;;  %v250_v54 = vrot.slane %v184_v50, 4  ;;  %v186_v60 = vld [vmem:[%s8802_s30 + $0x38] sm:$0xff]  ;;  %v247_v61 = vrot.slane %v182_v57, 4  ;;  %v183_v12 = vld [vmem:[%s8802_s30 + $0x20] sm:$0xff]  ;;  %v244_v14 = vrot.slane %v179_v9, 4 }
  0x23   : > { %1101 = vmatpush1.bf16.msra.mxu1 %v7756_v23  ;;  %v8820_v52 = vld [vmem:[%s8802_s30 + $0x68] sm:$0xff]  ;;  %v258_v55 = vrot.slane %v188_v51, 4  ;;  %341 = vst [vmem:[#allocation2 + $0x8] sm:$0xf0] %v245_v53  ;;  %v190_v3 = vld [vmem:[%s8802_s30 + $0x58] sm:$0xff]  ;;  %v254_v5 = vrot.slane %v186_v60, 4 }
  0x24   : > { %3580 = vmatpush1.bf16.msra.mxu0 %v7757_v24  ;;  %1102 = vmatprep.subr.bf16.mxu1 %v7758_v25  ;;  %v266_v56 = vrot.slane %v8820_v52, 4  ;;  %v7794_v58 = vld [vmem:[%s11102_s1 + $0x2c4] ss:$8 sps:$4 sm:$0xff]   ;;  %v7798_v62 = vld [vmem:[%s11102_s1 + $0x2c0] ss:$8 sps:$4 sm:$0xff]   ;;  %v8838_v0 = vsel %vm243_vm0, %v245_v53, %v250_v54  ;;  %v8846_v4 = vld [vmem:[%s8802_s30 + $0x78] sm:$0xff] }
  0x25   : > { %3581 = vmatprep.subr.bf16.mxu0 %v7760_v26  ;;  %v7796_v59 = vld [vmem:[%s11102_s1 + $0x9c4] ss:$8 sps:$4 sm:$0xff]   ;;  %v7799_v63 = vld [vmem:[%s11102_s1 + $0x9c0] ss:$8 sps:$4 sm:$0xff]   ;;  %v259_v1 = vsel %vm243_vm0, %v250_v54, %v258_v55  ;;  %v7800_v6 = vld [vmem:[%s11102_s1 + $0x2d4] ss:$8 sps:$4 sm:$0xff]   ;;  %v8858_v11 = vsel %vm243_vm0, %v247_v61, %v254_v5 }
  0x26   : > { %v267_v2 = vsel %vm243_vm0, %v258_v55, %v266_v56  ;;  %345 = vst [vmem:[#allocation2 + $0x28] sm:$0xff] %v8838_v0  ;;  %349 = vst [vmem:[#allocation2 + $0x48] sm:$0xff] %v259_v1  ;;  %v262_v7 = vrot.slane %v190_v3, 4  ;;  %v270_v8 = vrot.slane %v8846_v4, 4  ;;  %v7802_v10 = vld [vmem:[%s11102_s1 + $0x9d4] ss:$8 sps:$4 sm:$0xff]  }
  0x27   : > { %1103 = vmatpush1.bf16.msra.mxu1 %v7762_v27  ;;  %353 = vst [vmem:[#allocation2 + $0x68] sm:$0xff] %v267_v2  ;;  %343 = vst [vmem:[#allocation2 + $0x18] sm:$0xf0] %v247_v61  ;;  %v187_v13 = vld [vmem:[%s8802_s30 + $0x40] sm:$0xff]  ;;  %v8862_v15 = vpack.c.bf16 %v267_v2, %v259_v1  ;;  %v248_v19 = vrot.slane %v183_v12, 4  ;;  %v181_v20 = vld [vmem:[%s8802_s30 + $0x10] sm:$0xff] }
  0x28   : > { %3582 = vmatpush1.bf16.msra.mxu0 %v7763_v28  ;;  %1104 = vmatprep.subr.bf16.mxu1 %v7764_v29  ;;  %v263_v16 = vsel %vm243_vm0, %v254_v5, %v262_v7  ;;  %v271_v17 = vsel %vm243_vm0, %v262_v7, %v270_v8  ;;  %347 = vst [vmem:[#allocation2 + $0x38] sm:$0xff] %v8858_v11  ;;  %v8870_v18 = vld [vmem:[%s8802_s30 + $0x60] sm:$0xff]  ;;  %v185_v21 = vld [vmem:[%s8802_s30 + $0x30] sm:$0xff]  ;;  %v256_v23 = vrot.slane %v187_v13, 4  ;;  %340 = vst [vmem:[#allocation2] sm:$0xf0] %v244_v14 }
  0x29   : > { %3583 = vmatprep.subr.bf16.mxu0 %v7766_v30  ;;  %v7804_v22 = vld [vmem:[%s11102_s1 + $0x2d0] ss:$8 sps:$4 sm:$0xff]   ;;  %351 = vst [vmem:[#allocation2 + $0x58] sm:$0xff] %v263_v16  ;;  %355 = vst [vmem:[#allocation2 + $0x78] sm:$0xff] %v271_v17  ;;  %v264_v24 = vrot.slane %v8870_v18, 4  ;;  %v246_v27 = vrot.slane %v181_v20, 4  ;;  %v8885_v29 = vpack.c.bf16 %v271_v17, %v263_v16  ;;  %v8888_v30 = vsel %vm243_vm0, %v244_v14, %v248_v19 }
  0x2a   : > { %v189_v25 = vld [vmem:[%s8802_s30 + $0x50] sm:$0xff]  ;;  %344 = vst [vmem:[#allocation2 + $0x20] sm:$0xff] %v8888_v30  ;;  %v7820_v3 = vld [vmem:[%s11102_s1 + $0x304] ss:$8 sps:$4 sm:$0xff]   ;;  %v7818_v20 = vld [vmem:[%s11102_s1 + $0x300] ss:$8 sps:$4 sm:$0xff]  }
  0x2b   : > { %1105 = vmatpush1.bf16.msra.mxu1 %v7768_v31  ;;  %v8880_v26 = vld [vmem:[%s8802_s30 + $0x70] sm:$0xff]  ;;  %v252_v31 = vrot.slane %v185_v21, 4  ;;  %342 = vst [vmem:[#allocation2 + $0x10] sm:$0xf0] %v246_v27  ;;  %v3134_v53 = vrot.slane %v8885_v29, 2  ;;  %vm1803_vm5 = vcmask 1046528  }
  0x2c   : > { %3584 = vmatpush1.bf16.msra.mxu0 %v7769_v32  ;;  %1106 = vmatprep.subr.bf16.mxu1 %v7770_v33  ;;  %v7805_v28 = vld [vmem:[%s11102_s1 + $0x9d0] ss:$8 sps:$4 sm:$0xff]   ;;  %v260_v32 = vrot.slane %v189_v25, 4  ;;  %v7806_v33 = vld [vmem:[%s11102_s1 + $0x2e4] ss:$8 sps:$4 sm:$0xff]   ;;  %s7440_s25 = sshll.u32 %s11115_s13, 7 }
  0x2d   : > { %3585 = vmatprep.subr.bf16.mxu0 %v7772_v34  ;;  %v489_v34 = vld [vmem:[#allocation2 + $0x8] sm:$0xfe]  ;;  %v7814_v54 = vld [vmem:[%s11102_s1 + $0x9f4] ss:$8 sps:$4 sm:$0xff]   ;;  %v7816_v61 = vld [vmem:[%s11102_s1 + $0x2f0] ss:$8 sps:$4 sm:$0xff]   ;;  %s11064_s28 = scalar_lea.vmem %s11104_s3, %s7440_s25 }
  0x2e   : > { %v7817_v1 = vld [vmem:[%s11102_s1 + $0x9f0] ss:$8 sps:$4 sm:$0xff]   ;;  %v7823_v14 = vld [vmem:[%s11102_s1 + $0xa04] ss:$8 sps:$4 sm:$0xff]   ;;  %v7821_v21 = vld [vmem:[%s11102_s1 + $0xa00] ss:$8 sps:$4 sm:$0xff]  }
  0x2f   : > { %1107 = vmatpush1.bf16.msra.mxu1 %v7774_v35  ;;  %v257_v35 = vsel %vm243_vm0, %v248_v19, %v256_v23  ;;  %v488_v60 = vld [vmem:[#allocation2] sm:$0xfe]  ;;  %v7826_v25 = vld [vmem:[%s11102_s1 + $0x314] ss:$8 sps:$4 sm:$0xff]   ;;  %vm3739_vm3 = vsmask.f32 5376 }
  0x30   : > { %3586 = vmatpush1.bf16.msra.mxu0 %v7775_v36  ;;  %1108 = vmatprep.subr.bf16.mxu1 %v7776_v37  ;;  %v265_v36 = vsel %vm243_vm0, %v256_v23, %v264_v24  ;;  %v268_v37 = vrot.slane %v8880_v26, 4  ;;  %348 = vst [vmem:[#allocation2 + $0x40] sm:$0xff] %v257_v35  ;;  %v7853_v52 = vld [vmem:[%s11102_s1 + $0xa54] ss:$8 sps:$4 sm:$0xff]   ;;  %vm5059_vm6 = vsmask.f32 4352 }
  0x31   : > { %3587 = vmatprep.subr.bf16.mxu0 %v7778_v38  ;;  %v7808_v38 = vld [vmem:[%s11102_s1 + $0x9e4] ss:$8 sps:$4 sm:$0xff]   ;;  %352 = vst [vmem:[#allocation2 + $0x60] sm:$0xff] %v265_v36  ;;  %vm2419_vm7 = vsmask.f32 6400 }
  0x33   : > { %1109 = vmatpush1.bf16.msra.mxu1 %v7780_v39  ;;  %v525_v39 = vpack.c.bf16 %v8838_v0, %v489_v34  ;;  %v7835_v34 = vld [vmem:[%s11102_s1 + $0xa24] ss:$8 sps:$4 sm:$0xff]  }
  0x34   : > { %3588 = vmatpush1.bf16.msra.mxu0 %v7781_v40  ;;  %1110 = vmatprep.subr.bf16.mxu1 %v7782_v41  ;;  %v8904_v40 = vshll.u32 %v8862_v15, 16  ;;  %v8907_v41 = vsel %vm243_vm0, %v246_v27, %v252_v31  ;;  %v7829_v27 = vld [vmem:[%s11102_s1 + $0xa14] ss:$8 sps:$4 sm:$0xff]  }
  0x35   : > { %3589 = vmatprep.subr.bf16.mxu0 %v7784_v42  ;;  %v7810_v42 = vld [vmem:[%s11102_s1 + $0x2e0] ss:$8 sps:$4 sm:$0xff]   ;;  %346 = vst [vmem:[#allocation2 + $0x30] sm:$0xff] %v8907_v41  ;;  %v623_v49 = vshrl.u32 %v525_v39, 16  ;;  %v625_v50 = vshll.u32 %v525_v39, 16 }
  0x36   : > { %v7841_v39 = vld [vmem:[%s11102_s1 + $0xa34] ss:$8 sps:$4 sm:$0xff]  }
  0x37   : > { %1111 = vmatpush1.bf16.msra.mxu1 %v7786_v43  ;;  %v7811_v43 = vld [vmem:[%s11102_s1 + $0x9e0] ss:$8 sps:$4 sm:$0xff]   ;;  %v627_v57 = vrot.slane %v625_v50, 1 }
  0x38   : > { %3590 = vmatpush1.bf16.msra.mxu0 %v7787_v44  ;;  %1112 = vmatprep.subr.bf16.mxu1 %v7788_v45  ;;  %v3037_v44 = vld [vmem:[#allocation2 + $0x18] sm:$0xf0]  ;;  %v8915_v45 = vpack.c.bf16 %v265_v36, %v257_v35  ;;  %v7830_v35 = vld [vmem:[%s11102_s1 + $0x320] ss:$8 sps:$4 sm:$0xff]  }
  0x39   : > { %3591 = vmatprep.subr.bf16.mxu0 %v7790_v46  ;;  %v261_v46 = vsel %vm243_vm0, %v252_v31, %v260_v32  ;;  %v3045_v51 = vpack.c.bf16 %v8858_v11, %v3037_v44  ;;  %v628_v2 = vor.u32 %v627_v57, %v623_v49  ;;  %v7824_v31 = vld [vmem:[%s11102_s1 + $0x310] ss:$8 sps:$4 sm:$0xff]   ;;  %v7833_v36 = vld [vmem:[%s11102_s1 + $0xa20] ss:$8 sps:$4 sm:$0xff]   ;;  %v7844_v44 = vld [vmem:[%s11102_s1 + $0x344] ss:$8 sps:$4 sm:$0xff]  }
  0x3a   : > { %350 = vst [vmem:[#allocation2 + $0x50] sm:$0xff] %v261_v46  ;;  %v7842_v50 = vld [vmem:[%s11102_s1 + $0x340] ss:$8 sps:$4 sm:$0xff]   ;;  %v198_v57 = vld [vmem:[%s8802_s30 + $0x98] sm:$0xff] }
  0x3b   : > { %1113 = vmatpush1.bf16.msra.mxu1 %v7792_v47  ;;  %v269_v47 = vsel %vm243_vm0, %v260_v32, %v268_v37  ;;  %v7827_v32 = vld [vmem:[%s11102_s1 + $0xa10] ss:$8 sps:$4 sm:$0xff]  }
  0x3c   : > { %3592 = vmatpush1.bf16.msra.mxu0 %v7793_v48  ;;  %1114 = vmatprep.subr.bf16.mxu1 %v7794_v58  ;;  %v7812_v48 = vld [vmem:[%s11102_s1 + $0x2f4] ss:$8 sps:$4 sm:$0xff]   ;;  %354 = vst [vmem:[#allocation2 + $0x70] sm:$0xff] %v269_v47  ;;  %v8930_v55 = vpack.c.bf16 %v269_v47, %v261_v46  ;;  %v632_v58 = vrot.slane %v8904_v40, 1  ;;  %v7847_v46 = vld [vmem:[%s11102_s1 + $0xa44] ss:$8 sps:$4 sm:$0xff]  }
  0x3d   : > { %3593 = vmatprep.subr.bf16.mxu0 %v7796_v59  ;;  %v3133_v59 = vrot.slane %v3045_v51, 2  ;;  %v196_v47 = vld [vmem:[%s8802_s30 + $0x88] sm:$0xff] }
  0x3e   : > { %v3131_v12 = vrot.slane %v8930_v55, 2  ;;  %v633_v13 = vsel %vm609_vm2, %v628_v2, %v632_v58  ;;  %v274_v49 = vrot.slane %v196_v47, 4  ;;  %v7845_v51 = vld [vmem:[%s11102_s1 + $0xa40] ss:$8 sps:$4 sm:$0xff]  }
  0x3f   : > { %1115 = vmatpush1.bf16.msra.mxu1 %v7798_v62  ;;  %v524_v62 = vpack.c.bf16 %v8888_v30, %v488_v60  ;;  %v3135_v5 = vsel %vm3123_vm1, %v3133_v59, %v3134_v53  ;;  %1122 = vmatprep.mubr.bf16.mxu1 %v633_v13  ;;  %v9028_v60 = vshrl.u32 %v8862_v15, 16  ;;  %v197_v13 = vld [vmem:[%s8802_s30 + $0x90] sm:$0xff] }
  0x40   : > { %3594 = vmatpush1.bf16.msra.mxu0 %v7799_v63  ;;  %1116 = vmatprep.subr.bf16.mxu1 %v7800_v6  ;;  %v8938_v63 = vshll.u32 %v8915_v45, 16  ;;  %v3036_v6 = vld [vmem:[#allocation2 + $0x10] sm:$0xf0]  ;;  %v275_v59 = vsel %vm243_vm0, %v266_v56, %v274_v49 }
  0x41   : > { %3595 = vmatprep.subr.bf16.mxu0 %v7802_v10  ;;  %v611_v7 = vshrl.u32 %v524_v62, 16  ;;  %v613_v9 = vshll.u32 %v524_v62, 16  ;;  %v3044_v10 = vpack.c.bf16 %v8907_v41, %v3036_v6  ;;  %3601 = vmatprep.mubr.bf16.mxu0 %v3135_v5  ;;  %v278_v62 = vrot.slane %v198_v57, 4  ;;  %357 = vst [vmem:[#allocation2 + $0x88] sm:$0xff] %v275_v59  ;;  %v210_v57 = vld [vmem:[%s8802_s30 + $0xf8] sm:$0xff] }
  0x42   : > { %v620_v17 = vrot.slane %v8938_v63, 1 }
  0x43   : > { %1117 = vmatpush1.bf16.msra.mxu1 %v7804_v22  ;;  %v615_v16 = vrot.slane %v613_v9, 1  ;;  %v3130_v19 = vrot.slane %v3044_v10, 2  ;;  %v279_v6 = vsel %vm243_vm0, %v270_v8, %v278_v62  ;;  %v9053_v10 = vshrl.u32 %v8915_v45, 16  ;;  %v7848_v8 = vld [vmem:[%s11102_s1 + $0x350] ss:$8 sps:$4 sm:$0xff]  }
  0x44   : > { %3596 = vmatpush1.bf16.msra.mxu0 %v7805_v28  ;;  %1118 = vmatprep.subr.bf16.mxu1 %v7806_v33  ;;  %v7832_v33 = vld [vmem:[%s11102_s1 + $0x324] ss:$8 sps:$4 sm:$0xff]   ;;  %359 = vst [vmem:[#allocation2 + $0x98] sm:$0xff] %v279_v6 }
  0x45   : > { %3597 = vmatprep.subr.bf16.mxu0 %v7808_v38  ;;  %v616_v22 = vor.u32 %v615_v16, %v611_v7  ;;  %v3132_v23 = vsel %vm3123_vm1, %v3130_v19, %v3131_v12  ;;  %v7838_v38 = vld [vmem:[%s11102_s1 + $0x334] ss:$8 sps:$4 sm:$0xff]   ;;  %v9050_v7 = vld [vmem:[%s8802_s30 + $0xa0] sm:$0xff] }
  0x46   : > { %v280_v19 = vrot.slane %v9050_v7, 4  ;;  %v7866_v7 = vld [vmem:[%s11102_s1 + $0x380] ss:$8 sps:$4 sm:$0xff]  }
  0x47   : > { %1119 = vmatpush1.bf16.msra.mxu1 %v7810_v42  ;;  %v621_v28 = vsel %vm609_vm2, %v616_v22, %v620_v17  ;;  %v7836_v42 = vld [vmem:[%s11102_s1 + $0x330] ss:$8 sps:$4 sm:$0xff]   ;;  %v668_v22 = vor.u32 %v9028_v60, %v632_v58  ;;  %v7859_v58 = vld [vmem:[%s11102_s1 + $0xa64] ss:$8 sps:$4 sm:$0xff]  }
  0x48   : > { %3598 = vmatpush1.bf16.msra.mxu0 %v7811_v43  ;;  %1120 = vmatprep.subr.bf16.mxu1 %v7812_v48  ;;  %v7839_v43 = vld [vmem:[%s11102_s1 + $0xa30] ss:$8 sps:$4 sm:$0xff]   ;;  %v9014_v48 = vld [vmem:[%s8802_s30 + $0xa8] sm:$0xff] }
  0x49   : > { %3599 = vmatprep.subr.bf16.mxu0 %v7814_v54  ;;  %v282_v54 = vrot.slane %v9014_v48, 4 }
  0x4b   : > { %1121 = vmatpush1.bf16.msra.mxu1 %v7816_v61  ;;  %v9031_v61 = vld [vmem:[%s8802_s30 + $0xb8] sm:$0xff]  ;;  %v283_v56 = vsel %vm243_vm0, %v274_v49, %v282_v54 }
  0x4c   : > { %3600 = vmatpush1.bf16.msra.mxu0 %v7817_v1  ;;  %1163 = vmatprep.subr.bf16.mxu1 %v7820_v3  ;;  %v7850_v1 = vld [vmem:[%s11102_s1 + $0x354] ss:$8 sps:$4 sm:$0xff]   ;;  %v286_v2 = vrot.slane %v9031_v61, 4  ;;  %v195_v3 = vld [vmem:[%s8802_s30 + $0x80] sm:$0xff]  ;;  %361 = vst [vmem:[#allocation2 + $0xa8] sm:$0xff] %v283_v56  ;;  %v9044_v5 = vpack.c.bf16 %v283_v56, %v275_v59 }
  0x4d   : > { %4192 = vmatprep.subr.bf16.mxu0 %v7823_v14  ;;  %v272_v9 = vrot.slane %v195_v3, 4  ;;  %v9057_v14 = vld [vmem:[%s8802_s30 + $0xb0] sm:$0xff] }
  0x4e   : > { %1123 = vmatmul.mubr.bf16.vlgmr.msra.gmra.mrb[0].mxu1 %v621_v28  ;;  %11108 = vst [vmem:[#allocation3_spill] sm:$0xff] %v9044_v5  ;;  %v287_v16 = vsel %vm243_vm0, %v278_v62, %v286_v2  ;;  %v284_v4 = vrot.slane %v9057_v14, 4  ;;  %v7856_v28 = vld [vmem:[%s11102_s1 + $0x364] ss:$8 sps:$4 sm:$0xff]   ;;  %v7865_v59 = vld [vmem:[%s11102_s1 + $0xa74] ss:$8 sps:$4 sm:$0xff]  }
  0x4f   : > { %3602 = vmatmul.mubr.bf16.vlgmr.msra.gmra.mrb[0].mxu0 %v3132_v23  ;;  %1164 = vmatpush1.bf16.msra.mxu1 %v7818_v20  ;;  %v276_v20 = vrot.slane %v197_v13, 4  ;;  %v9074_v23 = vshll.u32 %v9044_v5, 16  ;;  %363 = vst [vmem:[#allocation2 + $0xb8] sm:$0xff] %v287_v16  ;;  %v7860_v56 = vld [vmem:[%s11102_s1 + $0x370] ss:$8 sps:$4 sm:$0xff]   ;;  %v207_v13 = vld [vmem:[%s8802_s30 + $0xe0] sm:$0xff] }
  0x50   : > { %4193 = vmatpush1.bf16.msra.mxu0 %v7821_v21  ;;  %1165 = vmatprep.subr.bf16.mxu1 %v7826_v25  ;;  %v7851_v21 = vld [vmem:[%s11102_s1 + $0xa50] ss:$8 sps:$4 sm:$0xff]   ;;  %v9076_v25 = vpack.c.bf16 %v287_v16, %v279_v6  ;;  %v302_v6 = vrot.slane %v210_v57, 4 }
  0x51   : > { %4194 = vmatprep.subr.bf16.mxu0 %v7829_v27  ;;  %v273_v27 = vsel %vm243_vm0, %v264_v24, %v272_v9  ;;  %v277_v18 = vsel %vm243_vm0, %v268_v37, %v276_v20  ;;  %v285_v24 = vsel %vm243_vm0, %v276_v20, %v284_v4  ;;  %v208_v37 = vld [vmem:[%s8802_s30 + $0xe8] sm:$0xff]  ;;  %v205_v16 = vld [vmem:[%s8802_s30 + $0xd0] sm:$0xff] }
  0x52   : > { %356 = vst [vmem:[#allocation2 + $0x80] sm:$0xff] %v273_v27  ;;  %358 = vst [vmem:[#allocation2 + $0x90] sm:$0xff] %v277_v18  ;;  %v9104_v26 = vpack.c.bf16 %v285_v24, %v277_v18  ;;  %v7871_v18 = vld [vmem:[%s11102_s1 + $0xa84] ss:$8 sps:$4 sm:$0xff]  }
  0x53   : > { %1166 = vmatpush1.bf16.msra.mxu1 %v7824_v31  ;;  %v281_v31 = vsel %vm243_vm0, %v272_v9, %v280_v19  ;;  %362 = vst [vmem:[#allocation2 + $0xb0] sm:$0xff] %v285_v24  ;;  %v203_v9 = vld [vmem:[%s8802_s30 + $0xc0] sm:$0xff]  ;;  %375 = vst [vmem:[#allocation2 + $0x118] sm:$0xf] %v302_v6 }
  0x54   : > { %4195 = vmatpush1.bf16.msra.mxu0 %v7827_v32  ;;  %1167 = vmatprep.subr.bf16.mxu1 %v7832_v33  ;;  %v204_v32 = vld [vmem:[%s8802_s30 + $0xc8] sm:$0xff]  ;;  %v9098_v33 = vshrl.u32 %v9044_v5, 16  ;;  %360 = vst [vmem:[#allocation2 + $0xa0] sm:$0xff] %v281_v31 }
  0x55   : > { %4196 = vmatprep.subr.bf16.mxu0 %v7835_v34  ;;  %v672_v34 = vrot.slane %v9074_v23, 1 }
  0x57   : > { %1168 = vmatpush1.bf16.msra.mxu1 %v7830_v35  ;;  %v3142_v35 = vrot.slane %v9076_v25, 2 }
  0x58   : > { %4197 = vmatpush1.bf16.msra.mxu0 %v7833_v36  ;;  %1169 = vmatprep.subr.bf16.mxu1 %v7838_v38  ;;  %v9102_v36 = vpack.c.bf16 %v281_v31, %v273_v27  ;;  %v7854_v38 = vld [vmem:[%s11102_s1 + $0x360] ss:$8 sps:$4 sm:$0xff]   ;;  %v209_v27 = vld [vmem:[%s8802_s30 + $0xf0] sm:$0xff]  ;;  %v292_v31 = vrot.slane %v205_v16, 4  ;;  %v7880_v16 = vld [vmem:[%s11102_s1 + $0x3a4] ss:$8 sps:$4 sm:$0xff]  }
  0x59   : > { %4198 = vmatprep.subr.bf16.mxu0 %v7841_v39  ;;  %v7857_v39 = vld [vmem:[%s11102_s1 + $0xa60] ss:$8 sps:$4 sm:$0xff]   ;;  %v3143_v47 = vsel %vm3123_vm1, %v3134_v53, %v3142_v35 }
  0x5a   : > { %11109 = vst [vmem:[#allocation4_spill] sm:$0xff] %v9102_v36  ;;  %v9123_v49 = vshll.u32 %v9102_v36, 16  ;;  %3611 = vmatprep.mubr.bf16.mxu0 %v3143_v47 }
  0x5b   : > { %1170 = vmatpush1.bf16.msra.mxu1 %v7836_v42  ;;  %v660_v42 = vor.u32 %v9053_v10, %v620_v17  ;;  %v7862_v17 = vld [vmem:[%s11102_s1 + $0x374] ss:$8 sps:$4 sm:$0xff]  }
  0x5c   : > { %4199 = vmatpush1.bf16.msra.mxu0 %v7839_v43  ;;  %1171 = vmatprep.subr.bf16.mxu1 %v7844_v44  ;;  %v290_v43 = vrot.slane %v204_v32, 4  ;;  %v298_v44 = vrot.slane %v208_v37, 4  ;;  %v664_v3 = vrot.slane %v9123_v49, 1  ;;  %v300_v37 = vrot.slane %v209_v27, 4 }
  0x5d   : > { %4200 = vmatprep.subr.bf16.mxu0 %v7847_v46  ;;  %v673_v46 = vsel %vm609_vm2, %v668_v22, %v672_v34  ;;  %v9157_v22 = vshrl.u32 %v9102_v36, 16 }
  0x5e   : > { %v291_v53 = vsel %vm243_vm0, %v282_v54, %v290_v43  ;;  %v299_v62 = vsel %vm243_vm0, %v290_v43, %v298_v44  ;;  %373 = vst [vmem:[#allocation2 + $0x108] sm:$0xf] %v298_v44  ;;  %1132 = vmatprep.mubr.bf16.mxu1 %v673_v46  ;;  %v665_v61 = vsel %vm609_vm2, %v660_v42, %v664_v3  ;;  %374 = vst [vmem:[#allocation2 + $0x110] sm:$0xf] %v300_v37 }
  0x5f   : > { %1172 = vmatpush1.bf16.msra.mxu1 %v7842_v50  ;;  %v3140_v50 = vrot.slane %v9104_v26, 2  ;;  %365 = vst [vmem:[#allocation2 + $0xc8] sm:$0xff] %v291_v53  ;;  %369 = vst [vmem:[#allocation2 + $0xe8] sm:$0xff] %v299_v62  ;;  %v9148_v54 = vpack.c.bf16 %v299_v62, %v291_v53  ;;  %v293_v42 = vsel %vm243_vm0, %v284_v4, %v292_v31 }
  0x60   : > { %4201 = vmatpush1.bf16.msra.mxu0 %v7845_v51  ;;  %1173 = vmatprep.subr.bf16.mxu1 %v7850_v1  ;;  %v206_v51 = vld [vmem:[%s8802_s30 + $0xd8] sm:$0xff]  ;;  %v700_v1 = vor.u32 %v9098_v33, %v672_v34  ;;  %v301_v44 = vsel %vm243_vm0, %v292_v31, %v300_v37  ;;  %366 = vst [vmem:[#allocation2 + $0xd0] sm:$0xff] %v293_v42  ;;  %v3760_v37 = vrot.slane %v9028_v60, 2 }
  0x61   : > { %4202 = vmatprep.subr.bf16.mxu0 %v7853_v52  ;;  %v294_v52 = vrot.slane %v206_v51, 4  ;;  %v3141_v48 = vsel %vm3123_vm1, %v3131_v12, %v3140_v50  ;;  %11110 = vst [vmem:[#allocation5_spill] sm:$0xff] %v9148_v54  ;;  %v7863_v12 = vld [vmem:[%s11102_s1 + $0xa70] ss:$8 sps:$4 sm:$0xff]   ;;  %1133 = vmatmul.mubr.bf16.gmra.mrb[4].mxu1 %v665_v61  ;;  %v9195_v46 = vshrl.u32 %v9148_v54, 16  ;;  %v692_v4 = vor.u32 %v9157_v22, %v664_v3 }
  0x62   : > { %3612 = vmatmul.mubr.bf16.gmra.mrb[4].mxu0 %v3141_v48  ;;  %370 = vst [vmem:[#allocation2 + $0xf0] sm:$0xff] %v301_v44  ;;  %v9202_v51 = vpack.c.bf16 %v301_v44, %v293_v42  ;;  %v3659_v44 = vld [vmem:[#allocation2 + $0x8] sm:$0xe0] }
  0x63   : > { %1174 = vmatpush1.bf16.msra.mxu1 %v7848_v8  ;;  %v295_v20 = vsel %vm243_vm0, %v286_v2, %v294_v52  ;;  %v288_v8 = vrot.slane %v203_v9, 4  ;;  %v9168_v2 = vshll.u32 %v9148_v54, 16  ;;  %v3041_v9 = vld [vmem:[#allocation2 + $0x118] sm:$0xf] }
  0x64   : > { %4203 = vmatpush1.bf16.msra.mxu0 %v7851_v21  ;;  %1175 = vmatprep.subr.bf16.mxu1 %v7856_v28  ;;  %v296_v21 = vrot.slane %v207_v13, 4  ;;  %v7868_v28 = vld [vmem:[%s11102_s1 + $0x384] ss:$8 sps:$4 sm:$0xff]   ;;  %367 = vst [vmem:[#allocation2 + $0xd8] sm:$0xff] %v295_v20  ;;  %v3148_v48 = vrot.slane %v9202_v51, 2  ;;  %v3049_v27 = vpack.c.bf16 %v3041_v9, %v3041_v9 }
  0x65   : > { %4204 = vmatprep.subr.bf16.mxu0 %v7859_v58  ;;  %v303_v58 = vsel %vm243_vm0, %v294_v52, %v302_v6  ;;  %v289_v32 = vsel %vm243_vm0, %v280_v19, %v288_v8  ;;  %v7869_v19 = vld [vmem:[%s11102_s1 + $0xa80] ss:$8 sps:$4 sm:$0xff]   ;;  %v7872_v52 = vld [vmem:[%s11102_s1 + $0x390] ss:$8 sps:$4 sm:$0xff]   ;;  %v7892_v9 = vld [vmem:[%s11102_s1 + $0x3c4] ss:$8 sps:$4 sm:$0xff]  }
  0x66   : > { %371 = vst [vmem:[#allocation2 + $0xf8] sm:$0xff] %v303_v58  ;;  %v9174_v24 = vpack.c.bf16 %v303_v58, %v295_v20  ;;  %v297_v34 = vsel %vm243_vm0, %v288_v8, %v296_v21  ;;  %372 = vst [vmem:[#allocation2 + $0x100] sm:$0xf] %v296_v21  ;;  %v521_v57 = vld [vmem:[#allocation2 + $0x108] sm:$0x1]  ;;  %v3149_v21 = vsel %vm3123_vm1, %v3140_v50, %v3148_v48  ;;  %v3761_v50 = vrot.slane %v8904_v40, 3 }
  0x67   : > { %1176 = vmatpush1.bf16.msra.mxu1 %v7854_v38  ;;  %v704_v38 = vrot.slane %v9168_v2, 1  ;;  %364 = vst [vmem:[#allocation2 + $0xc0] sm:$0xff] %v289_v32  ;;  %368 = vst [vmem:[#allocation2 + $0xe0] sm:$0xff] %v297_v34  ;;  %v541_v62 = vpack.c.bf16 %v521_v57, %v521_v57  ;;  %v7883_v20 = vld [vmem:[%s11102_s1 + $0xaa4] ss:$8 sps:$4 sm:$0xff]  }
  0x68   : > { %4205 = vmatpush1.bf16.msra.mxu0 %v7857_v39  ;;  %1177 = vmatprep.subr.bf16.mxu1 %v7862_v17  ;;  %v9181_v39 = vpack.c.bf16 %v297_v34, %v289_v32  ;;  %v3150_v43 = vrot.slane %v9174_v24, 2  ;;  %v7874_v17 = vld [vmem:[%s11102_s1 + $0x394] ss:$8 sps:$4 sm:$0xff]   ;;  %v3040_v32 = vld [vmem:[#allocation2 + $0x110] sm:$0xf] }
  0x69   : > { %4206 = vmatprep.subr.bf16.mxu0 %v7865_v59  ;;  %v705_v14 = vsel %vm609_vm2, %v700_v1, %v704_v38  ;;  %v7877_v59 = vld [vmem:[%s11102_s1 + $0xa94] ss:$8 sps:$4 sm:$0xff]   ;;  %v9214_v1 = vshll.u32 %v8885_v29, 16  ;;  %v734_v6 = vshll.u32 %v541_v62, 16 }
  0x6a   : > { %v9200_v47 = vshll.u32 %v9181_v39, 16  ;;  %v3151_v53 = vsel %vm3123_vm1, %v3142_v35, %v3150_v43  ;;  %1142 = vmatprep.mubr.bf16.mxu1 %v705_v14  ;;  %v732_v35 = vor.u32 %v9195_v46, %v704_v38  ;;  %v9226_v13 = vshrl.u32 %v9181_v39, 16  ;;  %v491_v58 = vld [vmem:[#allocation2 + $0x18] sm:$0xfe]  ;;  %v7878_v14 = vld [vmem:[%s11102_s1 + $0x3a0] ss:$8 sps:$4 sm:$0xff]  }
  0x6b   : > { %1178 = vmatpush1.bf16.msra.mxu1 %v7860_v56  ;;  %v7875_v56 = vld [vmem:[%s11102_s1 + $0xa90] ss:$8 sps:$4 sm:$0xff]   ;;  %3621 = vmatprep.mubr.bf16.mxu0 %v3151_v53  ;;  %v656_v31 = vrot.slane %v9214_v1, 1  ;;  %v527_v34 = vpack.c.bf16 %v8858_v11, %v491_v58  ;;  %v7881_v11 = vld [vmem:[%s11102_s1 + $0xaa0] ss:$8 sps:$4 sm:$0xff]  }
  0x6c   : > { %4207 = vmatpush1.bf16.msra.mxu0 %v7863_v12  ;;  %1179 = vmatprep.subr.bf16.mxu1 %v7868_v28  ;;  %v696_v3 = vrot.slane %v9200_v47, 1  ;;  %v736_v28 = vrot.slane %v734_v6, 1  ;;  %v7886_v53 = vld [vmem:[%s11102_s1 + $0x3b4] ss:$8 sps:$4 sm:$0xff]   ;;  %v7887_v6 = vld [vmem:[%s11102_s1 + $0xab0] ss:$8 sps:$4 sm:$0xff]  }
  0x6d   : > { %4208 = vmatprep.subr.bf16.mxu0 %v7871_v18  ;;  %v520_v12 = vld [vmem:[#allocation2 + $0x100] sm:$0x1]  ;;  %3622 = vmatmul.mubr.bf16.gmra.mrb[8].mxu0 %v3149_v21  ;;  %v3158_v18 = vrot.slane %v3049_v27, 2  ;;  %v647_v57 = vshrl.u32 %v527_v34, 16  ;;  %v7889_v62 = vld [vmem:[%s11102_s1 + $0xab4] ss:$8 sps:$4 sm:$0xff]  }
  0x6e   : > { %v697_v8 = vsel %vm609_vm2, %v692_v4, %v696_v3  ;;  %v540_v61 = vpack.c.bf16 %v520_v12, %v520_v12  ;;  %v737_v38 = vsel %vm609_vm2, %v732_v35, %v736_v28  ;;  %v724_v42 = vor.u32 %v9226_v13, %v696_v3  ;;  %v3658_v58 = vld [vmem:[#allocation2] sm:$0xe0] }
  0x6f   : > { %1180 = vmatpush1.bf16.msra.mxu1 %v7866_v7  ;;  %v3159_v4 = vsel %vm3123_vm1, %v3150_v43, %v3158_v18  ;;  %v7884_v43 = vld [vmem:[%s11102_s1 + $0x3b0] ss:$8 sps:$4 sm:$0xff]   ;;  %v9272_v28 = vor.u32 %v3761_v50, %v3760_v37 }
  0x70   : > { %4209 = vmatpush1.bf16.msra.mxu0 %v7869_v19  ;;  %1181 = vmatprep.subr.bf16.mxu1 %v7874_v17  ;;  %v726_v7 = vshll.u32 %v540_v61, 16  ;;  %v3048_v19 = vpack.c.bf16 %v3040_v32, %v3040_v32  ;;  %v649_v17 = vshll.u32 %v527_v34, 16  ;;  %v490_v61 = vld [vmem:[#allocation2 + $0x10] sm:$0xfe]  ;;  %v7890_v32 = vld [vmem:[%s11102_s1 + $0x3c0] ss:$8 sps:$4 sm:$0xff]  }
  0x71   : > { %4210 = vmatprep.subr.bf16.mxu0 %v7877_v59  ;;  %1143 = vmatmul.mubr.bf16.gmra.mrb[8].mxu1 %v697_v8  ;;  %v3667_v59 = vpack.c.bf16 %v8838_v0, %v3659_v44  ;;  %v7895_v8 = vld [vmem:[%s11102_s1 + $0xac4] ss:$8 sps:$4 sm:$0xff]   ;;  %v7893_v34 = vld [vmem:[%s11102_s1 + $0xac0] ss:$8 sps:$4 sm:$0xff]   ;;  %v526_v50 = vpack.c.bf16 %v8907_v41, %v490_v61  ;;  %v7899_v41 = vld [vmem:[%s11102_s1 + $0xad0] ss:$8 sps:$4 sm:$0xff]  }
  0x72   : > { %1152 = vmatprep.mubr.bf16.mxu1 %v737_v38  ;;  %3631 = vmatprep.mubr.bf16.mxu0 %v3159_v4  ;;  %v651_v3 = vrot.slane %v649_v17, 1  ;;  %v3666_v38 = vpack.c.bf16 %v8888_v30, %v3658_v58  ;;  %v7907_v4 = vld [vmem:[%s11102_s1 + $0xae4] ss:$8 sps:$4 sm:$0xff]   ;;  %v9309_v17 = vshll.u32 %v8930_v55, 16 }
  0x73   : > { %1182 = vmatpush1.bf16.msra.mxu1 %v7872_v52  ;;  %v728_v52 = vrot.slane %v726_v7, 1  ;;  %v3753_v0 = vshrl.u32 %v3667_v59, 16  ;;  %v3756_v35 = vshll.u32 %v3667_v59, 16  ;;  %v7901_v7 = vld [vmem:[%s11102_s1 + $0xad4] ss:$8 sps:$4 sm:$0xff]   ;;  %v637_v30 = vshll.u32 %v526_v50, 16 }
  0x74   : > { %4211 = vmatpush1.bf16.msra.mxu0 %v7875_v56  ;;  %1183 = vmatprep.subr.bf16.mxu1 %v7880_v16  ;;  %v3156_v56 = vrot.slane %v3048_v19, 2  ;;  %v652_v21 = vor.u32 %v651_v3, %v647_v57  ;;  %v7896_v19 = vld [vmem:[%s11102_s1 + $0x3d0] ss:$8 sps:$4 sm:$0xff]   ;;  %v3741_v44 = vshrl.u32 %v3666_v38, 16  ;;  %v7902_v57 = vld [vmem:[%s11102_s1 + $0x3e0] ss:$8 sps:$4 sm:$0xff]  }
  0x75   : > { %4212 = vmatprep.subr.bf16.mxu0 %v7883_v20  ;;  %v729_v16 = vsel %vm609_vm2, %v724_v42, %v728_v52  ;;  %v3755_v27 = vrot.slane %v3753_v0, 2  ;;  %v3758_v12 = vrot.slane %v3756_v35, 3  ;;  %v7898_v42 = vld [vmem:[%s11102_s1 + $0x3d4] ss:$8 sps:$4 sm:$0xff]   ;;  %v7905_v59 = vld [vmem:[%s11102_s1 + $0xae0] ss:$8 sps:$4 sm:$0xff]  }
  0x76   : > { %v3157_v20 = vsel %vm3123_vm1, %v3148_v48, %v3156_v56  ;;  %v657_v48 = vsel %vm609_vm2, %v652_v21, %v656_v31  ;;  %v635_v52 = vshrl.u32 %v526_v50, 16  ;;  %v639_v56 = vrot.slane %v637_v30, 1  ;;  %v7910_v0 = vld [vmem:[%s11102_s1 + $0x3f4] ss:$8 sps:$4 sm:$0xff]   ;;  %v7911_v21 = vld [vmem:[%s11102_s1 + $0xaf0] ss:$8 sps:$4 sm:$0xff]  }
  0x77   : > { %1184 = vmatpush1.bf16.msra.mxu1 %v7878_v14  ;;  %3632 = vmatmul.mubr.bf16.gmra.mrb[12].mxu0 %v3157_v20  ;;  %v3759_v18 = vor.u32 %v3758_v12, %v3755_v27  ;;  %v3744_v14 = vshll.u32 %v3666_v38, 16  ;;  %v7913_v35 = vld [vmem:[%s11102_s1 + $0xaf4] ss:$8 sps:$4 sm:$0xff]   ;;  %v3792_v20 = vrot.slane %v9098_v33, 2  ;;  %v644_v12 = vrot.slane %v9309_v17, 1 }
  0x78   : > { %4213 = vmatpush1.bf16.msra.mxu0 %v7881_v11  ;;  %1185 = vmatprep.subr.bf16.mxu1 %v7886_v53  ;;  %v7904_v11 = vld [vmem:[%s11102_s1 + $0x3e4] ss:$8 sps:$4 sm:$0xff]   ;;  %v3748_v53 = vrot.slane %v9053_v10, 2  ;;  %v640_v27 = vor.u32 %v639_v56, %v635_v52  ;;  %v9351_v38 = vshrl.u32 %v8930_v55, 16  ;;  %v3789_v30 = vrot.slane %v9123_v49, 3 }
  0x79   : > { %4214 = vmatprep.subr.bf16.mxu0 %v7889_v62  ;;  %1153 = vmatmul.mubr.bf16.gmra.mrb[12].mxu1 %v729_v16  ;;  %v3763_v37 = vsel %vm3739_vm3, %v3759_v18, %v9272_v28  ;;  %v3749_v62 = vrot.slane %v8938_v63, 3  ;;  %v3746_v3 = vrot.slane %v3744_v14, 3  ;;  %v7908_v16 = vld [vmem:[%s11102_s1 + $0x3f0] ss:$8 sps:$4 sm:$0xff]   ;;  %v7919_v18 = vld [vmem:[%s11102_s1 + $0xb04] ss:$8 sps:$4 sm:$0xff]  }
  0x7a   : > { %1195 = vmatprep.mubr.bf16.mxu1 %v657_v48  ;;  %4224 = vmatprep.mubr.bf16.mxu0 %v3763_v37  ;;  %v7916_v48 = vld [vmem:[%s11102_s1 + $0x4] ss:$8 sps:$4 sm:$0xff]   ;;  %v7914_v37 = vld [vmem:[%s11102_s1] ss:$8 sps:$4 sm:$0xff]   ;;  %v7925_v14 = vld [vmem:[%s11102_s1 + $0xb14] ss:$8 sps:$4 sm:$0xff]  }
  0x7b   : > { %1186 = vmatpush1.bf16.msra.mxu1 %v7884_v43  ;;  %v3743_v43 = vrot.slane %v3741_v44, 2  ;;  %v3750_v58 = vor.u32 %v3749_v62, %v3748_v53  ;;  %v7922_v44 = vld [vmem:[%s11102_s1 + $0x14] ss:$8 sps:$4 sm:$0xff]   ;;  %v9379_v53 = vshll.u32 %v9174_v24, 16  ;;  %v3808_v62 = vrot.slane %v9195_v46, 2 }
  0x7c   : > { %4215 = vmatpush1.bf16.msra.mxu0 %v7887_v6  ;;  %1187 = vmatprep.subr.bf16.mxu1 %v7892_v9  ;;  %v9323_v6 = vshrl.u32 %v8885_v29, 16  ;;  %v9326_v9 = vshll.u32 %v9076_v25, 16  ;;  %v3809_v52 = vrot.slane %v9168_v2, 3  ;;  %v7923_v56 = vld [vmem:[%s11102_s1 + $0xb10] ss:$8 sps:$4 sm:$0xff]  }
  0x7d   : > { %4216 = vmatprep.subr.bf16.mxu0 %v7895_v8  ;;  %v3793_v8 = vrot.slane %v9074_v23, 3  ;;  %v3747_v61 = vor.u32 %v3746_v3, %v3743_v43  ;;  %v676_v43 = vor.u32 %v9351_v38, %v644_v12 }
  0x7f   : > { %1188 = vmatpush1.bf16.msra.mxu1 %v7890_v32  ;;  %v684_v32 = vor.u32 %v9323_v6, %v656_v31  ;;  %v3794_v50 = vor.u32 %v3793_v8, %v3792_v20  ;;  %v645_v31 = vsel %vm609_vm2, %v640_v27, %v644_v12  ;;  %v720_v8 = vrot.slane %v9379_v53, 1 }
  0x80   : > { %4217 = vmatpush1.bf16.msra.mxu0 %v7893_v34  ;;  %1189 = vmatprep.subr.bf16.mxu1 %v7898_v42  ;;  %v688_v34 = vrot.slane %v9326_v9, 1  ;;  %v9354_v42 = vshll.u32 %v9104_v26, 16  ;;  %v9402_v27 = vshrl.u32 %v9104_v26, 16  ;;  %v9405_v12 = vshll.u32 %v9202_v51, 16 }
  0x81   : > { %4218 = vmatprep.subr.bf16.mxu0 %v7901_v7  ;;  %v7917_v7 = vld [vmem:[%s11102_s1 + $0xb00] ss:$8 sps:$4 sm:$0xff]  }
  0x82   : > { %v680_v3 = vrot.slane %v9354_v42, 1 }
  0x83   : > { %1190 = vmatpush1.bf16.msra.mxu1 %v7896_v19  ;;  %v3751_v19 = vsel %vm3739_vm3, %v3747_v61, %v3750_v58  ;;  %v7929_v61 = vld [vmem:[%s11102_s1 + $0xb20] ss:$8 sps:$4 sm:$0xff]  }
  0x84   : > { %4219 = vmatpush1.bf16.msra.mxu0 %v7899_v41  ;;  %1191 = vmatprep.subr.bf16.mxu1 %v7904_v11  ;;  %v3788_v41 = vrot.slane %v9157_v22, 2  ;;  %v7920_v11 = vld [vmem:[%s11102_s1 + $0x10] ss:$8 sps:$4 sm:$0xff]  }
  0x85   : > { %4220 = vmatprep.subr.bf16.mxu0 %v7907_v4  ;;  %v689_v4 = vsel %vm609_vm2, %v684_v32, %v688_v34  ;;  %v3804_v32 = vrot.slane %v9226_v13, 2 }
  0x87   : > { %1192 = vmatpush1.bf16.msra.mxu1 %v7902_v57  ;;  %v9374_v57 = vshrl.u32 %v9076_v25, 16 }
  0x88   : > { %4221 = vmatpush1.bf16.msra.mxu0 %v7905_v59  ;;  %1193 = vmatprep.subr.bf16.mxu1 %v7910_v0  ;;  %v3795_v59 = vsel %vm3739_vm3, %v9272_v28, %v3794_v50  ;;  %v3790_v0 = vor.u32 %v3789_v30, %v3788_v41  ;;  %v7928_v28 = vld [vmem:[%s11102_s1 + $0x24] ss:$8 sps:$4 sm:$0xff]   ;;  %v708_v41 = vor.u32 %v9402_v27, %v680_v3  ;;  %v712_v30 = vrot.slane %v9405_v12, 1 }
  0x89   : > { %4222 = vmatprep.subr.bf16.mxu0 %v7913_v35  ;;  %v7931_v35 = vld [vmem:[%s11102_s1 + $0xb24] ss:$8 sps:$4 sm:$0xff]   ;;  %v716_v20 = vor.u32 %v9374_v57, %v688_v34  ;;  %v3805_v34 = vrot.slane %v9200_v47, 3 }
  0x8b   : > { %1194 = vmatpush1.bf16.msra.mxu1 %v7908_v16  ;;  %v7926_v16 = vld [vmem:[%s11102_s1 + $0x20] ss:$8 sps:$4 sm:$0xff]  }
  0x8c   : > { %4223 = vmatpush1.bf16.msra.mxu0 %v7911_v21  ;;  %1556 = vmatprep.subr.bf16.mxu1 %v7916_v48  ;;  %v9399_v21 = vor.u32 %v3809_v52, %v3808_v62  ;;  %v681_v48 = vsel %vm609_vm2, %v676_v43, %v680_v3  ;;  %v7938_v62 = vld [vmem:[%s11102_s1 + $0x40] ss:$8 sps:$4 sm:$0xff]   ;;  %v713_v43 = vsel %vm609_vm2, %v708_v41, %v712_v30 }
  0x8d   : > { %4265 = vmatprep.subr.bf16.mxu0 %v7919_v18  ;;  %v3791_v18 = vsel %vm3739_vm3, %v3750_v58, %v3790_v0  ;;  %v721_v58 = vsel %vm609_vm2, %v716_v20, %v720_v8  ;;  %v3663_v3 = vld [vmem:[#allocation2 + $0x108] sm:$0x1f] }
  0x8e   : > { %1196 = vmatmul.mubr.bf16.vlgmr.msra.gmra.mrb[0].mxu1 %v645_v31  ;;  %v7932_v31 = vld [vmem:[%s11102_s1 + $0x30] ss:$8 sps:$4 sm:$0xff]  }
  0x8f   : > { %4225 = vmatmul.mubr.bf16.vlgmr.msra.gmra.mrb[0].mxu0 %v3751_v19  ;;  %1557 = vmatpush1.bf16.msra.mxu1 %v7914_v37  ;;  %v7934_v37 = vld [vmem:[%s11102_s1 + $0x34] ss:$8 sps:$4 sm:$0xff]   ;;  %v3811_v19 = vsel %vm3739_vm3, %v3794_v50, %v9399_v21  ;;  %v7940_v50 = vld [vmem:[%s11102_s1 + $0x44] ss:$8 sps:$4 sm:$0xff]  }
  0x90   : > { %4266 = vmatpush1.bf16.msra.mxu0 %v7917_v7  ;;  %1558 = vmatprep.subr.bf16.mxu1 %v7922_v44  ;;  %v7937_v7 = vld [vmem:[%s11102_s1 + $0xb34] ss:$8 sps:$4 sm:$0xff]   ;;  %v7935_v44 = vld [vmem:[%s11102_s1 + $0xb30] ss:$8 sps:$4 sm:$0xff]  }
  0x91   : > { %4267 = vmatprep.subr.bf16.mxu0 %v7925_v14  ;;  %1205 = vmatprep.mubr.bf16.mxu1 %v689_v4  ;;  %v9431_v14 = vor.u32 %v3805_v34, %v3804_v32  ;;  %v7943_v4 = vld [vmem:[%s11102_s1 + $0xb44] ss:$8 sps:$4 sm:$0xff]   ;;  %v522_v32 = vld [vmem:[#allocation2 + $0x110] sm:$0x1] }
  0x92   : > { %4234 = vmatprep.mubr.bf16.mxu0 %v3795_v59  ;;  %v523_v59 = vld [vmem:[#allocation2 + $0x118] sm:$0x1]  ;;  %v3662_v34 = vld [vmem:[#allocation2 + $0x100] sm:$0x1f] }
  0x93   : > { %1559 = vmatpush1.bf16.msra.mxu1 %v7920_v11  ;;  %v9434_v11 = vshrl.u32 %v9174_v24, 16  ;;  %v543_v52 = vpack.c.bf16 %v523_v59, %v523_v59  ;;  %v3807_v20 = vsel %vm3739_vm3, %v3790_v0, %v9431_v14  ;;  %v7947_v0 = vld [vmem:[%s11102_s1 + $0xb50] ss:$8 sps:$4 sm:$0xff]   ;;  %v3670_v41 = vpack.c.bf16 %v3662_v34, %v3662_v34  ;;  %v3661_v34 = vld [vmem:[#allocation2 + $0x18] sm:$0xe0] }
  0x94   : > { %4268 = vmatpush1.bf16.msra.mxu0 %v7923_v56  ;;  %1560 = vmatprep.subr.bf16.mxu1 %v7928_v28  ;;  %v7941_v56 = vld [vmem:[%s11102_s1 + $0xb40] ss:$8 sps:$4 sm:$0xff]   ;;  %v9450_v28 = vshrl.u32 %v9202_v51, 16 }
  0x95   : > { %4269 = vmatprep.subr.bf16.mxu0 %v7931_v35  ;;  %v7946_v35 = vld [vmem:[%s11102_s1 + $0x54] ss:$8 sps:$4 sm:$0xff]  }
  0x96   : > { %1206 = vmatmul.mubr.bf16.gmra.mrb[4].mxu1 %v681_v48  ;;  %v750_v48 = vshll.u32 %v543_v52, 16 }
  0x97   : > { %4235 = vmatmul.mubr.bf16.gmra.mrb[4].mxu0 %v3791_v18  ;;  %1561 = vmatpush1.bf16.msra.mxu1 %v7926_v16  ;;  %v7949_v16 = vld [vmem:[%s11102_s1 + $0xb54] ss:$8 sps:$4 sm:$0xff]   ;;  %v3671_v18 = vpack.c.bf16 %v3663_v3, %v3663_v3  ;;  %v3821_v3 = vshrl.u32 %v3670_v41, 16 }
  0x98   : > { %4270 = vmatpush1.bf16.msra.mxu0 %v7929_v61  ;;  %1562 = vmatprep.subr.bf16.mxu1 %v7934_v37  ;;  %v748_v61 = vor.u32 %v9434_v11, %v720_v8  ;;  %v7944_v37 = vld [vmem:[%s11102_s1 + $0x50] ss:$8 sps:$4 sm:$0xff]   ;;  %v740_v8 = vor.u32 %v9450_v28, %v712_v30  ;;  %v3824_v30 = vshll.u32 %v3670_v41, 16  ;;  %v3785_v41 = vrot.slane %v9214_v1, 3 }
  0x99   : > { %4271 = vmatprep.subr.bf16.mxu0 %v7937_v7  ;;  %1215 = vmatprep.mubr.bf16.mxu1 %v721_v58  ;;  %v752_v7 = vrot.slane %v750_v48, 1  ;;  %v3833_v58 = vshll.u32 %v3671_v18, 16  ;;  %v381_v48 = vld [vmem:[#allocation2 + $0x28] sm:$0xff] }
  0x9a   : > { %4244 = vmatprep.mubr.bf16.mxu0 %v3811_v19  ;;  %v542_v19 = vpack.c.bf16 %v522_v32, %v522_v32  ;;  %v3823_v32 = vrot.slane %v3821_v3, 2 }
  0x9b   : > { %1563 = vmatpush1.bf16.msra.mxu1 %v7932_v31  ;;  %v3830_v31 = vshrl.u32 %v3671_v18, 16  ;;  %v3835_v59 = vrot.slane %v3833_v58, 3  ;;  %v3784_v18 = vrot.slane %v9323_v6, 2  ;;  %v8586_v58 = vld [vmem:[#allocation2 + $0x38] sm:$0xff] }
  0x9c   : > { %4272 = vmatpush1.bf16.msra.mxu0 %v7935_v44  ;;  %1564 = vmatprep.subr.bf16.mxu1 %v7940_v50  ;;  %v7952_v44 = vld [vmem:[%s11102_s1 + $0x64] ss:$8 sps:$4 sm:$0xff]   ;;  %v753_v50 = vsel %vm609_vm2, %v748_v61, %v752_v7  ;;  %v742_v52 = vshll.u32 %v542_v19, 16  ;;  %v3826_v61 = vrot.slane %v3824_v30, 3  ;;  %v3669_v19 = vpack.c.bf16 %v8586_v58, %v3661_v34  ;;  %v7968_v34 = vld [vmem:[%s11102_s1 + $0x90] ss:$8 sps:$4 sm:$0xff]  }
  0x9d   : > { %4273 = vmatprep.subr.bf16.mxu0 %v7943_v4  ;;  %v3832_v4 = vrot.slane %v3830_v31, 2  ;;  %v7977_v58 = vld [vmem:[%s11102_s1 + $0xba0] ss:$8 sps:$4 sm:$0xff]  }
  0x9e   : > { %1216 = vmatmul.mubr.bf16.gmra.mrb[8].mxu1 %v713_v43  ;;  %v7955_v43 = vld [vmem:[%s11102_s1 + $0xb64] ss:$8 sps:$4 sm:$0xff]  }
  0x9f   : > { %4245 = vmatmul.mubr.bf16.gmra.mrb[8].mxu0 %v3807_v20  ;;  %1565 = vmatpush1.bf16.msra.mxu1 %v7938_v62  ;;  %v3836_v62 = vor.u32 %v3835_v59, %v3832_v4  ;;  %v377_v20 = vld [vmem:[#allocation2 + $0x8] sm:$0xff]  ;;  %v3780_v59 = vshll.u32 %v3669_v19, 16 }
  0xa0   : > { %4274 = vmatpush1.bf16.msra.mxu0 %v7941_v56  ;;  %1566 = vmatprep.subr.bf16.mxu1 %v7946_v35  ;;  %v744_v56 = vrot.slane %v742_v52, 1  ;;  %v7950_v35 = vld [vmem:[%s11102_s1 + $0x60] ss:$8 sps:$4 sm:$0xff]   ;;  %v409_v4 = vpack.c.bf16 %v381_v48, %v377_v20  ;;  %v7959_v52 = vld [vmem:[%s11102_s1 + $0xb70] ss:$8 sps:$4 sm:$0xff]  }
  0xa1   : > { %4275 = vmatprep.subr.bf16.mxu0 %v7949_v16  ;;  %1225 = vmatprep.mubr.bf16.mxu1 %v753_v50  ;;  %v7953_v16 = vld [vmem:[%s11102_s1 + $0xb60] ss:$8 sps:$4 sm:$0xff]   ;;  %v3837_v7 = vsel %vm3739_vm3, %v9399_v21, %v3836_v62  ;;  %v3827_v50 = vor.u32 %v3826_v61, %v3823_v32  ;;  %v3777_v21 = vshrl.u32 %v3669_v19, 16  ;;  %v3782_v30 = vrot.slane %v3780_v59, 3  ;;  %v7973_v61 = vld [vmem:[%s11102_s1 + $0xb94] ss:$8 sps:$4 sm:$0xff]  }
  0xa2   : > { %v745_v31 = vsel %vm609_vm2, %v740_v8, %v744_v56  ;;  %4254 = vmatprep.mubr.bf16.mxu0 %v3837_v7  ;;  %v7956_v8 = vld [vmem:[%s11102_s1 + $0x70] ss:$8 sps:$4 sm:$0xff]   ;;  %v9503_v62 = vor.u32 %v3785_v41, %v3784_v18  ;;  %v7962_v20 = vld [vmem:[%s11102_s1 + $0x80] ss:$8 sps:$4 sm:$0xff]   ;;  %v7970_v18 = vld [vmem:[%s11102_s1 + $0x94] ss:$8 sps:$4 sm:$0xff]  }
  0xa3   : > { %1567 = vmatpush1.bf16.msra.mxu1 %v7944_v37  ;;  %v7958_v37 = vld [vmem:[%s11102_s1 + $0x74] ss:$8 sps:$4 sm:$0xff]   ;;  %v3779_v3 = vrot.slane %v3777_v21, 2  ;;  %v7965_v48 = vld [vmem:[%s11102_s1 + $0xb80] ss:$8 sps:$4 sm:$0xff]  }
  0xa4   : > { %4276 = vmatpush1.bf16.msra.mxu0 %v7947_v0  ;;  %1568 = vmatprep.subr.bf16.mxu1 %v7952_v44  ;;  %v7961_v0 = vld [vmem:[%s11102_s1 + $0xb74] ss:$8 sps:$4 sm:$0xff]   ;;  %v3828_v44 = vsel %vm3739_vm3, %v9431_v14, %v3827_v50  ;;  %v7967_v14 = vld [vmem:[%s11102_s1 + $0xb84] ss:$8 sps:$4 sm:$0xff]   ;;  %v7986_v59 = vld [vmem:[%s11102_s1 + $0xc0] ss:$8 sps:$4 sm:$0xff]  }
  0xa5   : > { %4277 = vmatprep.subr.bf16.mxu0 %v7955_v43  ;;  %v7964_v43 = vld [vmem:[%s11102_s1 + $0x84] ss:$8 sps:$4 sm:$0xff]   ;;  %v3783_v56 = vor.u32 %v3782_v30, %v3779_v3  ;;  %v7982_v19 = vld [vmem:[%s11102_s1 + $0xb4] ss:$8 sps:$4 sm:$0xff]   ;;  %v7992_v30 = vld [vmem:[%s11102_s1 + $0xd0] ss:$8 sps:$4 sm:$0xff]  }
  0xa6   : > { %1226 = vmatmul.mubr.bf16.gmra.mrb[12].mxu1 %v745_v31  ;;  %v7979_v7 = vld [vmem:[%s11102_s1 + $0xba4] ss:$8 sps:$4 sm:$0xff]   ;;  %v7974_v31 = vld [vmem:[%s11102_s1 + $0xa0] ss:$8 sps:$4 sm:$0xff]   ;;  %v7985_v41 = vld [vmem:[%s11102_s1 + $0xbb4] ss:$8 sps:$4 sm:$0xff]  }
  0xa7   : > { %1569 = vmatpush1.bf16.msra.mxu1 %v7950_v35  ;;  %4255 = vmatmul.mubr.bf16.gmra.mrb[12].mxu0 %v3828_v44  ;;  %v3787_v32 = vsel %vm3739_vm3, %v3783_v56, %v9503_v62  ;;  %v7971_v35 = vld [vmem:[%s11102_s1 + $0xb90] ss:$8 sps:$4 sm:$0xff]   ;;  %v7988_v50 = vld [vmem:[%s11102_s1 + $0xc4] ss:$8 sps:$4 sm:$0xff]   ;;  %v3660_v21 = vld [vmem:[#allocation2 + $0x10] sm:$0xe0] }
  0xa8   : > { %4278 = vmatpush1.bf16.msra.mxu0 %v7953_v16  ;;  %1570 = vmatprep.subr.bf16.mxu1 %v7958_v37  ;;  %v7976_v16 = vld [vmem:[%s11102_s1 + $0xa4] ss:$8 sps:$4 sm:$0xff]   ;;  %v7980_v37 = vld [vmem:[%s11102_s1 + $0xb0] ss:$8 sps:$4 sm:$0xff]   ;;  %v7994_v44 = vld [vmem:[%s11102_s1 + $0xd4] ss:$8 sps:$4 sm:$0xff]  }
  0xa9   : > { %4279 = vmatprep.subr.bf16.mxu0 %v7961_v0  ;;  %1588 = vmatprep.mubr.bf16.mxu1 %v409_v4  ;;  %v7983_v0 = vld [vmem:[%s11102_s1 + $0xbb0] ss:$8 sps:$4 sm:$0xff]   ;;  %v7991_v4 = vld [vmem:[%s11102_s1 + $0xbc4] ss:$8 sps:$4 sm:$0xff]   ;;  %v7997_v3 = vld [vmem:[%s11102_s1 + $0xbd4] ss:$8 sps:$4 sm:$0xff]  }
  0xaa   : > { %4297 = vmatprep.mubr.bf16.mxu0 %v3787_v32  ;;  %v7998_v32 = vld [vmem:[%s11102_s1 + $0xe0] ss:$8 sps:$4 sm:$0xff]  }
  0xab   : > { %1571 = vmatpush1.bf16.msra.mxu1 %v7956_v8  ;;  %v7989_v8 = vld [vmem:[%s11102_s1 + $0xbc0] ss:$8 sps:$4 sm:$0xff]  }
  0xac   : > { %4280 = vmatpush1.bf16.msra.mxu0 %v7959_v52  ;;  %1572 = vmatprep.subr.bf16.mxu1 %v7964_v43  ;;  %v8587_v52 = vld [vmem:[#allocation2 + $0x30] sm:$0xff] }
  0xad   : > { %4281 = vmatprep.subr.bf16.mxu0 %v7967_v14  ;;  %v3668_v43 = vpack.c.bf16 %v8587_v52, %v3660_v21  ;;  %v7995_v14 = vld [vmem:[%s11102_s1 + $0xbd0] ss:$8 sps:$4 sm:$0xff]   ;;  %v380_v21 = vld [vmem:[#allocation2 + $0x20] sm:$0xff] }
  0xae   : > { %v8010_v52 = vld [vmem:[%s11102_s1 + $0x100] ss:$8 sps:$4 sm:$0xff]  }
  0xaf   : > { %1573 = vmatpush1.bf16.msra.mxu1 %v7962_v20  ;;  %v3765_v56 = vshrl.u32 %v3668_v43, 16  ;;  %v3768_v20 = vshll.u32 %v3668_v43, 16 }
  0xb0   : > { %4282 = vmatpush1.bf16.msra.mxu0 %v7965_v48  ;;  %1574 = vmatprep.subr.bf16.mxu1 %v7970_v18  ;;  %v8000_v48 = vld [vmem:[%s11102_s1 + $0xe4] ss:$8 sps:$4 sm:$0xff]  }
  0xb1   : > { %4283 = vmatprep.subr.bf16.mxu0 %v7973_v61  ;;  %v8003_v18 = vld [vmem:[%s11102_s1 + $0xbe4] ss:$8 sps:$4 sm:$0xff]   ;;  %v3772_v61 = vrot.slane %v9351_v38, 2 }
  0xb3   : > { %1575 = vmatpush1.bf16.msra.mxu1 %v7968_v34  ;;  %v8001_v34 = vld [vmem:[%s11102_s1 + $0xbe0] ss:$8 sps:$4 sm:$0xff]  }
  0xb4   : > { %4284 = vmatpush1.bf16.msra.mxu0 %v7971_v35  ;;  %1576 = vmatprep.subr.bf16.mxu1 %v7976_v16  ;;  %v3767_v35 = vrot.slane %v3765_v56, 2  ;;  %v3770_v16 = vrot.slane %v3768_v20, 3  ;;  %v8013_v56 = vld [vmem:[%s11102_s1 + $0xc00] ss:$8 sps:$4 sm:$0xff]  }
  0xb5   : > { %4285 = vmatprep.subr.bf16.mxu0 %v7979_v7  ;;  %v3773_v7 = vrot.slane %v9309_v17, 3 }
  0xb7   : > { %1577 = vmatpush1.bf16.msra.mxu1 %v7974_v31  ;;  %v8006_v31 = vld [vmem:[%s11102_s1 + $0xf4] ss:$8 sps:$4 sm:$0xff]  }
  0xb8   : > { %4286 = vmatpush1.bf16.msra.mxu0 %v7977_v58  ;;  %1578 = vmatprep.subr.bf16.mxu1 %v7982_v19  ;;  %v8009_v58 = vld [vmem:[%s11102_s1 + $0xbf4] ss:$8 sps:$4 sm:$0xff]   ;;  %v8004_v19 = vld [vmem:[%s11102_s1 + $0xf0] ss:$8 sps:$4 sm:$0xff]  }
  0xb9   : > { %4287 = vmatprep.subr.bf16.mxu0 %v7985_v41  ;;  %v8007_v41 = vld [vmem:[%s11102_s1 + $0xbf0] ss:$8 sps:$4 sm:$0xff]  }
  0xbb   : > { %1579 = vmatpush1.bf16.msra.mxu1 %v7980_v37  ;;  %v3800_v37 = vrot.slane %v9374_v57, 2 }
  0xbc   : > { %4288 = vmatpush1.bf16.msra.mxu0 %v7983_v0  ;;  %1580 = vmatprep.subr.bf16.mxu1 %v7988_v50  ;;  %v3801_v0 = vrot.slane %v9326_v9, 3  ;;  %v8012_v50 = vld [vmem:[%s11102_s1 + $0x104] ss:$8 sps:$4 sm:$0xff]  }
  0xbd   : > { %4289 = vmatprep.subr.bf16.mxu0 %v7991_v4  ;;  %v376_v4 = vld [vmem:[#allocation2] sm:$0xff] }
  0xbe   : > { %v408_v43 = vpack.c.bf16 %v380_v21, %v376_v4  ;;  %v8027_v21 = vld [vmem:[%s11102_s1 + $0xc24] ss:$8 sps:$4 sm:$0xff]  }
  0xbf   : > { %1581 = vmatpush1.bf16.msra.mxu1 %v7986_v59  ;;  %v3771_v59 = vor.u32 %v3770_v16, %v3767_v35  ;;  %v8016_v35 = vld [vmem:[%s11102_s1 + $0x110] ss:$8 sps:$4 sm:$0xff]  }
  0xc0   : > { %4290 = vmatpush1.bf16.msra.mxu0 %v7989_v8  ;;  %1582 = vmatprep.subr.bf16.mxu1 %v7994_v44  ;;  %v3774_v8 = vor.u32 %v3773_v7, %v3772_v61  ;;  %v8015_v44 = vld [vmem:[%s11102_s1 + $0xc04] ss:$8 sps:$4 sm:$0xff]   ;;  %v8021_v61 = vld [vmem:[%s11102_s1 + $0xc14] ss:$8 sps:$4 sm:$0xff]   ;;  %v3816_v7 = vrot.slane %v9434_v11, 2 }
  0xc1   : > { %4291 = vmatprep.subr.bf16.mxu0 %v7997_v3  ;;  %v385_v3 = vld [vmem:[#allocation2 + $0x48] sm:$0xff] }
  0xc2   : > { %v3775_v20 = vsel %vm3739_vm3, %v3771_v59, %v3774_v8  ;;  %v3664_v59 = vld [vmem:[#allocation2 + $0x110] sm:$0x1f] }
  0xc3   : > { %1583 = vmatpush1.bf16.msra.mxu1 %v7992_v30  ;;  %v389_v30 = vld [vmem:[#allocation2 + $0x68] sm:$0xff] }
  0xc4   : > { %4292 = vmatpush1.bf16.msra.mxu0 %v7995_v14  ;;  %1584 = vmatprep.subr.bf16.mxu1 %v8000_v48  ;;  %v3802_v14 = vor.u32 %v3801_v0, %v3800_v37  ;;  %v3796_v48 = vrot.slane %v9402_v27, 2  ;;  %v413_v16 = vpack.c.bf16 %v389_v30, %v385_v3  ;;  %v3817_v37 = vrot.slane %v9379_v53, 3  ;;  %v397_v3 = vld [vmem:[#allocation2 + $0xa8] sm:$0xff] }
  0xc5   : > { %4293 = vmatprep.subr.bf16.mxu0 %v8003_v18  ;;  %v3797_v18 = vrot.slane %v9354_v42, 3 }
  0xc6   : > { %v3818_v30 = vor.u32 %v3817_v37, %v3816_v7  ;;  %v8031_v7 = vld [vmem:[%s11102_s1 + $0xc30] ss:$8 sps:$4 sm:$0xff]   ;;  %v392_v37 = vld [vmem:[#allocation2 + $0x80] sm:$0xff] }
  0xc7   : > { %1585 = vmatpush1.bf16.msra.mxu1 %v7998_v32  ;;  %v8018_v32 = vld [vmem:[%s11102_s1 + $0x114] ss:$8 sps:$4 sm:$0xff]   ;;  %v3798_v4 = vor.u32 %v3797_v18, %v3796_v48  ;;  %v8025_v48 = vld [vmem:[%s11102_s1 + $0xc20] ss:$8 sps:$4 sm:$0xff]  }
  0xc8   : > { %4294 = vmatpush1.bf16.msra.mxu0 %v8001_v34  ;;  %1586 = vmatprep.subr.bf16.mxu1 %v8006_v31  ;;  %v3665_v34 = vld [vmem:[#allocation2 + $0x118] sm:$0x1f] }
  0xc9   : > { %4295 = vmatprep.subr.bf16.mxu0 %v8009_v58  ;;  %v8019_v31 = vld [vmem:[%s11102_s1 + $0xc10] ss:$8 sps:$4 sm:$0xff]   ;;  %v8024_v58 = vld [vmem:[%s11102_s1 + $0x124] ss:$8 sps:$4 sm:$0xff]   ;;  %v3673_v0 = vpack.c.bf16 %v3665_v34, %v3665_v34  ;;  %v8030_v18 = vld [vmem:[%s11102_s1 + $0x134] ss:$8 sps:$4 sm:$0xff]   ;;  %v3672_v34 = vpack.c.bf16 %v3664_v59, %v3664_v59 }
  0xcb   : > { %1587 = vmatpush1.bf16.msra.mxu1 %v8004_v19  ;;  %v3803_v19 = vsel %vm3739_vm3, %v9503_v62, %v3802_v14  ;;  %v3812_v62 = vrot.slane %v9450_v28, 2  ;;  %v3842_v59 = vshll.u32 %v3672_v34, 16 }
  0xcc   : > { %4296 = vmatpush1.bf16.msra.mxu0 %v8007_v41  ;;  %1629 = vmatprep.subr.bf16.mxu1 %v8012_v50  ;;  %v384_v41 = vld [vmem:[#allocation2 + $0x40] sm:$0xff] }
  0xcd   : > { %4816 = vmatprep.subr.bf16.mxu0 %v8015_v44  ;;  %v388_v50 = vld [vmem:[#allocation2 + $0x60] sm:$0xff] }
  0xce   : > { %1589 = vmatmul.mubr.bf16.vlgmr.msra.gmra.mrb[0].mxu1 %v408_v43  ;;  %v8022_v44 = vld [vmem:[%s11102_s1 + $0x120] ss:$8 sps:$4 sm:$0xff]   ;;  %v412_v43 = vpack.c.bf16 %v388_v50, %v384_v41 }
  0xcf   : > { %4298 = vmatmul.mubr.bf16.vlgmr.msra.gmra.mrb[0].mxu0 %v3775_v20  ;;  %1630 = vmatpush1.bf16.msra.mxu1 %v8010_v52  ;;  %v393_v52 = vld [vmem:[#allocation2 + $0x88] sm:$0xff]  ;;  %v3851_v20 = vshll.u32 %v3673_v0, 16 }
  0xd0   : > { %4817 = vmatpush1.bf16.msra.mxu0 %v8013_v56  ;;  %1631 = vmatprep.subr.bf16.mxu1 %v8018_v32  ;;  %v3848_v56 = vshrl.u32 %v3673_v0, 16  ;;  %v3799_v32 = vsel %vm3739_vm3, %v3774_v8, %v3798_v4  ;;  %v8036_v8 = vld [vmem:[%s11102_s1 + $0x144] ss:$8 sps:$4 sm:$0xff]  }
  0xd1   : > { %4818 = vmatprep.subr.bf16.mxu0 %v8021_v61  ;;  %1598 = vmatprep.mubr.bf16.mxu1 %v413_v16  ;;  %v3813_v61 = vrot.slane %v9405_v12, 3  ;;  %v8028_v16 = vld [vmem:[%s11102_s1 + $0x130] ss:$8 sps:$4 sm:$0xff]   ;;  %v3853_v41 = vrot.slane %v3851_v20, 3  ;;  %v396_v0 = vld [vmem:[#allocation2 + $0xa0] sm:$0xff] }
  0xd2   : > { %4307 = vmatprep.mubr.bf16.mxu0 %v3803_v19  ;;  %v3850_v19 = vrot.slane %v3848_v56, 2  ;;  %v405_v56 = vld [vmem:[#allocation2 + $0xe8] sm:$0xff] }
  0xd3   : > { %1632 = vmatpush1.bf16.msra.mxu1 %v8016_v35  ;;  %v8033_v35 = vld [vmem:[%s11102_s1 + $0xc34] ss:$8 sps:$4 sm:$0xff]   ;;  %v3814_v50 = vor.u32 %v3813_v61, %v3812_v62  ;;  %v416_v62 = vpack.c.bf16 %v396_v0, %v392_v37  ;;  %v4355_v61 = vld [vmem:[#allocation2 + $0x8] sm:$0xc0] }
  0xd4   : > { %4819 = vmatpush1.bf16.msra.mxu0 %v8019_v31  ;;  %1633 = vmatprep.subr.bf16.mxu1 %v8024_v58  ;;  %v417_v31 = vpack.c.bf16 %v397_v3, %v393_v52  ;;  %v3819_v58 = vsel %vm3739_vm3, %v3802_v14, %v3818_v30  ;;  %v8039_v52 = vld [vmem:[%s11102_s1 + $0xc44] ss:$8 sps:$4 sm:$0xff]   ;;  %v8037_v14 = vld [vmem:[%s11102_s1 + $0xc40] ss:$8 sps:$4 sm:$0xff]   ;;  %v3854_v20 = vor.u32 %v3853_v41, %v3850_v19 }
  0xd5   : > { %4820 = vmatprep.subr.bf16.mxu0 %v8027_v21  ;;  %v3839_v21 = vshrl.u32 %v3672_v34, 16  ;;  %v401_v3 = vld [vmem:[#allocation2 + $0xc8] sm:$0xff]  ;;  %v8045_v34 = vld [vmem:[%s11102_s1 + $0xc54] ss:$8 sps:$4 sm:$0xff]   ;;  %v400_v19 = vld [vmem:[#allocation2 + $0xc0] sm:$0xff] }
  0xd6   : > { %1599 = vmatmul.mubr.bf16.gmra.mrb[4].mxu1 %v412_v43  ;;  %v8034_v43 = vld [vmem:[%s11102_s1 + $0x140] ss:$8 sps:$4 sm:$0xff]   ;;  %v8051_v0 = vld [vmem:[%s11102_s1 + $0xc64] ss:$8 sps:$4 sm:$0xff]  }
  0xd7   : > { %4308 = vmatmul.mubr.bf16.gmra.mrb[4].mxu0 %v3799_v32  ;;  %1634 = vmatpush1.bf16.msra.mxu1 %v8022_v44  ;;  %v8042_v44 = vld [vmem:[%s11102_s1 + $0x154] ss:$8 sps:$4 sm:$0xff]   ;;  %v3844_v32 = vrot.slane %v3842_v59, 3  ;;  %v404_v41 = vld [vmem:[#allocation2 + $0xe0] sm:$0xff] }
  0xd8   : > { %4821 = vmatpush1.bf16.msra.mxu0 %v8025_v48  ;;  %1635 = vmatprep.subr.bf16.mxu1 %v8030_v18  ;;  %v3815_v48 = vsel %vm3739_vm3, %v3798_v4, %v3814_v50  ;;  %v3841_v18 = vrot.slane %v3839_v21, 2  ;;  %v8048_v4 = vld [vmem:[%s11102_s1 + $0x164] ss:$8 sps:$4 sm:$0xff]   ;;  %v8046_v21 = vld [vmem:[%s11102_s1 + $0x160] ss:$8 sps:$4 sm:$0xff]   ;;  %v379_v59 = vld [vmem:[#allocation2 + $0x18] sm:$0xff] }
  0xd9   : > { %4822 = vmatprep.subr.bf16.mxu0 %v8033_v35  ;;  %1608 = vmatprep.mubr.bf16.mxu1 %v417_v31  ;;  %v8040_v35 = vld [vmem:[%s11102_s1 + $0x150] ss:$8 sps:$4 sm:$0xff]   ;;  %v421_v31 = vpack.c.bf16 %v405_v56, %v401_v3  ;;  %v8057_v56 = vld [vmem:[%s11102_s1 + $0xc74] ss:$8 sps:$4 sm:$0xff]  }
  0xda   : > { %4317 = vmatprep.mubr.bf16.mxu0 %v3819_v58  ;;  %v3845_v37 = vor.u32 %v3844_v32, %v3841_v18  ;;  %v8060_v32 = vld [vmem:[%s11102_s1 + $0x184] ss:$8 sps:$4 sm:$0xff]  }
  0xdb   : > { %1636 = vmatpush1.bf16.msra.mxu1 %v8028_v16  ;;  %v8043_v16 = vld [vmem:[%s11102_s1 + $0xc50] ss:$8 sps:$4 sm:$0xff]  }
  0xdc   : > { %4823 = vmatpush1.bf16.msra.mxu0 %v8031_v7  ;;  %1637 = vmatprep.subr.bf16.mxu1 %v8036_v8  ;;  %v3855_v7 = vsel %vm3739_vm3, %v3818_v30, %v3854_v20  ;;  %v9692_v8 = vld [vmem:[#allocation2 + $0x28] sm:$0xff]  ;;  %v420_v30 = vpack.c.bf16 %v404_v41, %v400_v19  ;;  %v3846_v3 = vsel %vm3739_vm3, %v3814_v50, %v3845_v37  ;;  %v8055_v50 = vld [vmem:[%s11102_s1 + $0xc70] ss:$8 sps:$4 sm:$0xff]  }
  0xdd   : > { %4824 = vmatprep.subr.bf16.mxu0 %v8039_v52  ;;  %v4363_v58 = vpack.c.bf16 %v9692_v8, %v4355_v61  ;;  %v383_v52 = vld [vmem:[#allocation2 + $0x38] sm:$0xff]  ;;  %v8063_v61 = vld [vmem:[%s11102_s1 + $0xc84] ss:$8 sps:$4 sm:$0xff]   ;;  %v8070_v41 = vld [vmem:[%s11102_s1 + $0x1a0] ss:$8 sps:$4 sm:$0xff]  }
  0xde   : > { %1609 = vmatmul.mubr.bf16.gmra.mrb[8].mxu1 %v416_v62  ;;  %v8054_v62 = vld [vmem:[%s11102_s1 + $0x174] ss:$8 sps:$4 sm:$0xff]   ;;  %v411_v20 = vpack.c.bf16 %v383_v52, %v379_v59  ;;  %v8075_v19 = vld [vmem:[%s11102_s1 + $0xca4] ss:$8 sps:$4 sm:$0xff]   ;;  %v8073_v37 = vld [vmem:[%s11102_s1 + $0xca0] ss:$8 sps:$4 sm:$0xff]  }
  0xdf   : > { %4318 = vmatmul.mubr.bf16.gmra.mrb[8].mxu0 %v3815_v48  ;;  %1638 = vmatpush1.bf16.msra.mxu1 %v8034_v43  ;;  %v4447_v43 = vrot.slane %v4363_v58, 3  ;;  %v8052_v48 = vld [vmem:[%s11102_s1 + $0x170] ss:$8 sps:$4 sm:$0xff]   ;;  %v8072_v58 = vld [vmem:[%s11102_s1 + $0x1a4] ss:$8 sps:$4 sm:$0xff]  }
  0xe0   : > { %4825 = vmatpush1.bf16.msra.mxu0 %v8037_v14  ;;  %1639 = vmatprep.subr.bf16.mxu1 %v8042_v44  ;;  %v4448_v14 = vrot.slane %v8862_v15, 3  ;;  %v8049_v44 = vld [vmem:[%s11102_s1 + $0xc60] ss:$8 sps:$4 sm:$0xff]   ;;  %v8079_v59 = vld [vmem:[%s11102_s1 + $0xcb0] ss:$8 sps:$4 sm:$0xff]  }
  0xe1   : > { %4826 = vmatprep.subr.bf16.mxu0 %v8045_v34  ;;  %1618 = vmatprep.mubr.bf16.mxu1 %v421_v31  ;;  %v8058_v34 = vld [vmem:[%s11102_s1 + $0x180] ss:$8 sps:$4 sm:$0xff]   ;;  %v8066_v31 = vld [vmem:[%s11102_s1 + $0x194] ss:$8 sps:$4 sm:$0xff]   ;;  %v8084_v52 = vld [vmem:[%s11102_s1 + $0x1c4] ss:$8 sps:$4 sm:$0xff]  }
  0xe2   : > { %4327 = vmatprep.mubr.bf16.mxu0 %v3855_v7  ;;  %v4449_v18 = vsel %vm4443_vm4, %v4447_v43, %v4448_v14  ;;  %v8067_v7 = vld [vmem:[%s11102_s1 + $0xc90] ss:$8 sps:$4 sm:$0xff]   ;;  %v8087_v43 = vld [vmem:[%s11102_s1 + $0xcc4] ss:$8 sps:$4 sm:$0xff]  }
  0xe3   : > { %1640 = vmatpush1.bf16.msra.mxu1 %v8040_v35  ;;  %v8061_v35 = vld [vmem:[%s11102_s1 + $0xc80] ss:$8 sps:$4 sm:$0xff]  }
  0xe4   : > { %4827 = vmatpush1.bf16.msra.mxu0 %v8043_v16  ;;  %1641 = vmatprep.subr.bf16.mxu1 %v8048_v4  ;;  %v8069_v16 = vld [vmem:[%s11102_s1 + $0xc94] ss:$8 sps:$4 sm:$0xff]   ;;  %v8064_v4 = vld [vmem:[%s11102_s1 + $0x190] ss:$8 sps:$4 sm:$0xff]  }
  0xe5   : > { %4828 = vmatprep.subr.bf16.mxu0 %v8051_v0  ;;  %v8078_v0 = vld [vmem:[%s11102_s1 + $0x1b4] ss:$8 sps:$4 sm:$0xff]  }
  0xe6   : > { %1619 = vmatmul.mubr.bf16.gmra.mrb[12].mxu1 %v420_v30  ;;  %v8076_v30 = vld [vmem:[%s11102_s1 + $0x1b0] ss:$8 sps:$4 sm:$0xff]  }
  0xe7   : > { %4328 = vmatmul.mubr.bf16.gmra.mrb[12].mxu0 %v3846_v3  ;;  %1642 = vmatpush1.bf16.msra.mxu1 %v8046_v21  ;;  %v8081_v21 = vld [vmem:[%s11102_s1 + $0xcb4] ss:$8 sps:$4 sm:$0xff]  }
  0xe8   : > { %4829 = vmatpush1.bf16.msra.mxu0 %v8049_v44  ;;  %1643 = vmatprep.subr.bf16.mxu1 %v8054_v62  ;;  %v8082_v44 = vld [vmem:[%s11102_s1 + $0x1c0] ss:$8 sps:$4 sm:$0xff]   ;;  %v8090_v3 = vld [vmem:[%s11102_s1 + $0x1d4] ss:$8 sps:$4 sm:$0xff]  }
  0xe9   : > { %4830 = vmatprep.subr.bf16.mxu0 %v8057_v56  ;;  %1661 = vmatprep.mubr.bf16.mxu1 %v411_v20  ;;  %v8085_v62 = vld [vmem:[%s11102_s1 + $0xcc0] ss:$8 sps:$4 sm:$0xff]   ;;  %v8093_v56 = vld [vmem:[%s11102_s1 + $0xcd4] ss:$8 sps:$4 sm:$0xff]   ;;  %v8088_v20 = vld [vmem:[%s11102_s1 + $0x1d0] ss:$8 sps:$4 sm:$0xff]  }
  0xea   : > { %4848 = vmatprep.mubr.bf16.mxu0 %v4449_v18  ;;  %v8096_v18 = vld [vmem:[%s11102_s1 + $0x1e4] ss:$8 sps:$4 sm:$0xff]  }
  0xeb   : > { %1644 = vmatpush1.bf16.msra.mxu1 %v8052_v48  ;;  %v8091_v48 = vld [vmem:[%s11102_s1 + $0xcd0] ss:$8 sps:$4 sm:$0xff]  }
  0xec   : > { %4831 = vmatpush1.bf16.msra.mxu0 %v8055_v50  ;;  %1645 = vmatprep.subr.bf16.mxu1 %v8060_v32  ;;  %v8099_v50 = vld [vmem:[%s11102_s1 + $0xce4] ss:$8 sps:$4 sm:$0xff]  }
  0xed   : > { %4832 = vmatprep.subr.bf16.mxu0 %v8063_v61  ;;  %v4354_v32 = vld [vmem:[#allocation2] sm:$0xc0]  ;;  %v8094_v61 = vld [vmem:[%s11102_s1 + $0x1e0] ss:$8 sps:$4 sm:$0xff]  }
  0xef   : > { %1646 = vmatpush1.bf16.msra.mxu1 %v8058_v34  ;;  %v8097_v34 = vld [vmem:[%s11102_s1 + $0xce0] ss:$8 sps:$4 sm:$0xff]  }
  0xf0   : > { %4833 = vmatpush1.bf16.msra.mxu0 %v8061_v35  ;;  %1647 = vmatprep.subr.bf16.mxu1 %v8066_v31  ;;  %v9805_v35 = vld [vmem:[#allocation2 + $0x20] sm:$0xff] }
  0xf1   : > { %4834 = vmatprep.subr.bf16.mxu0 %v8069_v16  ;;  %v4362_v31 = vpack.c.bf16 %v9805_v35, %v4354_v32  ;;  %v8102_v16 = vld [vmem:[%s11102_s1 + $0x1f4] ss:$8 sps:$4 sm:$0xff]  }
  0xf3   : > { %1648 = vmatpush1.bf16.msra.mxu1 %v8064_v4  ;;  %v8105_v4 = vld [vmem:[%s11102_s1 + $0xcf4] ss:$8 sps:$4 sm:$0xff]  }
  0xf4   : > { %4835 = vmatpush1.bf16.msra.mxu0 %v8067_v7  ;;  %1649 = vmatprep.subr.bf16.mxu1 %v8072_v58  ;;  %v8100_v7 = vld [vmem:[%s11102_s1 + $0x1f0] ss:$8 sps:$4 sm:$0xff]  }
  0xf5   : > { %4836 = vmatprep.subr.bf16.mxu0 %v8075_v19  ;;  %v8103_v58 = vld [vmem:[%s11102_s1 + $0xcf0] ss:$8 sps:$4 sm:$0xff]  }
  0xf6   : > { %v378_v19 = vld [vmem:[#allocation2 + $0x10] sm:$0xff] }
  0xf7   : > { %1650 = vmatpush1.bf16.msra.mxu1 %v8070_v41  ;;  %v382_v41 = vld [vmem:[#allocation2 + $0x30] sm:$0xff] }
  0xf8   : > { %4837 = vmatpush1.bf16.msra.mxu0 %v8073_v37  ;;  %1651 = vmatprep.subr.bf16.mxu1 %v8078_v0  ;;  %v4444_v37 = vrot.slane %v4362_v31, 3  ;;  %v4445_v0 = vrot.slane %v8915_v45, 3  ;;  %v390_v31 = vld [vmem:[#allocation2 + $0x70] sm:$0xff] }
  0xf9   : > { %4838 = vmatprep.subr.bf16.mxu0 %v8081_v21  ;;  %v8108_v21 = vld [vmem:[%s11102_s1 + $0x404] ss:$8 sps:$4 sm:$0xff]  }
  0xfb   : > { %1652 = vmatpush1.bf16.msra.mxu1 %v8076_v30  ;;  %v8111_v30 = vld [vmem:[%s11102_s1 + $0xd04] ss:$8 sps:$4 sm:$0xff]  }
  0xfc   : > { %4839 = vmatpush1.bf16.msra.mxu0 %v8079_v59  ;;  %1653 = vmatprep.subr.bf16.mxu1 %v8084_v52  ;;  %v8106_v59 = vld [vmem:[%s11102_s1 + $0x400] ss:$8 sps:$4 sm:$0xff]   ;;  %v387_v52 = vld [vmem:[#allocation2 + $0x58] sm:$0xff] }
  0xfd   : > { %4840 = vmatprep.subr.bf16.mxu0 %v8087_v43  ;;  %v410_v43 = vpack.c.bf16 %v382_v41, %v378_v19  ;;  %v395_v19 = vld [vmem:[#allocation2 + $0x98] sm:$0xff] }
  0xff   : > { %1654 = vmatpush1.bf16.msra.mxu1 %v8082_v44  ;;  %v391_v44 = vld [vmem:[#allocation2 + $0x78] sm:$0xff] }
 0x100   : > { %4841 = vmatpush1.bf16.msra.mxu0 %v8085_v62  ;;  %1655 = vmatprep.subr.bf16.mxu1 %v8090_v3  ;;  %v4458_v62 = vrot.slane %v9044_v5, 3  ;;  %v8109_v3 = vld [vmem:[%s11102_s1 + $0xd00] ss:$8 sps:$4 sm:$0xff]   ;;  %v415_v32 = vpack.c.bf16 %v391_v44, %v387_v52  ;;  %v8126_v52 = vld [vmem:[%s11102_s1 + $0x434] ss:$8 sps:$4 sm:$0xff]  }
 0x101   : > { %4842 = vmatprep.subr.bf16.mxu0 %v8093_v56  ;;  %v4446_v56 = vsel %vm4443_vm4, %v4444_v37, %v4445_v0  ;;  %v399_v37 = vld [vmem:[#allocation2 + $0xb8] sm:$0xff] }
 0x102   : > { %v8124_v44 = vld [vmem:[%s11102_s1 + $0x430] ss:$8 sps:$4 sm:$0xff]  }
 0x103   : > { %1656 = vmatpush1.bf16.msra.mxu1 %v8088_v20  ;;  %v8114_v20 = vld [vmem:[%s11102_s1 + $0x414] ss:$8 sps:$4 sm:$0xff]  }
 0x104   : > { %4843 = vmatpush1.bf16.msra.mxu0 %v8091_v48  ;;  %1657 = vmatprep.subr.bf16.mxu1 %v8096_v18  ;;  %v8117_v48 = vld [vmem:[%s11102_s1 + $0xd14] ss:$8 sps:$4 sm:$0xff]   ;;  %v8112_v18 = vld [vmem:[%s11102_s1 + $0x410] ss:$8 sps:$4 sm:$0xff]  }
 0x105   : > { %4844 = vmatprep.subr.bf16.mxu0 %v8099_v50  ;;  %v8115_v50 = vld [vmem:[%s11102_s1 + $0xd10] ss:$8 sps:$4 sm:$0xff]  }
 0x107   : > { %1658 = vmatpush1.bf16.msra.mxu1 %v8094_v61  ;;  %v4459_v61 = vsel %vm4443_vm4, %v4448_v14, %v4458_v62  ;;  %v8118_v14 = vld [vmem:[%s11102_s1 + $0x420] ss:$8 sps:$4 sm:$0xff]  }
 0x108   : > { %4845 = vmatpush1.bf16.msra.mxu0 %v8097_v34  ;;  %1659 = vmatprep.subr.bf16.mxu1 %v8102_v16  ;;  %v386_v34 = vld [vmem:[#allocation2 + $0x50] sm:$0xff]  ;;  %v4456_v16 = vrot.slane %v9102_v36, 3 }
 0x109   : > { %4846 = vmatprep.subr.bf16.mxu0 %v8105_v4  ;;  %v8120_v4 = vld [vmem:[%s11102_s1 + $0x424] ss:$8 sps:$4 sm:$0xff]   ;;  %v414_v41 = vpack.c.bf16 %v390_v31, %v386_v34  ;;  %v8130_v31 = vld [vmem:[%s11102_s1 + $0x440] ss:$8 sps:$4 sm:$0xff]  }
 0x10a   : > { %v4358_v34 = vld [vmem:[#allocation2 + $0x100] sm:$0x3f] }
 0x10b   : > { %1660 = vmatpush1.bf16.msra.mxu1 %v8100_v7  ;;  %v8123_v7 = vld [vmem:[%s11102_s1 + $0xd24] ss:$8 sps:$4 sm:$0xff]  }
 0x10c   : > { %4847 = vmatpush1.bf16.msra.mxu0 %v8103_v58  ;;  %2176 = vmatprep.subr.bf16.mxu1 %v8108_v21  ;;  %v8121_v58 = vld [vmem:[%s11102_s1 + $0xd20] ss:$8 sps:$4 sm:$0xff]   ;;  %v4466_v21 = vrot.slane %v9148_v54, 3 }
 0x10d   : > { %4889 = vmatprep.subr.bf16.mxu0 %v8111_v30  ;;  %v4457_v30 = vsel %vm4443_vm4, %v4445_v0, %v4456_v16  ;;  %v419_v0 = vpack.c.bf16 %v399_v37, %v395_v19  ;;  %v1703_v19 = vld [vmem:[#allocation2 + $0x8] sm:$0xfc]  ;;  %v4366_v37 = vpack.c.bf16 %v4358_v34, %v4358_v34  ;;  %v4454_v34 = vrot.slane %v8885_v29, 3 }
 0x10e   : > { %1662 = vmatmul.mubr.bf16.vlgmr.msra.gmra.mrb[0].mxu1 %v410_v43  ;;  %v8129_v43 = vld [vmem:[%s11102_s1 + $0xd34] ss:$8 sps:$4 sm:$0xff]  }
 0x10f   : > { %4849 = vmatmul.mubr.bf16.vlgmr.msra.gmra.mrb[0].mxu0 %v4446_v56  ;;  %2177 = vmatpush1.bf16.msra.mxu1 %v8106_v59  ;;  %v4359_v59 = vld [vmem:[#allocation2 + $0x108] sm:$0x3f] }
 0x110   : > { %4890 = vmatpush1.bf16.msra.mxu0 %v8109_v3  ;;  %2178 = vmatprep.subr.bf16.mxu1 %v8114_v20  ;;  %v8127_v3 = vld [vmem:[%s11102_s1 + $0xd30] ss:$8 sps:$4 sm:$0xff]   ;;  %v8132_v56 = vld [vmem:[%s11102_s1 + $0x444] ss:$8 sps:$4 sm:$0xff]   ;;  %v4467_v20 = vsel %vm4443_vm4, %v4458_v62, %v4466_v21  ;;  %v8133_v62 = vld [vmem:[%s11102_s1 + $0xd40] ss:$8 sps:$4 sm:$0xff]  }
 0x111   : > { %4891 = vmatprep.subr.bf16.mxu0 %v8117_v48  ;;  %1671 = vmatprep.mubr.bf16.mxu1 %v415_v32  ;;  %v394_v48 = vld [vmem:[#allocation2 + $0x90] sm:$0xff]  ;;  %v4464_v32 = vrot.slane %v9181_v39, 3 }
 0x112   : > { %4858 = vmatprep.mubr.bf16.mxu0 %v4459_v61  ;;  %v8135_v61 = vld [vmem:[%s11102_s1 + $0xd44] ss:$8 sps:$4 sm:$0xff]  }
 0x113   : > { %2179 = vmatpush1.bf16.msra.mxu1 %v8112_v18  ;;  %v4367_v18 = vpack.c.bf16 %v4359_v59, %v4359_v59  ;;  %v8138_v59 = vld [vmem:[%s11102_s1 + $0x454] ss:$8 sps:$4 sm:$0xff]  }
 0x114   : > { %4892 = vmatpush1.bf16.msra.mxu0 %v8115_v50  ;;  %2180 = vmatprep.subr.bf16.mxu1 %v8120_v4  ;;  %v398_v50 = vld [vmem:[#allocation2 + $0xb0] sm:$0xff]  ;;  %v403_v4 = vld [vmem:[#allocation2 + $0xd8] sm:$0xff] }
 0x115   : > { %4893 = vmatprep.subr.bf16.mxu0 %v8123_v7  ;;  %v407_v7 = vld [vmem:[#allocation2 + $0xf8] sm:$0xff] }
 0x116   : > { %1672 = vmatmul.mubr.bf16.gmra.mrb[4].mxu1 %v414_v41  ;;  %v4465_v41 = vsel %vm4443_vm4, %v4456_v16, %v4464_v32  ;;  %v8139_v16 = vld [vmem:[%s11102_s1 + $0xd50] ss:$8 sps:$4 sm:$0xff]  }
 0x117   : > { %4859 = vmatmul.mubr.bf16.gmra.mrb[4].mxu0 %v4457_v30  ;;  %2181 = vmatpush1.bf16.msra.mxu1 %v8118_v14  ;;  %v418_v14 = vpack.c.bf16 %v398_v50, %v394_v48  ;;  %v4357_v30 = vld [vmem:[#allocation2 + $0x18] sm:$0xc0]  ;;  %v4472_v50 = vrot.slane %v4366_v37, 3  ;;  %v8148_v37 = vld [vmem:[%s11102_s1 + $0x470] ss:$8 sps:$4 sm:$0xff]  }
 0x118   : > { %4894 = vmatpush1.bf16.msra.mxu0 %v8121_v58  ;;  %2182 = vmatprep.subr.bf16.mxu1 %v8126_v52  ;;  %v4474_v58 = vrot.slane %v4367_v18, 3  ;;  %v8141_v52 = vld [vmem:[%s11102_s1 + $0xd54] ss:$8 sps:$4 sm:$0xff]  }
 0x119   : > { %4895 = vmatprep.subr.bf16.mxu0 %v8129_v43  ;;  %1681 = vmatprep.mubr.bf16.mxu1 %v419_v0  ;;  %v8136_v43 = vld [vmem:[%s11102_s1 + $0x450] ss:$8 sps:$4 sm:$0xff]  }
 0x11a   : > { %4868 = vmatprep.mubr.bf16.mxu0 %v4467_v20  ;;  %v402_v0 = vld [vmem:[#allocation2 + $0xd0] sm:$0xff]  ;;  %v9906_v20 = vld [vmem:[#allocation2 + $0x38] sm:$0xff] }
 0x11b   : > { %2183 = vmatpush1.bf16.msra.mxu1 %v8124_v44  ;;  %v423_v44 = vpack.c.bf16 %v407_v7, %v403_v4  ;;  %v4365_v48 = vpack.c.bf16 %v9906_v20, %v4357_v30  ;;  %v406_v18 = vld [vmem:[#allocation2 + $0xf0] sm:$0xff] }
 0x11c   : > { %4896 = vmatpush1.bf16.msra.mxu0 %v8127_v3  ;;  %2184 = vmatprep.subr.bf16.mxu1 %v8132_v56  ;;  %v4475_v3 = vsel %vm4443_vm4, %v4466_v21, %v4474_v58  ;;  %v1711_v56 = vpack.c.bf16 %v9692_v8, %v1703_v19  ;;  %v8147_v21 = vld [vmem:[%s11102_s1 + $0xd64] ss:$8 sps:$4 sm:$0xff]   ;;  %v1808_v8 = vrot.slane %v8862_v15, 1  ;;  %v4473_v58 = vsel %vm4443_vm4, %v4464_v32, %v4472_v50  ;;  %v8150_v19 = vld [vmem:[%s11102_s1 + $0x474] ss:$8 sps:$4 sm:$0xff]  }
 0x11d   : > { %4897 = vmatprep.subr.bf16.mxu0 %v8135_v61  ;;  %v8144_v61 = vld [vmem:[%s11102_s1 + $0x464] ss:$8 sps:$4 sm:$0xff]   ;;  %v4453_v7 = vrot.slane %v4365_v48, 3  ;;  %v8163_v48 = vld [vmem:[%s11102_s1 + $0xd90] ss:$8 sps:$4 sm:$0xff]  }
 0x11e   : > { %1682 = vmatmul.mubr.bf16.gmra.mrb[8].mxu1 %v418_v14  ;;  %v1807_v4 = vrot.slane %v1711_v56, 1  ;;  %v8145_v14 = vld [vmem:[%s11102_s1 + $0xd60] ss:$8 sps:$4 sm:$0xff]   ;;  %v8160_v56 = vld [vmem:[%s11102_s1 + $0x490] ss:$8 sps:$4 sm:$0xff]  }
 0x11f   : > { %4869 = vmatmul.mubr.bf16.gmra.mrb[8].mxu0 %v4465_v41  ;;  %2185 = vmatpush1.bf16.msra.mxu1 %v8130_v31  ;;  %v8142_v31 = vld [vmem:[%s11102_s1 + $0x460] ss:$8 sps:$4 sm:$0xff]   ;;  %v8153_v41 = vld [vmem:[%s11102_s1 + $0xd74] ss:$8 sps:$4 sm:$0xff]   ;;  %v4455_v30 = vsel %vm4443_vm4, %v4453_v7, %v4454_v34  ;;  %v8171_v50 = vld [vmem:[%s11102_s1 + $0xda4] ss:$8 sps:$4 sm:$0xff]  }
 0x120   : > { %4898 = vmatpush1.bf16.msra.mxu0 %v8133_v62  ;;  %2186 = vmatprep.subr.bf16.mxu1 %v8138_v59  ;;  %v422_v62 = vpack.c.bf16 %v406_v18, %v402_v0  ;;  %v1809_v32 = vsel %vm1803_vm5, %v1807_v4, %v1808_v8  ;;  %v8151_v59 = vld [vmem:[%s11102_s1 + $0xd70] ss:$8 sps:$4 sm:$0xff]   ;;  %v8165_v0 = vld [vmem:[%s11102_s1 + $0xd94] ss:$8 sps:$4 sm:$0xff]   ;;  %v8168_v18 = vld [vmem:[%s11102_s1 + $0x4a4] ss:$8 sps:$4 sm:$0xff]  }
 0x121   : > { %4899 = vmatprep.subr.bf16.mxu0 %v8141_v52  ;;  %1691 = vmatprep.mubr.bf16.mxu1 %v423_v44  ;;  %v8156_v52 = vld [vmem:[%s11102_s1 + $0x484] ss:$8 sps:$4 sm:$0xff]   ;;  %v8157_v44 = vld [vmem:[%s11102_s1 + $0xd80] ss:$8 sps:$4 sm:$0xff]   ;;  %v8172_v4 = vld [vmem:[%s11102_s1 + $0x4b0] ss:$8 sps:$4 sm:$0xff]  }
 0x122   : > { %4878 = vmatprep.mubr.bf16.mxu0 %v4475_v3  ;;  %v8162_v3 = vld [vmem:[%s11102_s1 + $0x494] ss:$8 sps:$4 sm:$0xff]   ;;  %v8175_v7 = vld [vmem:[%s11102_s1 + $0xdb0] ss:$8 sps:$4 sm:$0xff]  }
 0x123   : > { %2187 = vmatpush1.bf16.msra.mxu1 %v8136_v43  ;;  %v8159_v43 = vld [vmem:[%s11102_s1 + $0xd84] ss:$8 sps:$4 sm:$0xff]  }
 0x124   : > { %4900 = vmatpush1.bf16.msra.mxu0 %v8139_v16  ;;  %2188 = vmatprep.subr.bf16.mxu1 %v8144_v61  ;;  %v8154_v16 = vld [vmem:[%s11102_s1 + $0x480] ss:$8 sps:$4 sm:$0xff]  }
 0x125   : > { %4901 = vmatprep.subr.bf16.mxu0 %v8147_v21  ;;  %v8166_v61 = vld [vmem:[%s11102_s1 + $0x4a0] ss:$8 sps:$4 sm:$0xff]  }
 0x126   : > { %1692 = vmatmul.mubr.bf16.gmra.mrb[12].mxu1 %v422_v62  ;;  %v8169_v21 = vld [vmem:[%s11102_s1 + $0xda0] ss:$8 sps:$4 sm:$0xff]   ;;  %v8177_v62 = vld [vmem:[%s11102_s1 + $0xdb4] ss:$8 sps:$4 sm:$0xff]  }
 0x127   : > { %4879 = vmatmul.mubr.bf16.gmra.mrb[12].mxu0 %v4473_v58  ;;  %2189 = vmatpush1.bf16.msra.mxu1 %v8142_v31  ;;  %v8174_v31 = vld [vmem:[%s11102_s1 + $0x4b4] ss:$8 sps:$4 sm:$0xff]   ;;  %v8183_v58 = vld [vmem:[%s11102_s1 + $0xdc4] ss:$8 sps:$4 sm:$0xff]  }
 0x128   : > { %4902 = vmatpush1.bf16.msra.mxu0 %v8145_v14  ;;  %2190 = vmatprep.subr.bf16.mxu1 %v8150_v19  ;;  %v8180_v14 = vld [vmem:[%s11102_s1 + $0x4c4] ss:$8 sps:$4 sm:$0xff]   ;;  %v8178_v19 = vld [vmem:[%s11102_s1 + $0x4c0] ss:$8 sps:$4 sm:$0xff]  }
 0x129   : > { %4903 = vmatprep.subr.bf16.mxu0 %v8153_v41  ;;  %2208 = vmatprep.mubr.bf16.mxu1 %v1809_v32  ;;  %v8181_v41 = vld [vmem:[%s11102_s1 + $0xdc0] ss:$8 sps:$4 sm:$0xff]   ;;  %v8189_v32 = vld [vmem:[%s11102_s1 + $0xdd4] ss:$8 sps:$4 sm:$0xff]  }
 0x12a   : > { %4921 = vmatprep.mubr.bf16.mxu0 %v4455_v30  ;;  %v8184_v30 = vld [vmem:[%s11102_s1 + $0x4d0] ss:$8 sps:$4 sm:$0xff]  }
 0x12b   : > { %2191 = vmatpush1.bf16.msra.mxu1 %v8148_v37  ;;  %v8186_v37 = vld [vmem:[%s11102_s1 + $0x4d4] ss:$8 sps:$4 sm:$0xff]  }
 0x12c   : > { %4904 = vmatpush1.bf16.msra.mxu0 %v8151_v59  ;;  %2192 = vmatprep.subr.bf16.mxu1 %v8156_v52  ;;  %v8187_v59 = vld [vmem:[%s11102_s1 + $0xdd0] ss:$8 sps:$4 sm:$0xff]   ;;  %v8192_v52 = vld [vmem:[%s11102_s1 + $0x4e4] ss:$8 sps:$4 sm:$0xff]  }
 0x12d   : > { %4905 = vmatprep.subr.bf16.mxu0 %v8159_v43  ;;  %v8195_v43 = vld [vmem:[%s11102_s1 + $0xde4] ss:$8 sps:$4 sm:$0xff]  }
 0x12f   : > { %2193 = vmatpush1.bf16.msra.mxu1 %v8154_v16  ;;  %v1702_v16 = vld [vmem:[#allocation2] sm:$0xfc] }
 0x130   : > { %4906 = vmatpush1.bf16.msra.mxu0 %v8157_v44  ;;  %2194 = vmatprep.subr.bf16.mxu1 %v8162_v3  ;;  %v4356_v44 = vld [vmem:[#allocation2 + $0x10] sm:$0xc0]  ;;  %v8190_v3 = vld [vmem:[%s11102_s1 + $0x4e0] ss:$8 sps:$4 sm:$0xff]  }
 0x131   : > { %4907 = vmatprep.subr.bf16.mxu0 %v8165_v0  ;;  %v8193_v0 = vld [vmem:[%s11102_s1 + $0xde0] ss:$8 sps:$4 sm:$0xff]  }
 0x133   : > { %2195 = vmatpush1.bf16.msra.mxu1 %v8160_v56  ;;  %v8198_v56 = vld [vmem:[%s11102_s1 + $0x4f4] ss:$8 sps:$4 sm:$0xff]  }
 0x134   : > { %4908 = vmatpush1.bf16.msra.mxu0 %v8163_v48  ;;  %2196 = vmatprep.subr.bf16.mxu1 %v8168_v18  ;;  %v1710_v48 = vpack.c.bf16 %v9805_v35, %v1702_v16  ;;  %v10030_v18 = vld [vmem:[#allocation2 + $0x30] sm:$0xff]  ;;  %v1805_v35 = vrot.slane %v8915_v45, 1 }
 0x135   : > { %4909 = vmatprep.subr.bf16.mxu0 %v8171_v50  ;;  %v4364_v50 = vpack.c.bf16 %v10030_v18, %v4356_v44  ;;  %v8208_v16 = vld [vmem:[%s11102_s1 + $0x510] ss:$8 sps:$4 sm:$0xff]  }
 0x137   : > { %2197 = vmatpush1.bf16.msra.mxu1 %v8166_v61  ;;  %v8201_v61 = vld [vmem:[%s11102_s1 + $0xdf4] ss:$8 sps:$4 sm:$0xff]  }
 0x138   : > { %4910 = vmatpush1.bf16.msra.mxu0 %v8169_v21  ;;  %2198 = vmatprep.subr.bf16.mxu1 %v8174_v31  ;;  %v8196_v21 = vld [vmem:[%s11102_s1 + $0x4f0] ss:$8 sps:$4 sm:$0xff]  }
 0x139   : > { %4911 = vmatprep.subr.bf16.mxu0 %v8177_v62  ;;  %v8199_v31 = vld [vmem:[%s11102_s1 + $0xdf0] ss:$8 sps:$4 sm:$0xff]   ;;  %v8204_v62 = vld [vmem:[%s11102_s1 + $0x504] ss:$8 sps:$4 sm:$0xff]  }
 0x13b   : > { %2199 = vmatpush1.bf16.msra.mxu1 %v8172_v4  ;;  %v1804_v4 = vrot.slane %v1710_v48, 1  ;;  %v8216_v48 = vld [vmem:[%s11102_s1 + $0x524] ss:$8 sps:$4 sm:$0xff]  }
 0x13c   : > { %4912 = vmatpush1.bf16.msra.mxu0 %v8175_v7  ;;  %2200 = vmatprep.subr.bf16.mxu1 %v8180_v14  ;;  %v4450_v7 = vrot.slane %v4364_v50, 3  ;;  %v4451_v14 = vrot.slane %v8930_v55, 3  ;;  %v4460_v50 = vrot.slane %v9104_v26, 3 }
 0x13d   : > { %4913 = vmatprep.subr.bf16.mxu0 %v8183_v58  ;;  %v8207_v58 = vld [vmem:[%s11102_s1 + $0xe04] ss:$8 sps:$4 sm:$0xff]  }
 0x13f   : > { %2201 = vmatpush1.bf16.msra.mxu1 %v8178_v19  ;;  %v8202_v19 = vld [vmem:[%s11102_s1 + $0x500] ss:$8 sps:$4 sm:$0xff]  }
 0x140   : > { %4914 = vmatpush1.bf16.msra.mxu0 %v8181_v41  ;;  %2202 = vmatprep.subr.bf16.mxu1 %v8186_v37  ;;  %v1818_v41 = vrot.slane %v9044_v5, 1  ;;  %v4462_v37 = vrot.slane %v9076_v25, 3 }
 0x141   : > { %4915 = vmatprep.subr.bf16.mxu0 %v8189_v32  ;;  %v8205_v32 = vld [vmem:[%s11102_s1 + $0xe00] ss:$8 sps:$4 sm:$0xff]  }
 0x142   : > { %v1819_v44 = vsel %vm1803_vm5, %v1808_v8, %v1818_v41  ;;  %v8219_v8 = vld [vmem:[%s11102_s1 + $0xe24] ss:$8 sps:$4 sm:$0xff]  }
 0x143   : > { %2203 = vmatpush1.bf16.msra.mxu1 %v8184_v30  ;;  %v1806_v30 = vsel %vm1803_vm5, %v1804_v4, %v1805_v35  ;;  %v1707_v4 = vld [vmem:[#allocation2 + $0x108] sm:$0x3] }
 0x144   : > { %4916 = vmatpush1.bf16.msra.mxu0 %v8187_v59  ;;  %2204 = vmatprep.subr.bf16.mxu1 %v8192_v52  ;;  %v4452_v59 = vsel %vm4443_vm4, %v4450_v7, %v4451_v14  ;;  %v8210_v52 = vld [vmem:[%s11102_s1 + $0x514] ss:$8 sps:$4 sm:$0xff]  }
 0x145   : > { %4917 = vmatprep.subr.bf16.mxu0 %v8195_v43  ;;  %v8213_v43 = vld [vmem:[%s11102_s1 + $0xe14] ss:$8 sps:$4 sm:$0xff]  }
 0x147   : > { %2205 = vmatpush1.bf16.msra.mxu1 %v8190_v3  ;;  %v4463_v3 = vsel %vm4443_vm4, %v4454_v34, %v4462_v37  ;;  %v8214_v34 = vld [vmem:[%s11102_s1 + $0x520] ss:$8 sps:$4 sm:$0xff]  }
 0x148   : > { %4918 = vmatpush1.bf16.msra.mxu0 %v8193_v0  ;;  %2206 = vmatprep.subr.bf16.mxu1 %v8198_v56  ;;  %v1816_v0 = vrot.slane %v9102_v36, 1  ;;  %v8211_v56 = vld [vmem:[%s11102_s1 + $0xe10] ss:$8 sps:$4 sm:$0xff]  }
 0x149   : > { %4919 = vmatprep.subr.bf16.mxu0 %v8201_v61  ;;  %v8217_v61 = vld [vmem:[%s11102_s1 + $0xe20] ss:$8 sps:$4 sm:$0xff]  }
 0x14a   : > { %v1817_v7 = vsel %vm1803_vm5, %v1805_v35, %v1816_v0  ;;  %v8223_v35 = vld [vmem:[%s11102_s1 + $0xe30] ss:$8 sps:$4 sm:$0xff]  }
 0x14b   : > { %2207 = vmatpush1.bf16.msra.mxu1 %v8196_v21  ;;  %v1826_v21 = vrot.slane %v9148_v54, 1 }
 0x14c   : > { %4920 = vmatpush1.bf16.msra.mxu0 %v8199_v31  ;;  %2249 = vmatprep.subr.bf16.mxu1 %v8204_v62  ;;  %v8222_v31 = vld [vmem:[%s11102_s1 + $0x534] ss:$8 sps:$4 sm:$0xff]   ;;  %v4470_v62 = vrot.slane %v9174_v24, 3 }
 0x14d   : > { %5512 = vmatprep.subr.bf16.mxu0 %v8207_v58  ;;  %v4461_v58 = vsel %vm4443_vm4, %v4451_v14, %v4460_v50  ;;  %v8228_v14 = vld [vmem:[%s11102_s1 + $0x544] ss:$8 sps:$4 sm:$0xff]  }
 0x14e   : > { %2209 = vmatmul.mubr.bf16.vlgmr.msra.gmra.mrb[0].mxu1 %v1806_v30  ;;  %v8225_v30 = vld [vmem:[%s11102_s1 + $0xe34] ss:$8 sps:$4 sm:$0xff]  }
 0x14f   : > { %4922 = vmatmul.mubr.bf16.vlgmr.msra.gmra.mrb[0].mxu0 %v4452_v59  ;;  %2250 = vmatpush1.bf16.msra.mxu1 %v8202_v19  ;;  %v4361_v19 = vld [vmem:[#allocation2 + $0x118] sm:$0x3f] }
 0x150   : > { %5513 = vmatpush1.bf16.msra.mxu0 %v8205_v32  ;;  %2251 = vmatprep.subr.bf16.mxu1 %v8210_v52  ;;  %v4979_v32 = vld [vmem:[#allocation2 + $0x8] sm:$0x80]  ;;  %v8220_v59 = vld [vmem:[%s11102_s1 + $0x530] ss:$8 sps:$4 sm:$0xff]   ;;  %v1827_v52 = vsel %vm1803_vm5, %v1818_v41, %v1826_v21 }
 0x151   : > { %5514 = vmatprep.subr.bf16.mxu0 %v8213_v43  ;;  %2218 = vmatprep.mubr.bf16.mxu1 %v1819_v44  ;;  %v1715_v43 = vpack.c.bf16 %v1707_v4, %v1707_v4  ;;  %v1824_v44 = vrot.slane %v9181_v39, 1  ;;  %v1706_v4 = vld [vmem:[#allocation2 + $0x100] sm:$0x3] }
 0x152   : > { %4931 = vmatprep.mubr.bf16.mxu0 %v4463_v3  ;;  %v4369_v3 = vpack.c.bf16 %v4361_v19, %v4361_v19  ;;  %v1714_v36 = vpack.c.bf16 %v1706_v4, %v1706_v4 }
 0x153   : > { %2252 = vmatpush1.bf16.msra.mxu1 %v8208_v16  ;;  %v4471_v16 = vsel %vm4443_vm4, %v4462_v37, %v4470_v62  ;;  %v8226_v37 = vld [vmem:[%s11102_s1 + $0x540] ss:$8 sps:$4 sm:$0xff]  }
 0x154   : > { %5515 = vmatpush1.bf16.msra.mxu0 %v8211_v56  ;;  %2253 = vmatprep.subr.bf16.mxu1 %v8216_v48  ;;  %v10114_v56 = vld [vmem:[#allocation2 + $0x28] sm:$0xff]  ;;  %v4478_v19 = vrot.slane %v4369_v3, 3 }
 0x155   : > { %5516 = vmatprep.subr.bf16.mxu0 %v8219_v8  ;;  %v4987_v41 = vpack.c.bf16 %v10114_v56, %v4979_v32  ;;  %v8231_v48 = vld [vmem:[%s11102_s1 + $0xe44] ss:$8 sps:$4 sm:$0xff]   ;;  %v4468_v8 = vrot.slane %v9202_v51, 3 }
 0x156   : > { %2219 = vmatmul.mubr.bf16.gmra.mrb[4].mxu1 %v1817_v7  ;;  %v4360_v7 = vld [vmem:[#allocation2 + $0x110] sm:$0x3f] }
 0x157   : > { %4932 = vmatmul.mubr.bf16.gmra.mrb[4].mxu0 %v4461_v58  ;;  %2254 = vmatpush1.bf16.msra.mxu1 %v8214_v34  ;;  %v8229_v58 = vld [vmem:[%s11102_s1 + $0xe40] ss:$8 sps:$4 sm:$0xff]   ;;  %v1834_v34 = vrot.slane %v1715_v43, 1  ;;  %v5073_v32 = vshrl.u32 %v4987_v41, 16  ;;  %v4469_v54 = vsel %vm4443_vm4, %v4460_v50, %v4468_v8  ;;  %v4368_v5 = vpack.c.bf16 %v4360_v7, %v4360_v7 }
 0x158   : > { %5517 = vmatpush1.bf16.msra.mxu0 %v8217_v61  ;;  %2255 = vmatprep.subr.bf16.mxu1 %v8222_v31  ;;  %v1825_v61 = vsel %vm1803_vm5, %v1816_v0, %v1824_v44  ;;  %v5076_v31 = vshll.u32 %v4987_v41, 16  ;;  %v8237_v0 = vld [vmem:[%s11102_s1 + $0xe54] ss:$8 sps:$4 sm:$0xff]   ;;  %v8238_v7 = vld [vmem:[%s11102_s1 + $0x560] ss:$8 sps:$4 sm:$0xff]  }
 0x159   : > { %5518 = vmatprep.subr.bf16.mxu0 %v8225_v30  ;;  %2228 = vmatprep.mubr.bf16.mxu1 %v1827_v52  ;;  %v8234_v30 = vld [vmem:[%s11102_s1 + $0x554] ss:$8 sps:$4 sm:$0xff]   ;;  %v1835_v43 = vsel %vm1803_vm5, %v1826_v21, %v1834_v34  ;;  %v5075_v3 = vrot.slane %v5073_v32, 3  ;;  %v8235_v21 = vld [vmem:[%s11102_s1 + $0xe50] ss:$8 sps:$4 sm:$0xff]   ;;  %v4476_v4 = vrot.slane %v4368_v5, 3 }
 0x15a   : > { %4941 = vmatprep.mubr.bf16.mxu0 %v4471_v16  ;;  %v1705_v52 = vld [vmem:[#allocation2 + $0x18] sm:$0xfc]  ;;  %v4479_v16 = vsel %vm4443_vm4, %v4470_v62, %v4478_v19  ;;  %v5078_v41 = vrot.slane %v5076_v31, 4  ;;  %v1814_v62 = vrot.slane %v8885_v29, 1  ;;  %v8315_v29 = vld [vmem:[%s11102_s1 + $0xf24] ss:$8 sps:$4 sm:$0xff]  }
 0x15b   : > { %2256 = vmatpush1.bf16.msra.mxu1 %v8220_v59  ;;  %v5080_v59 = vrot.slane %v9028_v60, 3  ;;  %v1713_v50 = vpack.c.bf16 %v9906_v20, %v1705_v52  ;;  %v8243_v20 = vld [vmem:[%s11102_s1 + $0xe64] ss:$8 sps:$4 sm:$0xff]   ;;  %v8246_v34 = vld [vmem:[%s11102_s1 + $0x574] ss:$8 sps:$4 sm:$0xff]   ;;  %v4477_v19 = vsel %vm4443_vm4, %v4468_v8, %v4476_v4 }
 0x15c   : > { %5519 = vmatpush1.bf16.msra.mxu0 %v8223_v35  ;;  %2257 = vmatprep.subr.bf16.mxu1 %v8228_v14  ;;  %v5081_v35 = vrot.slane %v8904_v40, 4  ;;  %v8232_v14 = vld [vmem:[%s11102_s1 + $0x550] ss:$8 sps:$4 sm:$0xff]   ;;  %v5079_v5 = vor.u32 %v5078_v41, %v5075_v3  ;;  %v8249_v32 = vld [vmem:[%s11102_s1 + $0xe74] ss:$8 sps:$4 sm:$0xff]  }
 0x15d   : > { %5520 = vmatprep.subr.bf16.mxu0 %v8231_v48  ;;  %v1832_v48 = vrot.slane %v1714_v36, 1  ;;  %v1813_v36 = vrot.slane %v1713_v50, 1  ;;  %v8244_v31 = vld [vmem:[%s11102_s1 + $0x570] ss:$8 sps:$4 sm:$0xff]   ;;  %v8252_v52 = vld [vmem:[%s11102_s1 + $0x584] ss:$8 sps:$4 sm:$0xff]  }
 0x15e   : > { %2229 = vmatmul.mubr.bf16.gmra.mrb[8].mxu1 %v1825_v61  ;;  %v8247_v8 = vld [vmem:[%s11102_s1 + $0xe70] ss:$8 sps:$4 sm:$0xff]   ;;  %v8264_v41 = vld [vmem:[%s11102_s1 + $0x5a4] ss:$8 sps:$4 sm:$0xff]   ;;  %v8270_v4 = vld [vmem:[%s11102_s1 + $0x5b4] ss:$8 sps:$4 sm:$0xff]  }
 0x15f   : > { %4942 = vmatmul.mubr.bf16.gmra.mrb[8].mxu0 %v4469_v54  ;;  %2258 = vmatpush1.bf16.msra.mxu1 %v8226_v37  ;;  %v8240_v54 = vld [vmem:[%s11102_s1 + $0x564] ss:$8 sps:$4 sm:$0xff]   ;;  %v10158_v37 = vor.u32 %v5081_v35, %v5080_v59  ;;  %v1833_v61 = vsel %vm1803_vm5, %v1824_v44, %v1832_v48  ;;  %v8253_v59 = vld [vmem:[%s11102_s1 + $0xe80] ss:$8 sps:$4 sm:$0xff]   ;;  %v8258_v35 = vld [vmem:[%s11102_s1 + $0x594] ss:$8 sps:$4 sm:$0xff]  }
 0x160   : > { %5521 = vmatpush1.bf16.msra.mxu0 %v8229_v58  ;;  %2259 = vmatprep.subr.bf16.mxu1 %v8234_v30  ;;  %v8241_v58 = vld [vmem:[%s11102_s1 + $0xe60] ss:$8 sps:$4 sm:$0xff]   ;;  %v1815_v30 = vsel %vm1803_vm5, %v1813_v36, %v1814_v62  ;;  %v8256_v50 = vld [vmem:[%s11102_s1 + $0x590] ss:$8 sps:$4 sm:$0xff]   ;;  %v8276_v36 = vld [vmem:[%s11102_s1 + $0x5c4] ss:$8 sps:$4 sm:$0xff]  }
 0x161   : > { %5522 = vmatprep.subr.bf16.mxu0 %v8237_v0  ;;  %2238 = vmatprep.mubr.bf16.mxu1 %v1835_v43  ;;  %v5083_v44 = vsel %vm5059_vm6, %v5079_v5, %v10158_v37  ;;  %v8255_v0 = vld [vmem:[%s11102_s1 + $0xe84] ss:$8 sps:$4 sm:$0xff]   ;;  %v8250_v43 = vld [vmem:[%s11102_s1 + $0x580] ss:$8 sps:$4 sm:$0xff]   ;;  %v8259_v3 = vld [vmem:[%s11102_s1 + $0xe90] ss:$8 sps:$4 sm:$0xff]  }
 0x162   : > { %4951 = vmatprep.mubr.bf16.mxu0 %v4479_v16  ;;  %v8261_v16 = vld [vmem:[%s11102_s1 + $0xe94] ss:$8 sps:$4 sm:$0xff]   ;;  %v8265_v48 = vld [vmem:[%s11102_s1 + $0xea0] ss:$8 sps:$4 sm:$0xff]   ;;  %v8279_v5 = vld [vmem:[%s11102_s1 + $0xec4] ss:$8 sps:$4 sm:$0xff]  }
 0x163   : > { %2260 = vmatpush1.bf16.msra.mxu1 %v8232_v14  ;;  %v8267_v14 = vld [vmem:[%s11102_s1 + $0xea4] ss:$8 sps:$4 sm:$0xff]  }
 0x164   : > { %5523 = vmatpush1.bf16.msra.mxu0 %v8235_v21  ;;  %2261 = vmatprep.subr.bf16.mxu1 %v8240_v54  ;;  %v8262_v21 = vld [vmem:[%s11102_s1 + $0x5a0] ss:$8 sps:$4 sm:$0xff]   ;;  %v8273_v54 = vld [vmem:[%s11102_s1 + $0xeb4] ss:$8 sps:$4 sm:$0xff]  }
 0x165   : > { %5524 = vmatprep.subr.bf16.mxu0 %v8243_v20  ;;  %v8268_v20 = vld [vmem:[%s11102_s1 + $0x5b0] ss:$8 sps:$4 sm:$0xff]  }
 0x166   : > { %2239 = vmatmul.mubr.bf16.gmra.mrb[12].mxu1 %v1833_v61  ;;  %v8277_v61 = vld [vmem:[%s11102_s1 + $0xec0] ss:$8 sps:$4 sm:$0xff]  }
 0x167   : > { %4952 = vmatmul.mubr.bf16.gmra.mrb[12].mxu0 %v4477_v19  ;;  %2262 = vmatpush1.bf16.msra.mxu1 %v8238_v7  ;;  %v8271_v7 = vld [vmem:[%s11102_s1 + $0xeb0] ss:$8 sps:$4 sm:$0xff]   ;;  %v10244_v19 = vld [vmem:[#allocation2 + $0x20] sm:$0xff] }
 0x168   : > { %5525 = vmatpush1.bf16.msra.mxu0 %v8241_v58  ;;  %2263 = vmatprep.subr.bf16.mxu1 %v8246_v34  ;;  %v4978_v58 = vld [vmem:[#allocation2] sm:$0x80]  ;;  %v8274_v34 = vld [vmem:[%s11102_s1 + $0x5c0] ss:$8 sps:$4 sm:$0xff]  }
 0x169   : > { %5526 = vmatprep.subr.bf16.mxu0 %v8249_v32  ;;  %2281 = vmatprep.mubr.bf16.mxu1 %v1815_v30  ;;  %v4986_v32 = vpack.c.bf16 %v10244_v19, %v4978_v58  ;;  %v8285_v30 = vld [vmem:[%s11102_s1 + $0xed4] ss:$8 sps:$4 sm:$0xff]  }
 0x16a   : > { %5544 = vmatprep.mubr.bf16.mxu0 %v5083_v44  ;;  %v8280_v44 = vld [vmem:[%s11102_s1 + $0x5d0] ss:$8 sps:$4 sm:$0xff]  }
 0x16b   : > { %2264 = vmatpush1.bf16.msra.mxu1 %v8244_v31  ;;  %v8282_v31 = vld [vmem:[%s11102_s1 + $0x5d4] ss:$8 sps:$4 sm:$0xff]  }
 0x16c   : > { %5527 = vmatpush1.bf16.msra.mxu0 %v8247_v8  ;;  %2265 = vmatprep.subr.bf16.mxu1 %v8252_v52  ;;  %v8283_v8 = vld [vmem:[%s11102_s1 + $0xed0] ss:$8 sps:$4 sm:$0xff]   ;;  %v8288_v52 = vld [vmem:[%s11102_s1 + $0x5e4] ss:$8 sps:$4 sm:$0xff]  }
 0x16d   : > { %5528 = vmatprep.subr.bf16.mxu0 %v8255_v0  ;;  %v5061_v0 = vshrl.u32 %v4986_v32, 16 }
 0x16f   : > { %2266 = vmatpush1.bf16.msra.mxu1 %v8250_v43  ;;  %v5064_v43 = vshll.u32 %v4986_v32, 16 }
 0x170   : > { %5529 = vmatpush1.bf16.msra.mxu0 %v8253_v59  ;;  %2267 = vmatprep.subr.bf16.mxu1 %v8258_v35  ;;  %v8291_v59 = vld [vmem:[%s11102_s1 + $0xee4] ss:$8 sps:$4 sm:$0xff]   ;;  %v1704_v35 = vld [vmem:[#allocation2 + $0x10] sm:$0xfc] }
 0x171   : > { %5530 = vmatprep.subr.bf16.mxu0 %v8261_v16  ;;  %v8286_v16 = vld [vmem:[%s11102_s1 + $0x5e0] ss:$8 sps:$4 sm:$0xff]  }
 0x173   : > { %2268 = vmatpush1.bf16.msra.mxu1 %v8256_v50  ;;  %v5068_v50 = vrot.slane %v9053_v10, 3 }
 0x174   : > { %5531 = vmatpush1.bf16.msra.mxu0 %v8259_v3  ;;  %2269 = vmatprep.subr.bf16.mxu1 %v8264_v41  ;;  %v8289_v3 = vld [vmem:[%s11102_s1 + $0xee0] ss:$8 sps:$4 sm:$0xff]   ;;  %v1712_v41 = vpack.c.bf16 %v10030_v18, %v1704_v35  ;;  %v5112_v18 = vrot.slane %v9098_v33, 3  ;;  %v5108_v35 = vrot.slane %v9157_v22, 3 }
 0x175   : > { %5532 = vmatprep.subr.bf16.mxu0 %v8267_v14  ;;  %v5063_v14 = vrot.slane %v5061_v0, 3 }
 0x176   : > { %v1810_v58 = vrot.slane %v1712_v41, 1  ;;  %v8307_v41 = vld [vmem:[%s11102_s1 + $0xf10] ss:$8 sps:$4 sm:$0xff]  }
 0x177   : > { %2270 = vmatpush1.bf16.msra.mxu1 %v8262_v21  ;;  %v5066_v21 = vrot.slane %v5064_v43, 4 }
 0x178   : > { %5533 = vmatpush1.bf16.msra.mxu0 %v8265_v48  ;;  %2271 = vmatprep.subr.bf16.mxu1 %v8270_v4  ;;  %v5069_v48 = vrot.slane %v8938_v63, 4  ;;  %v8294_v4 = vld [vmem:[%s11102_s1 + $0x5f4] ss:$8 sps:$4 sm:$0xff]  }
 0x179   : > { %5534 = vmatprep.subr.bf16.mxu0 %v8273_v54  ;;  %v8297_v54 = vld [vmem:[%s11102_s1 + $0xef4] ss:$8 sps:$4 sm:$0xff]  }
 0x17a   : > { %v5070_v32 = vor.u32 %v5069_v48, %v5068_v50  ;;  %v5128_v48 = vrot.slane %v9195_v46, 3 }
 0x17b   : > { %2272 = vmatpush1.bf16.msra.mxu1 %v8268_v20  ;;  %v8292_v20 = vld [vmem:[%s11102_s1 + $0x5f0] ss:$8 sps:$4 sm:$0xff]  }
 0x17c   : > { %5535 = vmatpush1.bf16.msra.mxu0 %v8271_v7  ;;  %2273 = vmatprep.subr.bf16.mxu1 %v8276_v36  ;;  %v5113_v7 = vrot.slane %v9074_v23, 4  ;;  %v8295_v36 = vld [vmem:[%s11102_s1 + $0xef0] ss:$8 sps:$4 sm:$0xff]  }
 0x17d   : > { %5536 = vmatprep.subr.bf16.mxu0 %v8279_v5  ;;  %v8300_v5 = vld [vmem:[%s11102_s1 + $0x604] ss:$8 sps:$4 sm:$0xff]  }
 0x17f   : > { %2274 = vmatpush1.bf16.msra.mxu1 %v8274_v34  ;;  %v1811_v34 = vrot.slane %v8930_v55, 1  ;;  %v8301_v55 = vld [vmem:[%s11102_s1 + $0xf00] ss:$8 sps:$4 sm:$0xff]  }
 0x180   : > { %5537 = vmatpush1.bf16.msra.mxu0 %v8277_v61  ;;  %2275 = vmatprep.subr.bf16.mxu1 %v8282_v31  ;;  %v5067_v61 = vor.u32 %v5066_v21, %v5063_v14  ;;  %v8303_v31 = vld [vmem:[%s11102_s1 + $0xf04] ss:$8 sps:$4 sm:$0xff]  }
 0x181   : > { %5538 = vmatprep.subr.bf16.mxu0 %v8285_v30  ;;  %v8298_v30 = vld [vmem:[%s11102_s1 + $0x600] ss:$8 sps:$4 sm:$0xff]   ;;  %v1812_v0 = vsel %vm1803_vm5, %v1810_v58, %v1811_v34 }
 0x182   : > { %v5071_v43 = vsel %vm5059_vm6, %v5067_v61, %v5070_v32 }
 0x183   : > { %2276 = vmatpush1.bf16.msra.mxu1 %v8280_v44  ;;  %v1822_v44 = vrot.slane %v9076_v25, 1  ;;  %v5109_v25 = vrot.slane %v9123_v49, 4 }
 0x184   : > { %5539 = vmatpush1.bf16.msra.mxu0 %v8283_v8  ;;  %2277 = vmatprep.subr.bf16.mxu1 %v8288_v52  ;;  %v10299_v8 = vor.u32 %v5113_v7, %v5112_v18  ;;  %v4983_v52 = vld [vmem:[#allocation2 + $0x108] sm:$0x7f] }
 0x185   : > { %5540 = vmatprep.subr.bf16.mxu0 %v8291_v59  ;;  %v8306_v59 = vld [vmem:[%s11102_s1 + $0x614] ss:$8 sps:$4 sm:$0xff]   ;;  %v4991_v50 = vpack.c.bf16 %v4983_v52, %v4983_v52  ;;  %v1823_v14 = vsel %vm1803_vm5, %v1814_v62, %v1822_v44  ;;  %v1820_v62 = vrot.slane %v9104_v26, 1  ;;  %v8310_v18 = vld [vmem:[%s11102_s1 + $0x620] ss:$8 sps:$4 sm:$0xff]  }
 0x186   : > { %v5115_v21 = vsel %vm5059_vm6, %v10158_v37, %v10299_v8  ;;  %v4982_v37 = vld [vmem:[#allocation2 + $0x100] sm:$0x7f]  ;;  %v8318_v26 = vld [vmem:[%s11102_s1 + $0x634] ss:$8 sps:$4 sm:$0xff]  }
 0x187   : > { %2278 = vmatpush1.bf16.msra.mxu1 %v8286_v16  ;;  %v8309_v16 = vld [vmem:[%s11102_s1 + $0xf14] ss:$8 sps:$4 sm:$0xff]   ;;  %v8313_v7 = vld [vmem:[%s11102_s1 + $0xf20] ss:$8 sps:$4 sm:$0xff]   ;;  %v5153_v58 = vshll.u32 %v4991_v50, 16  ;;  %v1821_v52 = vsel %vm1803_vm5, %v1811_v34, %v1820_v62 }
 0x188   : > { %5541 = vmatpush1.bf16.msra.mxu0 %v8289_v3  ;;  %2279 = vmatprep.subr.bf16.mxu1 %v8294_v4  ;;  %v8304_v3 = vld [vmem:[%s11102_s1 + $0x610] ss:$8 sps:$4 sm:$0xff]   ;;  %v5129_v4 = vrot.slane %v9168_v2, 4 }
 0x189   : > { %5542 = vmatprep.subr.bf16.mxu0 %v8297_v54  ;;  %v8312_v54 = vld [vmem:[%s11102_s1 + $0x624] ss:$8 sps:$4 sm:$0xff]   ;;  %v8316_v34 = vld [vmem:[%s11102_s1 + $0x630] ss:$8 sps:$4 sm:$0xff]  }
 0x18a   : > { %v5130_v61 = vor.u32 %v5129_v4, %v5128_v48 }
 0x18b   : > { %2280 = vmatpush1.bf16.msra.mxu1 %v8292_v20  ;;  %v10335_v20 = vor.u32 %v5109_v25, %v5108_v35  ;;  %v4981_v35 = vld [vmem:[#allocation2 + $0x18] sm:$0x80] }
 0x18c   : > { %5543 = vmatpush1.bf16.msra.mxu0 %v8295_v36  ;;  %2872 = vmatprep.subr.bf16.mxu1 %v8300_v5  ;;  %v1830_v36 = vrot.slane %v9174_v24, 1  ;;  %v5150_v5 = vshrl.u32 %v4991_v50, 16  ;;  %v8321_v25 = vld [vmem:[%s11102_s1 + $0xf34] ss:$8 sps:$4 sm:$0xff]   ;;  %v5131_v48 = vsel %vm5059_vm6, %v10299_v8, %v5130_v61  ;;  %v8325_v8 = vld [vmem:[%s11102_s1 + $0xf40] ss:$8 sps:$4 sm:$0xff]  }
 0x18d   : > { %5585 = vmatprep.subr.bf16.mxu0 %v8303_v31  ;;  %v5124_v31 = vrot.slane %v9226_v13, 3 }
 0x18e   : > { %2282 = vmatmul.mubr.bf16.vlgmr.msra.gmra.mrb[0].mxu1 %v1812_v0  ;;  %v5125_v0 = vrot.slane %v9200_v47, 4  ;;  %v1831_v50 = vsel %vm1803_vm5, %v1822_v44, %v1830_v36  ;;  %v8327_v44 = vld [vmem:[%s11102_s1 + $0xf44] ss:$8 sps:$4 sm:$0xff]  }
 0x18f   : > { %5545 = vmatmul.mubr.bf16.vlgmr.msra.gmra.mrb[0].mxu0 %v5071_v43  ;;  %2873 = vmatpush1.bf16.msra.mxu1 %v8298_v30  ;;  %v1709_v30 = vld [vmem:[#allocation2 + $0x118] sm:$0x3]  ;;  %v4990_v43 = vpack.c.bf16 %v4982_v37, %v4982_v37 }
 0x190   : > { %5586 = vmatpush1.bf16.msra.mxu0 %v8301_v55  ;;  %2874 = vmatprep.subr.bf16.mxu1 %v8306_v59  ;;  %v5111_v55 = vsel %vm5059_vm6, %v5070_v32, %v10335_v20  ;;  %v2339_v59 = vld [vmem:[#allocation2 + $0x8] sm:$0xf8]  ;;  %v8319_v32 = vld [vmem:[%s11102_s1 + $0xf30] ss:$8 sps:$4 sm:$0xff]   ;;  %v5126_v37 = vor.u32 %v5125_v0, %v5124_v31 }
 0x191   : > { %5587 = vmatprep.subr.bf16.mxu0 %v8309_v16  ;;  %2291 = vmatprep.mubr.bf16.mxu1 %v1823_v14  ;;  %v1828_v16 = vrot.slane %v9202_v51, 1  ;;  %v5155_v14 = vrot.slane %v5153_v58, 4  ;;  %v2347_v4 = vpack.c.bf16 %v10114_v56, %v2339_v59  ;;  %v5144_v58 = vshll.u32 %v4990_v43, 16  ;;  %v8322_v56 = vld [vmem:[%s11102_s1 + $0x640] ss:$8 sps:$4 sm:$0xff]  }
 0x192   : > { %5554 = vmatprep.mubr.bf16.mxu0 %v5115_v21  ;;  %v8324_v21 = vld [vmem:[%s11102_s1 + $0x644] ss:$8 sps:$4 sm:$0xff]   ;;  %v5127_v59 = vsel %vm5059_vm6, %v10335_v20, %v5126_v37  ;;  %v5104_v20 = vrot.slane %v9323_v6, 3 }
 0x193   : > { %2875 = vmatpush1.bf16.msra.mxu1 %v8304_v3  ;;  %v1717_v3 = vpack.c.bf16 %v1709_v30, %v1709_v30  ;;  %v1708_v30 = vld [vmem:[#allocation2 + $0x110] sm:$0x3] }
 0x194   : > { %5588 = vmatpush1.bf16.msra.mxu0 %v8307_v41  ;;  %2876 = vmatprep.subr.bf16.mxu1 %v8312_v54  ;;  %v5152_v41 = vrot.slane %v5150_v5, 3  ;;  %v10371_v54 = vld [vmem:[#allocation2 + $0x38] sm:$0xff]  ;;  %v5141_v5 = vshrl.u32 %v4990_v43, 16 }
 0x195   : > { %5589 = vmatprep.subr.bf16.mxu0 %v8315_v29  ;;  %v4989_v29 = vpack.c.bf16 %v10371_v54, %v4981_v35  ;;  %v8330_v43 = vld [vmem:[%s11102_s1 + $0x654] ss:$8 sps:$4 sm:$0xff]   ;;  %v1716_v35 = vpack.c.bf16 %v1708_v30, %v1708_v30 }
 0x196   : > { %2292 = vmatmul.mubr.bf16.gmra.mrb[4].mxu1 %v1821_v52  ;;  %v5156_v31 = vor.u32 %v5155_v14, %v5152_v41  ;;  %v2433_v52 = vshrl.u32 %v2347_v4, 16  ;;  %v5105_v14 = vrot.slane %v9214_v1, 4 }
 0x197   : > { %5555 = vmatmul.mubr.bf16.gmra.mrb[4].mxu0 %v5111_v55  ;;  %2877 = vmatpush1.bf16.msra.mxu1 %v8310_v18  ;;  %v1829_v18 = vsel %vm1803_vm5, %v1820_v62, %v1828_v16  ;;  %v5097_v55 = vshrl.u32 %v4989_v29, 16  ;;  %v5100_v0 = vshll.u32 %v4989_v29, 16  ;;  %v8333_v62 = vld [vmem:[%s11102_s1 + $0xf54] ss:$8 sps:$4 sm:$0xff]   ;;  %v1836_v24 = vrot.slane %v1716_v35, 1 }
 0x198   : > { %5590 = vmatpush1.bf16.msra.mxu0 %v8313_v7  ;;  %2878 = vmatprep.subr.bf16.mxu1 %v8318_v26  ;;  %v1838_v7 = vrot.slane %v1717_v3, 1  ;;  %v2436_v26 = vshll.u32 %v2347_v4, 16  ;;  %v2440_v3 = vrot.slane %v9028_v60, 1  ;;  %v5157_v41 = vsel %vm5059_vm6, %v5130_v61, %v5156_v31  ;;  %v8331_v60 = vld [vmem:[%s11102_s1 + $0xf50] ss:$8 sps:$4 sm:$0xff]  }
 0x199   : > { %5591 = vmatprep.subr.bf16.mxu0 %v8321_v25  ;;  %2301 = vmatprep.mubr.bf16.mxu1 %v1831_v50  ;;  %v5143_v25 = vrot.slane %v5141_v5, 3  ;;  %v5146_v50 = vrot.slane %v5144_v58, 4  ;;  %v5099_v4 = vrot.slane %v5097_v55, 3  ;;  %v5102_v29 = vrot.slane %v5100_v0, 4  ;;  %v8336_v61 = vld [vmem:[%s11102_s1 + $0x664] ss:$8 sps:$4 sm:$0xff]  }
 0x19a   : > { %5564 = vmatprep.mubr.bf16.mxu0 %v5131_v48  ;;  %v2438_v48 = vrot.slane %v2436_v26, 2  ;;  %v8334_v5 = vld [vmem:[%s11102_s1 + $0x660] ss:$8 sps:$4 sm:$0xff]   ;;  %v8345_v26 = vld [vmem:[%s11102_s1 + $0xf74] ss:$8 sps:$4 sm:$0xff]  }
 0x19b   : > { %2879 = vmatpush1.bf16.msra.mxu1 %v8316_v34  ;;  %v2441_v34 = vrot.slane %v8904_v40, 2  ;;  %v8328_v40 = vld [vmem:[%s11102_s1 + $0x650] ss:$8 sps:$4 sm:$0xff]   ;;  %v8348_v0 = vld [vmem:[%s11102_s1 + $0x684] ss:$8 sps:$4 sm:$0xff]  }
 0x19c   : > { %5592 = vmatpush1.bf16.msra.mxu0 %v8319_v32  ;;  %2880 = vmatprep.subr.bf16.mxu1 %v8324_v21  ;;  %v1839_v32 = vsel %vm1803_vm5, %v1830_v36, %v1838_v7  ;;  %v2435_v21 = vrot.slane %v2433_v52, 1  ;;  %v5147_v36 = vor.u32 %v5146_v50, %v5143_v25  ;;  %v1837_v7 = vsel %vm1803_vm5, %v1828_v16, %v1836_v24  ;;  %v8342_v52 = vld [vmem:[%s11102_s1 + $0x674] ss:$8 sps:$4 sm:$0xff]   ;;  %v8343_v55 = vld [vmem:[%s11102_s1 + $0xf70] ss:$8 sps:$4 sm:$0xff]  }
 0x19d   : > { %5593 = vmatprep.subr.bf16.mxu0 %v8327_v44  ;;  %v8339_v44 = vld [vmem:[%s11102_s1 + $0xf64] ss:$8 sps:$4 sm:$0xff]   ;;  %v10417_v30 = vor.u32 %v2441_v34, %v2440_v3  ;;  %v8349_v35 = vld [vmem:[%s11102_s1 + $0xf80] ss:$8 sps:$4 sm:$0xff]   ;;  %v8354_v25 = vld [vmem:[%s11102_s1 + $0x694] ss:$8 sps:$4 sm:$0xff]  }
 0x19e   : > { %2302 = vmatmul.mubr.bf16.gmra.mrb[8].mxu1 %v1829_v18  ;;  %v2439_v58 = vor.u32 %v2438_v48, %v2435_v21  ;;  %v8337_v18 = vld [vmem:[%s11102_s1 + $0xf60] ss:$8 sps:$4 sm:$0xff]   ;;  %v5148_v31 = vsel %vm5059_vm6, %v5126_v37, %v5147_v36  ;;  %v8340_v37 = vld [vmem:[%s11102_s1 + $0x670] ss:$8 sps:$4 sm:$0xff]   ;;  %v8357_v50 = vld [vmem:[%s11102_s1 + $0xf94] ss:$8 sps:$4 sm:$0xff]  }
 0x19f   : > { %5565 = vmatmul.mubr.bf16.gmra.mrb[8].mxu0 %v5127_v59  ;;  %2881 = vmatpush1.bf16.msra.mxu1 %v8322_v56  ;;  %v5103_v56 = vor.u32 %v5102_v29, %v5099_v4  ;;  %v8346_v59 = vld [vmem:[%s11102_s1 + $0x680] ss:$8 sps:$4 sm:$0xff]   ;;  %v8355_v3 = vld [vmem:[%s11102_s1 + $0xf90] ss:$8 sps:$4 sm:$0xff]   ;;  %v8360_v34 = vld [vmem:[%s11102_s1 + $0x6a4] ss:$8 sps:$4 sm:$0xff]  }
 0x1a0   : > { %5594 = vmatpush1.bf16.msra.mxu0 %v8325_v8  ;;  %2882 = vmatprep.subr.bf16.mxu1 %v8330_v43  ;;  %v10419_v8 = vor.u32 %v5105_v14, %v5104_v20  ;;  %v2443_v51 = vsel %vm2419_vm7, %v2439_v58, %v10417_v30  ;;  %v8351_v43 = vld [vmem:[%s11102_s1 + $0xf84] ss:$8 sps:$4 sm:$0xff]   ;;  %v8361_v20 = vld [vmem:[%s11102_s1 + $0xfa0] ss:$8 sps:$4 sm:$0xff]   ;;  %v8366_v14 = vld [vmem:[%s11102_s1 + $0x6b4] ss:$8 sps:$4 sm:$0xff]  }
 0x1a1   : > { %5595 = vmatprep.subr.bf16.mxu0 %v8333_v62  ;;  %2311 = vmatprep.mubr.bf16.mxu1 %v1839_v32  ;;  %v8352_v62 = vld [vmem:[%s11102_s1 + $0x690] ss:$8 sps:$4 sm:$0xff]   ;;  %v8363_v32 = vld [vmem:[%s11102_s1 + $0xfa4] ss:$8 sps:$4 sm:$0xff]   ;;  %v8369_v21 = vld [vmem:[%s11102_s1 + $0xfb4] ss:$8 sps:$4 sm:$0xff]  }
 0x1a2   : > { %5574 = vmatprep.mubr.bf16.mxu0 %v5157_v41  ;;  %v5107_v16 = vsel %vm5059_vm6, %v5103_v56, %v10419_v8  ;;  %v8358_v41 = vld [vmem:[%s11102_s1 + $0x6a0] ss:$8 sps:$4 sm:$0xff]   ;;  %v8364_v48 = vld [vmem:[%s11102_s1 + $0x6b0] ss:$8 sps:$4 sm:$0xff]   ;;  %v8372_v29 = vld [vmem:[%s11102_s1 + $0x6c4] ss:$8 sps:$4 sm:$0xff]  }
 0x1a3   : > { %2883 = vmatpush1.bf16.msra.mxu1 %v8328_v40  ;;  %v8367_v4 = vld [vmem:[%s11102_s1 + $0xfb0] ss:$8 sps:$4 sm:$0xff]   ;;  %v8375_v40 = vld [vmem:[%s11102_s1 + $0xfc4] ss:$8 sps:$4 sm:$0xff]   ;;  %v4980_v24 = vld [vmem:[#allocation2 + $0x10] sm:$0x80] }
 0x1a4   : > { %5596 = vmatpush1.bf16.msra.mxu0 %v8331_v60  ;;  %2884 = vmatprep.subr.bf16.mxu1 %v8336_v61  ;;  %v2338_v60 = vld [vmem:[#allocation2] sm:$0xf8]  ;;  %v8378_v56 = vld [vmem:[%s11102_s1 + $0x6d4] ss:$8 sps:$4 sm:$0xff]  }
 0x1a5   : > { %5597 = vmatprep.subr.bf16.mxu0 %v8339_v44  ;;  %v8370_v36 = vld [vmem:[%s11102_s1 + $0x6c0] ss:$8 sps:$4 sm:$0xff]   ;;  %v2346_v44 = vpack.c.bf16 %v10244_v19, %v2338_v60  ;;  %v8379_v19 = vld [vmem:[%s11102_s1 + $0xfd0] ss:$8 sps:$4 sm:$0xff]   ;;  %v8399_v60 = vld [vmem:[%s11102_s1 + $0x1004] ss:$8 sps:$4 sm:$0xff]  }
 0x1a6   : > { %2312 = vmatmul.mubr.bf16.gmra.mrb[12].mxu1 %v1837_v7  ;;  %v8373_v61 = vld [vmem:[%s11102_s1 + $0xfc0] ss:$8 sps:$4 sm:$0xff]   ;;  %v8376_v7 = vld [vmem:[%s11102_s1 + $0x6d0] ss:$8 sps:$4 sm:$0xff]  }
 0x1a7   : > { %5575 = vmatmul.mubr.bf16.gmra.mrb[12].mxu0 %v5148_v31  ;;  %2885 = vmatpush1.bf16.msra.mxu1 %v8334_v5  ;;  %v10505_v5 = vld [vmem:[#allocation2 + $0x30] sm:$0xff]  ;;  %v2421_v31 = vshrl.u32 %v2346_v44, 16 }
 0x1a8   : > { %5598 = vmatpush1.bf16.msra.mxu0 %v8337_v18  ;;  %2886 = vmatprep.subr.bf16.mxu1 %v8342_v52  ;;  %v4988_v58 = vpack.c.bf16 %v10505_v5, %v4980_v24  ;;  %v8381_v18 = vld [vmem:[%s11102_s1 + $0xfd4] ss:$8 sps:$4 sm:$0xff]   ;;  %v2424_v52 = vshll.u32 %v2346_v44, 16  ;;  %v8394_v24 = vld [vmem:[%s11102_s1 + $0x700] ss:$8 sps:$4 sm:$0xff]  }
 0x1a9   : > { %5599 = vmatprep.subr.bf16.mxu0 %v8345_v26  ;;  %2904 = vmatprep.mubr.bf16.mxu1 %v2443_v51 }
 0x1aa   : > { %5617 = vmatprep.mubr.bf16.mxu0 %v5107_v16  ;;  %v5085_v26 = vshrl.u32 %v4988_v58, 16  ;;  %v5088_v51 = vshll.u32 %v4988_v58, 16  ;;  %v8384_v16 = vld [vmem:[%s11102_s1 + $0x6e4] ss:$8 sps:$4 sm:$0xff]   ;;  %v2468_v58 = vrot.slane %v9157_v22, 1 }
 0x1ab   : > { %2887 = vmatpush1.bf16.msra.mxu1 %v8340_v37  ;;  %v8387_v37 = vld [vmem:[%s11102_s1 + $0xfe4] ss:$8 sps:$4 sm:$0xff]   ;;  %v4985_v22 = vld [vmem:[#allocation2 + $0x118] sm:$0x7f] }
 0x1ac   : > { %5600 = vmatpush1.bf16.msra.mxu0 %v8343_v55  ;;  %2888 = vmatprep.subr.bf16.mxu1 %v8348_v0  ;;  %v8382_v55 = vld [vmem:[%s11102_s1 + $0x6e0] ss:$8 sps:$4 sm:$0xff]   ;;  %v2428_v0 = vrot.slane %v9053_v10, 1  ;;  %v8393_v10 = vld [vmem:[%s11102_s1 + $0xff4] ss:$8 sps:$4 sm:$0xff]  }
 0x1ad   : > { %5601 = vmatprep.subr.bf16.mxu0 %v8351_v43  ;;  %v2429_v43 = vrot.slane %v8938_v63, 2  ;;  %v8390_v63 = vld [vmem:[%s11102_s1 + $0x6f4] ss:$8 sps:$4 sm:$0xff]  }
 0x1af   : > { %2889 = vmatpush1.bf16.msra.mxu1 %v8346_v59  ;;  %v5092_v59 = vrot.slane %v9351_v38, 3 }
 0x1b0   : > { %5602 = vmatpush1.bf16.msra.mxu0 %v8349_v35  ;;  %2890 = vmatprep.subr.bf16.mxu1 %v8354_v25  ;;  %v5093_v35 = vrot.slane %v9309_v17, 4  ;;  %v8385_v25 = vld [vmem:[%s11102_s1 + $0xfe0] ss:$8 sps:$4 sm:$0xff]  }
 0x1b1   : > { %5603 = vmatprep.subr.bf16.mxu0 %v8357_v50  ;;  %v2423_v50 = vrot.slane %v2421_v31, 1  ;;  %v8402_v31 = vld [vmem:[%s11102_s1 + $0x714] ss:$8 sps:$4 sm:$0xff]  }
 0x1b3   : > { %2891 = vmatpush1.bf16.msra.mxu1 %v8352_v62  ;;  %v2426_v62 = vrot.slane %v2424_v52, 2  ;;  %v5116_v52 = vrot.slane %v9402_v27, 3 }
 0x1b4   : > { %5604 = vmatpush1.bf16.msra.mxu0 %v8355_v3  ;;  %2892 = vmatprep.subr.bf16.mxu1 %v8360_v34  ;;  %v5087_v3 = vrot.slane %v5085_v26, 3  ;;  %v5090_v34 = vrot.slane %v5088_v51, 4  ;;  %v5117_v26 = vrot.slane %v9354_v42, 4  ;;  %v2488_v51 = vrot.slane %v9195_v46, 1 }
 0x1b5   : > { %5605 = vmatprep.subr.bf16.mxu0 %v8363_v32  ;;  %v2472_v32 = vrot.slane %v9098_v33, 1 }
 0x1b6   : > { %v5091_v33 = vor.u32 %v5090_v34, %v5087_v3  ;;  %v2484_v34 = vrot.slane %v9226_v13, 1  ;;  %v8406_v13 = vld [vmem:[%s11102_s1 + $0x720] ss:$8 sps:$4 sm:$0xff]  }
 0x1b7   : > { %2893 = vmatpush1.bf16.msra.mxu1 %v8358_v41  ;;  %v2473_v41 = vrot.slane %v9074_v23, 2  ;;  %v8396_v23 = vld [vmem:[%s11102_s1 + $0x704] ss:$8 sps:$4 sm:$0xff]  }
 0x1b8   : > { %5606 = vmatpush1.bf16.msra.mxu0 %v8361_v20  ;;  %2894 = vmatprep.subr.bf16.mxu1 %v8366_v14  ;;  %v10544_v20 = vor.u32 %v2429_v43, %v2428_v0  ;;  %v5120_v14 = vrot.slane %v9374_v57, 3 }
 0x1b9   : > { %5607 = vmatprep.subr.bf16.mxu0 %v8369_v21  ;;  %v5121_v21 = vrot.slane %v9326_v9, 4 }
 0x1bb   : > { %2895 = vmatpush1.bf16.msra.mxu1 %v8364_v48  ;;  %v8388_v48 = vld [vmem:[%s11102_s1 + $0x6f0] ss:$8 sps:$4 sm:$0xff]   ;;  %v10570_v44 = vor.u32 %v5121_v21, %v5120_v14  ;;  %v5133_v14 = vrot.slane %v9405_v12, 4 }
 0x1bc   : > { %5608 = vmatpush1.bf16.msra.mxu0 %v8367_v4  ;;  %2896 = vmatprep.subr.bf16.mxu1 %v8372_v29  ;;  %v8391_v4 = vld [vmem:[%s11102_s1 + $0xff0] ss:$8 sps:$4 sm:$0xff]   ;;  %v2427_v29 = vor.u32 %v2426_v62, %v2423_v50  ;;  %v8411_v50 = vld [vmem:[%s11102_s1 + $0x1024] ss:$8 sps:$4 sm:$0xff]   ;;  %v5118_v62 = vor.u32 %v5117_v26, %v5116_v52 }
 0x1bd   : > { %5609 = vmatprep.subr.bf16.mxu0 %v8375_v40  ;;  %v10554_v40 = vor.u32 %v5093_v35, %v5092_v59  ;;  %v8400_v59 = vld [vmem:[%s11102_s1 + $0x710] ss:$8 sps:$4 sm:$0xff]   ;;  %v5123_v46 = vsel %vm5059_vm6, %v10419_v8, %v10570_v44  ;;  %v4993_v35 = vpack.c.bf16 %v4985_v22, %v4985_v22 }
 0x1bf   : > { %2897 = vmatpush1.bf16.msra.mxu1 %v8370_v36  ;;  %v10565_v36 = vor.u32 %v2473_v41, %v2472_v32  ;;  %v2485_v32 = vrot.slane %v9200_v47, 2  ;;  %v5132_v41 = vrot.slane %v9450_v28, 3  ;;  %v8409_v47 = vld [vmem:[%s11102_s1 + $0x1020] ss:$8 sps:$4 sm:$0xff]  }
 0x1c0   : > { %5610 = vmatpush1.bf16.msra.mxu0 %v8373_v61  ;;  %2898 = vmatprep.subr.bf16.mxu1 %v8378_v56  ;;  %v8397_v61 = vld [vmem:[%s11102_s1 + $0x1000] ss:$8 sps:$4 sm:$0xff]   ;;  %v2469_v56 = vrot.slane %v9123_v49, 2  ;;  %v8405_v49 = vld [vmem:[%s11102_s1 + $0x1014] ss:$8 sps:$4 sm:$0xff]  }
 0x1c1   : > { %5611 = vmatprep.subr.bf16.mxu0 %v8381_v18  ;;  %v2343_v18 = vld [vmem:[#allocation2 + $0x108] sm:$0x7]  ;;  %v2475_v0 = vsel %vm2419_vm7, %v10417_v30, %v10565_v36  ;;  %v8403_v30 = vld [vmem:[%s11102_s1 + $0x1010] ss:$8 sps:$4 sm:$0xff]  }
 0x1c2   : > { %v2351_v43 = vpack.c.bf16 %v2343_v18, %v2343_v18  ;;  %v10641_v18 = vor.u32 %v2485_v32, %v2484_v34  ;;  %v8429_v32 = vld [vmem:[%s11102_s1 + $0x1054] ss:$8 sps:$4 sm:$0xff]  }
 0x1c3   : > { %2899 = vmatpush1.bf16.msra.mxu1 %v8376_v7  ;;  %v2431_v7 = vsel %vm2419_vm7, %v2427_v29, %v10544_v20  ;;  %v5168_v29 = vshrl.u32 %v4993_v35, 16 }
 0x1c4   : > { %5612 = vmatpush1.bf16.msra.mxu0 %v8379_v19  ;;  %2900 = vmatprep.subr.bf16.mxu1 %v8384_v16  ;;  %v5095_v19 = vsel %vm5059_vm6, %v5091_v33, %v10554_v40  ;;  %v2489_v16 = vrot.slane %v9168_v2, 2  ;;  %v10599_v2 = vor.u32 %v2469_v56, %v2468_v58  ;;  %v2510_v21 = vshrl.u32 %v2351_v43, 16  ;;  %v8417_v58 = vld [vmem:[%s11102_s1 + $0x1034] ss:$8 sps:$4 sm:$0xff]  }
 0x1c5   : > { %5613 = vmatprep.subr.bf16.mxu0 %v8387_v37  ;;  %v5136_v37 = vrot.slane %v9434_v11, 3  ;;  %v5171_v33 = vshll.u32 %v4993_v35, 16  ;;  %v5170_v26 = vrot.slane %v5168_v29, 3 }
 0x1c6   : > { %v10610_v8 = vor.u32 %v2489_v16, %v2488_v51 }
 0x1c7   : > { %2901 = vmatpush1.bf16.msra.mxu1 %v8382_v55  ;;  %v5137_v55 = vrot.slane %v9379_v53, 4  ;;  %v5173_v22 = vrot.slane %v5171_v33, 4  ;;  %v8424_v33 = vld [vmem:[%s11102_s1 + $0x750] ss:$8 sps:$4 sm:$0xff]  }
 0x1c8   : > { %5614 = vmatpush1.bf16.msra.mxu0 %v8385_v25  ;;  %2902 = vmatprep.subr.bf16.mxu1 %v8390_v63  ;;  %v8408_v25 = vld [vmem:[%s11102_s1 + $0x724] ss:$8 sps:$4 sm:$0xff]   ;;  %v2342_v63 = vld [vmem:[#allocation2 + $0x100] sm:$0x7]  ;;  %v2491_v56 = vsel %vm2419_vm7, %v10565_v36, %v10610_v8 }
 0x1c9   : > { %5615 = vmatprep.subr.bf16.mxu0 %v8393_v10  ;;  %v10612_v3 = vor.u32 %v5137_v55, %v5136_v37  ;;  %v4984_v10 = vld [vmem:[#allocation2 + $0x110] sm:$0x7f]  ;;  %v8420_v55 = vld [vmem:[%s11102_s1 + $0x744] ss:$8 sps:$4 sm:$0xff]   ;;  %v5174_v35 = vor.u32 %v5173_v22, %v5170_v26 }
 0x1ca   : > { %v8444_v26 = vld [vmem:[%s11102_s1 + $0x784] ss:$8 sps:$4 sm:$0xff]  }
 0x1cb   : > { %2903 = vmatpush1.bf16.msra.mxu1 %v8388_v48  ;;  %v2471_v48 = vsel %vm2419_vm7, %v10544_v20, %v10599_v2  ;;  %v8414_v20 = vld [vmem:[%s11102_s1 + $0x734] ss:$8 sps:$4 sm:$0xff]   ;;  %v8447_v22 = vld [vmem:[%s11102_s1 + $0x1084] ss:$8 sps:$4 sm:$0xff]  }
 0x1cc   : > { %5616 = vmatpush1.bf16.msra.mxu0 %v8391_v4  ;;  %2945 = vmatprep.subr.bf16.mxu1 %v8396_v23  ;;  %v2513_v4 = vshll.u32 %v2351_v43, 16  ;;  %v5119_v23 = vsel %vm5059_vm6, %v10554_v40, %v5118_v62  ;;  %v5139_v40 = vsel %vm5059_vm6, %v10570_v44, %v10612_v3  ;;  %v8415_v44 = vld [vmem:[%s11102_s1 + $0x1030] ss:$8 sps:$4 sm:$0xff]  }
 0x1cd   : > { %6079 = vmatprep.subr.bf16.mxu0 %v8399_v60  ;;  %v2350_v60 = vpack.c.bf16 %v2342_v63, %v2342_v63 }
 0x1ce   : > { %2905 = vmatmul.mubr.bf16.vlgmr.msra.gmra.mrb[0].mxu1 %v2431_v7  ;;  %v10643_v7 = vor.u32 %v5133_v14, %v5132_v41  ;;  %v2515_v52 = vrot.slane %v2513_v4, 2  ;;  %v2464_v41 = vrot.slane %v9323_v6, 1  ;;  %v2465_v14 = vrot.slane %v9214_v1, 2  ;;  %v8427_v1 = vld [vmem:[%s11102_s1 + $0x1050] ss:$8 sps:$4 sm:$0xff]  }
 0x1cf   : > { %5618 = vmatmul.mubr.bf16.vlgmr.msra.gmra.mrb[0].mxu0 %v5095_v19  ;;  %2946 = vmatpush1.bf16.msra.mxu1 %v8394_v24  ;;  %v4992_v24 = vpack.c.bf16 %v4984_v10, %v4984_v10  ;;  %v2512_v19 = vrot.slane %v2510_v21, 1  ;;  %v2504_v51 = vshll.u32 %v2350_v60, 16 }
 0x1d0   : > { %6080 = vmatpush1.bf16.msra.mxu0 %v8397_v61  ;;  %2947 = vmatprep.subr.bf16.mxu1 %v8402_v31  ;;  %v2341_v61 = vld [vmem:[#allocation2 + $0x18] sm:$0xf8]  ;;  %v5135_v43 = vsel %vm5059_vm6, %v5118_v62, %v10643_v7 }
 0x1d1   : > { %6081 = vmatprep.subr.bf16.mxu0 %v8405_v49  ;;  %2914 = vmatprep.mubr.bf16.mxu1 %v2475_v0  ;;  %v8412_v31 = vld [vmem:[%s11102_s1 + $0x730] ss:$8 sps:$4 sm:$0xff]   ;;  %v2349_v36 = vpack.c.bf16 %v10371_v54, %v2341_v61  ;;  %v2501_v49 = vshrl.u32 %v2350_v60, 16  ;;  %v5159_v16 = vshrl.u32 %v4992_v24, 16  ;;  %v5162_v37 = vshll.u32 %v4992_v24, 16 }
 0x1d2   : > { %5627 = vmatprep.mubr.bf16.mxu0 %v5123_v46  ;;  %v8423_v54 = vld [vmem:[%s11102_s1 + $0x1044] ss:$8 sps:$4 sm:$0xff]   ;;  %v2487_v0 = vsel %vm2419_vm7, %v10599_v2, %v10641_v18  ;;  %v2516_v46 = vor.u32 %v2515_v52, %v2512_v19  ;;  %v2506_v63 = vrot.slane %v2504_v51, 2  ;;  %v8426_v62 = vld [vmem:[%s11102_s1 + $0x754] ss:$8 sps:$4 sm:$0xff]  }
 0x1d3   : > { %2948 = vmatpush1.bf16.msra.mxu1 %v8400_v59  ;;  %v8418_v59 = vld [vmem:[%s11102_s1 + $0x740] ss:$8 sps:$4 sm:$0xff]   ;;  %v2503_v34 = vrot.slane %v2501_v49, 1  ;;  %v5161_v2 = vrot.slane %v5159_v16, 3  ;;  %v5164_v10 = vrot.slane %v5162_v37, 4 }
 0x1d4   : > { %6082 = vmatpush1.bf16.msra.mxu0 %v8403_v30  ;;  %2949 = vmatprep.subr.bf16.mxu1 %v8408_v25  ;;  %v2457_v30 = vshrl.u32 %v2349_v36, 16  ;;  %v2460_v25 = vshll.u32 %v2349_v36, 16  ;;  %v2517_v21 = vsel %vm2419_vm7, %v10610_v8, %v2516_v46  ;;  %v8432_v8 = vld [vmem:[%s11102_s1 + $0x764] ss:$8 sps:$4 sm:$0xff]   ;;  %v8430_v60 = vld [vmem:[%s11102_s1 + $0x760] ss:$8 sps:$4 sm:$0xff]  }
 0x1d5   : > { %6083 = vmatprep.subr.bf16.mxu0 %v8411_v50  ;;  %v8421_v50 = vld [vmem:[%s11102_s1 + $0x1040] ss:$8 sps:$4 sm:$0xff]   ;;  %v2507_v6 = vor.u32 %v2506_v63, %v2503_v34  ;;  %v8439_v52 = vld [vmem:[%s11102_s1 + $0x1070] ss:$8 sps:$4 sm:$0xff]   ;;  %v8450_v49 = vld [vmem:[%s11102_s1 + $0x794] ss:$8 sps:$4 sm:$0xff]  }
 0x1d6   : > { %2915 = vmatmul.mubr.bf16.gmra.mrb[4].mxu1 %v2471_v48  ;;  %v5175_v48 = vsel %vm5059_vm6, %v10612_v3, %v5174_v35  ;;  %v2459_v4 = vrot.slane %v2457_v30, 1  ;;  %v2462_v29 = vrot.slane %v2460_v25, 2  ;;  %v8435_v3 = vld [vmem:[%s11102_s1 + $0x1064] ss:$8 sps:$4 sm:$0xff]   ;;  %v8433_v24 = vld [vmem:[%s11102_s1 + $0x1060] ss:$8 sps:$4 sm:$0xff]  }
 0x1d7   : > { %5628 = vmatmul.mubr.bf16.gmra.mrb[4].mxu0 %v5119_v23  ;;  %2950 = vmatpush1.bf16.msra.mxu1 %v8406_v13  ;;  %v5165_v13 = vor.u32 %v5164_v10, %v5161_v2  ;;  %v10693_v23 = vor.u32 %v2465_v14, %v2464_v41  ;;  %v2508_v61 = vsel %vm2419_vm7, %v10641_v18, %v2507_v6  ;;  %v8597_v19 = vld [vmem:[#allocation2 + $0x48] sm:$0xff]  ;;  %v8453_v51 = vld [vmem:[%s11102_s1 + $0x1094] ss:$8 sps:$4 sm:$0xff]   ;;  %v8448_v16 = vld [vmem:[%s11102_s1 + $0x790] ss:$8 sps:$4 sm:$0xff]  }
 0x1d8   : > { %6084 = vmatpush1.bf16.msra.mxu0 %v8409_v47  ;;  %2951 = vmatprep.subr.bf16.mxu1 %v8414_v20  ;;  %v2463_v47 = vor.u32 %v2462_v29, %v2459_v4  ;;  %v8442_v36 = vld [vmem:[%s11102_s1 + $0x780] ss:$8 sps:$4 sm:$0xff]   ;;  %v8451_v37 = vld [vmem:[%s11102_s1 + $0x1090] ss:$8 sps:$4 sm:$0xff]   ;;  %v8465_v46 = vld [vmem:[%s11102_s1 + $0x10b4] ss:$8 sps:$4 sm:$0xff]  }
 0x1d9   : > { %6085 = vmatprep.subr.bf16.mxu0 %v8417_v58  ;;  %2924 = vmatprep.mubr.bf16.mxu1 %v2491_v56  ;;  %v5166_v20 = vsel %vm5059_vm6, %v10643_v7, %v5165_v13  ;;  %v8438_v58 = vld [vmem:[%s11102_s1 + $0x774] ss:$8 sps:$4 sm:$0xff]   ;;  %v8436_v7 = vld [vmem:[%s11102_s1 + $0x770] ss:$8 sps:$4 sm:$0xff]   ;;  %v8468_v25 = vld [vmem:[%s11102_s1 + $0x7c4] ss:$8 sps:$4 sm:$0xff]  }
 0x1da   : > { %5637 = vmatprep.mubr.bf16.mxu0 %v5139_v40  ;;  %v8441_v56 = vld [vmem:[%s11102_s1 + $0x1074] ss:$8 sps:$4 sm:$0xff]   ;;  %v10711_v40 = vld [vmem:[#allocation2 + $0x28] sm:$0xff]  ;;  %v2467_v18 = vsel %vm2419_vm7, %v2463_v47, %v10693_v23  ;;  %v8460_v35 = vld [vmem:[%s11102_s1 + $0x7b0] ss:$8 sps:$4 sm:$0xff]  }
 0x1db   : > { %2952 = vmatpush1.bf16.msra.mxu1 %v8412_v31  ;;  %v5679_v31 = vpack.c.bf16 %v8597_v19, %v10711_v40  ;;  %v8463_v30 = vld [vmem:[%s11102_s1 + $0x10b0] ss:$8 sps:$4 sm:$0xff]   ;;  %v8466_v63 = vld [vmem:[%s11102_s1 + $0x7c0] ss:$8 sps:$4 sm:$0xff]   ;;  %v8480_v4 = vld [vmem:[%s11102_s1 + $0x7e4] ss:$8 sps:$4 sm:$0xff]  }
 0x1dc   : > { %6086 = vmatpush1.bf16.msra.mxu0 %v8415_v44  ;;  %2953 = vmatprep.subr.bf16.mxu1 %v8420_v55  ;;  %v8445_v44 = vld [vmem:[%s11102_s1 + $0x1080] ss:$8 sps:$4 sm:$0xff]   ;;  %v8456_v55 = vld [vmem:[%s11102_s1 + $0x7a4] ss:$8 sps:$4 sm:$0xff]   ;;  %v2340_v34 = vld [vmem:[#allocation2 + $0x10] sm:$0xf8] }
 0x1dd   : > { %6087 = vmatprep.subr.bf16.mxu0 %v8423_v54  ;;  %v8459_v54 = vld [vmem:[%s11102_s1 + $0x10a4] ss:$8 sps:$4 sm:$0xff]   ;;  %v8469_v2 = vld [vmem:[%s11102_s1 + $0x10c0] ss:$8 sps:$4 sm:$0xff]   ;;  %v2348_v10 = vpack.c.bf16 %v10505_v5, %v2340_v34  ;;  %v8472_v41 = vld [vmem:[%s11102_s1 + $0x7d0] ss:$8 sps:$4 sm:$0xff]  }
 0x1de   : > { %2925 = vmatmul.mubr.bf16.gmra.mrb[8].mxu1 %v2487_v0  ;;  %v8454_v0 = vld [vmem:[%s11102_s1 + $0x7a0] ss:$8 sps:$4 sm:$0xff]   ;;  %v8475_v14 = vld [vmem:[%s11102_s1 + $0x10d0] ss:$8 sps:$4 sm:$0xff]   ;;  %v8483_v29 = vld [vmem:[%s11102_s1 + $0x10e4] ss:$8 sps:$4 sm:$0xff]  }
 0x1df   : > { %5638 = vmatmul.mubr.bf16.gmra.mrb[8].mxu0 %v5135_v43  ;;  %2954 = vmatpush1.bf16.msra.mxu1 %v8418_v59  ;;  %v8457_v43 = vld [vmem:[%s11102_s1 + $0x10a0] ss:$8 sps:$4 sm:$0xff]   ;;  %v8462_v59 = vld [vmem:[%s11102_s1 + $0x7b4] ss:$8 sps:$4 sm:$0xff]  }
 0x1e0   : > { %6088 = vmatpush1.bf16.msra.mxu0 %v8421_v50  ;;  %2955 = vmatprep.subr.bf16.mxu1 %v8426_v62  ;;  %v8471_v50 = vld [vmem:[%s11102_s1 + $0x10c4] ss:$8 sps:$4 sm:$0xff]   ;;  %v8474_v62 = vld [vmem:[%s11102_s1 + $0x7d4] ss:$8 sps:$4 sm:$0xff]  }
 0x1e1   : > { %6089 = vmatprep.subr.bf16.mxu0 %v8429_v32  ;;  %2934 = vmatprep.mubr.bf16.mxu1 %v2517_v21  ;;  %v8477_v32 = vld [vmem:[%s11102_s1 + $0x10d4] ss:$8 sps:$4 sm:$0xff]   ;;  %v2445_v21 = vshrl.u32 %v2348_v10, 16  ;;  %v10832_v19 = vld [vmem:[#allocation2 + $0x20] sm:$0xff] }
 0x1e2   : > { %5647 = vmatprep.mubr.bf16.mxu0 %v5175_v48  ;;  %v2448_v48 = vshll.u32 %v2348_v10, 16  ;;  %v8486_v47 = vld [vmem:[%s11102_s1 + $0x7f4] ss:$8 sps:$4 sm:$0xff]   ;;  %v8505_v10 = vld [vmem:[%s11102_s1 + $0x1120] ss:$8 sps:$4 sm:$0xff]  }
 0x1e3   : > { %2956 = vmatpush1.bf16.msra.mxu1 %v8424_v33  ;;  %v8478_v33 = vld [vmem:[%s11102_s1 + $0x7e0] ss:$8 sps:$4 sm:$0xff]   ;;  %v2447_v6 = vrot.slane %v2445_v21, 1  ;;  %v8510_v21 = vld [vmem:[%s11102_s1 + $0x834] ss:$8 sps:$4 sm:$0xff]  }
 0x1e4   : > { %6090 = vmatpush1.bf16.msra.mxu0 %v8427_v1  ;;  %2957 = vmatprep.subr.bf16.mxu1 %v8432_v8  ;;  %v8481_v1 = vld [vmem:[%s11102_s1 + $0x10e0] ss:$8 sps:$4 sm:$0xff]   ;;  %v2450_v13 = vrot.slane %v2448_v48, 2  ;;  %v2452_v8 = vrot.slane %v9351_v38, 1  ;;  %v8487_v38 = vld [vmem:[%s11102_s1 + $0x10f0] ss:$8 sps:$4 sm:$0xff]  }
 0x1e5   : > { %6091 = vmatprep.subr.bf16.mxu0 %v8435_v3  ;;  %v2453_v3 = vrot.slane %v9309_v17, 2  ;;  %v8484_v17 = vld [vmem:[%s11102_s1 + $0x7f0] ss:$8 sps:$4 sm:$0xff]   ;;  %v8513_v48 = vld [vmem:[%s11102_s1 + $0x1134] ss:$8 sps:$4 sm:$0xff]  }
 0x1e6   : > { %2935 = vmatmul.mubr.bf16.gmra.mrb[12].mxu1 %v2508_v61  ;;  %v2481_v61 = vrot.slane %v9326_v9, 2  ;;  %v8495_v9 = vld [vmem:[%s11102_s1 + $0x1104] ss:$8 sps:$4 sm:$0xff]  }
 0x1e7   : > { %5648 = vmatmul.mubr.bf16.gmra.mrb[12].mxu0 %v5166_v20  ;;  %2958 = vmatpush1.bf16.msra.mxu1 %v8430_v60  ;;  %v8489_v60 = vld [vmem:[%s11102_s1 + $0x10f4] ss:$8 sps:$4 sm:$0xff]   ;;  %v2451_v20 = vor.u32 %v2450_v13, %v2447_v6  ;;  %v8508_v6 = vld [vmem:[%s11102_s1 + $0x830] ss:$8 sps:$4 sm:$0xff]  }
 0x1e8   : > { %6092 = vmatpush1.bf16.msra.mxu0 %v8433_v24  ;;  %2959 = vmatprep.subr.bf16.mxu1 %v8438_v58  ;;  %v2480_v24 = vrot.slane %v9374_v57, 1  ;;  %v2454_v58 = vor.u32 %v2453_v3, %v2452_v8  ;;  %v8492_v57 = vld [vmem:[%s11102_s1 + $0x804] ss:$8 sps:$4 sm:$0xff]   ;;  %v8511_v13 = vld [vmem:[%s11102_s1 + $0x1130] ss:$8 sps:$4 sm:$0xff]  }
 0x1e9   : > { %6093 = vmatprep.subr.bf16.mxu0 %v8441_v56  ;;  %2977 = vmatprep.mubr.bf16.mxu1 %v2467_v18  ;;  %v8490_v56 = vld [vmem:[%s11102_s1 + $0x800] ss:$8 sps:$4 sm:$0xff]  }
 0x1ea   : > { %6111 = vmatprep.mubr.bf16.mxu0 %v5679_v31  ;;  %v8599_v31 = vld [vmem:[#allocation2 + $0x40] sm:$0xff] }
 0x1eb   : > { %2960 = vmatpush1.bf16.msra.mxu1 %v8436_v7  ;;  %v5678_v18 = vpack.c.bf16 %v8599_v31, %v10832_v19  ;;  %v2482_v7 = vor.u32 %v2481_v61, %v2480_v24  ;;  %v8519_v24 = vld [vmem:[%s11102_s1 + $0x1144] ss:$8 sps:$4 sm:$0xff]   ;;  %v8514_v61 = vld [vmem:[%s11102_s1 + $0x840] ss:$8 sps:$4 sm:$0xff]  }
 0x1ec   : > { %6094 = vmatpush1.bf16.msra.mxu0 %v8439_v52  ;;  %2961 = vmatprep.subr.bf16.mxu1 %v8444_v26  ;;  %v8493_v52 = vld [vmem:[%s11102_s1 + $0x1100] ss:$8 sps:$4 sm:$0xff]   ;;  %v2455_v26 = vsel %vm2419_vm7, %v2451_v20, %v2454_v58 }
 0x1ed   : > { %6095 = vmatprep.subr.bf16.mxu0 %v8447_v22  ;;  %v2476_v22 = vrot.slane %v9402_v27, 1  ;;  %v2483_v27 = vsel %vm2419_vm7, %v10693_v23, %v2482_v7  ;;  %v2344_v23 = vld [vmem:[#allocation2 + $0x110] sm:$0x7] }
 0x1ef   : > { %2962 = vmatpush1.bf16.msra.mxu1 %v8442_v36  ;;  %v2477_v36 = vrot.slane %v9354_v42, 2  ;;  %v2496_v42 = vrot.slane %v9434_v11, 1  ;;  %v8504_v11 = vld [vmem:[%s11102_s1 + $0x824] ss:$8 sps:$4 sm:$0xff]  }
 0x1f0   : > { %6096 = vmatpush1.bf16.msra.mxu0 %v8445_v44  ;;  %2963 = vmatprep.subr.bf16.mxu1 %v8450_v49  ;;  %v2345_v44 = vld [vmem:[#allocation2 + $0x118] sm:$0x7]  ;;  %v8498_v49 = vld [vmem:[%s11102_s1 + $0x814] ss:$8 sps:$4 sm:$0xff]  }
 0x1f1   : > { %6097 = vmatprep.subr.bf16.mxu0 %v8453_v51  ;;  %v8501_v51 = vld [vmem:[%s11102_s1 + $0x1114] ss:$8 sps:$4 sm:$0xff]  }
 0x1f3   : > { %2964 = vmatpush1.bf16.msra.mxu1 %v8448_v16  ;;  %v8600_v16 = vld [vmem:[#allocation2 + $0x68] sm:$0xff] }
 0x1f4   : > { %6098 = vmatpush1.bf16.msra.mxu0 %v8451_v37  ;;  %2965 = vmatprep.subr.bf16.mxu1 %v8456_v55  ;;  %v8601_v37 = vld [vmem:[#allocation2 + $0x88] sm:$0xff] }
 0x1f5   : > { %6099 = vmatprep.subr.bf16.mxu0 %v8459_v54  ;;  %v5683_v55 = vpack.c.bf16 %v8601_v37, %v8600_v16  ;;  %v2497_v54 = vrot.slane %v9379_v53, 2  ;;  %v8507_v53 = vld [vmem:[%s11102_s1 + $0x1124] ss:$8 sps:$4 sm:$0xff]   ;;  %v8523_v16 = vld [vmem:[%s11102_s1 + $0x1150] ss:$8 sps:$4 sm:$0xff]  }
 0x1f7   : > { %2966 = vmatpush1.bf16.msra.mxu1 %v8454_v0  ;;  %v2353_v0 = vpack.c.bf16 %v2345_v44, %v2345_v44 }
 0x1f8   : > { %6100 = vmatpush1.bf16.msra.mxu0 %v8457_v43  ;;  %2967 = vmatprep.subr.bf16.mxu1 %v8462_v59  ;;  %v8496_v43 = vld [vmem:[%s11102_s1 + $0x810] ss:$8 sps:$4 sm:$0xff]  }
 0x1f9   : > { %6101 = vmatprep.subr.bf16.mxu0 %v8465_v46  ;;  %v8499_v59 = vld [vmem:[%s11102_s1 + $0x1110] ss:$8 sps:$4 sm:$0xff]   ;;  %v2478_v46 = vor.u32 %v2477_v36, %v2476_v22  ;;  %v2528_v34 = vshrl.u32 %v2353_v0, 16  ;;  %v8608_v22 = vld [vmem:[#allocation2 + $0xe8] sm:$0xff] }
 0x1fb   : > { %2968 = vmatpush1.bf16.msra.mxu1 %v8460_v35  ;;  %v8602_v35 = vld [vmem:[#allocation2 + $0x60] sm:$0xff] }
 0x1fc   : > { %6102 = vmatpush1.bf16.msra.mxu0 %v8463_v30  ;;  %2969 = vmatprep.subr.bf16.mxu1 %v8468_v25  ;;  %v8603_v30 = vld [vmem:[#allocation2 + $0x80] sm:$0xff] }
 0x1fd   : > { %6103 = vmatprep.subr.bf16.mxu0 %v8471_v50  ;;  %v5682_v25 = vpack.c.bf16 %v8603_v30, %v8602_v35  ;;  %v2498_v50 = vor.u32 %v2497_v54, %v2496_v42  ;;  %v8609_v42 = vld [vmem:[#allocation2 + $0xe0] sm:$0xff]  ;;  %v8610_v35 = vld [vmem:[#allocation2 + $0x38] sm:$0xff] }
 0x1fe   : > { %v8611_v30 = vld [vmem:[#allocation2 + $0x58] sm:$0xff] }
 0x1ff   : > { %2970 = vmatpush1.bf16.msra.mxu1 %v8466_v63  ;;  %v2531_v63 = vshll.u32 %v2353_v0, 16 }
 0x200   : > { %6104 = vmatpush1.bf16.msra.mxu0 %v8469_v2  ;;  %2971 = vmatprep.subr.bf16.mxu1 %v8474_v62  ;;  %v8502_v2 = vld [vmem:[%s11102_s1 + $0x820] ss:$8 sps:$4 sm:$0xff]   ;;  %v2479_v62 = vsel %vm2419_vm7, %v2454_v58, %v2478_v46 }
 0x201   : > { %6105 = vmatprep.subr.bf16.mxu0 %v8477_v32  ;;  %v2492_v32 = vrot.slane %v9450_v28, 1  ;;  %v2499_v28 = vsel %vm2419_vm7, %v2482_v7, %v2498_v50  ;;  %v3035_v7 = vld [vmem:[#allocation2 + $0x8] sm:$0xf0] }
 0x203   : > { %2972 = vmatpush1.bf16.msra.mxu1 %v8472_v41  ;;  %v2493_v41 = vrot.slane %v9405_v12, 2  ;;  %v2533_v12 = vrot.slane %v2531_v63, 2  ;;  %v8535_v63 = vld [vmem:[%s11102_s1 + $0x1170] ss:$8 sps:$4 sm:$0xff]  }
 0x204   : > { %6106 = vmatpush1.bf16.msra.mxu0 %v8475_v14  ;;  %2973 = vmatprep.subr.bf16.mxu1 %v8480_v4  ;;  %v2352_v14 = vpack.c.bf16 %v2344_v23, %v2344_v23  ;;  %v8604_v4 = vld [vmem:[#allocation2 + $0xa8] sm:$0xff]  ;;  %v8537_v23 = vld [vmem:[%s11102_s1 + $0x1174] ss:$8 sps:$4 sm:$0xff]  }
 0x205   : > { %6107 = vmatprep.subr.bf16.mxu0 %v8483_v29  ;;  %v8605_v29 = vld [vmem:[#allocation2 + $0xc8] sm:$0xff]  ;;  %v2494_v8 = vor.u32 %v2493_v41, %v2492_v32  ;;  %v8546_v41 = vld [vmem:[%s11102_s1 + $0x894] ss:$8 sps:$4 sm:$0xff]  }
 0x206   : > { %v2519_v3 = vshrl.u32 %v2352_v14, 16  ;;  %v8541_v32 = vld [vmem:[%s11102_s1 + $0x1180] ss:$8 sps:$4 sm:$0xff]  }
 0x207   : > { %2974 = vmatpush1.bf16.msra.mxu1 %v8478_v33  ;;  %v5687_v33 = vpack.c.bf16 %v8605_v29, %v8604_v4  ;;  %v8552_v4 = vld [vmem:[%s11102_s1 + $0x8a4] ss:$8 sps:$4 sm:$0xff]  }
 0x208   : > { %6108 = vmatpush1.bf16.msra.mxu0 %v8481_v1  ;;  %2975 = vmatprep.subr.bf16.mxu1 %v8486_v47  ;;  %v2530_v1 = vrot.slane %v2528_v34, 1  ;;  %v2522_v47 = vshll.u32 %v2352_v14, 16  ;;  %v2521_v31 = vrot.slane %v2519_v3, 1  ;;  %v8532_v34 = vld [vmem:[%s11102_s1 + $0x870] ss:$8 sps:$4 sm:$0xff]  }
 0x209   : > { %6109 = vmatprep.subr.bf16.mxu0 %v8489_v60  ;;  %v8516_v60 = vld [vmem:[%s11102_s1 + $0x844] ss:$8 sps:$4 sm:$0xff]   ;;  %v8549_v14 = vld [vmem:[%s11102_s1 + $0x1194] ss:$8 sps:$4 sm:$0xff]  }
 0x20a   : > { %v2534_v58 = vor.u32 %v2533_v12, %v2530_v1  ;;  %v8555_v29 = vld [vmem:[%s11102_s1 + $0x11a4] ss:$8 sps:$4 sm:$0xff]   ;;  %v8558_v1 = vld [vmem:[%s11102_s1 + $0x8b4] ss:$8 sps:$4 sm:$0xff]  }
 0x20b   : > { %2976 = vmatpush1.bf16.msra.mxu1 %v8484_v17  ;;  %v8606_v17 = vld [vmem:[#allocation2 + $0xa0] sm:$0xff]  ;;  %v8561_v12 = vld [vmem:[%s11102_s1 + $0x11b4] ss:$8 sps:$4 sm:$0xff]  }
 0x20c   : > { %6110 = vmatpush1.bf16.msra.mxu0 %v8487_v38  ;;  %3496 = vmatprep.subr.bf16.mxu1 %v8492_v57  ;;  %v8607_v38 = vld [vmem:[#allocation2 + $0xc0] sm:$0xff]  ;;  %v5675_v57 = vld [vmem:[#allocation2 + $0x108] sm:$0xff]  ;;  %v2535_v44 = vsel %vm2419_vm7, %v2498_v50, %v2534_v58 }
 0x20d   : > { %6152 = vmatprep.subr.bf16.mxu0 %v8495_v9  ;;  %v5686_v20 = vpack.c.bf16 %v8607_v38, %v8606_v17  ;;  %v8517_v9 = vld [vmem:[%s11102_s1 + $0x1140] ss:$8 sps:$4 sm:$0xff]   ;;  %v5691_v36 = vpack.c.bf16 %v5675_v57, %v8608_v22  ;;  %v8567_v3 = vld [vmem:[%s11102_s1 + $0x11c4] ss:$8 sps:$4 sm:$0xff]   ;;  %v8568_v17 = vld [vmem:[%s11102_s1 + $0x8d0] ss:$8 sps:$4 sm:$0xff]  }
 0x20e   : > { %2978 = vmatmul.mubr.bf16.vlgmr.msra.gmra.mrb[0].mxu1 %v2455_v26  ;;  %v8525_v26 = vld [vmem:[%s11102_s1 + $0x1154] ss:$8 sps:$4 sm:$0xff]   ;;  %v8571_v38 = vld [vmem:[%s11102_s1 + $0x11d0] ss:$8 sps:$4 sm:$0xff]   ;;  %v8579_v58 = vld [vmem:[%s11102_s1 + $0x11e4] ss:$8 sps:$4 sm:$0xff]  }
 0x20f   : > { %6112 = vmatmul.mubr.bf16.vlgmr.msra.gmra.mrb[0].mxu0 %v5678_v18  ;;  %3497 = vmatpush1.bf16.msra.mxu1 %v8490_v56  ;;  %v2495_v56 = vsel %vm2419_vm7, %v2478_v46, %v2494_v8  ;;  %v2524_v18 = vrot.slane %v2522_v47, 2  ;;  %v8529_v46 = vld [vmem:[%s11102_s1 + $0x1160] ss:$8 sps:$4 sm:$0xff]   ;;  %v3034_v57 = vld [vmem:[#allocation2] sm:$0xf0]  ;;  %v3125_v22 = vrot.slane %v8915_v45, 2 }
 0x210   : > { %6153 = vmatpush1.bf16.msra.mxu0 %v8493_v52  ;;  %3498 = vmatprep.subr.bf16.mxu1 %v8498_v49  ;;  %v8522_v52 = vld [vmem:[%s11102_s1 + $0x854] ss:$8 sps:$4 sm:$0xff]   ;;  %v3043_v49 = vpack.c.bf16 %v10711_v40, %v3035_v7  ;;  %v8531_v40 = vld [vmem:[%s11102_s1 + $0x1164] ss:$8 sps:$4 sm:$0xff]   ;;  %v8562_v47 = vld [vmem:[%s11102_s1 + $0x8c0] ss:$8 sps:$4 sm:$0xff]  }
 0x211   : > { %6154 = vmatprep.subr.bf16.mxu0 %v8501_v51  ;;  %2987 = vmatprep.mubr.bf16.mxu1 %v2483_v27  ;;  %v8520_v51 = vld [vmem:[%s11102_s1 + $0x850] ss:$8 sps:$4 sm:$0xff]   ;;  %v2525_v37 = vor.u32 %v2524_v18, %v2521_v31  ;;  %v8528_v27 = vld [vmem:[%s11102_s1 + $0x864] ss:$8 sps:$4 sm:$0xff]   ;;  %v3042_v31 = vpack.c.bf16 %v10832_v19, %v3034_v57  ;;  %v8582_v18 = vld [vmem:[%s11102_s1 + $0x8f4] ss:$8 sps:$4 sm:$0xff]  }
 0x212   : > { %6121 = vmatprep.mubr.bf16.mxu0 %v5683_v55  ;;  %v5674_v55 = vld [vmem:[#allocation2 + $0x100] sm:$0xff]  ;;  %v3127_v0 = vrot.slane %v3043_v49, 2  ;;  %v8585_v7 = vld [vmem:[%s11102_s1 + $0x11f4] ss:$8 sps:$4 sm:$0xff]   ;;  %v8583_v19 = vld [vmem:[%s11102_s1 + $0x11f0] ss:$8 sps:$4 sm:$0xff]  }
 0x213   : > { %3499 = vmatpush1.bf16.msra.mxu1 %v8496_v43  ;;  %v5690_v54 = vpack.c.bf16 %v5674_v55, %v8609_v42  ;;  %v3128_v43 = vrot.slane %v8862_v15, 2  ;;  %v8612_v49 = vld [vmem:[#allocation2 + $0x50] sm:$0xff]  ;;  %v8614_v55 = vld [vmem:[#allocation2 + $0x98] sm:$0xff]  ;;  %v11112_v45 = vld [vmem:[#allocation4_spill] sm:$0xff] }
 0x214   : > { %6155 = vmatpush1.bf16.msra.mxu0 %v8499_v59  ;;  %3500 = vmatprep.subr.bf16.mxu1 %v8504_v11  ;;  %v8526_v59 = vld [vmem:[%s11102_s1 + $0x860] ss:$8 sps:$4 sm:$0xff]   ;;  %v2526_v11 = vsel %vm2419_vm7, %v2494_v8, %v2525_v37  ;;  %v8564_v8 = vld [vmem:[%s11102_s1 + $0x8c4] ss:$8 sps:$4 sm:$0xff]   ;;  %v8613_v37 = vld [vmem:[#allocation2 + $0x78] sm:$0xff]  ;;  %v3136_v42 = vrot.slane %v11112_v45, 2 }
 0x215   : > { %6156 = vmatprep.subr.bf16.mxu0 %v8507_v53  ;;  %v8534_v53 = vld [vmem:[%s11102_s1 + $0x874] ss:$8 sps:$4 sm:$0xff]   ;;  %v3129_v50 = vsel %vm3123_vm1, %v3127_v0, %v3128_v43 }
 0x216   : > { %2988 = vmatmul.mubr.bf16.gmra.mrb[4].mxu1 %v2479_v62  ;;  %v8538_v62 = vld [vmem:[%s11102_s1 + $0x880] ss:$8 sps:$4 sm:$0xff]  }
 0x217   : > { %6122 = vmatmul.mubr.bf16.gmra.mrb[4].mxu0 %v5682_v25  ;;  %3501 = vmatpush1.bf16.msra.mxu1 %v8502_v2  ;;  %v5681_v25 = vpack.c.bf16 %v8611_v30, %v8610_v35  ;;  %v8540_v2 = vld [vmem:[%s11102_s1 + $0x884] ss:$8 sps:$4 sm:$0xff]   ;;  %v8618_v35 = vld [vmem:[#allocation2 + $0xd8] sm:$0xff] }
 0x218   : > { %6157 = vmatpush1.bf16.msra.mxu0 %v8505_v10  ;;  %3502 = vmatprep.subr.bf16.mxu1 %v8510_v21  ;;  %v8543_v10 = vld [vmem:[%s11102_s1 + $0x1184] ss:$8 sps:$4 sm:$0xff]   ;;  %v8544_v21 = vld [vmem:[%s11102_s1 + $0x890] ss:$8 sps:$4 sm:$0xff]  }
 0x219   : > { %6158 = vmatprep.subr.bf16.mxu0 %v8513_v48  ;;  %2997 = vmatprep.mubr.bf16.mxu1 %v2499_v28  ;;  %v8547_v48 = vld [vmem:[%s11102_s1 + $0x1190] ss:$8 sps:$4 sm:$0xff]   ;;  %v8553_v28 = vld [vmem:[%s11102_s1 + $0x11a0] ss:$8 sps:$4 sm:$0xff]  }
 0x21a   : > { %6131 = vmatprep.mubr.bf16.mxu0 %v5687_v33  ;;  %v8550_v33 = vld [vmem:[%s11102_s1 + $0x8a0] ss:$8 sps:$4 sm:$0xff]  }
 0x21b   : > { %3503 = vmatpush1.bf16.msra.mxu1 %v8508_v6  ;;  %v8556_v6 = vld [vmem:[%s11102_s1 + $0x8b0] ss:$8 sps:$4 sm:$0xff]  }
 0x21c   : > { %6159 = vmatpush1.bf16.msra.mxu0 %v8511_v13  ;;  %3504 = vmatprep.subr.bf16.mxu1 %v8516_v60  ;;  %v8559_v13 = vld [vmem:[%s11102_s1 + $0x11b0] ss:$8 sps:$4 sm:$0xff]   ;;  %v8565_v60 = vld [vmem:[%s11102_s1 + $0x11c0] ss:$8 sps:$4 sm:$0xff]  }
 0x21d   : > { %6160 = vmatprep.subr.bf16.mxu0 %v8519_v24  ;;  %v8570_v24 = vld [vmem:[%s11102_s1 + $0x8d4] ss:$8 sps:$4 sm:$0xff]  }
 0x21e   : > { %2998 = vmatmul.mubr.bf16.gmra.mrb[8].mxu1 %v2495_v56  ;;  %v8577_v56 = vld [vmem:[%s11102_s1 + $0x11e0] ss:$8 sps:$4 sm:$0xff]  }
 0x21f   : > { %6132 = vmatmul.mubr.bf16.gmra.mrb[8].mxu0 %v5686_v20  ;;  %3505 = vmatpush1.bf16.msra.mxu1 %v8514_v61  ;;  %v8573_v61 = vld [vmem:[%s11102_s1 + $0x11d4] ss:$8 sps:$4 sm:$0xff]   ;;  %v8576_v20 = vld [vmem:[%s11102_s1 + $0x8e4] ss:$8 sps:$4 sm:$0xff]  }
 0x220   : > { %6161 = vmatpush1.bf16.msra.mxu0 %v8517_v9  ;;  %3506 = vmatprep.subr.bf16.mxu1 %v8522_v52  ;;  %v8574_v9 = vld [vmem:[%s11102_s1 + $0x8e0] ss:$8 sps:$4 sm:$0xff]   ;;  %v8580_v52 = vld [vmem:[%s11102_s1 + $0x8f0] ss:$8 sps:$4 sm:$0xff]  }
 0x221   : > { %6162 = vmatprep.subr.bf16.mxu0 %v8525_v26  ;;  %3007 = vmatprep.mubr.bf16.mxu1 %v2535_v44  ;;  %v3124_v26 = vrot.slane %v3042_v31, 2 }
 0x222   : > { %6141 = vmatprep.mubr.bf16.mxu0 %v5691_v36  ;;  %v11111_v36 = vld [vmem:[#allocation3_spill] sm:$0xff] }
 0x223   : > { %3507 = vmatpush1.bf16.msra.mxu1 %v8520_v51  ;;  %v3138_v44 = vrot.slane %v11111_v36, 2  ;;  %v5680_v51 = vpack.c.bf16 %v8612_v49, %v10505_v5  ;;  %v3039_v5 = vld [vmem:[#allocation2 + $0x108] sm:$0xf] }
 0x224   : > { %6163 = vmatpush1.bf16.msra.mxu0 %v8523_v16  ;;  %3508 = vmatprep.subr.bf16.mxu1 %v8528_v27  ;;  %v3126_v16 = vsel %vm3123_vm1, %v3124_v26, %v3125_v22  ;;  %v5685_v27 = vpack.c.bf16 %v8614_v55, %v8613_v37 }
 0x225   : > { %6164 = vmatprep.subr.bf16.mxu0 %v8531_v40  ;;  %v3139_v40 = vsel %vm3123_vm1, %v3128_v43, %v3138_v44  ;;  %v3047_v43 = vpack.c.bf16 %v3039_v5, %v3039_v5 }
 0x226   : > { %3008 = vmatmul.mubr.bf16.gmra.mrb[12].mxu1 %v2526_v11 }
 0x227   : > { %6142 = vmatmul.mubr.bf16.gmra.mrb[12].mxu0 %v5690_v54  ;;  %3509 = vmatpush1.bf16.msra.mxu1 %v8526_v59  ;;  %v11113_v54 = vld [vmem:[#allocation5_spill] sm:$0xff] }
 0x228   : > { %6165 = vmatpush1.bf16.msra.mxu0 %v8529_v46  ;;  %3510 = vmatprep.subr.bf16.mxu1 %v8534_v53  ;;  %v3146_v0 = vrot.slane %v11113_v54, 2  ;;  %v8615_v59 = vld [vmem:[#allocation2 + $0x70] sm:$0xff]  ;;  %v3137_v53 = vsel %vm3123_vm1, %v3125_v22, %v3136_v42 }
 0x229   : > { %6166 = vmatprep.subr.bf16.mxu0 %v8537_v23  ;;  %3528 = vmatprep.mubr.bf16.mxu1 %v3129_v50  ;;  %v8616_v46 = vld [vmem:[#allocation2 + $0x90] sm:$0xff]  ;;  %v8617_v23 = vld [vmem:[#allocation2 + $0xb8] sm:$0xff]  ;;  %v3154_v50 = vrot.slane %v3047_v43, 2 }
 0x22a   : > { %6184 = vmatprep.mubr.bf16.mxu0 %v5681_v25  ;;  %v5684_v11 = vpack.c.bf16 %v8616_v46, %v8615_v59  ;;  %v5689_v30 = vpack.c.bf16 %v8618_v35, %v8617_v23  ;;  %v3147_v15 = vsel %vm3123_vm1, %v3138_v44, %v3146_v0  ;;  %v3144_v25 = vrot.slane %v9181_v39, 2  ;;  %v5676_v39 = vld [vmem:[#allocation2 + $0x110] sm:$0xff] }
 0x22b   : > { %3511 = vmatpush1.bf16.msra.mxu1 %v8532_v34  ;;  %v5677_v34 = vld [vmem:[#allocation2 + $0x118] sm:$0xff] }
 0x22c   : > { %6167 = vmatpush1.bf16.msra.mxu0 %v8535_v63  ;;  %3512 = vmatprep.subr.bf16.mxu1 %v8540_v2  ;;  %v3038_v63 = vld [vmem:[#allocation2 + $0x100] sm:$0xf]  ;;  %v8619_v2 = vld [vmem:[#allocation2 + $0xb0] sm:$0xff] }
 0x22d   : > { %6168 = vmatprep.subr.bf16.mxu0 %v8543_v10  ;;  %v8620_v10 = vld [vmem:[#allocation2 + $0xd0] sm:$0xff] }
 0x22f   : > { %3513 = vmatpush1.bf16.msra.mxu1 %v8538_v62  ;;  %v5688_v62 = vpack.c.bf16 %v8620_v10, %v8619_v2 }
 0x230   : > { %6169 = vmatpush1.bf16.msra.mxu0 %v8541_v32  ;;  %3514 = vmatprep.subr.bf16.mxu1 %v8546_v41  ;;  %v3145_v32 = vsel %vm3123_vm1, %v3136_v42, %v3144_v25  ;;  %v8621_v41 = vld [vmem:[#allocation2 + $0xf8] sm:$0xff] }
 0x231   : > { %6170 = vmatprep.subr.bf16.mxu0 %v8549_v14  ;;  %v5693_v14 = vpack.c.bf16 %v5677_v34, %v8621_v41 }
 0x233   : > { %3515 = vmatpush1.bf16.msra.mxu1 %v8544_v21  ;;  %v3046_v21 = vpack.c.bf16 %v3038_v63, %v3038_v63 }
 0x234   : > { %6171 = vmatpush1.bf16.msra.mxu0 %v8547_v48  ;;  %3516 = vmatprep.subr.bf16.mxu1 %v8552_v4  ;;  %v3155_v48 = vsel %vm3123_vm1, %v3146_v0, %v3154_v50 }
 0x235   : > { %6172 = vmatprep.subr.bf16.mxu0 %v8555_v29  ;;  %v3152_v4 = vrot.slane %v3046_v21, 2  ;;  %v8622_v29 = vld [vmem:[#allocation2 + $0xf0] sm:$0xff] }
 0x237   : > { %3517 = vmatpush1.bf16.msra.mxu1 %v8550_v33  ;;  %v5692_v33 = vpack.c.bf16 %v5676_v39, %v8622_v29 }
 0x238   : > { %6173 = vmatpush1.bf16.msra.mxu0 %v8553_v28  ;;  %3518 = vmatprep.subr.bf16.mxu1 %v8558_v1  ;;  %v3153_v28 = vsel %vm3123_vm1, %v3144_v25, %v3152_v4  ;;  %v6243_v1 = vlaneseq }
 0x239   : > { %6174 = vmatprep.subr.bf16.mxu0 %v8561_v12 }
 0x23a   : > { %v6244_v12 = vshrl.u32 %v6243_v1, 7 }
 0x23b   : > { %3519 = vmatpush1.bf16.msra.mxu1 %v8556_v6 }
 0x23c   : > { %6175 = vmatpush1.bf16.msra.mxu0 %v8559_v13  ;;  %3520 = vmatprep.subr.bf16.mxu1 %v8564_v8  ;;  %v6245_v6 = vsub.s32 0, %v6244_v12  ;;  %v6241_v13 = vld [vmem:[%s11103_s2] sm:$0x3]  ;;  %v6249_v8 = vsub.s32 1, %v6244_v12 }
 0x23d   : > { %6176 = vmatprep.subr.bf16.mxu0 %v8567_v3 }
 0x23e   : > { %v11057_v3 = vrot.slane %v6241_v13, %v6245_v6 }
 0x23f   : > { %3521 = vmatpush1.bf16.msra.mxu1 %v8562_v47 }
 0x240   : > { %6177 = vmatpush1.bf16.msra.mxu0 %v8565_v60  ;;  %3522 = vmatprep.subr.bf16.mxu1 %v8570_v24  ;;  %v11059_v24 = vrot.slane %v6241_v13, %v6249_v8 }
 0x241   : > { %6178 = vmatprep.subr.bf16.mxu0 %v8573_v61 }
 0x243   : > { %3523 = vmatpush1.bf16.msra.mxu1 %v8568_v17 }
 0x244   : > { %6179 = vmatpush1.bf16.msra.mxu0 %v8571_v38  ;;  %3524 = vmatprep.subr.bf16.mxu1 %v8576_v20 }
 0x245   : > { %6180 = vmatprep.subr.bf16.mxu0 %v8579_v58 }
 0x247   : > { %3525 = vmatpush1.bf16.msra.mxu1 %v8574_v9 }
 0x248   : > { %6181 = vmatpush1.bf16.msra.mxu0 %v8577_v56  ;;  %3526 = vmatprep.subr.bf16.mxu1 %v8582_v18 }
 0x249   : > { %6182 = vmatprep.subr.bf16.mxu0 %v8585_v7 }
 0x24b   : > { %3527 = vmatpush1.bf16.msra.mxu1 %v8580_v52 }
 0x24c   : > { %6183 = vmatpush1.bf16.msra.mxu0 %v8583_v19 }
 0x24e   : > { %3529 = vmatmul.mubr.bf16.vlgmr.msra.gmra.mrb[0].mxu1 %v3126_v16 }
 0x24f   : > { %6185 = vmatmul.mubr.bf16.vlgmr.msra.gmra.mrb[0].mxu0 %v5680_v51  ;;  %3538 = vmatprep.mubr.bf16.mxu1 %v3139_v40 }
 0x250   : > { %6194 = vmatprep.mubr.bf16.mxu0 %v5685_v27 }
 0x256   : > { %3539 = vmatmul.mubr.bf16.gmra.mrb[4].mxu1 %v3137_v53 }
 0x257   : > { %6195 = vmatmul.mubr.bf16.gmra.mrb[4].mxu0 %v5684_v11  ;;  %3548 = vmatprep.mubr.bf16.mxu1 %v3147_v15 }
 0x258   : > { %6204 = vmatprep.mubr.bf16.mxu0 %v5689_v30 }
 0x25e   : > { %3549 = vmatmul.mubr.bf16.gmra.mrb[8].mxu1 %v3145_v32 }
 0x25f   : > { %6205 = vmatmul.mubr.bf16.gmra.mrb[8].mxu0 %v5688_v62  ;;  %3558 = vmatprep.mubr.bf16.mxu1 %v3155_v48 }
 0x260   : > { %6214 = vmatprep.mubr.bf16.mxu0 %v5693_v14 }
 0x266   : > { %3559 = vmatmul.mubr.bf16.gmra.mrb[12].mxu1 %v3153_v28 }
 0x267   : > { %6215 = vmatmul.mubr.bf16.gmra.mrb[12].mxu0 %v5692_v33 }
 0x321   : > { %v3530_v47 = vpop.f32.mrb[0].mxu1 }
 0x322   : > { %v6186_v60 = vpop.f32.mrb[0].mxu0  ;;  %v3532_v17 = vpop.f32.mrb[1].mxu1 }
 0x323   : > { %v7441_v61 = vadd.f32 %v6186_v60, %v3530_v47  ;;  %v6188_v38 = vpop.f32.mrb[1].mxu0  ;;  %v3534_v58 = vpop.f32.mrb[2].mxu1 }
 0x324   : > { %v7442_v20 = vadd.f32 %v6188_v38, %v3532_v17  ;;  %v6190_v57 = vpop.f32.mrb[2].mxu0  ;;  %v3536_v31 = vpop.f32.mrb[3].mxu1 }
 0x325   : > { %v6253_v9 = vadd.f32 %v7441_v61, %v11057_v3  ;;  %v7443_v56 = vadd.f32 %v6190_v57, %v3534_v58  ;;  %v6192_v18 = vpop.f32.mrb[3].mxu0 }
 0x326   : > { %v6254_v7 = vadd.f32 %v7442_v20, %v11059_v24  ;;  %v7444_v52 = vadd.f32 %v6192_v18, %v3536_v31 }
 0x327   : > { %6269 = vst [vmem:[%s11064_s28] sm:$0xff] %v6253_v9  ;;  %v6255_v19 = vadd.f32 %v7443_v56, %v11057_v3 }
 0x328   : > { %6270 = vst [vmem:[%s11064_s28 + $0x8] sm:$0xff] %v6254_v7  ;;  %v6256_v26 = vadd.f32 %v7444_v52, %v11059_v24 }
 0x329   : > { %6271 = vst [vmem:[%s11064_s28 + $0x10] sm:$0xff] %v6255_v19  ;;  %v3540_v22 = vpop.f32.mrb[4].mxu1 }
 0x32a   : > { %6272 = vst [vmem:[%s11064_s28 + $0x18] sm:$0xff] %v6256_v26  ;;  %v6196_v36 = vpop.f32.mrb[4].mxu0  ;;  %v3542_v49 = vpop.f32.mrb[5].mxu1 }
 0x32b   : > { %v7445_v44 = vadd.f32 %v6196_v36, %v3540_v22  ;;  %v6198_v51 = vpop.f32.mrb[5].mxu0  ;;  %v3544_v37 = vpop.f32.mrb[6].mxu1 }
 0x32c   : > { %v7446_v16 = vadd.f32 %v6198_v51, %v3542_v49  ;;  %v6200_v55 = vpop.f32.mrb[6].mxu0  ;;  %v3546_v45 = vpop.f32.mrb[7].mxu1 }
 0x32d   : > { %v6257_v27 = vadd.f32 %v7445_v44, %v11057_v3  ;;  %v7447_v40 = vadd.f32 %v6200_v55, %v3544_v37  ;;  %v6202_v42 = vpop.f32.mrb[7].mxu0 }
 0x32e   : > { %v6258_v54 = vadd.f32 %v7446_v16, %v11059_v24  ;;  %v7448_v0 = vadd.f32 %v6202_v42, %v3546_v45 }
 0x32f   : > { %6273 = vst [vmem:[%s11064_s28 + $0x20] sm:$0xff] %v6257_v27  ;;  %v6259_v5 = vadd.f32 %v7447_v40, %v11057_v3 }
 0x330   : > { %6274 = vst [vmem:[%s11064_s28 + $0x28] sm:$0xff] %v6258_v54  ;;  %v6260_v59 = vadd.f32 %v7448_v0, %v11059_v24 }
 0x331   : > { %6275 = vst [vmem:[%s11064_s28 + $0x30] sm:$0xff] %v6259_v5  ;;  %v3550_v46 = vpop.f32.mrb[8].mxu1 }
 0x332   : > { %6276 = vst [vmem:[%s11064_s28 + $0x38] sm:$0xff] %v6260_v59  ;;  %v6206_v11 = vpop.f32.mrb[8].mxu0  ;;  %v3552_v23 = vpop.f32.mrb[9].mxu1 }
 0x333   : > { %v7449_v53 = vadd.f32 %v6206_v11, %v3550_v46  ;;  %v6208_v35 = vpop.f32.mrb[9].mxu0  ;;  %v3554_v15 = vpop.f32.mrb[10].mxu1 }
 0x334   : > { %v7450_v30 = vadd.f32 %v6208_v35, %v3552_v23  ;;  %v6210_v43 = vpop.f32.mrb[10].mxu0  ;;  %v3556_v34 = vpop.f32.mrb[11].mxu1 }
 0x335   : > { %v6261_v25 = vadd.f32 %v7449_v53, %v11057_v3  ;;  %v7451_v50 = vadd.f32 %v6210_v43, %v3554_v15  ;;  %v6212_v63 = vpop.f32.mrb[11].mxu0 }
 0x336   : > { %v6262_v2 = vadd.f32 %v7450_v30, %v11059_v24  ;;  %v7452_v10 = vadd.f32 %v6212_v63, %v3556_v34 }
 0x337   : > { %6277 = vst [vmem:[%s11064_s28 + $0x40] sm:$0xff] %v6261_v25  ;;  %v6263_v62 = vadd.f32 %v7451_v50, %v11057_v3 }
 0x338   : > { %6278 = vst [vmem:[%s11064_s28 + $0x48] sm:$0xff] %v6262_v2  ;;  %v6264_v32 = vadd.f32 %v7452_v10, %v11059_v24 }
 0x339   : > { %6279 = vst [vmem:[%s11064_s28 + $0x50] sm:$0xff] %v6263_v62  ;;  %v3560_v41 = vpop.f32.mrb[12].mxu1 }
 0x33a   : > { %6280 = vst [vmem:[%s11064_s28 + $0x58] sm:$0xff] %v6264_v32  ;;  %v6216_v14 = vpop.f32.mrb[12].mxu0  ;;  %v3562_v48 = vpop.f32.mrb[13].mxu1 }
 0x33b   : > { %v7453_v21 = vadd.f32 %v6216_v14, %v3560_v41  ;;  %v6218_v4 = vpop.f32.mrb[13].mxu0  ;;  %v3564_v29 = vpop.f32.mrb[14].mxu1 }
 0x33c   : > { %v7454_v39 = vadd.f32 %v6218_v4, %v3562_v48  ;;  %v6220_v33 = vpop.f32.mrb[14].mxu0  ;;  %v3566_v12 = vpop.f32.mrb[15].mxu1 }
 0x33d   : > { %v6265_v28 = vadd.f32 %v7453_v21, %v11057_v3  ;;  %v7455_v1 = vadd.f32 %v6220_v33, %v3564_v29  ;;  %v6222_v6 = vpop.f32.mrb[15].mxu0 }
 0x33e   : > { %v6266_v13 = vadd.f32 %v7454_v39, %v11059_v24  ;;  %v7456_v8 = vadd.f32 %v6222_v6, %v3566_v12 }
 0x33f   : > { %6281 = vst [vmem:[%s11064_s28 + $0x60] sm:$0xff] %v6265_v28  ;;  %v6267_v47 = vadd.f32 %v7455_v1, %v11057_v3 }
 0x340   : > { %6282 = vst [vmem:[%s11064_s28 + $0x68] sm:$0xff] %v6266_v13  ;;  %v6268_v60 = vadd.f32 %v7456_v8, %v11059_v24 }
 0x341   : > { %6283 = vst [vmem:[%s11064_s28 + $0x70] sm:$0xff] %v6267_v47 }
 0x342   : > { %6284 = vst [vmem:[%s11064_s28 + $0x78] sm:$0xff] %v6268_v60 }
 0x343 PF: > { %s13_s12 = sadd.s32 1, %s8629_s12  }
 0x344   : > { %p10_p4 = scmp.ge.s32.totalorder %s13_s12, 4  }
 0x346   :  { %12 = sbr.rel (!%p10_p4) target bundleno = 1 (0x1), region = 70 }

</bundles_post_ra>
